<compile_context>
chip_gen: v6e
topology: v6e:2x2x1
jax: 0.10.0
libtpu: 0.0.40
codegen_flags: <defaults>
</compile_context>

<pallas_src>
import jax
import jax.numpy as jnp
from jax.experimental import pallas as pl
from jax.experimental.pallas import tpu as pltpu

_EPS = 1e-5  # PyTorch BatchNorm2d default


# ---------------------------------------------------------------------------
# Shared per-tile conv core: zero-padded window -> 3 column-shifted slabs ->
# 3 accumulated MXU matmuls.  Emits pre-BN conv output (bf16) + BN partials.
# ---------------------------------------------------------------------------
def _conv_tile(r, num_r, top, body, bot, w_ref, y_ref, stats_ref,
               win_ref, slab_ref):
    """top/bot: (1, W, C) halo rows (already activated by the caller if
    needed), body: (TH, W, C).  w_ref: (3, 3*C, Cout)."""
    TH, W, C = body.shape
    Cout = w_ref.shape[2]
    bdt = win_ref.dtype                       # bf16 compute dtype for the MXU

    # Halo rows that fall outside the image are zero padding.  Mask AFTER any
    # pointwise activation applied by the caller (padding is exact zero in the
    # activated domain).
    top = jnp.where(r > 0, top, jnp.zeros_like(top))
    bot = jnp.where(r < num_r - 1, bot, jnp.zeros_like(bot))

    # Assemble the zero-padded (TH+2, W+2, C) window in VMEM scratch.  Only the
    # left/right 1-column halo needs explicit zeroing; every row is rewritten
    # on every grid step (megacore-safe, no big memset).
    win_ref[:, 0:1, :] = jnp.zeros((TH + 2, 1, C), bdt)
    win_ref[:, W + 1:W + 2, :] = jnp.zeros((TH + 2, 1, C), bdt)
    win_ref[0:1, 1:W + 1, :] = top.astype(bdt)
    win_ref[1:TH + 1, 1:W + 1, :] = body.astype(bdt)
    win_ref[TH + 1:TH + 2, 1:W + 1, :] = bot.astype(bdt)

    # Column-shifted im2col: 3 copies (instead of 9).  slab row (h*W + w) holds
    # window pixel (h, w+dw) for dw = 0..2 in its dw-th C-column block.
    for dw in range(3):
        slab_ref[:, dw * C:(dw + 1) * C] = (
            win_ref[:, dw:dw + W, :].reshape((TH + 2) * W, C))

    # 3 matmuls (one per kernel row dh), K = 3*C, contiguous row slices of the
    # slab, accumulated in f32.
    acc = jnp.zeros((TH * W, Cout), jnp.float32)
    for dh in range(3):
        acc = acc + jnp.dot(slab_ref[pl.ds(dh * W, TH * W), :], w_ref[dh],
                            preferred_element_type=jnp.float32)

    # bf16 inter-pass activation (halves the biggest HBM streams).
    y_ref[0] = acc.reshape(TH, W, Cout).astype(y_ref.dtype)

    # Per-tile BN partial statistics (sum, sum-of-squares) in f32, padded to a
    # full 8-sublane block so the store is a single unmasked write.
    ssum = jnp.sum(acc, axis=0, keepdims=True)            # (1, Cout)
    ssq = jnp.sum(acc * acc, axis=0, keepdims=True)       # (1, Cout)
    row = jax.lax.broadcasted_iota(jnp.int32, (8, Cout), 0)
    stats_ref[0, 0] = jnp.where(row == 0, ssum, jnp.where(row == 1, ssq, 0.0))


# ---------------------------------------------------------------------------
# Kernel A: conv1 + partial BN1 stats.
# ---------------------------------------------------------------------------
def _conv1_kernel(top_ref, body_ref, bot_ref, w_ref, y_ref, stats_ref,
                  win_ref, slab_ref):
    r, num_r = pl.program_id(1), pl.num_programs(1)
    _conv_tile(r, num_r, top_ref[0], body_ref[0], bot_ref[0],
               w_ref, y_ref, stats_ref, win_ref, slab_ref)


# ---------------------------------------------------------------------------
# Kernel B: (folded BN1 + ReLU) on the halo'd bf16 y1 tile, then conv2 +
#           partial BN2 stats.
# ---------------------------------------------------------------------------
def _conv2_kernel(scale_ref, shift_ref, top_ref, body_ref, bot_ref, w_ref,
                  y_ref, stats_ref, win_ref, slab_ref):
    r, num_r = pl.program_id(1), pl.num_programs(1)
    scale = scale_ref[...]                     # (1, C) f32, hoisted once
    shift = shift_ref[...]

    def act(v):                                # BN1 folded + ReLU (f32, VPU)
        return jnp.maximum(v.astype(jnp.float32) * scale + shift, 0.0)

    _conv_tile(r, num_r, act(top_ref[0]), act(body_ref[0]), act(bot_ref[0]),
               w_ref, y_ref, stats_ref, win_ref, slab_ref)


# ---------------------------------------------------------------------------
# Kernel C: folded BN2 + ReLU (pointwise) with the NHWC->NCHW transpose fused
# in-kernel (XLU), writing a lane-dense (Cout, TH*W) block.
# ---------------------------------------------------------------------------
def _bn_relu_nchw_kernel(scale_ref, shift_ref, y_ref, o_ref):
    y = y_ref[0].astype(jnp.float32)                              # (TH, W, C)
    act = jnp.maximum(y * scale_ref[...] + shift_ref[...], 0.0)
    th, w, c = y.shape
    o_ref[0] = act.reshape(th * w, c).T                           # (C, TH*W)


# ---------------------------------------------------------------------------
# Wrapper helpers.
# ---------------------------------------------------------------------------
def _bn_fold(stats, count, gamma, beta):
    """stats: (N, R, 8, C) partial (sum, sumsq, pad) -> per-channel scale/shift."""
    ssum = jnp.sum(stats[:, :, 0, :], axis=(0, 1))
    ssq = jnp.sum(stats[:, :, 1, :], axis=(0, 1))
    mean = ssum / count
    var = jnp.maximum(ssq / count - mean * mean, 0.0)     # biased (train mode)
    inv = jax.lax.rsqrt(var + _EPS)
    scale = gamma * inv
    shift = beta - mean * scale
    c = scale.shape[0]
    return (scale.reshape(1, c).astype(jnp.float32),
            shift.reshape(1, c).astype(jnp.float32))


def _hw_defaults():
    """(tile_h target, vmem_limit_bytes) chosen per TPU generation."""
    try:
        info = pltpu.get_tpu_info()
        cap = int(getattr(info, "vmem_capacity_bytes", 64 << 20))
    except Exception:  # pragma: no cover - conservative fallback
        cap = 64 << 20
    if cap >= (96 << 20):          # v5e / v6e class: 128 MiB physical VMEM
        return 32, 80 << 20
    return 16, 40 << 20            # v7x class: 64 MiB physical, 2 TCs


def _largest_divisor_leq(n, cap):
    cap = max(1, min(n, cap))
    for d in range(cap, 0, -1):
        if n % d == 0:
            return d
    return 1


def vgg_block_forward(x_nchw, w1_hwio, b1, g1, be1, w2_hwio, b2, g2, be2,
                      *, tile_h=None):
    """VGGBlock forward.  x_nchw: (N, Cin, H, W) float32 -> (N, Cout, H, W)."""
    # Conv biases are cancelled exactly by the train-mode BN mean subtraction.
    del b1, b2

    th_target, vmem_limit = _hw_defaults()
    if tile_h is not None:
        th_target = tile_h

    x = jnp.transpose(x_nchw, (0, 2, 3, 1)).astype(jnp.float32)  # NCHW -> NHWC
    N, H, W, Cin = x.shape
    Cm, Cout = w1_hwio.shape[3], w2_hwio.shape[3]

    TH = _largest_divisor_leq(H, th_target)
    R = H // TH
    count = float(N * H * W)
    # TODO(synk): for R > 1 with (TH*W) % 128 != 0 the fused-NCHW pass-3 block
    # is not lane-dense; for such shapes pick TH so that TH*W % 128 == 0.

    # bf16 operands for the MXU; accumulation stays f32 inside the kernels.
    x_bf = x.astype(jnp.bfloat16)
    w1_flat = w1_hwio.reshape(3, 3 * Cin, Cm).astype(jnp.bfloat16)
    w2_flat = w2_hwio.reshape(3, 3 * Cm, Cout).astype(jnp.bfloat16)

    cparams = pltpu.CompilerParams(
        dimension_semantics=("parallel", "parallel"),
        vmem_limit_bytes=vmem_limit,
    )

    def row_specs(c):
        # Body tile + clamped 1-row top/bottom halos (masked in-kernel).
        top = pl.BlockSpec((1, 1, W, c),
                           lambda n, r: (n, jnp.maximum(r * TH - 1, 0), 0, 0))
        body = pl.BlockSpec((1, TH, W, c), lambda n, r: (n, r, 0, 0))
        bot = pl.BlockSpec((1, 1, W, c),
                           lambda n, r: (n, jnp.minimum(r * TH + TH, H - 1), 0, 0))
        return top, body, bot

    # ---------------- pass 1: conv1 + partial BN1 stats ----------------------
    t1, b1s, bo1 = row_specs(Cin)
    y1, st1 = pl.pallas_call(
        _conv1_kernel,
        grid=(N, R),
        in_specs=[t1, b1s, bo1,
                  pl.BlockSpec((3, 3 * Cin, Cm), lambda n, r: (0, 0, 0))],
        out_specs=(pl.BlockSpec((1, TH, W, Cm), lambda n, r: (n, r, 0, 0)),
                   pl.BlockSpec((1, 1, 8, Cm), lambda n, r: (n, r, 0, 0))),
        out_shape=(jax.ShapeDtypeStruct((N, H, W, Cm), jnp.bfloat16),
                   jax.ShapeDtypeStruct((N, R, 8, Cm), jnp.float32)),
        scratch_shapes=[pltpu.VMEM((TH + 2, W + 2, Cin), jnp.bfloat16),
                        pltpu.VMEM(((TH + 2) * W, 3 * Cin), jnp.bfloat16)],
        compiler_params=cparams,
    )(x_bf, x_bf, x_bf, w1_flat)

    scale1, shift1 = _bn_fold(st1, count, g1, be1)

    # -------- pass 2: BN1+ReLU (folded) -> conv2 + partial BN2 stats ---------
    t2, b2s, bo2 = row_specs(Cm)
    y2, st2 = pl.pallas_call(
        _conv2_kernel,
        grid=(N, R),
        in_specs=[pl.BlockSpec((1, Cm), lambda n, r: (0, 0)),
                  pl.BlockSpec((1, Cm), lambda n, r: (0, 0)),
                  t2, b2s, bo2,
                  pl.BlockSpec((3, 3 * Cm, Cout), lambda n, r: (0, 0, 0))],
        out_specs=(pl.BlockSpec((1, TH, W, Cout), lambda n, r: (n, r, 0, 0)),
                   pl.BlockSpec((1, 1, 8, Cout), lambda n, r: (n, r, 0, 0))),
        out_shape=(jax.ShapeDtypeStruct((N, H, W, Cout), jnp.bfloat16),
                   jax.ShapeDtypeStruct((N, R, 8, Cout), jnp.float32)),
        scratch_shapes=[pltpu.VMEM((TH + 2, W + 2, Cm), jnp.bfloat16),
                        pltpu.VMEM(((TH + 2) * W, 3 * Cm), jnp.bfloat16)],
        compiler_params=cparams,
    )(scale1, shift1, y1, y1, y1, w2_flat)

    scale2, shift2 = _bn_fold(st2, count, g2, be2)

    # ------- pass 3: BN2 + ReLU + fused NHWC->NCHW transpose (no XLA copy) ----
    out_flat = pl.pallas_call(
        _bn_relu_nchw_kernel,
        grid=(N, R),
        in_specs=[pl.BlockSpec((1, Cout), lambda n, r: (0, 0)),
                  pl.BlockSpec((1, Cout), lambda n, r: (0, 0)),
                  pl.BlockSpec((1, TH, W, Cout), lambda n, r: (n, r, 0, 0))],
        out_specs=pl.BlockSpec((1, Cout, TH * W), lambda n, r: (n, 0, r)),
        out_shape=jax.ShapeDtypeStruct((N, Cout, H * W), jnp.float32),
        compiler_params=cparams,
    )(scale2, shift2, y2)

    return out_flat.reshape(N, Cout, H, W)     # free reshape (row-major bitcast)


# ---------------------------------------------------------------------------
# Pure-JAX f32 reference (PyTorch training-mode BatchNorm semantics).
# ---------------------------------------------------------------------------
def _reference_nhwc(x, w1, b1, g1, be1, w2, b2, g2, be2):
    def conv(v, w, b):
        y = jax.lax.conv_general_dilated(
            v, w, window_strides=(1, 1), padding='SAME',
            dimension_numbers=('NHWC', 'HWIO', 'NHWC'))
        return y + b

    def bn_relu(y, g, be):
        m = jnp.mean(y, axis=(0, 1, 2), keepdims=True)
        v = jnp.mean((y - m) ** 2, axis=(0, 1, 2), keepdims=True)
        return jnp.maximum(g * (y - m) * jax.lax.rsqrt(v + _EPS) + be, 0.0)

    y = bn_relu(conv(x, w1, b1), g1, be1)
    return bn_relu(conv(y, w2, b2), g2, be2)


if __name__ == "__main__":
    # Small shapes consistent with the module: N=2, Cin=4, Cm=8, Cout=4, H=W=16.
    N, Cin, Cm, Cout, H, W = 2, 4, 8, 4, 16, 16

    key = jax.random.PRNGKey(0)
    k = jax.random.split(key, 9)

    x = jax.random.normal(k[0], (N, Cin, H, W), jnp.float32)
    # PyTorch conv weight is OIHW; HWIO is built directly for the NHWC kernel.
    w1 = 0.1 * jax.random.normal(k[1], (3, 3, Cin, Cm), jnp.float32)
    b1 = 0.1 * jax.random.normal(k[2], (Cm,), jnp.float32)
    w2 = 0.1 * jax.random.normal(k[3], (3, 3, Cm, Cout), jnp.float32)
    b2 = 0.1 * jax.random.normal(k[4], (Cout,), jnp.float32)
    g1 = 1.0 + 0.1 * jax.random.normal(k[5], (Cm,), jnp.float32)
    be1 = 0.1 * jax.random.normal(k[6], (Cm,), jnp.float32)
    g2 = 1.0 + 0.1 * jax.random.normal(k[7], (Cout,), jnp.float32)
    be2 = 0.1 * jax.random.normal(k[8], (Cout,), jnp.float32)

    fwd = jax.jit(vgg_block_forward)
    out = jax.block_until_ready(fwd(x, w1, b1, g1, be1, w2, b2, g2, be2))

    # Correctness check against the f32 reference (bf16 MXU operands + bf16
    # inter-pass activations, f32 accumulation/statistics -> modest tolerance).
    x_nhwc = jnp.transpose(x, (0, 2, 3, 1))
    ref = jnp.transpose(
        _reference_nhwc(x_nhwc, w1, b1, g1, be1, w2, b2, g2, be2), (0, 3, 1, 2))
    assert out.shape == (N, Cout, H, W)
    err = float(jnp.max(jnp.abs(out - ref)))
    assert err < 6e-2, f"max abs err = {err}"

    print("KERNEL_OK")
</pallas_src>

<mosaic_0001>
module attributes {stable_mosaic.version = 11 : i64} {
  func.func @_bn_relu_nchw_kernel(%arg0: i32, %arg1: i32, %arg2: memref<1x4xf32, #tpu.memory_space<vmem>>, %arg3: memref<1x4xf32, #tpu.memory_space<vmem>>, %arg4: memref<1x16x16x4xbf16, #tpu.memory_space<vmem>>, %arg5: memref<1x4x256xf32, #tpu.memory_space<vmem>>) attributes {dimension_semantics = [#tpu.dimension_semantics<parallel>, #tpu.dimension_semantics<parallel>], iteration_bounds = array<i64: 2, 1>, scalar_prefetch = 0 : i64, scratch_operands = 0 : i64, tpu.core_type = #tpu.core_type<tc>, window_params = [{pipeline_mode = #tpu.pipeline_mode<synchronous>, transform_indices = @transform_0, window_bounds = array<i64: 1, 4>}, {pipeline_mode = #tpu.pipeline_mode<synchronous>, transform_indices = @transform_1, window_bounds = array<i64: 1, 4>}, {transform_indices = @transform_2, window_bounds = array<i64: 1, 16, 16, 4>}, {transform_indices = @transform_3, window_bounds = array<i64: 1, 4, 256>}]} {
    %c0 = arith.constant 0 : index
    %c0_0 = arith.constant 0 : index
    %c0_1 = arith.constant 0 : index
    %c0_2 = arith.constant 0 : index
    %0 = vector.load %arg4[%c0, %c0_0, %c0_1, %c0_2] : memref<1x16x16x4xbf16, #tpu.memory_space<vmem>>, vector<1x16x16x4xbf16>
    %1 = vector.shape_cast %0 : vector<1x16x16x4xbf16> to vector<16x16x4xbf16>
    %2 = arith.extf %1 : vector<16x16x4xbf16> to vector<16x16x4xf32>
    %c0_3 = arith.constant 0 : index
    %c0_4 = arith.constant 0 : index
    %3 = vector.load %arg2[%c0_3, %c0_4] : memref<1x4xf32, #tpu.memory_space<vmem>>, vector<1x4xf32>
    %4 = vector.shape_cast %3 : vector<1x4xf32> to vector<1x1x4xf32>
    %5 = vector.broadcast %4 : vector<1x1x4xf32> to vector<16x16x4xf32>
    %6 = arith.mulf %2, %5 : vector<16x16x4xf32>
    %c0_5 = arith.constant 0 : index
    %c0_6 = arith.constant 0 : index
    %7 = vector.load %arg3[%c0_5, %c0_6] : memref<1x4xf32, #tpu.memory_space<vmem>>, vector<1x4xf32>
    %8 = vector.shape_cast %7 : vector<1x4xf32> to vector<1x1x4xf32>
    %9 = vector.broadcast %8 : vector<1x1x4xf32> to vector<16x16x4xf32>
    %10 = arith.addf %6, %9 : vector<16x16x4xf32>
    %cst = arith.constant 0.000000e+00 : f32
    %11 = vector.broadcast %cst : f32 to vector<16x16x4xf32>
    %12 = arith.maximumf %10, %11 : vector<16x16x4xf32>
    %13 = vector.shape_cast %12 : vector<16x16x4xf32> to vector<256x4xf32>
    %14 = tpu.transpose %13, [1, 0] : vector<256x4xf32> -> vector<4x256xf32>
    %c0_7 = arith.constant 0 : index
    %c0_8 = arith.constant 0 : index
    %c0_9 = arith.constant 0 : index
    %15 = vector.load %arg5[%c0_7, %c0_8, %c0_9] : memref<1x4x256xf32, #tpu.memory_space<vmem>>, vector<1x4x256xf32>
    %16 = vector.shape_cast %15 : vector<1x4x256xf32> to vector<4x256xf32>
    %17 = vector.shape_cast %14 : vector<4x256xf32> to vector<1x4x256xf32>
    tpu.vector_store %arg5[%c0_7, %c0_8, %c0_9], %17 {strides = array<i32>} : memref<1x4x256xf32, #tpu.memory_space<vmem>>, vector<1x4x256xf32>,
    return
  }
  func.func @transform_0(%arg0: i32, %arg1: i32) -> (i32, i32) {
    %c0_i32 = arith.constant 0 : i32
    %c0_i32_0 = arith.constant 0 : i32
    %c0_i32_1 = arith.constant 0 : i32
    return %c0_i32, %c0_i32_0 : i32, i32
  }
  func.func @transform_1(%arg0: i32, %arg1: i32) -> (i32, i32) {
    %c0_i32 = arith.constant 0 : i32
    %c0_i32_0 = arith.constant 0 : i32
    %c0_i32_1 = arith.constant 0 : i32
    return %c0_i32, %c0_i32_0 : i32, i32
  }
  func.func @transform_2(%arg0: i32, %arg1: i32) -> (i32, i32, i32, i32) {
    %c0_i32 = arith.constant 0 : i32
    %c0_i32_0 = arith.constant 0 : i32
    %c0_i32_1 = arith.constant 0 : i32
    return %arg0, %arg1, %c0_i32, %c0_i32_0 : i32, i32, i32, i32
  }
  func.func @transform_3(%arg0: i32, %arg1: i32) -> (i32, i32, i32) {
    %c0_i32 = arith.constant 0 : i32
    %c0_i32_0 = arith.constant 0 : i32
    return %arg0, %c0_i32, %arg1 : i32, i32, i32
  }
}

module attributes {stable_mosaic.version = 11 : i64} {
  func.func @_conv1_kernel(%arg0: i32, %arg1: i32, %arg2: memref<1x1x16x4xbf16, #tpu.memory_space<vmem>>, %arg3: memref<1x16x16x4xbf16, #tpu.memory_space<vmem>>, %arg4: memref<1x1x16x4xbf16, #tpu.memory_space<vmem>>, %arg5: memref<3x12x8xbf16, #tpu.memory_space<vmem>>, %arg6: memref<1x16x16x8xbf16, #tpu.memory_space<vmem>>, %arg7: memref<1x1x8x8xf32, #tpu.memory_space<vmem>>, %arg8: memref<18x18x4xbf16, #tpu.memory_space<vmem>>, %arg9: memref<288x12xbf16, #tpu.memory_space<vmem>>) attributes {dimension_semantics = [#tpu.dimension_semantics<parallel>, #tpu.dimension_semantics<parallel>], iteration_bounds = array<i64: 2, 1>, scalar_prefetch = 0 : i64, scratch_operands = 2 : i64, tpu.core_type = #tpu.core_type<tc>, window_params = [{transform_indices = @transform_0, window_bounds = array<i64: 1, 1, 16, 4>}, {transform_indices = @transform_1, window_bounds = array<i64: 1, 16, 16, 4>}, {transform_indices = @transform_2, window_bounds = array<i64: 1, 1, 16, 4>}, {pipeline_mode = #tpu.pipeline_mode<synchronous>, transform_indices = @transform_3, window_bounds = array<i64: 3, 12, 8>}, {transform_indices = @transform_4, window_bounds = array<i64: 1, 16, 16, 8>}, {transform_indices = @transform_5, window_bounds = array<i64: 1, 1, 8, 8>}]} {
    %c0 = arith.constant 0 : index
    %c0_0 = arith.constant 0 : index
    %c0_1 = arith.constant 0 : index
    %c0_2 = arith.constant 0 : index
    %0 = vector.load %arg2[%c0, %c0_0, %c0_1, %c0_2] : memref<1x1x16x4xbf16, #tpu.memory_space<vmem>>, vector<1x1x16x4xbf16>
    %1 = vector.shape_cast %0 : vector<1x1x16x4xbf16> to vector<1x16x4xbf16>
    %c0_3 = arith.constant 0 : index
    %c0_4 = arith.constant 0 : index
    %c0_5 = arith.constant 0 : index
    %c0_6 = arith.constant 0 : index
    %2 = vector.load %arg3[%c0_3, %c0_4, %c0_5, %c0_6] : memref<1x16x16x4xbf16, #tpu.memory_space<vmem>>, vector<1x16x16x4xbf16>
    %3 = vector.shape_cast %2 : vector<1x16x16x4xbf16> to vector<16x16x4xbf16>
    %c0_7 = arith.constant 0 : index
    %c0_8 = arith.constant 0 : index
    %c0_9 = arith.constant 0 : index
    %c0_10 = arith.constant 0 : index
    %4 = vector.load %arg4[%c0_7, %c0_8, %c0_9, %c0_10] : memref<1x1x16x4xbf16, #tpu.memory_space<vmem>>, vector<1x1x16x4xbf16>
    %5 = vector.shape_cast %4 : vector<1x1x16x4xbf16> to vector<1x16x4xbf16>
    %c0_i32 = arith.constant 0 : i32
    %6 = arith.cmpi sgt, %arg1, %c0_i32 : i32
    %cst = arith.constant 0.000000e+00 : bf16
    %7 = vector.broadcast %cst : bf16 to vector<1x16x4xbf16>
    %8 = arith.select %6, %1, %7 : vector<1x16x4xbf16>
    %c0_i32_11 = arith.constant 0 : i32
    %9 = arith.cmpi slt, %arg1, %c0_i32_11 : i32
    %cst_12 = arith.constant 0.000000e+00 : bf16
    %10 = vector.broadcast %cst_12 : bf16 to vector<1x16x4xbf16>
    %11 = arith.select %9, %5, %10 : vector<1x16x4xbf16>
    %cst_13 = arith.constant 0.000000e+00 : bf16
    %12 = vector.broadcast %cst_13 : bf16 to vector<18x1x4xbf16>
    %c0_14 = arith.constant 0 : index
    %c0_15 = arith.constant 0 : index
    %c0_16 = arith.constant 0 : index
    %13 = vector.load %arg8[%c0_14, %c0_15, %c0_16] : memref<18x18x4xbf16, #tpu.memory_space<vmem>>, vector<18x1x4xbf16>
    tpu.vector_store %arg8[%c0_14, %c0_15, %c0_16], %12 {strides = array<i32>} : memref<18x18x4xbf16, #tpu.memory_space<vmem>>, vector<18x1x4xbf16>,
    %cst_17 = arith.constant 0.000000e+00 : bf16
    %14 = vector.broadcast %cst_17 : bf16 to vector<18x1x4xbf16>
    %c0_18 = arith.constant 0 : index
    %c17 = arith.constant 17 : index
    %c0_19 = arith.constant 0 : index
    %15 = vector.load %arg8[%c0_18, %c17, %c0_19] : memref<18x18x4xbf16, #tpu.memory_space<vmem>>, vector<18x1x4xbf16>
    tpu.vector_store %arg8[%c0_18, %c17, %c0_19], %14 {strides = array<i32>} : memref<18x18x4xbf16, #tpu.memory_space<vmem>>, vector<18x1x4xbf16>,
    %c0_20 = arith.constant 0 : index
    %c1 = arith.constant 1 : index
    %c0_21 = arith.constant 0 : index
    %16 = vector.load %arg8[%c0_20, %c1, %c0_21] : memref<18x18x4xbf16, #tpu.memory_space<vmem>>, vector<1x16x4xbf16>
    tpu.vector_store %arg8[%c0_20, %c1, %c0_21], %8 {strides = array<i32>} : memref<18x18x4xbf16, #tpu.memory_space<vmem>>, vector<1x16x4xbf16>,
    %c1_22 = arith.constant 1 : index
    %c1_23 = arith.constant 1 : index
    %c0_24 = arith.constant 0 : index
    %17 = vector.load %arg8[%c1_22, %c1_23, %c0_24] : memref<18x18x4xbf16, #tpu.memory_space<vmem>>, vector<16x16x4xbf16>
    tpu.vector_store %arg8[%c1_22, %c1_23, %c0_24], %3 {strides = array<i32>} : memref<18x18x4xbf16, #tpu.memory_space<vmem>>, vector<16x16x4xbf16>,
    %c17_25 = arith.constant 17 : index
    %c1_26 = arith.constant 1 : index
    %c0_27 = arith.constant 0 : index
    %18 = vector.load %arg8[%c17_25, %c1_26, %c0_27] : memref<18x18x4xbf16, #tpu.memory_space<vmem>>, vector<1x16x4xbf16>
    tpu.vector_store %arg8[%c17_25, %c1_26, %c0_27], %11 {strides = array<i32>} : memref<18x18x4xbf16, #tpu.memory_space<vmem>>, vector<1x16x4xbf16>,
    %c0_28 = arith.constant 0 : index
    %c0_29 = arith.constant 0 : index
    %c0_30 = arith.constant 0 : index
    %19 = vector.load %arg8[%c0_28, %c0_29, %c0_30] : memref<18x18x4xbf16, #tpu.memory_space<vmem>>, vector<18x16x4xbf16>
    %20 = vector.shape_cast %19 : vector<18x16x4xbf16> to vector<288x4xbf16>
    %c0_31 = arith.constant 0 : index
    %c0_32 = arith.constant 0 : index
    %21 = vector.load %arg9[%c0_31, %c0_32] : memref<288x12xbf16, #tpu.memory_space<vmem>>, vector<288x4xbf16>
    tpu.vector_store %arg9[%c0_31, %c0_32], %20 {strides = array<i32>} : memref<288x12xbf16, #tpu.memory_space<vmem>>, vector<288x4xbf16>,
    %c0_33 = arith.constant 0 : index
    %c1_34 = arith.constant 1 : index
    %c0_35 = arith.constant 0 : index
    %22 = vector.load %arg8[%c0_33, %c1_34, %c0_35] : memref<18x18x4xbf16, #tpu.memory_space<vmem>>, vector<18x16x4xbf16>
    %23 = vector.shape_cast %22 : vector<18x16x4xbf16> to vector<288x4xbf16>
    %c0_36 = arith.constant 0 : index
    %c4 = arith.constant 4 : index
    %24 = vector.load %arg9[%c0_36, %c4] : memref<288x12xbf16, #tpu.memory_space<vmem>>, vector<288x4xbf16>
    tpu.vector_store %arg9[%c0_36, %c4], %23 {strides = array<i32>} : memref<288x12xbf16, #tpu.memory_space<vmem>>, vector<288x4xbf16>,
    %c0_37 = arith.constant 0 : index
    %c2 = arith.constant 2 : index
    %c0_38 = arith.constant 0 : index
    %25 = vector.load %arg8[%c0_37, %c2, %c0_38] : memref<18x18x4xbf16, #tpu.memory_space<vmem>>, vector<18x16x4xbf16>
    %26 = vector.shape_cast %25 : vector<18x16x4xbf16> to vector<288x4xbf16>
    %c0_39 = arith.constant 0 : index
    %c8 = arith.constant 8 : index
    %27 = vector.load %arg9[%c0_39, %c8] : memref<288x12xbf16, #tpu.memory_space<vmem>>, vector<288x4xbf16>
    tpu.vector_store %arg9[%c0_39, %c8], %26 {strides = array<i32>} : memref<288x12xbf16, #tpu.memory_space<vmem>>, vector<288x4xbf16>,
    %cst_40 = arith.constant 0.000000e+00 : f32
    %28 = vector.broadcast %cst_40 : f32 to vector<256x8xf32>
    %c0_41 = arith.constant 0 : index
    %c0_42 = arith.constant 0 : index
    %29 = vector.load %arg9[%c0_41, %c0_42] : memref<288x12xbf16, #tpu.memory_space<vmem>>, vector<256x12xbf16>
    %c0_43 = arith.constant 0 : index
    %c0_44 = arith.constant 0 : index
    %c0_45 = arith.constant 0 : index
    %30 = vector.load %arg5[%c0_43, %c0_44, %c0_45] : memref<3x12x8xbf16, #tpu.memory_space<vmem>>, vector<1x12x8xbf16>
    %31 = vector.shape_cast %30 : vector<1x12x8xbf16> to vector<12x8xbf16>
    %cst_46 = arith.constant dense<0.000000e+00> : vector<256x8xf32>
    %32 = tpu.matmul %29, %31, %cst_46 {dimension_numbers = #tpu.dot_dimension_numbers<[1], [0], [0], [1], [0, 0, 1, 1], [], []>} : vector<256x12xbf16>, vector<12x8xbf16>, vector<256x8xf32> -> vector<256x8xf32>
    %33 = arith.addf %28, %32 : vector<256x8xf32>
    %c16 = arith.constant 16 : index
    %c0_47 = arith.constant 0 : index
    %34 = vector.load %arg9[%c16, %c0_47] : memref<288x12xbf16, #tpu.memory_space<vmem>>, vector<256x12xbf16>
    %c1_48 = arith.constant 1 : index
    %c0_49 = arith.constant 0 : index
    %c0_50 = arith.constant 0 : index
    %35 = vector.load %arg5[%c1_48, %c0_49, %c0_50] : memref<3x12x8xbf16, #tpu.memory_space<vmem>>, vector<1x12x8xbf16>
    %36 = vector.shape_cast %35 : vector<1x12x8xbf16> to vector<12x8xbf16>
    %cst_51 = arith.constant dense<0.000000e+00> : vector<256x8xf32>
    %37 = tpu.matmul %34, %36, %cst_51 {dimension_numbers = #tpu.dot_dimension_numbers<[1], [0], [0], [1], [0, 0, 1, 1], [], []>} : vector<256x12xbf16>, vector<12x8xbf16>, vector<256x8xf32> -> vector<256x8xf32>
    %38 = arith.addf %33, %37 : vector<256x8xf32>
    %c32 = arith.constant 32 : index
    %c0_52 = arith.constant 0 : index
    %39 = vector.load %arg9[%c32, %c0_52] : memref<288x12xbf16, #tpu.memory_space<vmem>>, vector<256x12xbf16>
    %c2_53 = arith.constant 2 : index
    %c0_54 = arith.constant 0 : index
    %c0_55 = arith.constant 0 : index
    %40 = vector.load %arg5[%c2_53, %c0_54, %c0_55] : memref<3x12x8xbf16, #tpu.memory_space<vmem>>, vector<1x12x8xbf16>
    %41 = vector.shape_cast %40 : vector<1x12x8xbf16> to vector<12x8xbf16>
    %cst_56 = arith.constant dense<0.000000e+00> : vector<256x8xf32>
    %42 = tpu.matmul %39, %41, %cst_56 {dimension_numbers = #tpu.dot_dimension_numbers<[1], [0], [0], [1], [0, 0, 1, 1], [], []>} : vector<256x12xbf16>, vector<12x8xbf16>, vector<256x8xf32> -> vector<256x8xf32>
    %43 = arith.addf %38, %42 : vector<256x8xf32>
    %44 = vector.shape_cast %43 : vector<256x8xf32> to vector<16x16x8xf32>
    %45 = arith.truncf %44 : vector<16x16x8xf32> to vector<16x16x8xbf16>
    %c0_57 = arith.constant 0 : index
    %c0_58 = arith.constant 0 : index
    %c0_59 = arith.constant 0 : index
    %c0_60 = arith.constant 0 : index
    %46 = vector.load %arg6[%c0_57, %c0_58, %c0_59, %c0_60] : memref<1x16x16x8xbf16, #tpu.memory_space<vmem>>, vector<1x16x16x8xbf16>
    %47 = vector.shape_cast %46 : vector<1x16x16x8xbf16> to vector<16x16x8xbf16>
    %48 = vector.shape_cast %45 : vector<16x16x8xbf16> to vector<1x16x16x8xbf16>
    tpu.vector_store %arg6[%c0_57, %c0_58, %c0_59, %c0_60], %48 {strides = array<i32>} : memref<1x16x16x8xbf16, #tpu.memory_space<vmem>>, vector<1x16x16x8xbf16>,
    %cst_61 = arith.constant dense<0.000000e+00> : vector<8xf32>
    %49 = vector.multi_reduction <add>, %43, %cst_61 [0] : vector<256x8xf32> to vector<8xf32>
    %50 = vector.shape_cast %49 : vector<8xf32> to vector<1x8xf32>
    %51 = arith.mulf %43, %43 : vector<256x8xf32>
    %cst_62 = arith.constant dense<0.000000e+00> : vector<8xf32>
    %52 = vector.multi_reduction <add>, %51, %cst_62 [0] : vector<256x8xf32> to vector<8xf32>
    %53 = vector.shape_cast %52 : vector<8xf32> to vector<1x8xf32>
    %54 = tpu.iota {dimensions = array<i32: 0>} : vector<8x8xi32>
    %c0_i32_63 = arith.constant 0 : i32
    %55 = vector.broadcast %c0_i32_63 : i32 to vector<8x8xi32>
    %56 = arith.cmpi eq, %54, %55 : vector<8x8xi32>
    %c1_i32 = arith.constant 1 : i32
    %57 = vector.broadcast %c1_i32 : i32 to vector<8x8xi32>
    %58 = arith.cmpi eq, %54, %57 : vector<8x8xi32>
    %cst_64 = arith.constant 0.000000e+00 : f32
    %59 = vector.shape_cast %53 : vector<1x8xf32> to vector<1x8xf32>
    %60 = vector.broadcast %59 : vector<1x8xf32> to vector<8x8xf32>
    %61 = vector.broadcast %cst_64 : f32 to vector<8x8xf32>
    %62 = arith.select %58, %60, %61 : vector<8x8xi1>, vector<8x8xf32>
    %63 = vector.shape_cast %50 : vector<1x8xf32> to vector<1x8xf32>
    %64 = vector.broadcast %63 : vector<1x8xf32> to vector<8x8xf32>
    %65 = arith.select %56, %64, %62 : vector<8x8xi1>, vector<8x8xf32>
    %c0_65 = arith.constant 0 : index
    %c0_66 = arith.constant 0 : index
    %c0_67 = arith.constant 0 : index
    %c0_68 = arith.constant 0 : index
    %66 = vector.load %arg7[%c0_65, %c0_66, %c0_67, %c0_68] : memref<1x1x8x8xf32, #tpu.memory_space<vmem>>, vector<1x1x8x8xf32>
    %67 = vector.shape_cast %66 : vector<1x1x8x8xf32> to vector<8x8xf32>
    %68 = vector.shape_cast %65 : vector<8x8xf32> to vector<1x1x8x8xf32>
    tpu.vector_store %arg7[%c0_65, %c0_66, %c0_67, %c0_68], %68 {strides = array<i32>} : memref<1x1x8x8xf32, #tpu.memory_space<vmem>>, vector<1x1x8x8xf32>,
    return
  }
  func.func @transform_0(%arg0: i32, %arg1: i32) -> (i32, i32, i32, i32) {
    %c16_i32 = arith.constant 16 : i32
    %0 = arith.muli %arg1, %c16_i32 : i32
    %c1_i32 = arith.constant 1 : i32
    %1 = arith.subi %0, %c1_i32 : i32
    %c0_i32 = arith.constant 0 : i32
    %2 = arith.maxsi %1, %c0_i32 : i32
    %c0_i32_0 = arith.constant 0 : i32
    %c0_i32_1 = arith.constant 0 : i32
    %c0_i32_2 = arith.constant 0 : i32
    return %arg0, %2, %c0_i32_0, %c0_i32_1 : i32, i32, i32, i32
  }
  func.func @transform_1(%arg0: i32, %arg1: i32) -> (i32, i32, i32, i32) {
    %c0_i32 = arith.constant 0 : i32
    %c0_i32_0 = arith.constant 0 : i32
    %c0_i32_1 = arith.constant 0 : i32
    return %arg0, %arg1, %c0_i32, %c0_i32_0 : i32, i32, i32, i32
  }
  func.func @transform_2(%arg0: i32, %arg1: i32) -> (i32, i32, i32, i32) {
    %c16_i32 = arith.constant 16 : i32
    %0 = arith.muli %arg1, %c16_i32 : i32
    %c16_i32_0 = arith.constant 16 : i32
    %1 = arith.addi %0, %c16_i32_0 : i32
    %c15_i32 = arith.constant 15 : i32
    %2 = arith.minsi %1, %c15_i32 : i32
    %c0_i32 = arith.constant 0 : i32
    %c0_i32_1 = arith.constant 0 : i32
    %c0_i32_2 = arith.constant 0 : i32
    return %arg0, %2, %c0_i32, %c0_i32_1 : i32, i32, i32, i32
  }
  func.func @transform_3(%arg0: i32, %arg1: i32) -> (i32, i32, i32) {
    %c0_i32 = arith.constant 0 : i32
    %c0_i32_0 = arith.constant 0 : i32
    %c0_i32_1 = arith.constant 0 : i32
    %c0_i32_2 = arith.constant 0 : i32
    return %c0_i32, %c0_i32_0, %c0_i32_1 : i32, i32, i32
  }
  func.func @transform_4(%arg0: i32, %arg1: i32) -> (i32, i32, i32, i32) {
    %c0_i32 = arith.constant 0 : i32
    %c0_i32_0 = arith.constant 0 : i32
    %c0_i32_1 = arith.constant 0 : i32
    return %arg0, %arg1, %c0_i32, %c0_i32_0 : i32, i32, i32, i32
  }
  func.func @transform_5(%arg0: i32, %arg1: i32) -> (i32, i32, i32, i32) {
    %c0_i32 = arith.constant 0 : i32
    %c0_i32_0 = arith.constant 0 : i32
    %c0_i32_1 = arith.constant 0 : i32
    return %arg0, %arg1, %c0_i32, %c0_i32_0 : i32, i32, i32, i32
  }
}

module attributes {stable_mosaic.version = 11 : i64} {
  func.func @_conv2_kernel(%arg0: i32, %arg1: i32, %arg2: memref<1x8xf32, #tpu.memory_space<vmem>>, %arg3: memref<1x8xf32, #tpu.memory_space<vmem>>, %arg4: memref<1x1x16x8xbf16, #tpu.memory_space<vmem>>, %arg5: memref<1x16x16x8xbf16, #tpu.memory_space<vmem>>, %arg6: memref<1x1x16x8xbf16, #tpu.memory_space<vmem>>, %arg7: memref<3x24x4xbf16, #tpu.memory_space<vmem>>, %arg8: memref<1x16x16x4xbf16, #tpu.memory_space<vmem>>, %arg9: memref<1x1x8x4xf32, #tpu.memory_space<vmem>>, %arg10: memref<18x18x8xbf16, #tpu.memory_space<vmem>>, %arg11: memref<288x24xbf16, #tpu.memory_space<vmem>>) attributes {dimension_semantics = [#tpu.dimension_semantics<parallel>, #tpu.dimension_semantics<parallel>], iteration_bounds = array<i64: 2, 1>, scalar_prefetch = 0 : i64, scratch_operands = 2 : i64, tpu.core_type = #tpu.core_type<tc>, window_params = [{pipeline_mode = #tpu.pipeline_mode<synchronous>, transform_indices = @transform_0, window_bounds = array<i64: 1, 8>}, {pipeline_mode = #tpu.pipeline_mode<synchronous>, transform_indices = @transform_1, window_bounds = array<i64: 1, 8>}, {transform_indices = @transform_2, window_bounds = array<i64: 1, 1, 16, 8>}, {transform_indices = @transform_3, window_bounds = array<i64: 1, 16, 16, 8>}, {transform_indices = @transform_4, window_bounds = array<i64: 1, 1, 16, 8>}, {pipeline_mode = #tpu.pipeline_mode<synchronous>, transform_indices = @transform_5, window_bounds = array<i64: 3, 24, 4>}, {transform_indices = @transform_6, window_bounds = array<i64: 1, 16, 16, 4>}, {transform_indices = @transform_7, window_bounds = array<i64: 1, 1, 8, 4>}]} {
    %c0 = arith.constant 0 : index
    %c0_0 = arith.constant 0 : index
    %0 = vector.load %arg2[%c0, %c0_0] : memref<1x8xf32, #tpu.memory_space<vmem>>, vector<1x8xf32>
    %c0_1 = arith.constant 0 : index
    %c0_2 = arith.constant 0 : index
    %1 = vector.load %arg3[%c0_1, %c0_2] : memref<1x8xf32, #tpu.memory_space<vmem>>, vector<1x8xf32>
    %c0_3 = arith.constant 0 : index
    %c0_4 = arith.constant 0 : index
    %c0_5 = arith.constant 0 : index
    %c0_6 = arith.constant 0 : index
    %2 = vector.load %arg4[%c0_3, %c0_4, %c0_5, %c0_6] : memref<1x1x16x8xbf16, #tpu.memory_space<vmem>>, vector<1x1x16x8xbf16>
    %3 = vector.shape_cast %2 : vector<1x1x16x8xbf16> to vector<1x16x8xbf16>
    %4 = arith.extf %3 : vector<1x16x8xbf16> to vector<1x16x8xf32>
    %5 = vector.shape_cast %0 : vector<1x8xf32> to vector<1x1x8xf32>
    %6 = vector.broadcast %5 : vector<1x1x8xf32> to vector<1x16x8xf32>
    %7 = arith.mulf %4, %6 : vector<1x16x8xf32>
    %8 = vector.shape_cast %1 : vector<1x8xf32> to vector<1x1x8xf32>
    %9 = vector.broadcast %8 : vector<1x1x8xf32> to vector<1x16x8xf32>
    %10 = arith.addf %7, %9 : vector<1x16x8xf32>
    %cst = arith.constant 0.000000e+00 : f32
    %11 = vector.broadcast %cst : f32 to vector<1x16x8xf32>
    %12 = arith.maximumf %10, %11 : vector<1x16x8xf32>
    %c0_7 = arith.constant 0 : index
    %c0_8 = arith.constant 0 : index
    %c0_9 = arith.constant 0 : index
    %c0_10 = arith.constant 0 : index
    %13 = vector.load %arg5[%c0_7, %c0_8, %c0_9, %c0_10] : memref<1x16x16x8xbf16, #tpu.memory_space<vmem>>, vector<1x16x16x8xbf16>
    %14 = vector.shape_cast %13 : vector<1x16x16x8xbf16> to vector<16x16x8xbf16>
    %15 = arith.extf %14 : vector<16x16x8xbf16> to vector<16x16x8xf32>
    %16 = vector.shape_cast %0 : vector<1x8xf32> to vector<1x1x8xf32>
    %17 = vector.broadcast %16 : vector<1x1x8xf32> to vector<16x16x8xf32>
    %18 = arith.mulf %15, %17 : vector<16x16x8xf32>
    %19 = vector.shape_cast %1 : vector<1x8xf32> to vector<1x1x8xf32>
    %20 = vector.broadcast %19 : vector<1x1x8xf32> to vector<16x16x8xf32>
    %21 = arith.addf %18, %20 : vector<16x16x8xf32>
    %cst_11 = arith.constant 0.000000e+00 : f32
    %22 = vector.broadcast %cst_11 : f32 to vector<16x16x8xf32>
    %23 = arith.maximumf %21, %22 : vector<16x16x8xf32>
    %c0_12 = arith.constant 0 : index
    %c0_13 = arith.constant 0 : index
    %c0_14 = arith.constant 0 : index
    %c0_15 = arith.constant 0 : index
    %24 = vector.load %arg6[%c0_12, %c0_13, %c0_14, %c0_15] : memref<1x1x16x8xbf16, #tpu.memory_space<vmem>>, vector<1x1x16x8xbf16>
    %25 = vector.shape_cast %24 : vector<1x1x16x8xbf16> to vector<1x16x8xbf16>
    %26 = arith.extf %25 : vector<1x16x8xbf16> to vector<1x16x8xf32>
    %27 = vector.shape_cast %0 : vector<1x8xf32> to vector<1x1x8xf32>
    %28 = vector.broadcast %27 : vector<1x1x8xf32> to vector<1x16x8xf32>
    %29 = arith.mulf %26, %28 : vector<1x16x8xf32>
    %30 = vector.shape_cast %1 : vector<1x8xf32> to vector<1x1x8xf32>
    %31 = vector.broadcast %30 : vector<1x1x8xf32> to vector<1x16x8xf32>
    %32 = arith.addf %29, %31 : vector<1x16x8xf32>
    %cst_16 = arith.constant 0.000000e+00 : f32
    %33 = vector.broadcast %cst_16 : f32 to vector<1x16x8xf32>
    %34 = arith.maximumf %32, %33 : vector<1x16x8xf32>
    %c0_i32 = arith.constant 0 : i32
    %35 = arith.cmpi sgt, %arg1, %c0_i32 : i32
    %cst_17 = arith.constant 0.000000e+00 : f32
    %36 = vector.broadcast %cst_17 : f32 to vector<1x16x8xf32>
    %37 = arith.select %35, %12, %36 : vector<1x16x8xf32>
    %c0_i32_18 = arith.constant 0 : i32
    %38 = arith.cmpi slt, %arg1, %c0_i32_18 : i32
    %cst_19 = arith.constant 0.000000e+00 : f32
    %39 = vector.broadcast %cst_19 : f32 to vector<1x16x8xf32>
    %40 = arith.select %38, %34, %39 : vector<1x16x8xf32>
    %cst_20 = arith.constant 0.000000e+00 : bf16
    %41 = vector.broadcast %cst_20 : bf16 to vector<18x1x8xbf16>
    %c0_21 = arith.constant 0 : index
    %c0_22 = arith.constant 0 : index
    %c0_23 = arith.constant 0 : index
    %42 = vector.load %arg10[%c0_21, %c0_22, %c0_23] : memref<18x18x8xbf16, #tpu.memory_space<vmem>>, vector<18x1x8xbf16>
    tpu.vector_store %arg10[%c0_21, %c0_22, %c0_23], %41 {strides = array<i32>} : memref<18x18x8xbf16, #tpu.memory_space<vmem>>, vector<18x1x8xbf16>,
    %cst_24 = arith.constant 0.000000e+00 : bf16
    %43 = vector.broadcast %cst_24 : bf16 to vector<18x1x8xbf16>
    %c0_25 = arith.constant 0 : index
    %c17 = arith.constant 17 : index
    %c0_26 = arith.constant 0 : index
    %44 = vector.load %arg10[%c0_25, %c17, %c0_26] : memref<18x18x8xbf16, #tpu.memory_space<vmem>>, vector<18x1x8xbf16>
    tpu.vector_store %arg10[%c0_25, %c17, %c0_26], %43 {strides = array<i32>} : memref<18x18x8xbf16, #tpu.memory_space<vmem>>, vector<18x1x8xbf16>,
    %45 = arith.truncf %37 : vector<1x16x8xf32> to vector<1x16x8xbf16>
    %c0_27 = arith.constant 0 : index
    %c1 = arith.constant 1 : index
    %c0_28 = arith.constant 0 : index
    %46 = vector.load %arg10[%c0_27, %c1, %c0_28] : memref<18x18x8xbf16, #tpu.memory_space<vmem>>, vector<1x16x8xbf16>
    tpu.vector_store %arg10[%c0_27, %c1, %c0_28], %45 {strides = array<i32>} : memref<18x18x8xbf16, #tpu.memory_space<vmem>>, vector<1x16x8xbf16>,
    %47 = arith.truncf %23 : vector<16x16x8xf32> to vector<16x16x8xbf16>
    %c1_29 = arith.constant 1 : index
    %c1_30 = arith.constant 1 : index
    %c0_31 = arith.constant 0 : index
    %48 = vector.load %arg10[%c1_29, %c1_30, %c0_31] : memref<18x18x8xbf16, #tpu.memory_space<vmem>>, vector<16x16x8xbf16>
    tpu.vector_store %arg10[%c1_29, %c1_30, %c0_31], %47 {strides = array<i32>} : memref<18x18x8xbf16, #tpu.memory_space<vmem>>, vector<16x16x8xbf16>,
    %49 = arith.truncf %40 : vector<1x16x8xf32> to vector<1x16x8xbf16>
    %c17_32 = arith.constant 17 : index
    %c1_33 = arith.constant 1 : index
    %c0_34 = arith.constant 0 : index
    %50 = vector.load %arg10[%c17_32, %c1_33, %c0_34] : memref<18x18x8xbf16, #tpu.memory_space<vmem>>, vector<1x16x8xbf16>
    tpu.vector_store %arg10[%c17_32, %c1_33, %c0_34], %49 {strides = array<i32>} : memref<18x18x8xbf16, #tpu.memory_space<vmem>>, vector<1x16x8xbf16>,
    %c0_35 = arith.constant 0 : index
    %c0_36 = arith.constant 0 : index
    %c0_37 = arith.constant 0 : index
    %51 = vector.load %arg10[%c0_35, %c0_36, %c0_37] : memref<18x18x8xbf16, #tpu.memory_space<vmem>>, vector<18x16x8xbf16>
    %52 = vector.shape_cast %51 : vector<18x16x8xbf16> to vector<288x8xbf16>
    %c0_38 = arith.constant 0 : index
    %c0_39 = arith.constant 0 : index
    %53 = vector.load %arg11[%c0_38, %c0_39] : memref<288x24xbf16, #tpu.memory_space<vmem>>, vector<288x8xbf16>
    tpu.vector_store %arg11[%c0_38, %c0_39], %52 {strides = array<i32>} : memref<288x24xbf16, #tpu.memory_space<vmem>>, vector<288x8xbf16>,
    %c0_40 = arith.constant 0 : index
    %c1_41 = arith.constant 1 : index
    %c0_42 = arith.constant 0 : index
    %54 = vector.load %arg10[%c0_40, %c1_41, %c0_42] : memref<18x18x8xbf16, #tpu.memory_space<vmem>>, vector<18x16x8xbf16>
    %55 = vector.shape_cast %54 : vector<18x16x8xbf16> to vector<288x8xbf16>
    %c0_43 = arith.constant 0 : index
    %c8 = arith.constant 8 : index
    %56 = vector.load %arg11[%c0_43, %c8] : memref<288x24xbf16, #tpu.memory_space<vmem>>, vector<288x8xbf16>
    tpu.vector_store %arg11[%c0_43, %c8], %55 {strides = array<i32>} : memref<288x24xbf16, #tpu.memory_space<vmem>>, vector<288x8xbf16>,
    %c0_44 = arith.constant 0 : index
    %c2 = arith.constant 2 : index
    %c0_45 = arith.constant 0 : index
    %57 = vector.load %arg10[%c0_44, %c2, %c0_45] : memref<18x18x8xbf16, #tpu.memory_space<vmem>>, vector<18x16x8xbf16>
    %58 = vector.shape_cast %57 : vector<18x16x8xbf16> to vector<288x8xbf16>
    %c0_46 = arith.constant 0 : index
    %c16 = arith.constant 16 : index
    %59 = vector.load %arg11[%c0_46, %c16] : memref<288x24xbf16, #tpu.memory_space<vmem>>, vector<288x8xbf16>
    tpu.vector_store %arg11[%c0_46, %c16], %58 {strides = array<i32>} : memref<288x24xbf16, #tpu.memory_space<vmem>>, vector<288x8xbf16>,
    %cst_47 = arith.constant 0.000000e+00 : f32
    %60 = vector.broadcast %cst_47 : f32 to vector<256x4xf32>
    %c0_48 = arith.constant 0 : index
    %c0_49 = arith.constant 0 : index
    %61 = vector.load %arg11[%c0_48, %c0_49] : memref<288x24xbf16, #tpu.memory_space<vmem>>, vector<256x24xbf16>
    %c0_50 = arith.constant 0 : index
    %c0_51 = arith.constant 0 : index
    %c0_52 = arith.constant 0 : index
    %62 = vector.load %arg7[%c0_50, %c0_51, %c0_52] : memref<3x24x4xbf16, #tpu.memory_space<vmem>>, vector<1x24x4xbf16>
    %63 = vector.shape_cast %62 : vector<1x24x4xbf16> to vector<24x4xbf16>
    %cst_53 = arith.constant dense<0.000000e+00> : vector<256x4xf32>
    %64 = tpu.matmul %61, %63, %cst_53 {dimension_numbers = #tpu.dot_dimension_numbers<[1], [0], [0], [1], [0, 0, 1, 1], [], []>} : vector<256x24xbf16>, vector<24x4xbf16>, vector<256x4xf32> -> vector<256x4xf32>
    %65 = arith.addf %60, %64 : vector<256x4xf32>
    %c16_54 = arith.constant 16 : index
    %c0_55 = arith.constant 0 : index
    %66 = vector.load %arg11[%c16_54, %c0_55] : memref<288x24xbf16, #tpu.memory_space<vmem>>, vector<256x24xbf16>
    %c1_56 = arith.constant 1 : index
    %c0_57 = arith.constant 0 : index
    %c0_58 = arith.constant 0 : index
    %67 = vector.load %arg7[%c1_56, %c0_57, %c0_58] : memref<3x24x4xbf16, #tpu.memory_space<vmem>>, vector<1x24x4xbf16>
    %68 = vector.shape_cast %67 : vector<1x24x4xbf16> to vector<24x4xbf16>
    %cst_59 = arith.constant dense<0.000000e+00> : vector<256x4xf32>
    %69 = tpu.matmul %66, %68, %cst_59 {dimension_numbers = #tpu.dot_dimension_numbers<[1], [0], [0], [1], [0, 0, 1, 1], [], []>} : vector<256x24xbf16>, vector<24x4xbf16>, vector<256x4xf32> -> vector<256x4xf32>
    %70 = arith.addf %65, %69 : vector<256x4xf32>
    %c32 = arith.constant 32 : index
    %c0_60 = arith.constant 0 : index
    %71 = vector.load %arg11[%c32, %c0_60] : memref<288x24xbf16, #tpu.memory_space<vmem>>, vector<256x24xbf16>
    %c2_61 = arith.constant 2 : index
    %c0_62 = arith.constant 0 : index
    %c0_63 = arith.constant 0 : index
    %72 = vector.load %arg7[%c2_61, %c0_62, %c0_63] : memref<3x24x4xbf16, #tpu.memory_space<vmem>>, vector<1x24x4xbf16>
    %73 = vector.shape_cast %72 : vector<1x24x4xbf16> to vector<24x4xbf16>
    %cst_64 = arith.constant dense<0.000000e+00> : vector<256x4xf32>
    %74 = tpu.matmul %71, %73, %cst_64 {dimension_numbers = #tpu.dot_dimension_numbers<[1], [0], [0], [1], [0, 0, 1, 1], [], []>} : vector<256x24xbf16>, vector<24x4xbf16>, vector<256x4xf32> -> vector<256x4xf32>
    %75 = arith.addf %70, %74 : vector<256x4xf32>
    %76 = vector.shape_cast %75 : vector<256x4xf32> to vector<16x16x4xf32>
    %77 = arith.truncf %76 : vector<16x16x4xf32> to vector<16x16x4xbf16>
    %c0_65 = arith.constant 0 : index
    %c0_66 = arith.constant 0 : index
    %c0_67 = arith.constant 0 : index
    %c0_68 = arith.constant 0 : index
    %78 = vector.load %arg8[%c0_65, %c0_66, %c0_67, %c0_68] : memref<1x16x16x4xbf16, #tpu.memory_space<vmem>>, vector<1x16x16x4xbf16>
    %79 = vector.shape_cast %78 : vector<1x16x16x4xbf16> to vector<16x16x4xbf16>
    %80 = vector.shape_cast %77 : vector<16x16x4xbf16> to vector<1x16x16x4xbf16>
    tpu.vector_store %arg8[%c0_65, %c0_66, %c0_67, %c0_68], %80 {strides = array<i32>} : memref<1x16x16x4xbf16, #tpu.memory_space<vmem>>, vector<1x16x16x4xbf16>,
    %cst_69 = arith.constant dense<0.000000e+00> : vector<4xf32>
    %81 = vector.multi_reduction <add>, %75, %cst_69 [0] : vector<256x4xf32> to vector<4xf32>
    %82 = vector.shape_cast %81 : vector<4xf32> to vector<1x4xf32>
    %83 = arith.mulf %75, %75 : vector<256x4xf32>
    %cst_70 = arith.constant dense<0.000000e+00> : vector<4xf32>
    %84 = vector.multi_reduction <add>, %83, %cst_70 [0] : vector<256x4xf32> to vector<4xf32>
    %85 = vector.shape_cast %84 : vector<4xf32> to vector<1x4xf32>
    %86 = tpu.iota {dimensions = array<i32: 0>} : vector<8x4xi32>
    %c0_i32_71 = arith.constant 0 : i32
    %87 = vector.broadcast %c0_i32_71 : i32 to vector<8x4xi32>
    %88 = arith.cmpi eq, %86, %87 : vector<8x4xi32>
    %c1_i32 = arith.constant 1 : i32
    %89 = vector.broadcast %c1_i32 : i32 to vector<8x4xi32>
    %90 = arith.cmpi eq, %86, %89 : vector<8x4xi32>
    %cst_72 = arith.constant 0.000000e+00 : f32
    %91 = vector.shape_cast %85 : vector<1x4xf32> to vector<1x4xf32>
    %92 = vector.broadcast %91 : vector<1x4xf32> to vector<8x4xf32>
    %93 = vector.broadcast %cst_72 : f32 to vector<8x4xf32>
    %94 = arith.select %90, %92, %93 : vector<8x4xi1>, vector<8x4xf32>
    %95 = vector.shape_cast %82 : vector<1x4xf32> to vector<1x4xf32>
    %96 = vector.broadcast %95 : vector<1x4xf32> to vector<8x4xf32>
    %97 = arith.select %88, %96, %94 : vector<8x4xi1>, vector<8x4xf32>
    %c0_73 = arith.constant 0 : index
    %c0_74 = arith.constant 0 : index
    %c0_75 = arith.constant 0 : index
    %c0_76 = arith.constant 0 : index
    %98 = vector.load %arg9[%c0_73, %c0_74, %c0_75, %c0_76] : memref<1x1x8x4xf32, #tpu.memory_space<vmem>>, vector<1x1x8x4xf32>
    %99 = vector.shape_cast %98 : vector<1x1x8x4xf32> to vector<8x4xf32>
    %100 = vector.shape_cast %97 : vector<8x4xf32> to vector<1x1x8x4xf32>
    tpu.vector_store %arg9[%c0_73, %c0_74, %c0_75, %c0_76], %100 {strides = array<i32>} : memref<1x1x8x4xf32, #tpu.memory_space<vmem>>, vector<1x1x8x4xf32>,
    return
  }
  func.func @transform_0(%arg0: i32, %arg1: i32) -> (i32, i32) {
    %c0_i32 = arith.constant 0 : i32
    %c0_i32_0 = arith.constant 0 : i32
    %c0_i32_1 = arith.constant 0 : i32
    return %c0_i32, %c0_i32_0 : i32, i32
  }
  func.func @transform_1(%arg0: i32, %arg1: i32) -> (i32, i32) {
    %c0_i32 = arith.constant 0 : i32
    %c0_i32_0 = arith.constant 0 : i32
    %c0_i32_1 = arith.constant 0 : i32
    return %c0_i32, %c0_i32_0 : i32, i32
  }
  func.func @transform_2(%arg0: i32, %arg1: i32) -> (i32, i32, i32, i32) {
    %c16_i32 = arith.constant 16 : i32
    %0 = arith.muli %arg1, %c16_i32 : i32
    %c1_i32 = arith.constant 1 : i32
    %1 = arith.subi %0, %c1_i32 : i32
    %c0_i32 = arith.constant 0 : i32
    %2 = arith.maxsi %1, %c0_i32 : i32
    %c0_i32_0 = arith.constant 0 : i32
    %c0_i32_1 = arith.constant 0 : i32
    %c0_i32_2 = arith.constant 0 : i32
    return %arg0, %2, %c0_i32_0, %c0_i32_1 : i32, i32, i32, i32
  }
  func.func @transform_3(%arg0: i32, %arg1: i32) -> (i32, i32, i32, i32) {
    %c0_i32 = arith.constant 0 : i32
    %c0_i32_0 = arith.constant 0 : i32
    %c0_i32_1 = arith.constant 0 : i32
    return %arg0, %arg1, %c0_i32, %c0_i32_0 : i32, i32, i32, i32
  }
  func.func @transform_4(%arg0: i32, %arg1: i32) -> (i32, i32, i32, i32) {
    %c16_i32 = arith.constant 16 : i32
    %0 = arith.muli %arg1, %c16_i32 : i32
    %c16_i32_0 = arith.constant 16 : i32
    %1 = arith.addi %0, %c16_i32_0 : i32
    %c15_i32 = arith.constant 15 : i32
    %2 = arith.minsi %1, %c15_i32 : i32
    %c0_i32 = arith.constant 0 : i32
    %c0_i32_1 = arith.constant 0 : i32
    %c0_i32_2 = arith.constant 0 : i32
    return %arg0, %2, %c0_i32, %c0_i32_1 : i32, i32, i32, i32
  }
  func.func @transform_5(%arg0: i32, %arg1: i32) -> (i32, i32, i32) {
    %c0_i32 = arith.constant 0 : i32
    %c0_i32_0 = arith.constant 0 : i32
    %c0_i32_1 = arith.constant 0 : i32
    %c0_i32_2 = arith.constant 0 : i32
    return %c0_i32, %c0_i32_0, %c0_i32_1 : i32, i32, i32
  }
  func.func @transform_6(%arg0: i32, %arg1: i32) -> (i32, i32, i32, i32) {
    %c0_i32 = arith.constant 0 : i32
    %c0_i32_0 = arith.constant 0 : i32
    %c0_i32_1 = arith.constant 0 : i32
    return %arg0, %arg1, %c0_i32, %c0_i32_0 : i32, i32, i32, i32
  }
  func.func @transform_7(%arg0: i32, %arg1: i32) -> (i32, i32, i32, i32) {
    %c0_i32 = arith.constant 0 : i32
    %c0_i32_0 = arith.constant 0 : i32
    %c0_i32_1 = arith.constant 0 : i32
    return %arg0, %arg1, %c0_i32, %c0_i32_0 : i32, i32, i32, i32
  }
}

</mosaic_0001>

<bundles_post_ra>
// kernel: vgg_block_forward.5
= control target key start
LH: loop header
LB: loop body
LE: loop exit
PB: predicated region body
PF: predicated region fallthrough
CT: control target
= control target key end

     0   :  { %s708_s12 = smov 0   ;;  %s710_s13 = smov 0   ;;  %s837_s0 = inlined_call_operand.vmem [shape: f32[1,4], index: 0, kind: input, shape index: {}]   ;;  %s838_s1 = inlined_call_operand.vmem [shape: f32[1,4], index: 1, kind: input, shape index: {}]   ;;  %s839_s2 = inlined_call_operand.vmem [shape: bf16[2,16,16,4], index: 2, kind: input, shape index: {}]   ;;  %s840_s3 = inlined_call_operand.vmem [shape: f32[2,4,256], index: 3, kind: output, shape index: {}]  }
   0x1   :  { %s712_s14 = smov 0  }
   0x2 LB: > { %s25_s15 = sadd.s32 1, %s682_s13  ;;  %p550_p0 = scmp.ge.s32.totalorder %s686_s14, 1  ;;  %s686_s14 = sphi %s712_s14, %s13_s14   ;;  %s682_s13 = sphi %s710_s13, %s842_s13   ;;  %s678_s12 = sphi %s708_s12, %s841_s12  }
   0x3   : > { %p27_p1 = scmp.ge.s32.totalorder %s25_s15, 2  ;;  %p159_p2 = scmp.lt.s32.totalorder %s686_s14, 3 }
   0x5   : > { %s844_s15 = smov (%p27_p1, %s25_s15), 0  ;;  %p160_p3 = pnand %p550_p0, %p159_p2 }
   0x6   : > { %p193_p4 = scmp.lt.s32.totalorder (!%p160_p3), %s678_s12, 1 }
   0x7   : > { %163 = sbr.rel (%p160_p3) target bundleno = 153 (0x99), region = 32 }
   0xc   : > { %s846_s12 = smov (!%p193_p4, %s678_s12), 1  ;;  %v737_v0 = vld [vmem:[%s837_s0] ss:$0 sm:$0xff] }
   0xd   : > { %s559_s16 = sshll.u32 %s846_s12, 7  ;;  %v746_v9 = vld [vmem:[%s838_s1] ss:$0 sm:$0xff]  ;;  %s560_s24 = sshll.u32 %s846_s12, 3 }
   0xe   : > { %s732_s19 = scalar_lea.vmem %s839_s2, %s559_s16  ;;  %s211_s27 = scalar_lea.vmem %s840_s3, %s560_s24 }
   0xf   : > { %v632_v1 = vld [vmem:[%s732_s19 + $0x40] sm:$0xff]   ;;  %v633_v3 = vld [vmem:[%s732_s19 + $0x48] sm:$0xff]   ;;  %v634_v24 = vld [vmem:[%s732_s19 + $0x50] sm:$0xff]  }
  0x10   : > { %v562_v2 = vld [vmem:[%s732_s19] sm:$0xff]   ;;  %v595_v4 = vunpack.c.l.bf16 %v632_v1  ;;  %v596_v6 = vunpack.c.h.bf16 %v632_v1  ;;  %v625_v8 = vld [vmem:[%s732_s19 + $0x8] sm:$0xff]   ;;  %v599_v10 = vunpack.c.l.bf16 %v633_v3  ;;  %v600_v18 = vunpack.c.h.bf16 %v633_v3  ;;  %v626_v25 = vld [vmem:[%s732_s19 + $0x10] sm:$0xff]  }
  0x11   : > { %v563_v5 = vunpack.c.l.bf16 %v562_v2  ;;  %v564_v7 = vunpack.c.h.bf16 %v562_v2  ;;  %v567_v11 = vunpack.c.l.bf16 %v625_v8  ;;  %v568_v19 = vunpack.c.h.bf16 %v625_v8  ;;  %v635_v44 = vld [vmem:[%s732_s19 + $0x58] sm:$0xff]   ;;  %v636_v62 = vld [vmem:[%s732_s19 + $0x60] sm:$0xff]  }
  0x12   : > { %v300_v12 = vmul.f32 %v595_v4, %v737_v0  ;;  %v301_v14 = vmul.f32 %v596_v6, %v737_v0  ;;  %v302_v16 = vmul.f32 %v599_v10, %v737_v0  ;;  %v303_v30 = vmul.f32 %v600_v18, %v737_v0  ;;  %v627_v45 = vld [vmem:[%s732_s19 + $0x18] sm:$0xff]   ;;  %v628_v63 = vld [vmem:[%s732_s19 + $0x20] sm:$0xff]   ;;  %v637_v18 = vld [vmem:[%s732_s19 + $0x68] sm:$0xff]  }
  0x13   : > { %v284_v13 = vmul.f32 %v563_v5, %v737_v0  ;;  %v285_v15 = vmul.f32 %v564_v7, %v737_v0  ;;  %v286_v17 = vmul.f32 %v567_v11, %v737_v0  ;;  %v287_v31 = vmul.f32 %v568_v19, %v737_v0  ;;  %v629_v19 = vld [vmem:[%s732_s19 + $0x28] sm:$0xff]  }
  0x14   : > { %v339_v20 = vadd.f32 %v746_v9, %v300_v12  ;;  %v340_v22 = vadd.f32 %v746_v9, %v301_v14  ;;  %v341_v28 = vadd.f32 %v746_v9, %v302_v16  ;;  %v603_v34 = vunpack.c.l.bf16 %v634_v24 }
  0x15   : > { %v323_v21 = vadd.f32 %v746_v9, %v284_v13  ;;  %v324_v23 = vadd.f32 %v746_v9, %v285_v15  ;;  %v325_v29 = vadd.f32 %v746_v9, %v286_v17  ;;  %v571_v35 = vunpack.c.l.bf16 %v626_v25 }
  0x16   : > { %v371_v26 = vmax.f32 %v339_v20, 0.0  ;;  %v372_v32 = vmax.f32 %v340_v22, 0.0  ;;  %v373_v36 = vmax.f32 %v341_v28, 0.0  ;;  %v342_v37 = vadd.f32 %v746_v9, %v303_v30 }
  0x17   : > { %v355_v27 = vmax.f32 %v323_v21, 0.0  ;;  %v356_v33 = vmax.f32 %v324_v23, 0.0  ;;  %v326_v38 = vadd.f32 %v746_v9, %v287_v31  ;;  %v604_v39 = vunpack.c.h.bf16 %v634_v24 }
  0x18   : > { %419 = vxpose.xlu1.b32.start [1/16] (narrow) %v371_v26, 8  ;;  %v357_v40 = vmax.f32 %v325_v29, 0.0  ;;  %v304_v41 = vmul.f32 %v603_v34, %v737_v0  ;;  %v288_v42 = vmul.f32 %v571_v35, %v737_v0  ;;  %v572_v43 = vunpack.c.h.bf16 %v626_v25 }
  0x19   : > { %387 = vxpose.xlu0.b32.start [1/16] (narrow) %v355_v27, 8  ;;  %v374_v46 = vmax.f32 %v342_v37, 0.0  ;;  %v305_v47 = vmul.f32 %v604_v39, %v737_v0  ;;  %v607_v48 = vunpack.c.l.bf16 %v635_v44  ;;  %v575_v49 = vunpack.c.l.bf16 %v627_v45  ;;  %v630_v37 = vld [vmem:[%s732_s19 + $0x30] sm:$0xff]  }
  0x1a   : > { %v358_v50 = vmax.f32 %v326_v38, 0.0  ;;  %v343_v51 = vadd.f32 %v746_v9, %v304_v41  ;;  %v327_v52 = vadd.f32 %v746_v9, %v288_v42  ;;  %v289_v53 = vmul.f32 %v572_v43, %v737_v0 }
  0x1b   : > { %v306_v54 = vmul.f32 %v607_v48, %v737_v0  ;;  %v290_v55 = vmul.f32 %v575_v49, %v737_v0  ;;  %v608_v56 = vunpack.c.h.bf16 %v635_v44  ;;  %v576_v57 = vunpack.c.h.bf16 %v627_v45 }
  0x1c   : > { %420 = vxpose.xlu1.b32.cont [2/16] (narrow) %v372_v32, 8  ;;  %v375_v58 = vmax.f32 %v343_v51, 0.0  ;;  %v359_v59 = vmax.f32 %v327_v52, 0.0  ;;  %v344_v60 = vadd.f32 %v746_v9, %v305_v47  ;;  %v328_v61 = vadd.f32 %v746_v9, %v289_v53 }
  0x1d   : > { %388 = vxpose.xlu0.b32.cont [2/16] (narrow) %v356_v33, 8  ;;  %v345_v1 = vadd.f32 %v746_v9, %v306_v54  ;;  %v307_v2 = vmul.f32 %v608_v56, %v737_v0  ;;  %v291_v3 = vmul.f32 %v576_v57, %v737_v0  ;;  %v611_v4 = vunpack.c.l.bf16 %v636_v62  ;;  %v639_v54 = vld [vmem:[%s732_s19 + $0x78] sm:$0xff]  }
  0x1e   : > { %v376_v5 = vmax.f32 %v344_v60, 0.0  ;;  %v360_v6 = vmax.f32 %v328_v61, 0.0  ;;  %v329_v7 = vadd.f32 %v746_v9, %v290_v55  ;;  %v579_v8 = vunpack.c.l.bf16 %v628_v63  ;;  %v631_v55 = vld [vmem:[%s732_s19 + $0x38] sm:$0xff]  }
  0x1f   : > { %v377_v10 = vmax.f32 %v345_v1, 0.0  ;;  %v346_v11 = vadd.f32 %v746_v9, %v307_v2  ;;  %v330_v12 = vadd.f32 %v746_v9, %v291_v3  ;;  %v308_v13 = vmul.f32 %v611_v4, %v737_v0 }
  0x20   : > { %421 = vxpose.xlu1.b32.cont [3/16] (narrow) %v373_v36, 8  ;;  %v361_v14 = vmax.f32 %v329_v7, 0.0  ;;  %v292_v15 = vmul.f32 %v579_v8, %v737_v0  ;;  %v612_v16 = vunpack.c.h.bf16 %v636_v62  ;;  %v580_v17 = vunpack.c.h.bf16 %v628_v63  ;;  %v638_v36 = vld [vmem:[%s732_s19 + $0x70] sm:$0xff]  }
  0x21   : > { %389 = vxpose.xlu0.b32.cont [3/16] (narrow) %v357_v40, 8  ;;  %v378_v20 = vmax.f32 %v346_v11, 0.0  ;;  %v347_v21 = vadd.f32 %v746_v9, %v308_v13  ;;  %v615_v22 = vunpack.c.l.bf16 %v637_v18  ;;  %v583_v23 = vunpack.c.l.bf16 %v629_v19 }
  0x22   : > { %v362_v24 = vmax.f32 %v330_v12, 0.0  ;;  %v331_v25 = vadd.f32 %v746_v9, %v292_v15  ;;  %v309_v26 = vmul.f32 %v612_v16, %v737_v0  ;;  %v293_v27 = vmul.f32 %v580_v17, %v737_v0 }
  0x23   : > { %v310_v28 = vmul.f32 %v615_v22, %v737_v0  ;;  %v294_v29 = vmul.f32 %v583_v23, %v737_v0  ;;  %v616_v30 = vunpack.c.h.bf16 %v637_v18  ;;  %v584_v31 = vunpack.c.h.bf16 %v629_v19 }
  0x24   : > { %422 = vxpose.xlu1.b32.cont [4/16] (narrow) %v374_v46, 8  ;;  %v379_v32 = vmax.f32 %v347_v21, 0.0  ;;  %v363_v33 = vmax.f32 %v331_v25, 0.0  ;;  %v348_v34 = vadd.f32 %v746_v9, %v309_v26  ;;  %v332_v35 = vadd.f32 %v746_v9, %v293_v27 }
  0x25   : > { %390 = vxpose.xlu0.b32.cont [4/16] (narrow) %v358_v50, 8  ;;  %v349_v38 = vadd.f32 %v746_v9, %v310_v28  ;;  %v311_v39 = vmul.f32 %v616_v30, %v737_v0  ;;  %v295_v40 = vmul.f32 %v584_v31, %v737_v0  ;;  %v619_v41 = vunpack.c.l.bf16 %v638_v36 }
  0x26   : > { %v380_v42 = vmax.f32 %v348_v34, 0.0  ;;  %v364_v43 = vmax.f32 %v332_v35, 0.0  ;;  %v333_v44 = vadd.f32 %v746_v9, %v294_v29  ;;  %v587_v45 = vunpack.c.l.bf16 %v630_v37 }
  0x27   : > { %v381_v46 = vmax.f32 %v349_v38, 0.0  ;;  %v350_v47 = vadd.f32 %v746_v9, %v311_v39  ;;  %v334_v48 = vadd.f32 %v746_v9, %v295_v40  ;;  %v312_v49 = vmul.f32 %v619_v41, %v737_v0 }
  0x28   : > { %423 = vxpose.xlu1.b32.cont [5/16] (narrow) %v375_v58, 8  ;;  %v365_v50 = vmax.f32 %v333_v44, 0.0  ;;  %v296_v51 = vmul.f32 %v587_v45, %v737_v0  ;;  %v620_v52 = vunpack.c.h.bf16 %v638_v36  ;;  %v588_v53 = vunpack.c.h.bf16 %v630_v37 }
  0x29   : > { %391 = vxpose.xlu0.b32.cont [5/16] (narrow) %v359_v59, 8  ;;  %v382_v56 = vmax.f32 %v350_v47, 0.0  ;;  %v351_v57 = vadd.f32 %v746_v9, %v312_v49  ;;  %v623_v58 = vunpack.c.l.bf16 %v639_v54  ;;  %v591_v59 = vunpack.c.l.bf16 %v631_v55 }
  0x2a   : > { %v366_v60 = vmax.f32 %v334_v48, 0.0  ;;  %v335_v61 = vadd.f32 %v746_v9, %v296_v51  ;;  %v313_v62 = vmul.f32 %v620_v52, %v737_v0  ;;  %v297_v63 = vmul.f32 %v588_v53, %v737_v0 }
  0x2b   : > { %v314_v1 = vmul.f32 %v623_v58, %v737_v0  ;;  %v298_v2 = vmul.f32 %v591_v59, %v737_v0  ;;  %v624_v3 = vunpack.c.h.bf16 %v639_v54  ;;  %v592_v4 = vunpack.c.h.bf16 %v631_v55 }
  0x2c   : > { %424 = vxpose.xlu1.b32.cont [6/16] (narrow) %v376_v5, 8  ;;  %v383_v5 = vmax.f32 %v351_v57, 0.0  ;;  %v352_v7 = vadd.f32 %v746_v9, %v313_v62  ;;  %v336_v8 = vadd.f32 %v746_v9, %v297_v63 }
  0x2d   : > { %392 = vxpose.xlu0.b32.cont [6/16] (narrow) %v360_v6, 8  ;;  %v367_v6 = vmax.f32 %v335_v61, 0.0  ;;  %v299_v11 = vmul.f32 %v592_v4, %v737_v0  ;;  %v337_v15 = vadd.f32 %v746_v9, %v298_v2 }
  0x2e   : > { %v384_v12 = vmax.f32 %v352_v7, 0.0  ;;  %v368_v13 = vmax.f32 %v336_v8, 0.0 }
  0x2f   : > { %v369_v17 = vmax.f32 %v337_v15, 0.0  ;;  %v338_v19 = vadd.f32 %v746_v9, %v299_v11 }
  0x30   : > { %425 = vxpose.xlu1.b32.cont [7/16] (narrow) %v377_v10, 8  ;;  %v315_v10 = vmul.f32 %v624_v3, %v737_v0 }
  0x31   : > { %393 = vxpose.xlu0.b32.cont [7/16] (narrow) %v361_v14, 8  ;;  %v353_v14 = vadd.f32 %v746_v9, %v314_v1 }
  0x32   : > { %v354_v18 = vadd.f32 %v746_v9, %v315_v10 }
  0x33   : > { %v385_v16 = vmax.f32 %v353_v14, 0.0 }
  0x34   : > { %426 = vxpose.xlu1.b32.cont [8/16] (narrow) %v378_v20, 8  ;;  %v386_v0 = vmax.f32 %v354_v18, 0.0  ;;  %v370_v20 = vmax.f32 %v338_v19, 0.0 }
  0x35   : > { %394 = vxpose.xlu0.b32.cont [8/16] (narrow) %v362_v24, 8 }
  0x38   : > { %427 = vxpose.xlu1.b32.cont [9/16] (narrow) %v379_v32, 8 }
  0x39   : > { %395 = vxpose.xlu0.b32.cont [9/16] (narrow) %v363_v33, 8 }
  0x3c   : > { %428 = vxpose.xlu1.b32.cont [10/16] (narrow) %v380_v42, 8 }
  0x3d   : > { %396 = vxpose.xlu0.b32.cont [10/16] (narrow) %v364_v43, 8 }
  0x40   : > { %429 = vxpose.xlu1.b32.cont [11/16] (narrow) %v381_v46, 8 }
  0x41   : > { %397 = vxpose.xlu0.b32.cont [11/16] (narrow) %v365_v50, 8 }
  0x44   : > { %430 = vxpose.xlu1.b32.cont [12/16] (narrow) %v382_v56, 8 }
  0x45   : > { %398 = vxpose.xlu0.b32.cont [12/16] (narrow) %v366_v60, 8 }
  0x48   : > { %431 = vxpose.xlu1.b32.cont [13/16] (narrow) %v383_v5, 8 }
  0x49   : > { %399 = vxpose.xlu0.b32.cont [13/16] (narrow) %v367_v6, 8 }
  0x4c   : > { %432 = vxpose.xlu1.b32.cont [14/16] (narrow) %v384_v12, 8 }
  0x4d   : > { %400 = vxpose.xlu0.b32.cont [14/16] (narrow) %v368_v13, 8 }
  0x50   : > { %433 = vxpose.xlu1.b32.cont [15/16] (narrow) %v385_v16, 8 }
  0x51   : > { %401 = vxpose.xlu0.b32.cont [15/16] (narrow) %v369_v17, 8 }
  0x54   : > { %434 = vxpose.xlu1.b32.end [16/16] (narrow) %v386_v0, 8 }
  0x55   : > { %402 = vxpose.xlu0.b32.end [16/16] (narrow) %v370_v20, 8 }
  0x94   : > { %v435_v21 = vpop.trf.xlu1 }
  0x95   : > { %v403_v22 = vpop.trf.xlu0 }
  0x96   : > { %v453_v23 = vcombine.low %v403_v22, %v435_v21 }
  0x98   : > { %455 = vst [vmem:[%s211_s27] sm:$0xff] %v453_v23 }
  0x99 PF: > { %s13_s14 = sadd.s32 1, %s686_s14   ;;  %s841_s12 = smov %s682_s13 }
  0x9a   : > { %p10_p5 = scmp.ge.s32.totalorder %s13_s14, 4   ;;  %s842_s13 = smov %s844_s15 }
  0x9c   :  { %12 = sbr.rel (!%p10_p5) target bundleno = 2 (0x2), region = 62 }

// kernel: vgg_block_forward.3
= control target key start
LH: loop header
LB: loop body
LE: loop exit
PB: predicated region body
PF: predicated region fallthrough
CT: control target
= control target key end

     0   :  { %s4022_s18 = smov 0   ;;  %s4024_s19 = smov 0   ;;  %s5341_s0 = inlined_call_operand.vmem [shape: bf16[2,16,16,4], index: 0, kind: input, shape index: {}, may-alias: {0,1,2}]   ;;  %s5342_s1 = inlined_call_operand.vmem [shape: bf16[2,16,16,4], index: 1, kind: input, shape index: {}, may-alias: {0,1,2}]   ;;  %s5343_s2 = inlined_call_operand.vmem [shape: bf16[2,16,16,4], index: 2, kind: input, shape index: {}, may-alias: {0,1,2}]   ;;  %s5344_s3 = inlined_call_operand.vmem [shape: bf16[3,12,8], index: 3, kind: input, shape index: {}]   ;;  %s5345_s4 = inlined_call_operand.vmem [shape: bf16[2,16,16,8], index: 4, kind: output, shape index: {0}]   ;;  %s5346_s5 = inlined_call_operand.vmem [shape: f32[2,1,8,8], index: 5, kind: output, shape index: {1}]  }
   0x1   :  { %s4026_s0 = smov 0  }
   0x2 LB: > { %s28_s2 = sadd.s32 1, %s3983_s19  ;;  %p3556_p0 = scmp.ge.s32.totalorder %s3987_s0, 1  ;;  %s3987_s0 = sphi %s4026_s0, %s16_s0   ;;  %s3983_s19 = sphi %s4024_s19, %s5360_s19   ;;  %s3979_s18 = sphi %s4022_s18, %s5359_s18  }
   0x3   : > { %p30_p1 = scmp.ge.s32.totalorder %s28_s2, 2  ;;  %p278_p2 = scmp.lt.s32.totalorder %s3987_s0, 3 }
   0x5   : > { %s5362_s2 = smov (%p30_p1, %s28_s2), 0  ;;  %p279_p3 = pnand %p3556_p0, %p278_p2 }
   0x6   : > { %p367_p4 = scmp.lt.s32.totalorder (!%p279_p3), %s3979_s18, 1  ;;  %s3989_s24 = smov (!%p279_p3), 8  }
   0x7   : > { %282 = sbr.rel (%p279_p3) target bundleno = 642 (0x282), region = 36  ;;  %s3990_s25 = smov (!%p279_p3), 4  }
   0xc   : > { %vm461_vm0 = vcmask 24576   ;;  %vm462_vm1 = vsmask.f32 256  ;;  %v491_v0 = vld [vmem:[#allocation2 + $0x6c] sm:$0x1]  ;;  %s5364_s18 = smov (!%p367_p4, %s3979_s18), 1 }
   0xd   : > { %vm4042_vm2 = vmand %vm461_vm0, %vm462_vm1  ;;  %vm518_vm3 = vsmask.f32 7938  ;;  %v547_v3 = vld [vmem:[#allocation2 + $0x74] sm:$0x1]  ;;  %v494_v4 = vld [vmem:[#allocation2 + $0x78] sm:$0x1] }
   0xe   : > { %v492_v2 = vsel %vm4042_vm2, 0, %v491_v0  ;;  %v550_v5 = vld [vmem:[#allocation2 + $0x80] sm:$0x1]  ;;  %s3707_s20 = sshll.u32 %s5364_s18, 7  ;;  %v495_v6 = vsel %vm4042_vm2, 0, %v494_v4  ;;  %vm596_vm5 = vcmask 27648   ;;  %vm4062_vm6 = vmand %vm461_vm0, %vm518_vm3 }
   0xf   : > { %493 = vst [vmem:[#allocation2 + $0x6c] sm:$0x1] %v492_v2  ;;  %v467_v7 = vld [vmem:[#allocation2 + $0xc] sm:$0x1]  ;;  %s4058_s23 = scalar_lea.vmem %s5342_s1, %s3707_s20  ;;  %vm574_vm4 = vsmask.f32 4368  ;;  %vm4086_vm8 = vmand %vm596_vm5, %vm518_vm3  ;;  %s5171_s9 = scalar_lea.vmem %s5345_s4, %s3707_s20 }
  0x10   : > { %496 = vst [vmem:[#allocation2 + $0x78] sm:$0x1] %v495_v6  ;;  %v468_v9 = vsel %vm4042_vm2, 0, %v467_v7  ;;  %v431_v10 = vld [vmem:[%s4058_s23 + $0x40] sm:$0xf]  ;;  %v548_v12 = vsel %vm4062_vm6, 0, %v547_v3  ;;  %vm4079_vm7 = vmor %vm462_vm1, %vm574_vm4 }
  0x11   : > { %v432_v11 = vld [vmem:[%s4058_s23 + $0x44] sm:$0xf]  ;;  %v551_v13 = vsel %vm4062_vm6, 0, %v550_v5  ;;  %469 = vst [vmem:[#allocation2 + $0xc] sm:$0x1] %v468_v9  ;;  %v743_v14 = vshrl.u32 %v431_v10, 16 }
  0x12   : > { %v746_v15 = vshll.u32 %v431_v10, 16  ;;  %v751_v16 = vshrl.u32 %v432_v11, 16  ;;  %v754_v17 = vshll.u32 %v432_v11, 16  ;;  %549 = vst [vmem:[#allocation2 + $0x74] sm:$0x1] %v548_v12  ;;  %vm1881_vm9 = vcmask 1042432  }
  0x13   : > { %v433_v18 = vld [vmem:[%s4058_s23 + $0x48] sm:$0xf]  ;;  %552 = vst [vmem:[#allocation2 + $0x80] sm:$0x1] %v551_v13  ;;  %v434_v19 = vld [vmem:[%s4058_s23 + $0x4c] sm:$0xf] }
  0x14   : > { %v760_v20 = vshrl.u32 %v433_v18, 16  ;;  %v763_v21 = vshll.u32 %v433_v18, 16  ;;  %v415_v22 = vld [vmem:[%s4058_s23] sm:$0xf]  ;;  %v745_v24 = vrot.slane %v743_v14, 7  ;;  %v753_v25 = vrot.slane %v751_v16, 7 }
  0x15   : > { %v768_v26 = vshrl.u32 %v434_v19, 16  ;;  %v771_v27 = vshll.u32 %v434_v19, 16  ;;  %v416_v28 = vld [vmem:[%s4058_s23 + $0x4] sm:$0xf]  ;;  %v607_v32 = vshrl.u32 %v415_v22, 16  ;;  %v610_v33 = vshll.u32 %v415_v22, 16 }
  0x16   : > { %v983_v30 = vld [vmem:[#allocation2 + $0x6c] sm:$0xf]  ;;  %v762_v31 = vrot.slane %v760_v20, 7  ;;  %v615_v34 = vshrl.u32 %v416_v28, 16  ;;  %v748_v35 = vor.u32 %v746_v15, %v745_v24  ;;  %v749_v36 = vrot.slane %v745_v24, 4  ;;  %s3565_s10 = sshll.u32 %s5364_s18, 3 }
  0x17   : > { %v756_v37 = vor.u32 %v754_v17, %v753_v25  ;;  %v758_v38 = vrot.slane %v753_v25, 4  ;;  %v523_v39 = vld [vmem:[#allocation2 + $0x14] sm:$0x1]  ;;  %v770_v42 = vrot.slane %v768_v26, 7  ;;  %v990_v43 = vld [vmem:[#allocation2 + $0x78] sm:$0xf]  ;;  %s411_s13 = scalar_lea.vmem %s5346_s5, %s3565_s10 }
  0x18   : > { %v765_v40 = vor.u32 %v763_v21, %v762_v31  ;;  %v766_v41 = vrot.slane %v762_v31, 4  ;;  %v609_v44 = vrot.slane %v607_v32, 7  ;;  %v470_v45 = vld [vmem:[#allocation2 + $0x18] sm:$0x1]  ;;  %v984_v47 = vsel %vm4086_vm8, %v748_v35, %v983_v30  ;;  %v927_v50 = vld [vmem:[#allocation2 + $0xc] sm:$0xf] }
  0x19   : > { %v757_v46 = vsel %vm4079_vm7, %v749_v36, %v756_v37  ;;  %v4094_v48 = vrot.slane %v615_v34, 7  ;;  %v618_v49 = vshll.u32 %v416_v28, 16  ;;  %v417_v51 = vld [vmem:[%s4058_s23 + $0x8] sm:$0xf]  ;;  %985 = vst [vmem:[#allocation2 + $0x6c] sm:$0xf] %v984_v47  ;;  %v773_v53 = vor.u32 %v771_v27, %v770_v42 }
  0x1a   : > { %986 = vst.msk [vmem:[#allocation2 + $0x70] sm:$0xf] %vm596_vm5, %v757_v46  ;;  %v987_v52 = vld [vmem:[#allocation2 + $0x74] sm:$0x1]  ;;  %v991_v54 = vsel %vm4086_vm8, %v765_v40, %v990_v43  ;;  %v775_v55 = vrot.slane %v770_v42, 4  ;;  %v612_v57 = vor.u32 %v610_v33, %v609_v44  ;;  %v613_v59 = vrot.slane %v609_v44, 4 }
  0x1b   : > { %v994_v56 = vld [vmem:[#allocation2 + $0x80] sm:$0x1]  ;;  %v988_v58 = vsel %vm4042_vm2, %v758_v38, %v987_v52  ;;  %992 = vst [vmem:[#allocation2 + $0x78] sm:$0xf] %v991_v54  ;;  %v620_v60 = vor.u32 %v618_v49, %v4094_v48  ;;  %v524_v61 = vsel %vm4062_vm6, 0, %v523_v39  ;;  %v774_v0 = vsel %vm4079_vm7, %v766_v41, %v773_v53 }
  0x1c   : > { %v418_v62 = vld [vmem:[%s4058_s23 + $0xc] sm:$0xf]  ;;  %v526_v63 = vld [vmem:[#allocation2 + $0x20] sm:$0x1]  ;;  %989 = vst [vmem:[#allocation2 + $0x74] sm:$0x1] %v988_v58  ;;  %v995_v2 = vsel %vm4042_vm2, %v775_v55, %v994_v56  ;;  %v928_v3 = vsel %vm4086_vm8, %v612_v57, %v927_v50 }
  0x1d   : > { %525 = vst [vmem:[#allocation2 + $0x14] sm:$0x1] %v524_v61  ;;  %v4113_v4 = vld [vmem:[%s4058_s23 + $0x50] sm:$0xf]  ;;  %v553_v5 = vld [vmem:[#allocation2 + $0x8c] sm:$0x1]  ;;  %v621_v6 = vsel %vm4079_vm7, %v613_v59, %v620_v60 }
  0x1e   : > { %993 = vst.msk [vmem:[#allocation2 + $0x7c] sm:$0xf] %vm596_vm5, %v774_v0  ;;  %996 = vst [vmem:[#allocation2 + $0x80] sm:$0x1] %v995_v2  ;;  %v471_v7 = vsel %vm4042_vm2, 0, %v470_v45  ;;  %v624_v9 = vshrl.u32 %v417_v51, 16 }
  0x1f   : > { %929 = vst [vmem:[#allocation2 + $0xc] sm:$0xf] %v928_v3  ;;  %v4121_v10 = vld [vmem:[%s4058_s23 + $0x54] sm:$0xf]  ;;  %vm1882_vm10 = vcmask 1046532   ;;  %v632_v11 = vshrl.u32 %v418_v62, 16 }
  0x20   : > { %930 = vst.msk [vmem:[#allocation2 + $0x10] sm:$0xf] %vm596_vm5, %v621_v6  ;;  %472 = vst [vmem:[#allocation2 + $0x18] sm:$0x1] %v471_v7  ;;  %v635_v12 = vshll.u32 %v418_v62, 16  ;;  %v527_v13 = vsel %vm4062_vm6, 0, %v526_v63 }
  0x21   : > { %v626_v14 = vrot.slane %v624_v9, 7  ;;  %v627_v15 = vshll.u32 %v417_v51, 16  ;;  %528 = vst [vmem:[#allocation2 + $0x20] sm:$0x1] %v527_v13  ;;  %v554_v16 = vsel %vm4062_vm6, 0, %v553_v5  ;;  %v777_v17 = vshrl.u32 %v4113_v4, 16  ;;  %vm4134_vm11 = vmor %vm1881_vm9, %vm1882_vm10 }
  0x22   : > { %v622_v18 = vrot.slane %v4094_v48, 4  ;;  %v634_v19 = vrot.slane %v632_v11, 7  ;;  %555 = vst [vmem:[#allocation2 + $0x8c] sm:$0x1] %v554_v16  ;;  %v780_v20 = vshll.u32 %v4113_v4, 16  ;;  %v785_v21 = vshrl.u32 %v4121_v10, 16 }
  0x23   : > { %v1800_v22 = vld [vmem:[#allocation2 + $0x6c] sm:$0xe]  ;;  %v1801_v24 = vld [vmem:[#allocation2 + $0x70] sm:$0xf]  ;;  %v630_v26 = vrot.slane %v626_v14, 4  ;;  %v788_v27 = vshll.u32 %v4121_v10, 16  ;;  %v629_v37 = vor.u32 %v627_v15, %v626_v14 }
  0x24   : > { %v3575_v28 = vrot.slane %v1800_v22, 9  ;;  %v1949_v30 = vrot.slane %v1801_v24, 5  ;;  %v1803_v31 = vld [vmem:[#allocation2 + $0x78] sm:$0xe]  ;;  %v637_v32 = vor.u32 %v635_v12, %v634_v19  ;;  %v4139_v33 = vrot.slane %v777_v17, 7 }
  0x25   : > { %v1802_v34 = vld [vmem:[#allocation2 + $0x74] sm:$0x1]  ;;  %v3576_v35 = vrot.slane %v1803_v31, 9  ;;  %v639_v38 = vrot.slane %v634_v19, 4  ;;  %vm1193_vm12 = vsmask.f32 3328 }
  0x26   : > { %v931_v36 = vld [vmem:[#allocation2 + $0x14] sm:$0x1]  ;;  %vm1194_vm13 = vsmask.f32 7440  ;;  %v1950_v39 = vsel %vm4134_vm11, %v3575_v28, %v1949_v30  ;;  %v1951_v40 = vrot.slane %v1949_v30, 4  ;;  %v1952_v41 = vrot.slane %v1802_v34, 5 }
  0x27   : > { %v1804_v42 = vld [vmem:[#allocation2 + $0x7c] sm:$0xf]  ;;  %v1805_v43 = vld [vmem:[#allocation2 + $0x80] sm:$0x1]  ;;  %v932_v44 = vsel %vm4042_vm2, %v622_v18, %v931_v36  ;;  %2046 = vrot.lane.b32.xlu0 %v1950_v39, %s3989_s24  ;;  %v1776_v47 = vld [vmem:[#allocation2 + $0xc] sm:$0xe]  ;;  %v638_v49 = vsel %vm4079_vm7, %v630_v26, %v637_v32 }
  0x28   : > { %v1956_v45 = vrot.slane %v1804_v42, 5  ;;  %v1959_v46 = vrot.slane %v1805_v43, 5  ;;  %v1777_v48 = vld [vmem:[#allocation2 + $0x10] sm:$0xf]  ;;  %933 = vst [vmem:[#allocation2 + $0x14] sm:$0x1] %v932_v44  ;;  %v1953_v50 = vsel %vm4134_vm11, %v1951_v40, %v1952_v41  ;;  %vm4172_vm14 = vmor %vm1193_vm12, %vm1194_vm13 }
  0x29   : > { %v3567_v51 = vrot.slane %v1776_v47, 9  ;;  %v1893_v52 = vrot.slane %v1777_v48, 5  ;;  %v934_v53 = vld [vmem:[#allocation2 + $0x18] sm:$0xf]  ;;  %937 = vst.msk [vmem:[#allocation2 + $0x1c] sm:$0xf] %vm596_vm5, %v638_v49  ;;  %2048 = vrot.lane.b32.xlu1 %v1953_v50, %s3989_s24 }
  0x2a   : > { %v938_v54 = vld [vmem:[#allocation2 + $0x20] sm:$0x1]  ;;  %v1957_v55 = vsel %vm4134_vm11, %v3576_v35, %v1956_v45  ;;  %v1958_v56 = vrot.slane %v1956_v45, 4  ;;  %v935_v57 = vsel %vm4086_vm8, %v629_v37, %v934_v53  ;;  %v1166_v59 = vld [vmem:[#allocation2 + $0x6c] sm:$0xf]  ;;  %v783_v49 = vrot.slane %v4139_v33, 4 }
  0x2b   : > { %v939_v58 = vsel %vm4042_vm2, %v639_v38, %v938_v54  ;;  %v1167_v60 = vld [vmem:[#allocation2 + $0x70] sm:$0xf]  ;;  %v1894_v61 = vsel %vm4134_vm11, %v3567_v51, %v1893_v52  ;;  %v1895_v62 = vrot.slane %v1893_v52, 4  ;;  %936 = vst [vmem:[#allocation2 + $0x18] sm:$0xf] %v935_v57  ;;  %v1413_v63 = vshrl.u32 %v1166_v59, 16  ;;  %2050 = vrot.lane.b32.xlu0 %v1957_v55, %s3989_s24 }
  0x2c   : > { %940 = vst [vmem:[#allocation2 + $0x20] sm:$0x1] %v939_v58  ;;  %v1416_v0 = vshll.u32 %v1166_v59, 16  ;;  %v1169_v2 = vld [vmem:[#allocation2 + $0x78] sm:$0xf]  ;;  %v1960_v3 = vsel %vm4134_vm11, %v1958_v56, %v1959_v46  ;;  %v1422_v5 = vshll.u32 %v1167_v60, 16 }
  0x2d   : > { %v1426_v6 = vshrl.u32 %v1167_v60, 16  ;;  %v1170_v7 = vld [vmem:[#allocation2 + $0x7c] sm:$0xf]  ;;  %v1437_v9 = vshrl.u32 %v1169_v2, 16  ;;  %v1415_v11 = vrot.slane %v1413_v63, 4  ;;  %v1440_v13 = vshll.u32 %v1169_v2, 16  ;;  %2052 = vrot.lane.b32.xlu1 %v1960_v3, %s3989_s24 }
  0x2e   : > { %v1418_v12 = vrot.slane %v1416_v0, 5  ;;  %v1446_v14 = vshll.u32 %v1170_v7, 16  ;;  %v1168_v15 = vld [vmem:[#allocation2 + $0x74] sm:$0x1]  ;;  %v4164_v16 = vrot.slane %v1422_v5, 5  ;;  %v1450_v18 = vshrl.u32 %v1170_v7, 16 }
  0x2f   : > { %v1439_v17 = vrot.slane %v1437_v9, 4  ;;  %v1428_v19 = vrot.slane %v1426_v6, 4  ;;  %v1171_v22 = vld [vmem:[#allocation2 + $0x80] sm:$0x1]  ;;  %v1778_v24 = vld [vmem:[#allocation2 + $0x14] sm:$0x1]  ;;  %2014 = vrot.lane.b32.xlu0 %v1894_v61, %s3989_s24 }
  0x30   : > { %v1419_v26 = vor.u32 %v1418_v12, %v1415_v11  ;;  %v1442_v28 = vrot.slane %v1440_v13, 5  ;;  %v4166_v30 = vrot.slane %v1446_v14, 5  ;;  %v1432_v31 = vshll.u32 %v1168_v15, 16  ;;  %v1780_v34 = vld [vmem:[#allocation2 + $0x1c] sm:$0xf] }
  0x31   : > { %v1896_v32 = vrot.slane %v1778_v24, 5  ;;  %v1429_v35 = vor.u32 %v1428_v19, %v4164_v16  ;;  %v1452_v36 = vrot.slane %v1450_v18, 4  ;;  %v1456_v37 = vshll.u32 %v1171_v22, 16  ;;  %v1142_v43 = vld [vmem:[#allocation2 + $0xc] sm:$0xf] }
  0x32   : > { %v1900_v38 = vrot.slane %v1780_v34, 5  ;;  %v1420_v40 = vrot.slane %v1419_v26, 4  ;;  %v1443_v41 = vor.u32 %v1442_v28, %v1439_v17  ;;  %v4176_v42 = vrot.slane %v1432_v31, 5  ;;  %v1779_v45 = vld [vmem:[#allocation2 + $0x18] sm:$0xe] }
  0x33   : > { %v1897_v44 = vsel %vm4134_vm11, %v1895_v62, %v1896_v32  ;;  %v1781_v46 = vld [vmem:[#allocation2 + $0x20] sm:$0x1]  ;;  %v4180_v47 = vrot.slane %v1429_v35, 4  ;;  %v1453_v48 = vor.u32 %v1452_v36, %v4166_v30  ;;  %v3568_v50 = vrot.slane %v1779_v45, 9  ;;  %v1143_v54 = vld [vmem:[#allocation2 + $0x10] sm:$0xf] }
  0x34   : > { %2016 = vrot.lane.b32.xlu1 %v1897_v44, %s3989_s24  ;;  %v1902_v51 = vrot.slane %v1900_v38, 4  ;;  %v1903_v52 = vrot.slane %v1781_v46, 5  ;;  %v4185_v53 = vrot.slane %v1456_v37, 5  ;;  %v1425_v55 = vsel %vm4172_vm14, %v1420_v40, %v4164_v16  ;;  %v1144_v59 = vld [vmem:[#allocation2 + $0x14] sm:$0x1] }
  0x35   : > { %v1444_v56 = vrot.slane %v1443_v41, 4  ;;  %v1435_v57 = vsel %vm4172_vm14, %v4180_v47, %v4176_v42  ;;  %v1221_v58 = vshrl.u32 %v1142_v43, 16  ;;  %v1901_v60 = vsel %vm4134_vm11, %v3568_v50, %v1900_v38  ;;  %v1145_v0 = vld [vmem:[#allocation2 + $0x18] sm:$0xf]  ;;  %v1146_v2 = vld [vmem:[#allocation2 + $0x1c] sm:$0xf] }
  0x36   : > { %v1904_v61 = vsel %vm4134_vm11, %v1902_v51, %v1903_v52  ;;  %v1224_v62 = vshll.u32 %v1142_v43, 16  ;;  %v1230_v63 = vshll.u32 %v1143_v54, 16  ;;  %2018 = vrot.lane.b32.xlu0 %v1901_v60, %s3989_s24  ;;  %v1454_v5 = vrot.slane %v1453_v48, 4  ;;  %v1147_v9 = vld [vmem:[#allocation2 + $0x20] sm:$0x1] }
  0x37   : > { %v1449_v3 = vsel %vm4172_vm14, %v1444_v56, %v4166_v30  ;;  %v1223_v6 = vrot.slane %v1221_v58, 4  ;;  %v1234_v7 = vshrl.u32 %v1143_v54, 16  ;;  %v1240_v13 = vshll.u32 %v1144_v59, 16  ;;  %v497_v19 = vld [vmem:[#allocation2 + $0x84] sm:$0x1] }
  0x38   : > { %2020 = vrot.lane.b32.xlu1 %v1904_v61, %s3989_s24  ;;  %v1226_v11 = vrot.slane %v1224_v62, 5  ;;  %v4203_v12 = vrot.slane %v1230_v63, 5  ;;  %v1245_v14 = vshrl.u32 %v1145_v0, 16  ;;  %v1248_v16 = vshll.u32 %v1145_v0, 16  ;;  %v556_v30 = vld [vmem:[#allocation2 + $0x98] sm:$0x1] }
  0x39   : > { %v1236_v15 = vrot.slane %v1234_v7, 4  ;;  %v1254_v17 = vshll.u32 %v1146_v2, 16  ;;  %v1258_v18 = vshrl.u32 %v1146_v2, 16  ;;  %v1242_v24 = vrot.slane %v1240_v13, 5  ;;  %v4210_v36 = vld [vmem:[%s4058_s23 + $0x58] sm:$0xf] }
  0x3a   : > { %v1227_v22 = vor.u32 %v1226_v11, %v1223_v6  ;;  %v1247_v26 = vrot.slane %v1245_v14, 4  ;;  %v1264_v28 = vshll.u32 %v1147_v9, 16  ;;  %1664 = vrot.lane.b32.xlu0 %v1425_v55, %s3990_s25  ;;  %v1250_v32 = vrot.slane %v1248_v16, 5  ;;  %v1001_v45 = vld [vmem:[#allocation2 + $0x8c] sm:$0x1] }
  0x3b   : > { %v1237_v31 = vor.u32 %v1236_v15, %v4203_v12  ;;  %v4207_v34 = vrot.slane %v1254_v17, 5  ;;  %v1260_v35 = vrot.slane %v1258_v18, 4  ;;  %v1459_v37 = vsel %vm4172_vm14, %v1454_v5, %v4185_v53  ;;  %v438_v46 = vld [vmem:[%s4058_s23 + $0x5c] sm:$0xf]  ;;  %v500_v52 = vld [vmem:[#allocation2 + $0x90] sm:$0x1] }
  0x3c   : > { %1668 = vrot.lane.b32.xlu1 %v1449_v3, %s3990_s25  ;;  %v1228_v38 = vrot.slane %v1227_v22, 4  ;;  %v787_v40 = vrot.slane %v785_v21, 7  ;;  %v498_v41 = vsel %vm4042_vm2, 0, %v497_v19  ;;  %v1251_v43 = vor.u32 %v1250_v32, %v1247_v26  ;;  %v419_v55 = vld [vmem:[%s4058_s23 + $0x10] sm:$0xf] }
  0x3d   : > { %v1238_v42 = vrot.slane %v1237_v31, 4  ;;  %v1261_v44 = vor.u32 %v1260_v35, %v4207_v34  ;;  %499 = vst [vmem:[#allocation2 + $0x84] sm:$0x1] %v498_v41  ;;  %v557_v47 = vsel %vm4062_vm6, 0, %v556_v30  ;;  %v782_v21 = vor.u32 %v780_v20, %v4139_v33  ;;  %v529_v56 = vld [vmem:[#allocation2 + $0x2c] sm:$0x1] }
  0x3e   : > { %v790_v48 = vor.u32 %v788_v27, %v787_v40  ;;  %v792_v50 = vrot.slane %v787_v40, 4  ;;  %558 = vst [vmem:[#allocation2 + $0x98] sm:$0x1] %v557_v47  ;;  %v794_v51 = vshrl.u32 %v4210_v36, 16  ;;  %1666 = vrot.lane.b32.xlu0 %v1435_v57, %s3990_s25  ;;  %v1233_v53 = vsel %vm4172_vm14, %v1228_v38, %v4203_v12  ;;  %v420_v59 = vld [vmem:[%s4058_s23 + $0x14] sm:$0xf] }
  0x3f   : > { %v1243_v10 = vsel %vm4172_vm14, %v1238_v42, %v1242_v24  ;;  %v1252_v27 = vrot.slane %v1251_v43, 4  ;;  %v1266_v54 = vrot.slane %v1264_v28, 5  ;;  %v802_v58 = vshrl.u32 %v438_v46, 16  ;;  %v473_v60 = vld [vmem:[#allocation2 + $0x24] sm:$0x1] }
  0x40   : > { %1670 = vrot.lane.b32.xlu1 %v1459_v37, %s3990_s25  ;;  %v791_v4 = vsel %vm4079_vm7, %v783_v49, %v790_v48  ;;  %v1002_v20 = vsel %vm4042_vm2, %v792_v50, %v1001_v45  ;;  %v796_v57 = vrot.slane %v794_v51, 7  ;;  %v1262_v61 = vrot.slane %v1261_v44, 4  ;;  %v532_v0 = vld [vmem:[#allocation2 + $0x38] sm:$0x1] }
  0x41   : > { %1000 = vst.msk [vmem:[#allocation2 + $0x88] sm:$0xf] %vm596_vm5, %v791_v4  ;;  %1003 = vst [vmem:[#allocation2 + $0x8c] sm:$0x1] %v1002_v20  ;;  %v797_v62 = vshll.u32 %v4210_v36, 16  ;;  %v805_v63 = vshll.u32 %v438_v46, 16  ;;  %v1257_v49 = vsel %vm4172_vm14, %v1252_v27, %v4207_v34 }
  0x42   : > { %v501_v33 = vsel %vm4042_vm2, 0, %v500_v52  ;;  %v800_v2 = vrot.slane %v796_v57, 4  ;;  %v804_v3 = vrot.slane %v802_v58, 7  ;;  %v530_v5 = vsel %vm4062_vm6, 0, %v529_v56  ;;  %1632 = vrot.lane.b32.xlu0 %v1233_v53, %s3990_s25  ;;  %v4256_v12 = vld [vmem:[%s4058_s23 + $0x18] sm:$0xf] }
  0x43   : > { %502 = vst [vmem:[#allocation2 + $0x90] sm:$0x1] %v501_v33  ;;  %531 = vst [vmem:[#allocation2 + $0x2c] sm:$0x1] %v530_v5  ;;  %v641_v6 = vshrl.u32 %v419_v55, 16  ;;  %v644_v7 = vshll.u32 %v419_v55, 16  ;;  %v1267_v18 = vsel %vm4172_vm14, %v1262_v61, %v1266_v54  ;;  %v799_v31 = vor.u32 %v797_v62, %v796_v57 }
  0x44   : > { %v649_v9 = vshrl.u32 %v420_v59, 16  ;;  %v652_v11 = vshll.u32 %v420_v59, 16  ;;  %1634 = vrot.lane.b32.xlu1 %v1243_v10, %s3990_s25  ;;  %v997_v13 = vld [vmem:[#allocation2 + $0x84] sm:$0xf]  ;;  %v807_v14 = vor.u32 %v805_v63, %v804_v3  ;;  %v809_v15 = vrot.slane %v804_v3, 4 }
  0x45   : > { %v474_v16 = vsel %vm4042_vm2, 0, %v473_v60  ;;  %v533_v17 = vsel %vm4062_vm6, 0, %v532_v0  ;;  %v998_v19 = vsel %vm4086_vm8, %v782_v21, %v997_v13  ;;  %v1008_v22 = vld [vmem:[#allocation2 + $0x98] sm:$0x1]  ;;  %v643_v24 = vrot.slane %v641_v6, 7 }
  0x46   : > { %v651_v26 = vrot.slane %v649_v9, 7  ;;  %475 = vst [vmem:[#allocation2 + $0x24] sm:$0x1] %v474_v16  ;;  %534 = vst [vmem:[#allocation2 + $0x38] sm:$0x1] %v533_v17  ;;  %v808_v28 = vsel %vm4079_vm7, %v800_v2, %v807_v14  ;;  %v1009_v30 = vsel %vm4042_vm2, %v809_v15, %v1008_v22  ;;  %1636 = vrot.lane.b32.xlu0 %v1257_v49, %s3990_s25  ;;  %v658_v37 = vshrl.u32 %v4256_v12, 16 }
  0x47   : > { %999 = vst [vmem:[#allocation2 + $0x84] sm:$0xf] %v998_v19  ;;  %1007 = vst.msk [vmem:[#allocation2 + $0x94] sm:$0xf] %vm596_vm5, %v808_v28  ;;  %v647_v32 = vrot.slane %v643_v24, 4  ;;  %v646_v42 = vor.u32 %v644_v7, %v643_v24  ;;  %v661_v27 = vshll.u32 %v4256_v12, 16 }
  0x48   : > { %1010 = vst [vmem:[#allocation2 + $0x98] sm:$0x1] %v1009_v30  ;;  %v654_v34 = vor.u32 %v652_v11, %v651_v26  ;;  %v656_v35 = vrot.slane %v651_v26, 4  ;;  %v4274_v36 = vld [vmem:[%s4058_s23 + $0x1c] sm:$0xf]  ;;  %1638 = vrot.lane.b32.xlu1 %v1267_v18, %s3990_s25  ;;  %v4294_v57 = vrot.slane %v658_v37, 7 }
  0x49   : > { %v1173_v38 = vld [vmem:[#allocation2 + $0x88] sm:$0xf]  ;;  %v1174_v40 = vld [vmem:[#allocation2 + $0x8c] sm:$0x1]  ;;  %v476_v52 = vld [vmem:[#allocation2 + $0x30] sm:$0x1] }
  0x4a   : > { %v4278_v41 = vld [vmem:[#allocation2 + $0x88] sm:$0xf]  ;;  %v1470_v43 = vshll.u32 %v1173_v38, 16  ;;  %v1474_v44 = vshrl.u32 %v1173_v38, 16  ;;  %v1480_v45 = vshll.u32 %v1174_v40, 16  ;;  %v655_v21 = vsel %vm4079_vm7, %v647_v32, %v654_v34 }
  0x4b   : > { %v1004_v46 = vld [vmem:[#allocation2 + $0x90] sm:$0xf]  ;;  %v1963_v47 = vrot.slane %v4278_v41, 5  ;;  %v1808_v50 = vld [vmem:[#allocation2 + $0x8c] sm:$0x1]  ;;  %v666_v54 = vshrl.u32 %v4274_v36, 16 }
  0x4c   : > { %v1005_v48 = vsel %vm4086_vm8, %v799_v31, %v1004_v46  ;;  %v945_v51 = vld [vmem:[#allocation2 + $0x2c] sm:$0x1]  ;;  %v4285_v53 = vrot.slane %v1470_v43, 5  ;;  %v1476_v10 = vrot.slane %v1474_v44, 4  ;;  %944 = vst.msk [vmem:[#allocation2 + $0x28] sm:$0xf] %vm596_vm5, %v655_v21 }
  0x4d   : > { %1006 = vst [vmem:[#allocation2 + $0x90] sm:$0xf] %v1005_v48  ;;  %v1482_v55 = vrot.slane %v1480_v45, 5  ;;  %v1965_v56 = vrot.slane %v1963_v47, 4  ;;  %v946_v4 = vsel %vm4042_vm2, %v656_v35, %v945_v51  ;;  %v941_v20 = vld [vmem:[#allocation2 + $0x24] sm:$0xf] }
  0x4e   : > { %v1477_v58 = vor.u32 %v1476_v10, %v4285_v53  ;;  %v1172_v59 = vld [vmem:[#allocation2 + $0x84] sm:$0xf]  ;;  %v1966_v60 = vrot.slane %v1808_v50, 5  ;;  %947 = vst [vmem:[#allocation2 + $0x2c] sm:$0x1] %v946_v4  ;;  %v942_v61 = vsel %vm4086_vm8, %v646_v42, %v941_v20  ;;  %v477_v62 = vsel %vm4042_vm2, 0, %v476_v52 }
  0x4f   : > { %v1461_v63 = vshrl.u32 %v1172_v59, 16  ;;  %v1464_v33 = vshll.u32 %v1172_v59, 16  ;;  %v1176_v0 = vld [vmem:[#allocation2 + $0x94] sm:$0xf]  ;;  %v1177_v49 = vld [vmem:[#allocation2 + $0x98] sm:$0x1] }
  0x50   : > { %943 = vst [vmem:[#allocation2 + $0x24] sm:$0xf] %v942_v61  ;;  %478 = vst [vmem:[#allocation2 + $0x30] sm:$0x1] %v477_v62  ;;  %v1478_v2 = vrot.slane %v1477_v58, 4  ;;  %v1494_v3 = vshll.u32 %v1176_v0, 16  ;;  %v1967_v26 = vsel %vm4134_vm11, %v1965_v56, %v1966_v60 }
  0x51   : > { %v1498_v5 = vshrl.u32 %v1176_v0, 16  ;;  %v1504_v6 = vshll.u32 %v1177_v49, 16  ;;  %v1463_v7 = vrot.slane %v1461_v63, 4  ;;  %v1466_v9 = vrot.slane %v1464_v33, 5  ;;  %v4304_v17 = vld [vmem:[#allocation2 + $0x94] sm:$0xf] }
  0x52   : > { %v668_v11 = vrot.slane %v666_v54, 7  ;;  %v669_v13 = vshll.u32 %v4274_v36, 16  ;;  %v1483_v14 = vsel %vm4172_vm14, %v1478_v2, %v1482_v55  ;;  %v1496_v15 = vrot.slane %v1494_v3, 5  ;;  %v1806_v35 = vld [vmem:[#allocation2 + $0x84] sm:$0xe] }
  0x53   : > { %v1500_v16 = vrot.slane %v1498_v5, 4  ;;  %v664_v18 = vrot.slane %v4294_v57, 4  ;;  %1674 = vrot.lane.b32.xlu1 %v1483_v14, %s3990_s25  ;;  %v1467_v19 = vor.u32 %v1466_v9, %v1463_v7  ;;  %v1506_v22 = vrot.slane %v1504_v6, 5  ;;  %v1149_v28 = vld [vmem:[#allocation2 + $0x28] sm:$0xf] }
  0x54   : > { %v1175_v24 = vld [vmem:[#allocation2 + $0x90] sm:$0xf]  ;;  %v673_v30 = vrot.slane %v668_v11, 4  ;;  %v1278_v36 = vshll.u32 %v1149_v28, 16  ;;  %v1282_v40 = vshrl.u32 %v1149_v28, 16  ;;  %v1970_v42 = vrot.slane %v4304_v17, 5 }
  0x55   : > { %v1501_v31 = vor.u32 %v1500_v16, %v1496_v15  ;;  %v1485_v32 = vshrl.u32 %v1175_v24, 16  ;;  %v1488_v34 = vshll.u32 %v1175_v24, 16  ;;  %v1468_v37 = vrot.slane %v1467_v19, 4  ;;  %v1150_v38 = vld [vmem:[#allocation2 + $0x2c] sm:$0x1] }
  0x56   : > { %v671_v43 = vor.u32 %v669_v13, %v668_v11  ;;  %v4311_v48 = vrot.slane %v1278_v36, 5  ;;  %v1284_v51 = vrot.slane %v1282_v40, 4  ;;  %v1288_v52 = vshll.u32 %v1150_v38, 16  ;;  %v952_v54 = vld [vmem:[#allocation2 + $0x38] sm:$0x1] }
  0x57   : > { %v1502_v44 = vrot.slane %v1501_v31, 4  ;;  %v1487_v45 = vrot.slane %v1485_v32, 4  ;;  %v1490_v46 = vrot.slane %v1488_v34, 5  ;;  %v1148_v50 = vld [vmem:[#allocation2 + $0x24] sm:$0xf]  ;;  %v1473_v21 = vsel %vm4172_vm14, %v1468_v37, %v4285_v53 }
  0x58   : > { %v1269_v10 = vshrl.u32 %v1148_v50, 16  ;;  %1672 = vrot.lane.b32.xlu0 %v1473_v21, %s3990_s25  ;;  %v3577_v4 = vrot.slane %v1806_v35, 9  ;;  %v1272_v20 = vshll.u32 %v1148_v50, 16  ;;  %v1811_v58 = vld [vmem:[#allocation2 + $0x98] sm:$0x1]  ;;  %v1285_v59 = vor.u32 %v1284_v51, %v4311_v48 }
  0x59   : > { %v1507_v55 = vsel %vm4172_vm14, %v1502_v44, %v1506_v22  ;;  %v1491_v56 = vor.u32 %v1490_v46, %v1487_v45  ;;  %v1290_v53 = vrot.slane %v1288_v52, 5  ;;  %v672_v61 = vsel %vm4079_vm7, %v664_v18, %v671_v43  ;;  %v948_v62 = vld [vmem:[#allocation2 + $0x30] sm:$0xf]  ;;  %v559_v63 = vld [vmem:[#allocation2 + $0xa4] sm:$0x1] }
  0x5a   : > { %1678 = vrot.lane.b32.xlu1 %v1507_v55, %s3990_s25  ;;  %v1271_v60 = vrot.slane %v1269_v10, 4  ;;  %v1274_v0 = vrot.slane %v1272_v20, 5  ;;  %951 = vst.msk [vmem:[#allocation2 + $0x34] sm:$0xf] %vm596_vm5, %v672_v61  ;;  %v953_v49 = vsel %vm4042_vm2, %v673_v30, %v952_v54  ;;  %v663_v2 = vor.u32 %v661_v27, %v4294_v57  ;;  %v439_v3 = vld [vmem:[%s4058_s23 + $0x60] sm:$0xf] }
  0x5b   : > { %v1492_v33 = vrot.slane %v1491_v56, 4  ;;  %v1286_v5 = vrot.slane %v1285_v59, 4  ;;  %v1972_v6 = vrot.slane %v1970_v42, 4  ;;  %v1973_v7 = vrot.slane %v1811_v58, 5  ;;  %954 = vst [vmem:[#allocation2 + $0x38] sm:$0x1] %v953_v49 }
  0x5c   : > { %v440_v9 = vld [vmem:[%s4058_s23 + $0x64] sm:$0xf]  ;;  %v1275_v13 = vor.u32 %v1274_v0, %v1271_v60  ;;  %v949_v14 = vsel %vm4086_vm8, %v663_v2, %v948_v62  ;;  %v560_v16 = vsel %vm4062_vm6, 0, %v559_v63  ;;  %v503_v12 = vld [vmem:[#allocation2 + $0x9c] sm:$0x1]  ;;  %v1964_v57 = vsel %vm4134_vm11, %v3577_v4, %v1963_v47 }
  0x5d   : > { %v1497_v11 = vsel %vm4172_vm14, %v1492_v33, %v1496_v15  ;;  %v562_v27 = vld [vmem:[#allocation2 + $0xb0] sm:$0x1]  ;;  %v1809_v15 = vld [vmem:[#allocation2 + $0x90] sm:$0xe]  ;;  %950 = vst [vmem:[#allocation2 + $0x30] sm:$0xf] %v949_v14  ;;  %v1291_v19 = vsel %vm4172_vm14, %v1286_v5, %v1290_v53  ;;  %v1974_v32 = vsel %vm4134_vm11, %v1972_v6, %v1973_v7 }
  0x5e   : > { %1676 = vrot.lane.b32.xlu0 %v1497_v11, %s3990_s25  ;;  %2056 = vrot.lane.b32.xlu1 %v1967_v26, %s3989_s24  ;;  %561 = vst [vmem:[#allocation2 + $0xa4] sm:$0x1] %v560_v16  ;;  %v811_v18 = vshrl.u32 %v439_v3, 16  ;;  %v1276_v22 = vrot.slane %v1275_v13, 4  ;;  %v4347_v24 = vld [vmem:[#allocation2 + $0x28] sm:$0xf] }
  0x5f   : > { %v819_v28 = vshrl.u32 %v440_v9, 16  ;;  %v822_v30 = vshll.u32 %v440_v9, 16  ;;  %v504_v41 = vsel %vm4042_vm2, 0, %v503_v12  ;;  %v4352_v26 = vld [vmem:[%s4058_s23 + $0x68] sm:$0xf]  ;;  %v563_v47 = vsel %vm4062_vm6, 0, %v562_v27 }
  0x60   : > { %v813_v31 = vrot.slane %v811_v18, 7  ;;  %v4358_v34 = vld [vmem:[#allocation2 + $0x2c] sm:$0x1]  ;;  %v814_v35 = vshll.u32 %v439_v3, 16  ;;  %505 = vst [vmem:[#allocation2 + $0x9c] sm:$0x1] %v504_v41  ;;  %v1281_v38 = vsel %vm4172_vm14, %v1276_v22, %v4311_v48 }
  0x61   : > { %v821_v36 = vrot.slane %v819_v28, 7  ;;  %v4361_v37 = vld [vmem:[%s4058_s23 + $0x6c] sm:$0xf]  ;;  %564 = vst [vmem:[#allocation2 + $0xb0] sm:$0x1] %v563_v47  ;;  %v3578_v40 = vrot.slane %v1809_v15, 9 }
  0x62   : > { %2054 = vrot.lane.b32.xlu0 %v1964_v57, %s3989_s24  ;;  %1642 = vrot.lane.b32.xlu1 %v1291_v19, %s3990_s25  ;;  %v1152_v43 = vld [vmem:[#allocation2 + $0x34] sm:$0xf]  ;;  %v1907_v44 = vrot.slane %v4347_v24, 5  ;;  %v817_v45 = vrot.slane %v813_v31, 4  ;;  %v1153_v46 = vld [vmem:[#allocation2 + $0x38] sm:$0x1]  ;;  %v816_v59 = vor.u32 %v814_v35, %v813_v31 }
  0x63   : > { %v1302_v50 = vshll.u32 %v1152_v43, 16  ;;  %v1306_v21 = vshrl.u32 %v1152_v43, 16  ;;  %v824_v51 = vor.u32 %v822_v30, %v821_v36  ;;  %v828_v52 = vshrl.u32 %v4352_v26, 16  ;;  %v506_v53 = vld [vmem:[#allocation2 + $0xa8] sm:$0x1] }
  0x64   : > { %v1312_v10 = vshll.u32 %v1153_v46, 16  ;;  %v1910_v54 = vrot.slane %v4358_v34, 5  ;;  %v826_v55 = vrot.slane %v821_v36, 4  ;;  %v836_v56 = vshrl.u32 %v4361_v37, 16  ;;  %v1151_v20 = vld [vmem:[#allocation2 + $0x30] sm:$0xf] }
  0x65   : > { %v4372_v4 = vrot.slane %v1302_v50, 5  ;;  %v1308_v48 = vrot.slane %v1306_v21, 4  ;;  %v825_v58 = vsel %vm4079_vm7, %v817_v45, %v824_v51  ;;  %v1971_v60 = vsel %vm4134_vm11, %v3578_v40, %v1970_v42  ;;  %v4382_v63 = vld [vmem:[#allocation2 + $0x34] sm:$0xf]  ;;  %v1015_v33 = vld [vmem:[#allocation2 + $0xa4] sm:$0x1] }
  0x66   : > { %1640 = vrot.lane.b32.xlu0 %v1281_v38, %s3990_s25  ;;  %2060 = vrot.lane.b32.xlu1 %v1974_v32, %s3989_s24  ;;  %v1293_v61 = vshrl.u32 %v1151_v20, 16  ;;  %v1296_v62 = vshll.u32 %v1151_v20, 16  ;;  %1014 = vst.msk [vmem:[#allocation2 + $0xa0] sm:$0xf] %vm596_vm5, %v825_v58  ;;  %v4386_v0 = vld [vmem:[%s4058_s23 + $0x20] sm:$0xf]  ;;  %v1016_v17 = vsel %vm4042_vm2, %v826_v55, %v1015_v33 }
  0x67   : > { %v1309_v49 = vor.u32 %v1308_v48, %v4372_v4  ;;  %v1314_v2 = vrot.slane %v1312_v10, 5  ;;  %v1782_v3 = vld [vmem:[#allocation2 + $0x24] sm:$0xe]  ;;  %v830_v5 = vrot.slane %v828_v52, 7  ;;  %v535_v6 = vld [vmem:[#allocation2 + $0x44] sm:$0x1] }
  0x68   : > { %v1295_v42 = vrot.slane %v1293_v61, 4  ;;  %v1298_v7 = vrot.slane %v1296_v62, 5  ;;  %v1909_v9 = vrot.slane %v1907_v44, 4  ;;  %1017 = vst [vmem:[#allocation2 + $0xa4] sm:$0x1] %v1016_v17  ;;  %v838_v13 = vrot.slane %v836_v56, 7 }
  0x69   : > { %v1011_v11 = vld [vmem:[#allocation2 + $0x9c] sm:$0xf]  ;;  %v4394_v14 = vld [vmem:[%s4058_s23 + $0x24] sm:$0xf]  ;;  %v1310_v16 = vrot.slane %v1309_v49, 4  ;;  %v1914_v12 = vrot.slane %v4382_v63, 5 }
  0x6a   : > { %v1012_v27 = vsel %vm4086_vm8, %v816_v59, %v1011_v11  ;;  %v834_v57 = vrot.slane %v830_v5, 4  ;;  %v1022_v15 = vld [vmem:[#allocation2 + $0xb0] sm:$0x1]  ;;  %2058 = vrot.lane.b32.xlu0 %v1971_v60, %s3989_s24  ;;  %v1299_v18 = vor.u32 %v1298_v7, %v1295_v42  ;;  %v1787_v19 = vld [vmem:[#allocation2 + $0x38] sm:$0x1]  ;;  %v839_v22 = vshll.u32 %v4361_v37, 16 }
  0x6b   : > { %1013 = vst [vmem:[#allocation2 + $0x9c] sm:$0xf] %v1012_v27  ;;  %v843_v28 = vrot.slane %v838_v13, 4  ;;  %v507_v30 = vsel %vm4042_vm2, 0, %v506_v53  ;;  %v1315_v31 = vsel %vm4172_vm14, %v1310_v16, %v1314_v2  ;;  %v831_v41 = vshll.u32 %v4352_v26, 16 }
  0x6c   : > { %508 = vst [vmem:[#allocation2 + $0xa8] sm:$0x1] %v507_v30  ;;  %v536_v47 = vsel %vm4062_vm6, 0, %v535_v6  ;;  %v675_v32 = vshrl.u32 %v4386_v0, 16  ;;  %1646 = vrot.lane.b32.xlu1 %v1315_v31, %s3990_s25  ;;  %v1300_v34 = vrot.slane %v1299_v18, 4  ;;  %v3569_v35 = vrot.slane %v1782_v3, 9 }
  0x6d   : > { %v1785_v36 = vld [vmem:[#allocation2 + $0x30] sm:$0xe]  ;;  %v841_v37 = vor.u32 %v839_v22, %v838_v13  ;;  %v1023_v38 = vsel %vm4042_vm2, %v843_v28, %v1022_v15  ;;  %537 = vst [vmem:[#allocation2 + $0x44] sm:$0x1] %v536_v47  ;;  %v1911_v40 = vsel %vm4134_vm11, %v1909_v9, %v1910_v54  ;;  %v1916_v26 = vrot.slane %v1914_v12, 4 }
  0x6e   : > { %v1917_v43 = vrot.slane %v1787_v19, 5  ;;  %v1179_v45 = vld [vmem:[#allocation2 + $0xa0] sm:$0xf]  ;;  %1024 = vst [vmem:[#allocation2 + $0xb0] sm:$0x1] %v1023_v38  ;;  %v683_v46 = vshrl.u32 %v4394_v14, 16  ;;  %v1305_v50 = vsel %vm4172_vm14, %v1300_v34, %v4372_v4  ;;  %v833_v56 = vor.u32 %v831_v41, %v830_v5 }
  0x6f   : > { %v1518_v21 = vshll.u32 %v1179_v45, 16  ;;  %v1522_v51 = vshrl.u32 %v1179_v45, 16  ;;  %v842_v52 = vsel %vm4079_vm7, %v834_v57, %v841_v37  ;;  %v1085_v10 = vld [vmem:[#allocation2 + $0x6c] sm:$0xf]  ;;  %1644 = vrot.lane.b32.xlu0 %v1305_v50, %s3990_s25  ;;  %v3570_v55 = vrot.slane %v1785_v36, 9 }
  0x70   : > { %v1180_v54 = vld [vmem:[#allocation2 + $0xa4] sm:$0x1]  ;;  %1021 = vst.msk [vmem:[#allocation2 + $0xac] sm:$0xf] %vm596_vm5, %v842_v52  ;;  %v4422_v48 = vrot.slane %v675_v32, 7  ;;  %2024 = vrot.lane.b32.xlu1 %v1911_v40, %s3989_s24  ;;  %v1908_v4 = vsel %vm4134_vm11, %v3569_v35, %v1907_v44  ;;  %v1918_v60 = vsel %vm4134_vm11, %v1916_v26, %v1917_v43  ;;  %v678_v63 = vshll.u32 %v4386_v0, 16 }
  0x71   : > { %1121 = vst.msk [vmem:[#allocation3 + $0x48] sm:$0xf] %vm596_vm5, %v1085_v10  ;;  %v4430_v20 = vrot.slane %v1518_v21, 5  ;;  %v1524_v58 = vrot.slane %v1522_v51, 4  ;;  %v1528_v59 = vshll.u32 %v1180_v54, 16  ;;  %v685_v33 = vrot.slane %v683_v46, 7 }
  0x72   : > { %v479_v53 = vld [vmem:[#allocation2 + $0x3c] sm:$0x1]  ;;  %v4434_v62 = vld [vmem:[#allocation2 + $0xa0] sm:$0xf]  ;;  %v1915_v17 = vsel %vm4134_vm11, %v3570_v55, %v1914_v12  ;;  %v681_v6 = vrot.slane %v4422_v48, 4  ;;  %v686_v42 = vshll.u32 %v4394_v14, 16 }
  0x73   : > { %v1178_v61 = vld [vmem:[#allocation2 + $0x9c] sm:$0xf]  ;;  %v1525_v24 = vor.u32 %v1524_v58, %v4430_v20  ;;  %v1530_v49 = vrot.slane %v1528_v59, 5  ;;  %v1018_v3 = vld [vmem:[#allocation2 + $0xa8] sm:$0xf]  ;;  %2022 = vrot.lane.b32.xlu0 %v1908_v4, %s3989_s24  ;;  %v690_v12 = vrot.slane %v685_v33, 4  ;;  %v680_v58 = vor.u32 %v678_v63, %v4422_v48 }
  0x74   : > { %v1509_v2 = vshrl.u32 %v1178_v61, 16  ;;  %v1512_v44 = vshll.u32 %v1178_v61, 16  ;;  %v1019_v5 = vsel %vm4086_vm8, %v833_v56, %v1018_v3  ;;  %v959_v7 = vld [vmem:[#allocation2 + $0x44] sm:$0x1]  ;;  %v4446_v9 = vld [vmem:[%s4058_s23 + $0x28] sm:$0xf]  ;;  %2028 = vrot.lane.b32.xlu1 %v1918_v60, %s3989_s24  ;;  %v688_v22 = vor.u32 %v686_v42, %v685_v33 }
  0x75   : > { %v538_v11 = vld [vmem:[#allocation2 + $0x50] sm:$0x1]  ;;  %v1087_v13 = vld [vmem:[#allocation2 + $0x78] sm:$0xf]  ;;  %v1526_v16 = vrot.slane %v1525_v24, 4  ;;  %v1977_v14 = vrot.slane %v4434_v62, 5  ;;  %v960_v34 = vsel %vm4042_vm2, %v690_v12, %v959_v7 }
  0x76   : > { %v1511_v27 = vrot.slane %v1509_v2, 4  ;;  %v1514_v57 = vrot.slane %v1512_v44, 5  ;;  %v1183_v15 = vld [vmem:[#allocation2 + $0xb0] sm:$0x1]  ;;  %1020 = vst [vmem:[#allocation2 + $0xa8] sm:$0xf] %v1019_v5  ;;  %v689_v38 = vsel %vm4079_vm7, %v681_v6, %v688_v22 }
  0x77   : > { %v426_v18 = vld [vmem:[%s4058_s23 + $0x2c] sm:$0xf]  ;;  %1123 = vst.msk [vmem:[#allocation3 + $0x50] sm:$0xf] %vm596_vm5, %v1087_v13  ;;  %v4451_v19 = vld [vmem:[#allocation2 + $0xa4] sm:$0x1]  ;;  %v1531_v31 = vsel %vm4172_vm14, %v1526_v16, %v1530_v49  ;;  %2026 = vrot.lane.b32.xlu0 %v1915_v17, %s3989_s24 }
  0x78   : > { %v480_v28 = vsel %vm4042_vm2, 0, %v479_v53  ;;  %v1086_v30 = vld [vmem:[#allocation2 + $0x70] sm:$0xf]  ;;  %v1515_v41 = vor.u32 %v1514_v57, %v1511_v27  ;;  %v1182_v47 = vld [vmem:[#allocation2 + $0xac] sm:$0xf]  ;;  %v1552_v32 = vshll.u32 %v1183_v15, 16  ;;  %1682 = vrot.lane.b32.xlu1 %v1531_v31, %s3990_s25 }
  0x79   : > { %481 = vst [vmem:[#allocation2 + $0x3c] sm:$0x1] %v480_v28  ;;  %v482_v35 = vld [vmem:[#allocation2 + $0x48] sm:$0x1]  ;;  %1122 = vst.msk [vmem:[#allocation3 + $0x4c] sm:$0xf] %vm596_vm5, %v1086_v30 }
  0x7a   : > { %v1542_v36 = vshll.u32 %v1182_v47, 16  ;;  %v1546_v37 = vshrl.u32 %v1182_v47, 16  ;;  %961 = vst [vmem:[#allocation2 + $0x44] sm:$0x1] %v960_v34  ;;  %v4464_v40 = vld [vmem:[#allocation2 + $0xac] sm:$0xf] }
  0x7b   : > { %v1088_v26 = vld [vmem:[#allocation2 + $0x7c] sm:$0xf]  ;;  %v1516_v43 = vrot.slane %v1515_v41, 4  ;;  %v1980_v45 = vrot.slane %v4451_v19, 5  ;;  %958 = vst.msk [vmem:[#allocation2 + $0x40] sm:$0xf] %vm596_vm5, %v689_v38 }
  0x7c   : > { %v539_v46 = vsel %vm4062_vm6, 0, %v538_v11  ;;  %v692_v50 = vshrl.u32 %v4446_v9, 16  ;;  %1124 = vst.msk [vmem:[#allocation3 + $0x54] sm:$0xf] %vm596_vm5, %v1088_v26  ;;  %v1069_v21 = vld [vmem:[#allocation2 + $0xc] sm:$0xf] }
  0x7d   : > { %v4473_v51 = vrot.slane %v1542_v36, 5  ;;  %v1548_v52 = vrot.slane %v1546_v37, 4  ;;  %v1979_v10 = vrot.slane %v1977_v14, 4  ;;  %v4477_v55 = vld [vmem:[#allocation2 + $0x9c] sm:$0xe]  ;;  %v700_v54 = vshrl.u32 %v426_v18, 16 }
  0x7e   : > { %540 = vst [vmem:[#allocation2 + $0x50] sm:$0x1] %v539_v46  ;;  %1105 = vst.msk [vmem:[#allocation3 + $0x8] sm:$0xf] %vm596_vm5, %v1069_v21  ;;  %v1070_v56 = vld [vmem:[#allocation2 + $0x10] sm:$0xf]  ;;  %v1521_v4 = vsel %vm4172_vm14, %v1516_v43, %v4430_v20 }
  0x7f   : > { %v4486_v59 = vld [vmem:[#allocation2 + $0xb0] sm:$0x1]  ;;  %v694_v53 = vrot.slane %v692_v50, 7  ;;  %v703_v60 = vshll.u32 %v426_v18, 16  ;;  %1106 = vst.msk [vmem:[#allocation3 + $0xc] sm:$0xf] %vm596_vm5, %v1070_v56  ;;  %1680 = vrot.lane.b32.xlu0 %v1521_v4, %s3990_s25  ;;  %v1549_v33 = vor.u32 %v1548_v52, %v4473_v51  ;;  %v1981_v36 = vsel %vm4134_vm11, %v1979_v10, %v1980_v45 }
  0x80   : > { %v1071_v61 = vld [vmem:[#allocation2 + $0x18] sm:$0xf]  ;;  %v1554_v24 = vrot.slane %v1552_v32, 5  ;;  %v1181_v49 = vld [vmem:[#allocation2 + $0xa8] sm:$0xf]  ;;  %v702_v2 = vrot.slane %v700_v54, 7 }
  0x81   : > { %v483_v20 = vsel %vm4042_vm2, 0, %v482_v35  ;;  %1107 = vst.msk [vmem:[#allocation3 + $0x10] sm:$0xf] %vm596_vm5, %v1071_v61  ;;  %v1533_v0 = vshrl.u32 %v1181_v49, 16  ;;  %v1536_v48 = vshll.u32 %v1181_v49, 16  ;;  %v1984_v63 = vrot.slane %v4464_v40, 5 }
  0x82   : > { %v695_v44 = vshll.u32 %v4446_v9, 16  ;;  %484 = vst [vmem:[#allocation2 + $0x48] sm:$0x1] %v483_v20  ;;  %v565_v3 = vld [vmem:[#allocation2 + $0xbc] sm:$0x1]  ;;  %v1550_v17 = vrot.slane %v1549_v33, 4  ;;  %v705_v42 = vor.u32 %v703_v60, %v702_v2 }
  0x83   : > { %v955_v5 = vld [vmem:[#allocation2 + $0x3c] sm:$0xf]  ;;  %v698_v6 = vrot.slane %v694_v53, 4  ;;  %v707_v7 = vrot.slane %v702_v2, 4  ;;  %v1535_v11 = vrot.slane %v1533_v0, 4  ;;  %v1538_v13 = vrot.slane %v1536_v48, 5 }
  0x84   : > { %v3579_v16 = vrot.slane %v4477_v55, 9  ;;  %v1156_v27 = vld [vmem:[#allocation2 + $0x44] sm:$0x1]  ;;  %v956_v57 = vsel %vm4086_vm8, %v680_v58, %v955_v5  ;;  %v4500_v15 = vld [vmem:[%s4058_s23 + $0x70] sm:$0xf]  ;;  %v1555_v9 = vsel %vm4172_vm14, %v1550_v17, %v1554_v24  ;;  %v1987_v19 = vrot.slane %v4486_v59, 5 }
  0x85   : > { %v1155_v12 = vld [vmem:[#allocation2 + $0x40] sm:$0xf]  ;;  %v1336_v18 = vshll.u32 %v1156_v27, 16  ;;  %957 = vst [vmem:[#allocation2 + $0x3c] sm:$0xf] %v956_v57  ;;  %v706_v22 = vsel %vm4079_vm7, %v698_v6, %v705_v42  ;;  %1686 = vrot.lane.b32.xlu1 %v1555_v9, %s3990_s25  ;;  %v1539_v30 = vor.u32 %v1538_v13, %v1535_v11  ;;  %v697_v32 = vor.u32 %v695_v44, %v694_v53 }
  0x86   : > { %v4508_v28 = vld [vmem:[%s4058_s23 + $0x74] sm:$0xf]  ;;  %v1326_v31 = vshll.u32 %v1155_v12, 16  ;;  %v1330_v41 = vshrl.u32 %v1155_v12, 16  ;;  %965 = vst.msk [vmem:[#allocation2 + $0x4c] sm:$0xf] %vm596_vm5, %v706_v22  ;;  %v1978_v48 = vsel %vm4134_vm11, %v3579_v16, %v1977_v14 }
  0x87   : > { %v966_v47 = vld [vmem:[#allocation2 + $0x50] sm:$0x1]  ;;  %v509_v34 = vld [vmem:[#allocation2 + $0xb4] sm:$0x1]  ;;  %v568_v35 = vld [vmem:[#allocation2 + $0xc8] sm:$0x1] }
  0x88   : > { %v1986_v37 = vrot.slane %v1984_v63, 4  ;;  %v4516_v38 = vld [vmem:[#allocation2 + $0xa8] sm:$0xe]  ;;  %v967_v26 = vsel %vm4042_vm2, %v707_v7, %v966_v47  ;;  %v566_v43 = vsel %vm4062_vm6, 0, %v565_v3  ;;  %v1540_v46 = vrot.slane %v1539_v30, 4 }
  0x89   : > { %v4522_v50 = vrot.slane %v1326_v31, 5  ;;  %v1332_v21 = vrot.slane %v1330_v41, 4  ;;  %v1338_v52 = vrot.slane %v1336_v18, 5  ;;  %968 = vst [vmem:[#allocation2 + $0x50] sm:$0x1] %v967_v26  ;;  %v845_v10 = vshrl.u32 %v4500_v15, 16  ;;  %2064 = vrot.lane.b32.xlu1 %v1981_v36, %s3989_s24 }
  0x8a   : > { %v4524_v55 = vld [vmem:[#allocation2 + $0x40] sm:$0xf]  ;;  %567 = vst [vmem:[#allocation2 + $0xbc] sm:$0x1] %v566_v43  ;;  %v962_v45 = vld [vmem:[#allocation2 + $0x48] sm:$0xf]  ;;  %v1545_v58 = vsel %vm4172_vm14, %v1540_v46, %v4473_v51  ;;  %v1988_v22 = vsel %vm4134_vm11, %v1986_v37, %v1987_v19 }
  0x8b   : > { %v848_v54 = vshll.u32 %v4500_v15, 16  ;;  %v853_v56 = vshrl.u32 %v4508_v28, 16  ;;  %v856_v4 = vshll.u32 %v4508_v28, 16  ;;  %v1333_v53 = vor.u32 %v1332_v21, %v4522_v50  ;;  %v1072_v61 = vld [vmem:[#allocation2 + $0x1c] sm:$0xf]  ;;  %1684 = vrot.lane.b32.xlu0 %v1545_v58, %s3990_s25 }
  0x8c   : > { %v963_v60 = vsel %vm4086_vm8, %v697_v32, %v962_v45  ;;  %v1090_v33 = vld [vmem:[#allocation2 + $0x88] sm:$0xf]  ;;  %v1089_v24 = vld [vmem:[#allocation2 + $0x84] sm:$0xf]  ;;  %v847_v49 = vrot.slane %v845_v10, 7  ;;  %v510_v20 = vsel %vm4042_vm2, 0, %v509_v34 }
  0x8d   : > { %964 = vst [vmem:[#allocation2 + $0x48] sm:$0xf] %v963_v60  ;;  %v4538_v2 = vrot.slane %v853_v56, 7  ;;  %v569_v51 = vsel %vm4062_vm6, 0, %v568_v35  ;;  %1108 = vst.msk [vmem:[#allocation3 + $0x14] sm:$0xf] %vm596_vm5, %v1072_v61 }
  0x8e   : > { %1126 = vst.msk [vmem:[#allocation3 + $0x5c] sm:$0xf] %vm596_vm5, %v1090_v33  ;;  %1125 = vst.msk [vmem:[#allocation3 + $0x58] sm:$0xf] %vm596_vm5, %v1089_v24  ;;  %v1092_v0 = vld [vmem:[#allocation2 + $0x94] sm:$0xf]  ;;  %v850_v31 = vor.u32 %v848_v54, %v847_v49 }
  0x8f   : > { %v1334_v44 = vrot.slane %v1333_v53, 4  ;;  %v1154_v3 = vld [vmem:[#allocation2 + $0x3c] sm:$0xf]  ;;  %v3580_v17 = vrot.slane %v4516_v38, 9  ;;  %v4552_v5 = vld [vmem:[#allocation2 + $0x44] sm:$0x1]  ;;  %v858_v15 = vor.u32 %v856_v4, %v4538_v2  ;;  %2062 = vrot.lane.b32.xlu0 %v1978_v48, %s3989_s24 }
  0x90   : > { %511 = vst [vmem:[#allocation2 + $0xb4] sm:$0x1] %v510_v20  ;;  %570 = vst [vmem:[#allocation2 + $0xc8] sm:$0x1] %v569_v51  ;;  %v1317_v6 = vshrl.u32 %v1154_v3, 16  ;;  %v1320_v42 = vshll.u32 %v1154_v3, 16 }
  0x91   : > { %1128 = vst.msk [vmem:[#allocation3 + $0x64] sm:$0xf] %vm596_vm5, %v1092_v0  ;;  %v1158_v7 = vld [vmem:[#allocation2 + $0x4c] sm:$0xf]  ;;  %v1921_v11 = vrot.slane %v4524_v55, 5  ;;  %v851_v13 = vrot.slane %v847_v49, 4  ;;  %v1339_v14 = vsel %vm4172_vm14, %v1334_v44, %v1338_v52  ;;  %v1985_v3 = vsel %vm4134_vm11, %v3580_v17, %v1984_v63 }
  0x92   : > { %v4557_v62 = vld [vmem:[%s4058_s23 + $0x78] sm:$0xf]  ;;  %v1350_v16 = vshll.u32 %v1158_v7, 16  ;;  %v1354_v27 = vshrl.u32 %v1158_v7, 16  ;;  %v4561_v57 = vld [vmem:[#allocation2 + $0x4c] sm:$0xf]  ;;  %1650 = vrot.lane.b32.xlu1 %v1339_v14, %s3990_s25 }
  0x93   : > { %v1091_v9 = vld [vmem:[#allocation2 + $0x90] sm:$0xf]  ;;  %v1319_v12 = vrot.slane %v1317_v6, 4  ;;  %v1322_v18 = vrot.slane %v1320_v42, 5  ;;  %v1928_v34 = vrot.slane %v4561_v57, 5  ;;  %v1924_v26 = vrot.slane %v4552_v5, 5 }
  0x94   : > { %v1159_v28 = vld [vmem:[#allocation2 + $0x50] sm:$0x1]  ;;  %1127 = vst.msk [vmem:[#allocation3 + $0x60] sm:$0xf] %vm596_vm5, %v1091_v9  ;;  %v4573_v41 = vrot.slane %v1350_v16, 5  ;;  %v1356_v47 = vrot.slane %v1354_v27, 4  ;;  %v859_v59 = vsel %vm4079_vm7, %v851_v13, %v858_v15 }
  0x95   : > { %v4570_v30 = vld [vmem:[#allocation2 + $0x50] sm:$0x1]  ;;  %v1360_v32 = vshll.u32 %v1159_v28, 16  ;;  %v1029_v35 = vld [vmem:[#allocation2 + $0xbc] sm:$0x1]  ;;  %v1323_v36 = vor.u32 %v1322_v18, %v1319_v12  ;;  %v860_v19 = vrot.slane %v4538_v2, 4 }
  0x96   : > { %v4581_v37 = vld [vmem:[%s4058_s23 + $0x7c] sm:$0xf]  ;;  %v1074_v43 = vld [vmem:[#allocation2 + $0x28] sm:$0xf]  ;;  %v1073_v46 = vld [vmem:[#allocation2 + $0x24] sm:$0xf]  ;;  %v1357_v21 = vor.u32 %v1356_v47, %v4573_v41  ;;  %2068 = vrot.lane.b32.xlu1 %v1988_v22, %s3989_s24 }
  0x97   : > { %v1362_v52 = vrot.slane %v1360_v32, 5  ;;  %v1157_v45 = vld [vmem:[#allocation2 + $0x48] sm:$0xf]  ;;  %v1923_v10 = vrot.slane %v1921_v11, 4  ;;  %1028 = vst.msk [vmem:[#allocation2 + $0xb8] sm:$0xf] %vm596_vm5, %v859_v59  ;;  %v1030_v51 = vsel %vm4042_vm2, %v860_v19, %v1029_v35 }
  0x98   : > { %v862_v54 = vshrl.u32 %v4557_v62, 16  ;;  %v512_v56 = vld [vmem:[#allocation2 + $0xc0] sm:$0x1]  ;;  %v541_v4 = vld [vmem:[#allocation2 + $0x5c] sm:$0x1]  ;;  %v1324_v58 = vrot.slane %v1323_v36, 4 }
  0x99   : > { %1110 = vst.msk [vmem:[#allocation3 + $0x1c] sm:$0xf] %vm596_vm5, %v1074_v43  ;;  %1109 = vst.msk [vmem:[#allocation3 + $0x18] sm:$0xf] %vm596_vm5, %v1073_v46  ;;  %v1341_v53 = vshrl.u32 %v1157_v45, 16  ;;  %v1344_v60 = vshll.u32 %v1157_v45, 16  ;;  %v1925_v9 = vsel %vm4134_vm11, %v1923_v10, %v1924_v26 }
  0x9a   : > { %v1931_v61 = vrot.slane %v4570_v30, 5  ;;  %v1025_v33 = vld [vmem:[#allocation2 + $0xb4] sm:$0xf]  ;;  %v4593_v24 = vld [vmem:[%s4058_s23 + $0x30] sm:$0xf]  ;;  %v1358_v49 = vrot.slane %v1357_v21, 4  ;;  %v1329_v44 = vsel %vm4172_vm14, %v1324_v58, %v4522_v50 }
  0x9b   : > { %v4595_v2 = vld [vmem:[#allocation2 + $0x3c] sm:$0xe]  ;;  %v1930_v20 = vrot.slane %v1928_v34, 4  ;;  %v1026_v0 = vsel %vm4086_vm8, %v850_v31, %v1025_v33  ;;  %v1076_v48 = vld [vmem:[#allocation2 + $0x34] sm:$0xf]  ;;  %v1343_v5 = vrot.slane %v1341_v53, 4  ;;  %1648 = vrot.lane.b32.xlu0 %v1329_v44, %s3990_s25 }
  0x9c   : > { %v1346_v6 = vrot.slane %v1344_v60, 5  ;;  %1031 = vst [vmem:[#allocation2 + $0xbc] sm:$0x1] %v1030_v51  ;;  %1027 = vst [vmem:[#allocation2 + $0xb4] sm:$0xf] %v1026_v0  ;;  %v1363_v50 = vsel %vm4172_vm14, %v1358_v49, %v1362_v52  ;;  %v864_v13 = vrot.slane %v862_v54, 7 }
  0x9d   : > { %1112 = vst.msk [vmem:[#allocation3 + $0x24] sm:$0xf] %vm596_vm5, %v1076_v48  ;;  %v1075_v42 = vld [vmem:[#allocation2 + $0x30] sm:$0xf]  ;;  %v1094_v7 = vld [vmem:[#allocation2 + $0xa0] sm:$0xf]  ;;  %1654 = vrot.lane.b32.xlu1 %v1363_v50, %s3990_s25  ;;  %v1932_v47 = vsel %vm4134_vm11, %v1930_v20, %v1931_v61 }
  0x9e   : > { %v865_v40 = vshll.u32 %v4557_v62, 16  ;;  %v870_v38 = vshrl.u32 %v4581_v37, 16  ;;  %v4619_v14 = vld [vmem:[%s4058_s23 + $0x34] sm:$0xf]  ;;  %1111 = vst.msk [vmem:[#allocation3 + $0x20] sm:$0xf] %vm596_vm5, %v1075_v42  ;;  %v1347_v17 = vor.u32 %v1346_v6, %v1343_v5 }
  0x9f   : > { %1130 = vst.msk [vmem:[#allocation3 + $0x6c] sm:$0xf] %vm596_vm5, %v1094_v7  ;;  %v1093_v63 = vld [vmem:[#allocation2 + $0x9c] sm:$0xf]  ;;  %v873_v16 = vshll.u32 %v4581_v37, 16  ;;  %v513_v27 = vsel %vm4042_vm2, 0, %v512_v56  ;;  %2066 = vrot.lane.b32.xlu0 %v1985_v3, %s3989_s24 }
  0xa0   : > { %v542_v62 = vsel %vm4062_vm6, 0, %v541_v4  ;;  %1129 = vst.msk [vmem:[#allocation3 + $0x68] sm:$0xf] %vm596_vm5, %v1093_v63  ;;  %v1096_v15 = vld [vmem:[#allocation2 + $0xac] sm:$0xf]  ;;  %v868_v12 = vrot.slane %v864_v13, 4  ;;  %v867_v46 = vor.u32 %v865_v40, %v864_v13 }
  0xa1   : > { %v872_v18 = vrot.slane %v870_v38, 7  ;;  %514 = vst [vmem:[#allocation2 + $0xc0] sm:$0x1] %v513_v27  ;;  %543 = vst [vmem:[#allocation2 + $0x5c] sm:$0x1] %v542_v62  ;;  %v709_v22 = vshrl.u32 %v4593_v24, 16  ;;  %2032 = vrot.lane.b32.xlu1 %v1925_v9, %s3989_s24 }
  0xa2   : > { %1132 = vst.msk [vmem:[#allocation3 + $0x74] sm:$0xf] %vm596_vm5, %v1096_v15  ;;  %v1095_v28 = vld [vmem:[#allocation2 + $0xa8] sm:$0xf]  ;;  %v1348_v30 = vrot.slane %v1347_v17, 4  ;;  %v3571_v31 = vrot.slane %v4595_v2, 9 }
  0xa3   : > { %v1185_v32 = vld [vmem:[#allocation2 + $0xb8] sm:$0xf]  ;;  %v1036_v35 = vld [vmem:[#allocation2 + $0xc8] sm:$0x1]  ;;  %1131 = vst.msk [vmem:[#allocation3 + $0x70] sm:$0xf] %vm596_vm5, %v1095_v28  ;;  %v875_v59 = vor.u32 %v873_v16, %v872_v18 }
  0xa4   : > { %v1566_v36 = vshll.u32 %v1185_v32, 16  ;;  %v1570_v26 = vshrl.u32 %v1185_v32, 16  ;;  %v877_v19 = vrot.slane %v872_v18, 4  ;;  %v1353_v37 = vsel %vm4172_vm14, %v1348_v30, %v4573_v41  ;;  %v1791_v43 = vld [vmem:[#allocation2 + $0x48] sm:$0xe]  ;;  %v4688_v30 = vpop.permute.xlu0 %2046 }
  0xa5   : > { %v4643_v21 = vrot.slane %v709_v22, 7  ;;  %v717_v52 = vshrl.u32 %v4619_v14, 16  ;;  %v1186_v45 = vld [vmem:[#allocation2 + $0xbc] sm:$0x1]  ;;  %v1184_v56 = vld [vmem:[#allocation2 + $0xb4] sm:$0xf]  ;;  %v876_v4 = vsel %vm4079_vm7, %v868_v12, %v875_v59  ;;  %v1922_v53 = vsel %vm4134_vm11, %v3571_v31, %v1921_v11  ;;  %1652 = vrot.lane.b32.xlu0 %v1353_v37, %s3990_s25  ;;  %2036 = vrot.lane.b32.xlu1 %v1932_v47, %s3989_s24  ;;  %v4700_v37 = vpop.permute.xlu1 %2048 }
  0xa6   : > { %v4646_v10 = vrot.slane %v1566_v36, 5  ;;  %v1572_v54 = vrot.slane %v1570_v26, 4  ;;  %v1037_v41 = vsel %vm4042_vm2, %v877_v19, %v1036_v35  ;;  %v485_v58 = vld [vmem:[#allocation2 + $0x54] sm:$0x1]  ;;  %v1576_v60 = vshll.u32 %v1186_v45, 16 }
  0xa7   : > { %v1557_v61 = vshrl.u32 %v1184_v56, 16  ;;  %v1560_v33 = vshll.u32 %v1184_v56, 16  ;;  %1035 = vst.msk [vmem:[#allocation2 + $0xc4] sm:$0xf] %vm596_vm5, %v876_v4  ;;  %1038 = vst [vmem:[#allocation2 + $0xc8] sm:$0x1] %v1037_v41 }
  0xa8   : > { %v544_v49 = vld [vmem:[#allocation2 + $0x68] sm:$0x1]  ;;  %v3572_v2 = vrot.slane %v1791_v43, 9  ;;  %v1573_v20 = vor.u32 %v1572_v54, %v4646_v10  ;;  %v4659_v51 = vld [vmem:[#allocation2 + $0xb8] sm:$0xf]  ;;  %v712_v0 = vshll.u32 %v4593_v24, 16 }
  0xa9   : > { %v719_v55 = vrot.slane %v717_v52, 7  ;;  %v4663_v48 = vld [vmem:[%s4058_s23 + $0x38] sm:$0xf]  ;;  %v1578_v11 = vrot.slane %v1576_v60, 5  ;;  %v1559_v44 = vrot.slane %v1557_v61, 4  ;;  %v1562_v3 = vrot.slane %v1560_v33, 5  ;;  %2030 = vrot.lane.b32.xlu0 %v1922_v53, %s3989_s24  ;;  %v4712_v60 = vpop.permute.xlu0 %2050 }
  0xaa   : > { %v1032_v5 = vld [vmem:[#allocation2 + $0xc0] sm:$0xf]  ;;  %v715_v6 = vrot.slane %v4643_v21, 4  ;;  %v1574_v42 = vrot.slane %v1573_v20, 4  ;;  %v720_v50 = vshll.u32 %v4619_v14, 16  ;;  %v486_v63 = vsel %vm4042_vm2, 0, %v485_v58 }
  0xab   : > { %v1033_v7 = vsel %vm4086_vm8, %v867_v46, %v1032_v5  ;;  %v973_v13 = vld [vmem:[#allocation2 + $0x5c] sm:$0x1]  ;;  %v1078_v40 = vld [vmem:[#allocation2 + $0x40] sm:$0xf]  ;;  %v1563_v24 = vor.u32 %v1562_v3, %v1559_v44  ;;  %v724_v38 = vrot.slane %v719_v55, 4  ;;  %v1991_v14 = vrot.slane %v4659_v51, 5  ;;  %v4720_v44 = vpop.permute.xlu1 %2052 }
  0xac   : > { %1034 = vst [vmem:[#allocation2 + $0xc0] sm:$0xf] %v1033_v7  ;;  %1114 = vst.msk [vmem:[#allocation3 + $0x2c] sm:$0xf] %vm596_vm5, %v1078_v40  ;;  %v1077_v17 = vld [vmem:[#allocation2 + $0x3c] sm:$0xf]  ;;  %v1579_v27 = vsel %vm4172_vm14, %v1574_v42, %v1578_v11  ;;  %v722_v62 = vor.u32 %v720_v50, %v719_v55  ;;  %v1929_v18 = vsel %vm4134_vm11, %v3572_v2, %v1928_v34 }
  0xad   : > { %v1080_v16 = vld [vmem:[#allocation2 + $0x4c] sm:$0xf]  ;;  %487 = vst [vmem:[#allocation2 + $0x54] sm:$0x1] %v486_v63  ;;  %v545_v15 = vsel %vm4062_vm6, 0, %v544_v49  ;;  %1690 = vrot.lane.b32.xlu1 %v1579_v27, %s3990_s25  ;;  %v1564_v22 = vrot.slane %v1563_v24, 4  ;;  %v974_v28 = vsel %vm4042_vm2, %v724_v38, %v973_v13  ;;  %2034 = vrot.lane.b32.xlu0 %v1929_v18, %s3989_s24  ;;  %v714_v52 = vor.u32 %v712_v0, %v4643_v21  ;;  %v4728_v63 = vpop.permute.xlu0 %2014 }
  0xae   : > { %1113 = vst.msk [vmem:[#allocation3 + $0x28] sm:$0xf] %vm596_vm5, %v1077_v17  ;;  %1116 = vst.msk [vmem:[#allocation3 + $0x34] sm:$0xf] %vm596_vm5, %v1080_v16  ;;  %v1079_v9 = vld [vmem:[#allocation2 + $0x48] sm:$0xf]  ;;  %v723_v36 = vsel %vm4079_vm7, %v715_v6, %v722_v62 }
  0xaf   : > { %v1098_v12 = vld [vmem:[#allocation2 + $0xb8] sm:$0xf]  ;;  %v430_v31 = vld [vmem:[%s4058_s23 + $0x3c] sm:$0xf]  ;;  %546 = vst [vmem:[#allocation2 + $0x68] sm:$0x1] %v545_v15  ;;  %v1569_v4 = vsel %vm4172_vm14, %v1564_v22, %v4646_v10 }
  0xb0   : > { %v726_v47 = vshrl.u32 %v4663_v48, 16  ;;  %1115 = vst.msk [vmem:[#allocation3 + $0x30] sm:$0xf] %vm596_vm5, %v1079_v9  ;;  %1134 = vst.msk [vmem:[#allocation3 + $0x7c] sm:$0xf] %vm596_vm5, %v1098_v12  ;;  %v1993_v46 = vrot.slane %v1991_v14, 4 }
  0xb1   : > { %v1097_v57 = vld [vmem:[#allocation2 + $0xb4] sm:$0xf]  ;;  %v1188_v32 = vld [vmem:[#allocation2 + $0xc4] sm:$0xf]  ;;  %v1189_v35 = vld [vmem:[#allocation2 + $0xc8] sm:$0x1]  ;;  %1688 = vrot.lane.b32.xlu0 %v1569_v4, %s3990_s25  ;;  %v4754_v4 = vpop.permute.xlu0 %2018 }
  0xb2   : > { %v4694_v34 = vld [vmem:[#allocation2 + $0xbc] sm:$0x1]  ;;  %975 = vst [vmem:[#allocation2 + $0x5c] sm:$0x1] %v974_v28  ;;  %1133 = vst.msk [vmem:[#allocation3 + $0x78] sm:$0xf] %vm596_vm5, %v1097_v57 }
  0xb3   : > { %v1590_v26 = vshll.u32 %v1188_v32, 16  ;;  %v1594_v59 = vshrl.u32 %v1188_v32, 16  ;;  %v1600_v19 = vshll.u32 %v1189_v35, 16  ;;  %972 = vst.msk [vmem:[#allocation2 + $0x58] sm:$0xf] %vm596_vm5, %v723_v36  ;;  %v728_v45 = vrot.slane %v726_v47, 7 }
  0xb4   : > { %v488_v43 = vld [vmem:[#allocation2 + $0x60] sm:$0x1]  ;;  %v734_v54 = vshrl.u32 %v430_v31, 16  ;;  %v1100_v56 = vld [vmem:[#allocation2 + $0xc4] sm:$0xf]  ;;  %v1994_v53 = vrot.slane %v4694_v34, 5  ;;  %v4742_v34 = vpop.permute.xlu1 %2016 }
  0xb5   : > { %v4709_v41 = vrot.slane %v1590_v26, 5  ;;  %v1596_v58 = vrot.slane %v1594_v59, 4  ;;  %1136 = vst.msk [vmem:[#allocation3 + $0x84] sm:$0xf] %vm596_vm5, %v1100_v56  ;;  %v1602_v61 = vrot.slane %v1600_v19, 5  ;;  %v737_v21 = vshll.u32 %v430_v31, 16 }
  0xb6   : > { %v1187_v33 = vld [vmem:[#allocation2 + $0xc0] sm:$0xf]  ;;  %v4715_v49 = vld [vmem:[#allocation2 + $0xb4] sm:$0xe]  ;;  %v4718_v10 = vld [vmem:[#allocation2 + $0xc4] sm:$0xf]  ;;  %v1995_v47 = vsel %vm4134_vm11, %v1993_v46, %v1994_v53 }
  0xb7   : > { %v1597_v2 = vor.u32 %v1596_v58, %v4709_v41  ;;  %v1581_v20 = vshrl.u32 %v1187_v33, 16  ;;  %v1584_v0 = vshll.u32 %v1187_v33, 16  ;;  %v969_v55 = vld [vmem:[#allocation2 + $0x54] sm:$0xf]  ;;  %v732_v11 = vrot.slane %v728_v45, 4 }
  0xb8   : > { %v970_v3 = vsel %vm4086_vm8, %v714_v52, %v969_v55  ;;  %v736_v5 = vrot.slane %v734_v54, 7  ;;  %v980_v6 = vld [vmem:[#allocation2 + $0x68] sm:$0x1]  ;;  %v489_v42 = vsel %vm4042_vm2, 0, %v488_v43  ;;  %v1099_v7 = vld [vmem:[#allocation2 + $0xc0] sm:$0xf] }
  0xb9   : > { %v1598_v50 = vrot.slane %v1597_v2, 4  ;;  %v1583_v13 = vrot.slane %v1581_v20, 4  ;;  %v1586_v40 = vrot.slane %v1584_v0, 5  ;;  %v1162_v24 = vld [vmem:[#allocation2 + $0x5c] sm:$0x1]  ;;  %v729_v38 = vshll.u32 %v4663_v48, 16  ;;  %v4769_v2 = vpop.permute.xlu1 %2020 }
  0xba   : > { %971 = vst [vmem:[#allocation2 + $0x54] sm:$0xf] %v970_v3  ;;  %490 = vst [vmem:[#allocation2 + $0x60] sm:$0x1] %v489_v42  ;;  %v520_v17 = vld [vmem:[#allocation2 + $0x8] sm:$0x1]  ;;  %v739_v15 = vor.u32 %v737_v21, %v736_v5 }
  0xbb   : > { %1135 = vst.msk [vmem:[#allocation3 + $0x80] sm:$0xf] %vm596_vm5, %v1099_v7  ;;  %v3581_v16 = vrot.slane %v4715_v49, 9  ;;  %v1161_v27 = vld [vmem:[#allocation2 + $0x58] sm:$0xf]  ;;  %v1384_v62 = vshll.u32 %v1162_v24, 16  ;;  %v1603_v12 = vsel %vm4172_vm14, %v1598_v50, %v1602_v61  ;;  %v1587_v18 = vor.u32 %v1586_v40, %v1583_v13  ;;  %v1665_v24 = vpop.permute.xlu0 %1664 }
  0xbc   : > { %v741_v9 = vrot.slane %v736_v5, 4  ;;  %v1374_v22 = vshll.u32 %v1161_v27, 16  ;;  %v1378_v28 = vshrl.u32 %v1161_v27, 16  ;;  %v1823_v31 = vld [vmem:[#allocation2 + $0xc8] sm:$0x1]  ;;  %1694 = vrot.lane.b32.xlu1 %v1603_v12, %s3990_s25  ;;  %v1998_v57 = vrot.slane %v4718_v10, 5 }
  0xbd   : > { %v1082_v48 = vld [vmem:[#allocation2 + $0x58] sm:$0xf]  ;;  %v740_v32 = vsel %vm4079_vm7, %v732_v11, %v739_v15  ;;  %v1588_v36 = vrot.slane %v1587_v18, 4  ;;  %v731_v19 = vor.u32 %v729_v38, %v728_v45  ;;  %v2001_v43 = vrot.slane %v1823_v31, 5  ;;  %v464_v61 = vld [vmem:[#allocation2] sm:$0x1]  ;;  %v1669_v12 = vpop.permute.xlu1 %1668 }
  0xbe   : > { %v981_v35 = vsel %vm4042_vm2, %v741_v9, %v980_v6  ;;  %1118 = vst.msk [vmem:[#allocation3 + $0x3c] sm:$0xf] %vm596_vm5, %v1082_v48  ;;  %v4745_v26 = vrot.slane %v1374_v22, 5  ;;  %v1380_v59 = vrot.slane %v1378_v28, 4  ;;  %979 = vst.msk [vmem:[#allocation2 + $0x64] sm:$0xf] %vm596_vm5, %v740_v32 }
  0xbf   : > { %982 = vst [vmem:[#allocation2 + $0x68] sm:$0x1] %v981_v35  ;;  %v521_v46 = vsel %vm4062_vm6, 0, %v520_v17  ;;  %v1593_v52 = vsel %vm4172_vm14, %v1588_v36, %v4709_v41  ;;  %v1386_v56 = vrot.slane %v1384_v62, 5  ;;  %v3991_v58 = vmov 0  }
  0xc0   : > { %v1381_v54 = vor.u32 %v1380_v59, %v4745_v26  ;;  %522 = vst [vmem:[#allocation2 + $0x8] sm:$0x1] %v521_v46  ;;  %v4756_v53 = vrot.slane %v3991_v58, 7  ;;  %v3929_v45 = vld [vmem:[%s5344_s3 + $0x8] sm:$0x3f]   ;;  %1692 = vrot.lane.b32.xlu0 %v1593_v52, %s3990_s25  ;;  %2072 = vrot.lane.b32.xlu1 %v1995_v47, %s3989_s24  ;;  %v1992_v41 = vsel %vm4134_vm11, %v3581_v16, %v1991_v14  ;;  %v2000_v49 = vrot.slane %v1998_v57, 4 }
  0xc1   : > { %v1160_v33 = vld [vmem:[#allocation2 + $0x54] sm:$0xf]  ;;  %v976_v21 = vld [vmem:[#allocation2 + $0x60] sm:$0xf]  ;;  %vm1736_vm15 = vcmask 60448   ;;  %vm2118_vm0 = vcmask 93248   ;;  %v1671_v52 = vpop.permute.xlu1 %1670 }
  0xc2   : > { %v4774_v20 = vld [vmem:[%s5344_s3] sm:$0x3f]   ;;  %v1382_v0 = vrot.slane %v1381_v54, 4  ;;  %v1365_v55 = vshrl.u32 %v1160_v33, 16  ;;  %v1368_v11 = vshll.u32 %v1160_v33, 16  ;;  %v977_v51 = vsel %vm4086_vm8, %v731_v19, %v976_v21 }
  0xc3   : > { %v571_v14 = vld [vmem:[#allocation2 + $0xd4] sm:$0x1]  ;;  %978 = vst [vmem:[#allocation2 + $0x60] sm:$0xf] %v977_v51  ;;  %v4779_v5 = vrot.slane %v4756_v53, 4  ;;  %v465_v6 = vsel %vm4042_vm2, 0, %v464_v61  ;;  %v2002_v16 = vsel %vm4134_vm11, %v2000_v49, %v2001_v43  ;;  %v1667_v43 = vpop.permute.xlu0 %1666 }
  0xc4   : > { %v1081_v3 = vld [vmem:[#allocation2 + $0x54] sm:$0xf]  ;;  %vm2328_vm1 = vcmask 1045504   ;;  %v1387_v7 = vsel %vm4172_vm14, %v1382_v0, %v1386_v56  ;;  %v1367_v50 = vrot.slane %v1365_v55, 4  ;;  %v1370_v13 = vrot.slane %v1368_v11, 5  ;;  %2070 = vrot.lane.b32.xlu0 %v1992_v41, %s3989_s24 }
  0xc5   : > { %1117 = vst.msk [vmem:[#allocation3 + $0x38] sm:$0xf] %vm596_vm5, %v1081_v3  ;;  %v4787_v42 = vld [vmem:[%s5344_s3 + $0x10] sm:$0x3f]   ;;  %v1821_v40 = vld [vmem:[#allocation2 + $0xc0] sm:$0xe]  ;;  %3899 = vmatprep.subr.msk.bf16.mxu1 %vm2328_vm1, %v3929_v45  ;;  %3898 = vmatprep.subr.msk.bf16.mxu0 %vm2328_vm1, %v3929_v45  ;;  %v591_v9 = vsel %vm4079_vm7, %v4779_v5, %v4756_v53 }
  0xc6   : > { %466 = vst [vmem:[#allocation2] sm:$0x1] %v465_v6  ;;  %v2330_v38 = vsel %vm2328_vm1, %v3929_v45, 0  ;;  %v515_v17 = vld [vmem:[#allocation2 + $0xcc] sm:$0x1]  ;;  %1658 = vrot.lane.b32.xlu1 %v1387_v7, %s3990_s25  ;;  %v1371_v18 = vor.u32 %v1370_v13, %v1367_v50  ;;  %v3582_v23 = vrot.slane %v1821_v40, 9 }
  0xc7   : > { %v1164_v27 = vld [vmem:[#allocation2 + $0x64] sm:$0xf]  ;;  %v1165_v62 = vld [vmem:[#allocation2 + $0x68] sm:$0x1]  ;;  %v4798_v15 = vld [vmem:[#allocation2 + $0x58] sm:$0xf]  ;;  %3897 = vmatpush3.bf16.msra.mxu1 %v2330_v38  ;;  %3795 = vmatpush3.bf16.msra.mxu0 %v2330_v38 }
  0xc8   : > { %1755 = vst.msk [vmem:[#allocation3 + $0x48] sm:$0xf] %vm1736_vm15, %v1665_v24  ;;  %v1398_v22 = vshll.u32 %v1164_v27, 16  ;;  %v1402_v28 = vshrl.u32 %v1164_v27, 16  ;;  %v1408_v31 = vshll.u32 %v1165_v62, 16  ;;  %v572_v35 = vsel %vm4062_vm6, 0, %v571_v14  ;;  %3900 = vmatprep.subr.msk.bf16.mxu1 %vm2328_vm1, %v4774_v20  ;;  %3901 = vmatprep.subr.msk.bf16.mxu0 %vm2328_vm1, %v4787_v42  ;;  %v1633_v14 = vpop.permute.xlu0 %1632 }
  0xc9   : > { %v4805_v48 = vld [vmem:[#allocation2 + $0x5c] sm:$0x1]  ;;  %602 = vst.msk [vmem:[#allocation2 + $0x4] sm:$0xf] %vm596_vm5, %v591_v9  ;;  %1063 = vst.msk [vmem:[#allocation2 + $0xd0] sm:$0xf] %vm596_vm5, %v591_v9 }
  0xca   : > { %2137 = vst.msk [vmem:[#allocation3 + $0x48] sm:$0xf] %vm2118_vm0, %v4688_v30  ;;  %v4812_v47 = vld [vmem:[#allocation2 + $0x64] sm:$0xf]  ;;  %v603_v32 = vld [vmem:[#allocation2 + $0x8] sm:$0x1]  ;;  %2076 = vrot.lane.b32.xlu1 %v2002_v16, %s3989_s24 }
  0xcb   : > { %1757 = vst.msk [vmem:[#allocation3 + $0x50] sm:$0xf] %vm1736_vm15, %v1669_v12  ;;  %v1372_v30 = vrot.slane %v1371_v18, 4  ;;  %v4822_v36 = vrot.slane %v1398_v22, 5  ;;  %v1404_v59 = vrot.slane %v1402_v28, 4  ;;  %v1935_v19 = vrot.slane %v4798_v15, 5 }
  0xcc   : > { %2139 = vst.msk [vmem:[#allocation3 + $0x50] sm:$0xf] %vm2118_vm0, %v4712_v60  ;;  %573 = vst [vmem:[#allocation2 + $0xd4] sm:$0x1] %v572_v35  ;;  %v1084_v46 = vld [vmem:[#allocation2 + $0x64] sm:$0xf]  ;;  %v604_v8 = vsel %vm4042_vm2, %v4779_v5, %v603_v32  ;;  %v1637_v18 = vpop.permute.xlu0 %1636 }
  0xcd   : > { %v4826_v60 = vld [vmem:[#allocation2 + $0x54] sm:$0xe]  ;;  %1756 = vst.msk [vmem:[#allocation3 + $0x4c] sm:$0xf] %vm1736_vm15, %v1667_v43  ;;  %v516_v54 = vsel %vm4042_vm2, 0, %v515_v17  ;;  %v1377_v56 = vsel %vm4172_vm14, %v1372_v30, %v4745_v26  ;;  %v1405_v58 = vor.u32 %v1404_v59, %v4822_v36  ;;  %v1410_v61 = vrot.slane %v1408_v31, 5 }
  0xce   : > { %1120 = vst.msk [vmem:[#allocation3 + $0x44] sm:$0xf] %vm596_vm5, %v1084_v46  ;;  %v1163_v45 = vld [vmem:[#allocation2 + $0x60] sm:$0xf]  ;;  %v4839_v41 = vld [vmem:[#allocation2 + $0x68] sm:$0x1]  ;;  %1656 = vrot.lane.b32.xlu0 %v1377_v56, %s3990_s25  ;;  %v1999_v26 = vsel %vm4134_vm11, %v3582_v23, %v1998_v57 }
  0xcf   : > { %v1942_v33 = vrot.slane %v4812_v47, 5  ;;  %605 = vst [vmem:[#allocation2 + $0x8] sm:$0x1] %v604_v8  ;;  %2138 = vst.msk [vmem:[#allocation3 + $0x4c] sm:$0xf] %vm2118_vm0, %v4700_v37  ;;  %v1389_v49 = vshrl.u32 %v1163_v45, 16 }
  0xd0   : > { %1758 = vst.msk [vmem:[#allocation3 + $0x54] sm:$0xf] %vm1736_vm15, %v1671_v52  ;;  %517 = vst [vmem:[#allocation2 + $0xcc] sm:$0x1] %v516_v54  ;;  %v1392_v21 = vshll.u32 %v1163_v45, 16  ;;  %v1938_v0 = vrot.slane %v4805_v48, 5 }
  0xd1   : > { %v598_v55 = vld [vmem:[#allocation2] sm:$0xf]  ;;  %2140 = vst.msk [vmem:[#allocation3 + $0x54] sm:$0xf] %vm2118_vm0, %v4720_v44  ;;  %v1406_v11 = vrot.slane %v1405_v58, 4  ;;  %v1937_v37 = vrot.slane %v1935_v19, 4  ;;  %v1635_v44 = vpop.permute.xlu1 %1634 }
  0xd2   : > { %v3573_v51 = vrot.slane %v4826_v60, 9  ;;  %v599_v10 = vsel %vm4086_vm8, %v4756_v53, %v598_v55  ;;  %v1083_v57 = vld [vmem:[#allocation2 + $0x60] sm:$0xf]  ;;  %v1391_v3 = vrot.slane %v1389_v49, 4  ;;  %v1394_v6 = vrot.slane %v1392_v21, 5  ;;  %2074 = vrot.lane.b32.xlu0 %v1999_v26, %s3989_s24 }
  0xd3   : > { %v1945_v7 = vrot.slane %v4839_v41, 5  ;;  %v1140_v50 = vld [vmem:[#allocation2 + $0x4] sm:$0xf]  ;;  %600 = vst [vmem:[#allocation2] sm:$0xf] %v599_v10  ;;  %vm2279_vm3 = vcmask 97280   ;;  %v1411_v13 = vsel %vm4172_vm14, %v1406_v11, %v1410_v61  ;;  %v1939_v62 = vsel %vm4134_vm11, %v1937_v37, %v1938_v0 }
  0xd4   : > { %1739 = vst.msk [vmem:[#allocation3 + $0x8] sm:$0xf] %vm1736_vm15, %v1633_v14  ;;  %v1944_v40 = vrot.slane %v1942_v33, 4  ;;  %v1206_v24 = vshll.u32 %v1140_v50, 16  ;;  %v1210_v38 = vshrl.u32 %v1140_v50, 16  ;;  %1662 = vrot.lane.b32.xlu1 %v1411_v13, %s3990_s25  ;;  %v1395_v17 = vor.u32 %v1394_v6, %v1391_v3 }
  0xd5   : > { %1119 = vst.msk [vmem:[#allocation3 + $0x40] sm:$0xf] %vm596_vm5, %v1083_v57  ;;  %v4871_v16 = vld [vmem:[#allocation2 + $0x4] sm:$0xf]  ;;  %v1064_v27 = vld [vmem:[#allocation2 + $0xd4] sm:$0x1]  ;;  %v1936_v35 = vsel %vm4134_vm11, %v3573_v51, %v1935_v19 }
  0xd6   : > { %2121 = vst.msk [vmem:[#allocation3 + $0x8] sm:$0xf] %vm2118_vm0, %v4728_v63  ;;  %v1797_v9 = vld [vmem:[#allocation2 + $0x60] sm:$0xe]  ;;  %v4877_v12 = vrot.slane %v1206_v24, 5  ;;  %v1212_v63 = vrot.slane %v1210_v38, 4  ;;  %v1065_v22 = vsel %vm4042_vm2, %v4779_v5, %v1064_v27 }
  0xd7   : > { %1740 = vst.msk [vmem:[#allocation3 + $0xc] sm:$0xf] %vm1736_vm15, %v1635_v44  ;;  %v1191_v28 = vld [vmem:[#allocation2 + $0xd0] sm:$0xf]  ;;  %v1396_v31 = vrot.slane %v1395_v17, 4  ;;  %v4885_v32 = vld [vmem:[#allocation3 + $0x48] sm:$0xff]  }
  0xd8   : > { %2122 = vst.msk [vmem:[#allocation3 + $0xc] sm:$0xf] %vm2118_vm0, %v4742_v34  ;;  %v1141_v48 = vld [vmem:[#allocation2 + $0x8] sm:$0x1]  ;;  %v1639_v34 = vpop.permute.xlu1 %1638  ;;  %1066 = vst [vmem:[#allocation2 + $0xd4] sm:$0x1] %v1065_v22  ;;  %v1213_v30 = vor.u32 %v1212_v63, %v4877_v12  ;;  %2040 = vrot.lane.b32.xlu1 %v1939_v62, %s3989_s24  ;;  %3812 = vmatprep.mubr.msk.bf16.mxu1 %vm2279_vm3, %v4885_v32  ;;  %v1673_v63 = vpop.permute.xlu0 %1672 }
  0xd9   : > { %v4882_v23 = vld [vmem:[#allocation2 + $0x8] sm:$0x1]  ;;  %1741 = vst.msk [vmem:[#allocation3 + $0x10] sm:$0xf] %vm1736_vm15, %v1637_v18  ;;  %v1216_v1 = vshll.u32 %v1141_v48, 16  ;;  %v1886_v5 = vrot.slane %v4871_v16, 5  ;;  %v1401_v59 = vsel %vm4172_vm14, %v1396_v31, %v4822_v36  ;;  %v1946_v36 = vsel %vm4134_vm11, %v1944_v40, %v1945_v7 }
  0xda   : > { %2123 = vst.msk [vmem:[#allocation3 + $0x10] sm:$0xf] %vm2118_vm0, %v4754_v4  ;;  %v4904_v15 = vld [vmem:[#allocation3 + $0x50] sm:$0xff]   ;;  %v1614_v19 = vshll.u32 %v1191_v28, 16  ;;  %v1618_v43 = vshrl.u32 %v1191_v28, 16  ;;  %v2507_v4 = vsel %vm2328_vm1, %v4774_v20, 0  ;;  %1660 = vrot.lane.b32.xlu0 %v1401_v59, %s3990_s25 }
  0xdb   : > { %1742 = vst.msk [vmem:[#allocation3 + $0x14] sm:$0xf] %vm1736_vm15, %v1639_v34  ;;  %v1060_v46 = vld [vmem:[#allocation2 + $0xcc] sm:$0xf]  ;;  %v1214_v60 = vrot.slane %v1213_v30, 4  ;;  %v1218_v8 = vrot.slane %v1216_v1, 5  ;;  %3813 = vmatmul.mubr.msk.bf16.vlgmr.msra.gmra.mxu1 %vm2279_vm3, %v4904_v15 }
  0xdc   : > { %2124 = vst.msk [vmem:[#allocation3 + $0x14] sm:$0xf] %vm2118_vm0, %v4769_v2  ;;  %v1139_v52 = vld [vmem:[#allocation2] sm:$0xf]  ;;  %v1061_v2 = vsel %vm4086_vm8, %v4756_v53, %v1060_v46  ;;  %v3574_v54 = vrot.slane %v1797_v9, 9  ;;  %v4916_v61 = vrot.slane %v1614_v19, 5  ;;  %3829 = vmatpush3.bf16.msra.mxu1 %v2507_v4  ;;  %2044 = vrot.lane.b32.xlu1 %v1946_v36, %s3989_s24  ;;  %v1675_v44 = vpop.permute.xlu1 %1674  ;;  %v1677_v30 = vpop.permute.xlu0 %1676 }
  0xdd   : > { %v1197_v56 = vshrl.u32 %v1139_v52, 16  ;;  %v1200_v58 = vshll.u32 %v1139_v52, 16  ;;  %1062 = vst [vmem:[#allocation2 + $0xcc] sm:$0xf] %v1061_v2  ;;  %v1888_v20 = vrot.slane %v1886_v5, 4  ;;  %v1889_v45 = vrot.slane %v4882_v23, 5 }
  0xde   : > { %v1620_v26 = vrot.slane %v1618_v43, 4  ;;  %v4923_v49 = vld [vmem:[#allocation2 + $0xd0] sm:$0xf]  ;;  %v1068_v21 = vld [vmem:[#allocation2 + $0x4] sm:$0xf]  ;;  %2038 = vrot.lane.b32.xlu0 %v1936_v35, %s3989_s24  ;;  %v1219_v55 = vsel %vm4172_vm14, %v1214_v60, %v1218_v8  ;;  %v1943_v10 = vsel %vm4134_vm11, %v3574_v54, %v1942_v33  ;;  %v2839_v6 = vsel %vm2328_vm1, %v4787_v42, 0 }
  0xdf   : > { %v4921_v41 = vld [vmem:[#allocation3 + $0x8] sm:$0xff]   ;;  %v1199_v29 = vrot.slane %v1197_v56, 4  ;;  %v1202_v53 = vrot.slane %v1200_v58, 5  ;;  %v1192_v37 = vld [vmem:[#allocation2 + $0xd4] sm:$0x1]  ;;  %v2005_v13 = vrot.slane %v4923_v49, 5  ;;  %v1890_v47 = vsel %vm4134_vm11, %v1888_v20, %v1889_v45 }
  0xe0   : > { %v1067_v0 = vld [vmem:[#allocation2] sm:$0xf]  ;;  %3796 = vmatprep.mubr.msk.bf16.mxu0 %vm2279_vm3, %v4921_v41  ;;  %v1621_v51 = vor.u32 %v1620_v26, %v4916_v61  ;;  %1104 = vst.msk [vmem:[#allocation3 + $0x4] sm:$0xf] %vm596_vm5, %v1068_v21  ;;  %v1624_v57 = vshll.u32 %v1192_v37, 16  ;;  %1630 = vrot.lane.b32.xlu1 %v1219_v55, %s3990_s25  ;;  %v1679_v31 = vpop.permute.xlu1 %1678  ;;  %v2055_v59 = vpop.permute.xlu0 %2054  ;;  %vm3162_vm2 = vcmask 60416  }
  0xe1   : > { %v1773_v11 = vld [vmem:[#allocation2] sm:$0xe]  ;;  %1103 = vst.msk [vmem:[#allocation3] sm:$0xf] %vm596_vm5, %v1067_v0  ;;  %v1203_v14 = vor.u32 %v1202_v53, %v1199_v29  ;;  %v1826_v27 = vld [vmem:[#allocation2 + $0xd4] sm:$0x1] }
  0xe2   : > { %v3566_v50 = vrot.slane %v1773_v11, 9  ;;  %2042 = vrot.lane.b32.xlu0 %v1943_v10, %s3989_s24  ;;  %1760 = vst.msk [vmem:[#allocation3 + $0x5c] sm:$0xf] %vm1736_vm15, %v1675_v44  ;;  %v1622_v33 = vrot.slane %v1621_v51, 4  ;;  %v1626_v40 = vrot.slane %v1624_v57, 5  ;;  %v2007_v22 = vrot.slane %v2005_v13, 4 }
  0xe3   : > { %v4938_v3 = vld [vmem:[#allocation3 + $0x10] sm:$0xff]   ;;  %v1204_v7 = vrot.slane %v1203_v14, 4  ;;  %v2008_v28 = vrot.slane %v1826_v27, 5  ;;  %1759 = vst.msk [vmem:[#allocation3 + $0x58] sm:$0xf] %vm1736_vm15, %v1673_v63  ;;  %vm3195_vm4 = vcmask 64512  }
  0xe4   : > { %3797 = vmatmul.mubr.msk.bf16.vlgmr.msra.gmra.mxu0 %vm2279_vm3, %v4938_v3  ;;  %v1190_v42 = vld [vmem:[#allocation2 + $0xcc] sm:$0xf]  ;;  %2012 = vrot.lane.b32.xlu1 %v1890_v47, %s3989_s24  ;;  %v1627_v18 = vsel %vm4172_vm14, %v1622_v33, %v1626_v40  ;;  %1762 = vst.msk [vmem:[#allocation3 + $0x64] sm:$0xf] %vm1736_vm15, %v1679_v31  ;;  %v2057_v16 = vpop.permute.xlu1 %2056  ;;  %1761 = vst.msk [vmem:[#allocation3 + $0x60] sm:$0xf] %vm1736_vm15, %v1677_v30  ;;  %v1641_v39 = vpop.permute.xlu0 %1640 }
  0xe5   : > { %v1209_v24 = vsel %vm4172_vm14, %v1204_v7, %v4877_v12  ;;  %v1605_v38 = vshrl.u32 %v1190_v42, 16  ;;  %v1608_v17 = vshll.u32 %v1190_v42, 16  ;;  %3863 = vmatpush3.bf16.msra.mxu0 %v2839_v6  ;;  %v1887_v12 = vsel %vm4134_vm11, %v3566_v50, %v1886_v5  ;;  %v1824_v23 = vld [vmem:[#allocation2 + $0xcc] sm:$0xe]  ;;  %2142 = vst.msk [vmem:[#allocation3 + $0x5c] sm:$0xf] %vm2118_vm0, %v2057_v16 }
  0xe6   : > { %1628 = vrot.lane.b32.xlu0 %v1209_v24, %s3990_s25  ;;  %v2009_v35 = vsel %vm4134_vm11, %v2007_v22, %v2008_v28  ;;  %v3583_v5 = vrot.slane %v1824_v23, 9  ;;  %2141 = vst.msk [vmem:[#allocation3 + $0x58] sm:$0xf] %vm2118_vm0, %v2055_v59  ;;  %v1102_v49 = vld [vmem:[#allocation2 + $0xd0] sm:$0xf] }
  0xe7   : > { %v1607_v62 = vrot.slane %v1605_v38, 4  ;;  %v1610_v9 = vrot.slane %v1608_v17, 5  ;;  %1743 = vst.msk [vmem:[#allocation3 + $0x18] sm:$0xf] %vm1736_vm15, %v1641_v39  ;;  %v1101_v29 = vld [vmem:[#allocation2 + $0xcc] sm:$0xf] }
  0xe8   : > { %1698 = vrot.lane.b32.xlu1 %v1627_v18, %s3990_s25  ;;  %v1643_v19 = vpop.permute.xlu1 %1642  ;;  %v2006_v43 = vsel %vm4134_vm11, %v3583_v5, %v2005_v13  ;;  %v2059_v4 = vpop.permute.xlu0 %2058  ;;  %1138 = vst.msk [vmem:[#allocation3 + $0x8c] sm:$0xf] %vm596_vm5, %v1102_v49  ;;  %1137 = vst.msk [vmem:[#allocation3 + $0x88] sm:$0xf] %vm596_vm5, %v1101_v29  ;;  %v3948_v39 = vld [vmem:[#allocation3 + $0x10] sm:$0xff]  }
  0xe9   : > { %v1611_v48 = vor.u32 %v1610_v9, %v1607_v62  ;;  %1744 = vst.msk [vmem:[#allocation3 + $0x1c] sm:$0xf] %vm1736_vm15, %v1643_v19 }
  0xea   : > { %2010 = vrot.lane.b32.xlu0 %v1887_v12, %s3989_s24  ;;  %2143 = vst.msk [vmem:[#allocation3 + $0x60] sm:$0xf] %vm2118_vm0, %v2059_v4 }
  0xeb   : > { %v1612_v34 = vrot.slane %v1611_v48, 4 }
  0xec   : > { %2080 = vrot.lane.b32.xlu1 %v2009_v35, %s3989_s24  ;;  %v2061_v46 = vpop.permute.xlu1 %2060  ;;  %v1645_v60 = vpop.permute.xlu0 %1644 }
  0xed   : > { %v1617_v1 = vsel %vm4172_vm14, %v1612_v34, %v4916_v61  ;;  %2144 = vst.msk [vmem:[#allocation3 + $0x64] sm:$0xf] %vm2118_vm0, %v2061_v46  ;;  %v4981_v36 = vld [vmem:[#allocation3 + $0x58] sm:$0xff]  }
  0xee   : > { %1696 = vrot.lane.b32.xlu0 %v1617_v1, %s3990_s25  ;;  %3816 = vmatprep.mubr.msk.bf16.mxu1 %vm2279_vm3, %v4981_v36  ;;  %1745 = vst.msk [vmem:[#allocation3 + $0x20] sm:$0xf] %vm1736_vm15, %v1645_v60 }
  0xf0   : > { %v1647_v25 = vpop.permute.xlu1 %1646  ;;  %v2023_v2 = vpop.permute.xlu0 %2022 }
  0xf1   : > { %1746 = vst.msk [vmem:[#allocation3 + $0x24] sm:$0xf] %vm1736_vm15, %v1647_v25 }
  0xf2   : > { %2078 = vrot.lane.b32.xlu0 %v2006_v43, %s3989_s24  ;;  %2125 = vst.msk [vmem:[#allocation3 + $0x18] sm:$0xf] %vm2118_vm0, %v2023_v2 }
  0xf4   : > { %v2025_v8 = vpop.permute.xlu1 %2024  ;;  %v4989_v52 = vld [vmem:[#allocation3 + $0x60] sm:$0xff]   ;;  %v2027_v56 = vpop.permute.xlu0 %2026 }
  0xf5   : > { %2126 = vst.msk [vmem:[#allocation3 + $0x1c] sm:$0xf] %vm2118_vm0, %v2025_v8  ;;  %3817 = vmatmul.mubr.msk.bf16.gmra.mxu1 %vm2279_vm3, %v4989_v52  ;;  %2127 = vst.msk [vmem:[#allocation3 + $0x20] sm:$0xf] %vm2118_vm0, %v2027_v56 }
  0xf8   : > { %v2029_v54 = vpop.permute.xlu1 %2028  ;;  %v1681_v61 = vpop.permute.xlu0 %1680 }
  0xf9   : > { %2128 = vst.msk [vmem:[#allocation3 + $0x24] sm:$0xf] %vm2118_vm0, %v2029_v54 }
  0xfa   : > { %1763 = vst.msk [vmem:[#allocation3 + $0x68] sm:$0xf] %vm1736_vm15, %v1681_v61 }
  0xfc   : > { %v1683_v58 = vpop.permute.xlu1 %1682  ;;  %v4997_v20 = vld [vmem:[#allocation3 + $0x18] sm:$0xff]  }
  0xfd   : > { %1764 = vst.msk [vmem:[#allocation3 + $0x6c] sm:$0xf] %vm1736_vm15, %v1683_v58  ;;  %3800 = vmatprep.mubr.msk.bf16.mxu0 %vm2279_vm3, %v4997_v20  ;;  %v1685_v21 = vpop.permute.xlu0 %1684  ;;  %v3950_v60 = vld [vmem:[#allocation3 + $0x18] sm:$0xff]  }
  0xfe   : > { %1765 = vst.msk [vmem:[#allocation3 + $0x70] sm:$0xf] %vm1736_vm15, %v1685_v21 }
 0x100   : > { %v5002_v45 = vld [vmem:[#allocation3 + $0x20] sm:$0xff]   ;;  %v1687_v26 = vpop.permute.xlu1 %1686 }
 0x101   : > { %1766 = vst.msk [vmem:[#allocation3 + $0x74] sm:$0xf] %vm1736_vm15, %v1687_v26  ;;  %3801 = vmatmul.mubr.msk.bf16.gmra.mxu0 %vm2279_vm3, %v5002_v45  ;;  %v2063_v0 = vpop.permute.xlu0 %2062  ;;  %v3951_v2 = vld [vmem:[#allocation3 + $0x20] sm:$0xff]  }
 0x102   : > { %2145 = vst.msk [vmem:[#allocation3 + $0x68] sm:$0xf] %vm2118_vm0, %v2063_v0 }
 0x104   : > { %v2065_v53 = vpop.permute.xlu1 %2064 }
 0x105   : > { %2146 = vst.msk [vmem:[#allocation3 + $0x6c] sm:$0xf] %vm2118_vm0, %v2065_v53 }
 0x108   : > { %v1651_v55 = vpop.permute.xlu1 %1650 }
 0x109   : > { %1748 = vst.msk [vmem:[#allocation3 + $0x2c] sm:$0xf] %vm1736_vm15, %v1651_v55 }
 0x10c   : > { %v2069_v11 = vpop.permute.xlu1 %2068  ;;  %v5015_v51 = vld [vmem:[#allocation3 + $0x68] sm:$0xff]  }
 0x10d   : > { %2148 = vst.msk [vmem:[#allocation3 + $0x74] sm:$0xf] %vm2118_vm0, %v2069_v11  ;;  %v1649_v37 = vpop.permute.xlu0 %1648  ;;  %3820 = vmatprep.mubr.msk.bf16.mxu1 %vm2279_vm3, %v5015_v51  ;;  %v3960_v26 = vld [vmem:[#allocation3 + $0x68] sm:$0xff]  }
 0x10e   : > { %1747 = vst.msk [vmem:[#allocation3 + $0x28] sm:$0xf] %vm1736_vm15, %v1649_v37 }
 0x110   : > { %v1655_v10 = vpop.permute.xlu1 %1654 }
 0x111   : > { %1750 = vst.msk [vmem:[#allocation3 + $0x34] sm:$0xf] %vm1736_vm15, %v1655_v10  ;;  %v2067_v14 = vpop.permute.xlu0 %2066 }
 0x112   : > { %2147 = vst.msk [vmem:[#allocation3 + $0x70] sm:$0xf] %vm2118_vm0, %v2067_v14 }
 0x114   : > { %v2033_v57 = vpop.permute.xlu1 %2032 }
 0x115   : > { %2130 = vst.msk [vmem:[#allocation3 + $0x2c] sm:$0xf] %vm2118_vm0, %v2033_v57 }
 0x117   : > { %v1653_v6 = vpop.permute.xlu0 %1652 }
 0x118   : > { %1749 = vst.msk [vmem:[#allocation3 + $0x30] sm:$0xf] %vm1736_vm15, %v1653_v6  ;;  %v2037_v7 = vpop.permute.xlu1 %2036 }
 0x119   : > { %2132 = vst.msk [vmem:[#allocation3 + $0x34] sm:$0xf] %vm2118_vm0, %v2037_v7  ;;  %v5024_v44 = vld [vmem:[#allocation3 + $0x70] sm:$0xff]  }
 0x11a   : > { %3821 = vmatmul.mubr.msk.bf16.gmra.mxu1 %vm2279_vm3, %v5024_v44  ;;  %v3961_v49 = vld [vmem:[#allocation3 + $0x70] sm:$0xff]  }
 0x11b   : > { %v2031_v50 = vpop.permute.xlu0 %2030 }
 0x11c   : > { %2129 = vst.msk [vmem:[#allocation3 + $0x28] sm:$0xf] %vm2118_vm0, %v2031_v50 }
 0x11f   : > { %v1691_v13 = vpop.permute.xlu1 %1690  ;;  %v2035_v47 = vpop.permute.xlu0 %2034 }
 0x120   : > { %1768 = vst.msk [vmem:[#allocation3 + $0x7c] sm:$0xf] %vm1736_vm15, %v1691_v13 }
 0x121   : > { %2131 = vst.msk [vmem:[#allocation3 + $0x30] sm:$0xf] %vm2118_vm0, %v2035_v47 }
 0x123   : > { %v1689_v33 = vpop.permute.xlu0 %1688  ;;  %v5031_v40 = vld [vmem:[#allocation3 + $0x28] sm:$0xff]  }
 0x124   : > { %1767 = vst.msk [vmem:[#allocation3 + $0x78] sm:$0xf] %vm1736_vm15, %v1689_v33  ;;  %3804 = vmatprep.mubr.msk.bf16.mxu0 %vm2279_vm3, %v5031_v40  ;;  %v3952_v54 = vld [vmem:[#allocation3 + $0x28] sm:$0xff]  }
 0x128   : > { %v5036_v24 = vld [vmem:[#allocation3 + $0x30] sm:$0xff]  }
 0x129   : > { %3805 = vmatmul.mubr.msk.bf16.gmra.mxu0 %vm2279_vm3, %v5036_v24  ;;  %v3953_v56 = vld [vmem:[#allocation3 + $0x30] sm:$0xff]  }
 0x12e   : > { %v1695_v42 = vpop.permute.xlu1 %1694 }
 0x12f   : > { %1770 = vst.msk [vmem:[#allocation3 + $0x84] sm:$0xf] %vm1736_vm15, %v1695_v42 }
 0x132   : > { %v1693_v38 = vpop.permute.xlu0 %1692  ;;  %v2073_v17 = vpop.permute.xlu1 %2072 }
 0x133   : > { %1769 = vst.msk [vmem:[#allocation3 + $0x80] sm:$0xf] %vm1736_vm15, %v1693_v38 }
 0x134   : > { %2150 = vst.msk [vmem:[#allocation3 + $0x7c] sm:$0xf] %vm2118_vm0, %v2073_v17 }
 0x136   : > { %v2071_v27 = vpop.permute.xlu0 %2070 }
 0x137   : > { %2149 = vst.msk [vmem:[#allocation3 + $0x78] sm:$0xf] %vm2118_vm0, %v2071_v27 }
 0x138   : > { %v1659_v62 = vpop.permute.xlu1 %1658 }
 0x139   : > { %1752 = vst.msk [vmem:[#allocation3 + $0x3c] sm:$0xf] %vm1736_vm15, %v1659_v62 }
 0x13c   : > { %v2077_v9 = vpop.permute.xlu1 %2076 }
 0x13d   : > { %2152 = vst.msk [vmem:[#allocation3 + $0x84] sm:$0xf] %vm2118_vm0, %v2077_v9 }
 0x13e   : > { %v5047_v18 = vld [vmem:[#allocation3 + $0x78] sm:$0xff]  }
 0x13f   : > { %3824 = vmatprep.mubr.msk.bf16.mxu1 %vm2279_vm3, %v5047_v18  ;;  %v3962_v29 = vld [vmem:[#allocation3 + $0x78] sm:$0xff]  }
 0x140   : > { %v1657_v63 = vpop.permute.xlu0 %1656 }
 0x141   : > { %1751 = vst.msk [vmem:[#allocation3 + $0x38] sm:$0xf] %vm1736_vm15, %v1657_v63 }
 0x144   : > { %v2075_v22 = vpop.permute.xlu0 %2074 }
 0x145   : > { %2151 = vst.msk [vmem:[#allocation3 + $0x80] sm:$0xf] %vm2118_vm0, %v2075_v22 }
 0x146   : > { %v1663_v28 = vpop.permute.xlu1 %1662 }
 0x147   : > { %1754 = vst.msk [vmem:[#allocation3 + $0x44] sm:$0xf] %vm1736_vm15, %v1663_v28 }
 0x14a   : > { %v2041_v12 = vpop.permute.xlu1 %2040 }
 0x14b   : > { %2134 = vst.msk [vmem:[#allocation3 + $0x3c] sm:$0xf] %vm2118_vm0, %v2041_v12 }
 0x14c   : > { %v1661_v31 = vpop.permute.xlu0 %1660  ;;  %v3945_v48 = vld [vmem:[#allocation3 + $0x80] sm:$0xff]  }
 0x14d   : > { %1753 = vst.msk [vmem:[#allocation3 + $0x40] sm:$0xf] %vm1736_vm15, %v1661_v31  ;;  %3825 = vmatmul.mubr.msk.bf16.gmra.mxu1 %vm2279_vm3, %v3945_v48  ;;  %v3963_v53 = vld [vmem:[#allocation3 + $0x80] sm:$0xff]  }
 0x14e   : > { %v2045_v23 = vpop.permute.xlu1 %2044 }
 0x14f   : > { %2136 = vst.msk [vmem:[#allocation3 + $0x44] sm:$0xf] %vm2118_vm0, %v2045_v23 }
 0x150   : > { %v2039_v34 = vpop.permute.xlu0 %2038 }
 0x151   : > { %2133 = vst.msk [vmem:[#allocation3 + $0x38] sm:$0xf] %vm2118_vm0, %v2039_v34 }
 0x152   : > { %v1631_v35 = vpop.permute.xlu1 %1630 }
 0x153   : > { %1738 = vst.msk [vmem:[#allocation3 + $0x4] sm:$0xf] %vm1736_vm15, %v1631_v35 }
 0x154   : > { %v2043_v30 = vpop.permute.xlu0 %2042 }
 0x155   : > { %2135 = vst.msk [vmem:[#allocation3 + $0x40] sm:$0xf] %vm2118_vm0, %v2043_v30 }
 0x156   : > { %v2013_v16 = vpop.permute.xlu1 %2012 }
 0x157   : > { %2120 = vst.msk [vmem:[#allocation3 + $0x4] sm:$0xf] %vm2118_vm0, %v2013_v16 }
 0x158   : > { %v1629_v1 = vpop.permute.xlu0 %1628  ;;  %v3946_v5 = vld [vmem:[#allocation3 + $0x38] sm:$0xff]  }
 0x159   : > { %1737 = vst.msk [vmem:[#allocation3] sm:$0xf] %vm1736_vm15, %v1629_v1  ;;  %3808 = vmatprep.mubr.msk.bf16.mxu0 %vm2279_vm3, %v3946_v5  ;;  %v3954_v58 = vld [vmem:[#allocation3 + $0x38] sm:$0xff]  }
 0x15a   : > { %v1699_v59 = vpop.permute.xlu1 %1698 }
 0x15b   : > { %1772 = vst.msk [vmem:[#allocation3 + $0x8c] sm:$0xf] %vm1736_vm15, %v1699_v59 }
 0x15c   : > { %v2011_v19 = vpop.permute.xlu0 %2010  ;;  %v3947_v43 = vld [vmem:[#allocation3 + $0x40] sm:$0xff]  }
 0x15d   : > { %2119 = vst.msk [vmem:[#allocation3] sm:$0xf] %vm2118_vm0, %v2011_v19  ;;  %3809 = vmatmul.mubr.msk.bf16.gmra.mxu0 %vm2279_vm3, %v3947_v43  ;;  %v3955_v61 = vld [vmem:[#allocation3 + $0x40] sm:$0xff]  }
 0x15e   : > { %3864 = vmatprep.mubr.msk.bf16.mxu0 %vm2279_vm3, %v3948_v39  ;;  %v2081_v46 = vpop.permute.xlu1 %2080 }
 0x15f   : > { %2154 = vst.msk [vmem:[#allocation3 + $0x8c] sm:$0xf] %vm2118_vm0, %v2081_v46 }
 0x160   : > { %v1697_v4 = vpop.permute.xlu0 %1696 }
 0x161   : > { %1771 = vst.msk [vmem:[#allocation3 + $0x88] sm:$0xf] %vm1736_vm15, %v1697_v4 }
 0x164   : > { %v3949_v25 = vld [vmem:[#allocation3] sm:$0xff]   ;;  %v2079_v8 = vpop.permute.xlu0 %2078 }
 0x165   : > { %2153 = vst.msk [vmem:[#allocation3 + $0x88] sm:$0xf] %vm2118_vm0, %v2079_v8  ;;  %3830 = vmatprep.mubr.msk.bf16.mxu1 %vm2279_vm3, %v3949_v25  ;;  %3865 = vmatmul.mubr.msk.bf16.vlgmr.msra.gmra.mxu0 %vm2279_vm3, %v3950_v60 }
 0x166   : > { %3831 = vmatmul.mubr.msk.bf16.vlgmr.msra.gmra.mxu1 %vm2279_vm3, %v4921_v41  ;;  %3868 = vmatprep.mubr.msk.bf16.mxu0 %vm2279_vm3, %v3951_v2  ;;  %v3956_v41 = vld [vmem:[#allocation3 + $0x48] sm:$0xff]  }
 0x167   : > { %3834 = vmatprep.mubr.msk.bf16.mxu1 %vm2279_vm3, %v4938_v3  ;;  %v3957_v3 = vld [vmem:[#allocation3 + $0x50] sm:$0xff]  }
 0x16d   : > { %3869 = vmatmul.mubr.msk.bf16.gmra.mxu0 %vm2279_vm3, %v3952_v54 }
 0x16e   : > { %3835 = vmatmul.mubr.msk.bf16.gmra.mxu1 %vm2279_vm3, %v4997_v20  ;;  %3872 = vmatprep.mubr.msk.bf16.mxu0 %vm2279_vm3, %v3953_v56  ;;  %v3958_v20 = vld [vmem:[#allocation3 + $0x58] sm:$0xff]  }
 0x16f   : > { %3838 = vmatprep.mubr.msk.bf16.mxu1 %vm2279_vm3, %v5002_v45  ;;  %v3959_v45 = vld [vmem:[#allocation3 + $0x60] sm:$0xff]  }
 0x175   : > { %3873 = vmatmul.mubr.msk.bf16.gmra.mxu0 %vm2279_vm3, %v3954_v58 }
 0x176   : > { %3839 = vmatmul.mubr.msk.bf16.gmra.mxu1 %vm2279_vm3, %v5031_v40  ;;  %3876 = vmatprep.mubr.msk.bf16.mxu0 %vm2279_vm3, %v3955_v61 }
 0x177   : > { %3842 = vmatprep.mubr.msk.bf16.mxu1 %vm2279_vm3, %v5036_v24 }
 0x17d   : > { %3877 = vmatmul.mubr.msk.bf16.gmra.mxu0 %vm2279_vm3, %v3956_v41 }
 0x17e   : > { %3843 = vmatmul.mubr.msk.bf16.gmra.mxu1 %vm2279_vm3, %v3946_v5  ;;  %3880 = vmatprep.mubr.msk.bf16.mxu0 %vm2279_vm3, %v3957_v3 }
 0x17f   : > { %3846 = vmatprep.mubr.msk.bf16.mxu1 %vm2279_vm3, %v3947_v43 }
 0x185   : > { %3881 = vmatmul.mubr.msk.bf16.gmra.mxu0 %vm2279_vm3, %v3958_v20 }
 0x186   : > { %3847 = vmatmul.mubr.msk.bf16.gmra.mxu1 %vm2279_vm3, %v4885_v32  ;;  %3884 = vmatprep.mubr.msk.bf16.mxu0 %vm2279_vm3, %v3959_v45  ;;  %v3964_v32 = vld [vmem:[#allocation3 + $0x88] sm:$0xff]  }
 0x187   : > { %3850 = vmatprep.mubr.msk.bf16.mxu1 %vm2279_vm3, %v4904_v15 }
 0x18d   : > { %3885 = vmatmul.mubr.msk.bf16.gmra.mxu0 %vm2279_vm3, %v3960_v26 }
 0x18e   : > { %3851 = vmatmul.mubr.msk.bf16.gmra.mxu1 %vm2279_vm3, %v4981_v36  ;;  %3888 = vmatprep.mubr.msk.bf16.mxu0 %vm2279_vm3, %v3961_v49 }
 0x18f   : > { %3854 = vmatprep.mubr.msk.bf16.mxu1 %vm2279_vm3, %v4989_v52 }
 0x195   : > { %3889 = vmatmul.mubr.msk.bf16.gmra.mxu0 %vm2279_vm3, %v3962_v29 }
 0x196   : > { %3855 = vmatmul.mubr.msk.bf16.gmra.mxu1 %vm2279_vm3, %v5015_v51  ;;  %3892 = vmatprep.mubr.msk.bf16.mxu0 %vm2279_vm3, %v3963_v53 }
 0x197   : > { %3858 = vmatprep.mubr.msk.bf16.mxu1 %vm2279_vm3, %v5024_v44 }
 0x19b   : > { %v5114_v15 = vpop.f32.mrf.mxu1 }
 0x19d   : > { %3893 = vmatmul.mubr.msk.bf16.gmra.mxu0 %vm2279_vm3, %v3964_v32  ;;  %v5116_v36 = vpop.f32.mrf.mxu1 }
 0x19e   : > { %3859 = vmatmul.mubr.msk.bf16.gmra.mxu1 %vm2279_vm3, %v5047_v18 }
 0x19f   : > { %v5118_v21 = vpop.f32.mrf.mxu1 }
 0x1a1   : > { %v5120_v55 = vpop.f32.mrf.mxu1 }
 0x1a4   : > { %v3798_v52 = vpop.f32.mrf.mxu0 }
 0x1a6   : > { %v2366_v0 = vpop.f32.mrf.mxu0 }
 0x1a8   : > { %v3799_v11 = vpop.f32.mrf.mxu0 }
 0x1aa   : > { %v2369_v51 = vpop.f32.mrf.mxu0 }
 0x1b5   : > { %v5122_v37 = vpop.f32.mrf.mxu1 }
 0x1b7   : > { %v5124_v10 = vpop.f32.mrf.mxu1 }
 0x1b9   : > { %v5126_v57 = vpop.f32.mrf.mxu1 }
 0x1bb   : > { %v5128_v7 = vpop.f32.mrf.mxu1 }
 0x1c1   : > { %v3802_v14 = vpop.f32.mrf.mxu0 }
 0x1c3   : > { %v2382_v6 = vpop.f32.mrf.mxu0 }
 0x1c5   : > { %v5130_v50 = vpop.f32.mrf.mxu0 }
 0x1c7   : > { %v5134_v13 = vpop.f32.mrf.mxu0 }
 0x1da   : > { %v5132_v44 = vpop.f32.mrf.mxu1 }
 0x1dc   : > { %v5136_v47 = vpop.f32.mrf.mxu1 }
 0x1de   : > { %v5140_v40 = vpop.f32.mrf.mxu1 }
 0x1e0   : > { %v5144_v24 = vpop.f32.mrf.mxu1 }
 0x1e9   : > { %v5138_v33 = vpop.f32.mrf.mxu0 }
 0x1eb   : > { %v5142_v42 = vpop.f32.mrf.mxu0 }
 0x1ed   : > { %v5146_v38 = vpop.f32.mrf.mxu0 }
 0x1ef   : > { %v5150_v27 = vpop.f32.mrf.mxu0 }
 0x20d   : > { %v5148_v17 = vpop.f32.mrf.mxu1 }
 0x20f   : > { %v5152_v62 = vpop.f32.mrf.mxu1 }
 0x211   : > { %v5158_v18 = vpop.f32.mrf.mxu1 }
 0x213   : > { %v5164_v12 = vpop.f32.mrf.mxu1 }
 0x21d   : > { %v5154_v9 = vpop.f32.mrf.mxu0 }
 0x21f   : > { %v5156_v63 = vpop.f32.mrf.mxu0 }
 0x221   : > { %v5160_v22 = vpop.f32.mrf.mxu0 }
 0x223   : > { %v5162_v28 = vpop.f32.mrf.mxu0 }
 0x225   : > { %v3866_v31 = vpop.f32.mrf.mxu0 }
 0x226   : > { %v3832_v48 = vpop.f32.mrf.mxu1 }
 0x227   : > { %v2552_v23 = vadd.f32 %v3832_v48, %v3798_v52  ;;  %v2875_v34 = vpop.f32.mrf.mxu0 }
 0x228   : > { %v2543_v35 = vpop.f32.mrf.mxu1 }
 0x229   : > { %v3004_v30 = vadd.f32 %v3866_v31, %v2552_v23  ;;  %v2544_v16 = vadd.f32 %v2543_v35, %v2366_v0  ;;  %v3867_v1 = vpop.f32.mrf.mxu0 }
 0x22a   : > { %v3833_v5 = vpop.f32.mrf.mxu1 }
 0x22b   : > { %v3713_v59 = vpack.c.bf16 %v3004_v30, %v3004_v30  ;;  %v3002_v19 = vadd.f32 %v2875_v34, %v2544_v16  ;;  %v2878_v43 = vpop.f32.mrf.mxu0  ;;  %v2555_v39 = vadd.f32 %v3833_v5, %v3799_v11  ;;  %v3267_v20 = vmul.f32 %v3004_v30, %v3004_v30 }
 0x22c   : > { %v2546_v46 = vpop.f32.mrf.mxu1  ;;  %v3199_v11 = vsel %vm3195_vm4, %v3004_v30, 0.0 }
 0x22d   : > { %3165 = vst.msk [vmem:[%s5171_s9 + $0x8] sm:$0xf] %vm3162_vm2, %v3713_v59  ;;  %v3711_v4 = vpack.c.bf16 %v3002_v19, %v3002_v19  ;;  %v3870_v25 = vpop.f32.mrf.mxu0  ;;  %v3005_v60 = vadd.f32 %v3867_v1, %v2555_v39  ;;  %v2547_v8 = vadd.f32 %v2546_v46, %v2369_v51  ;;  %v3265_v54 = vmul.f32 %v3002_v19, %v3002_v19 }
 0x22e   : > { %v3836_v2 = vpop.f32.mrf.mxu1  ;;  %v3196_v29 = vsel %vm3195_vm4, %v3002_v19, 0.0  ;;  %v3300_v1 = vsel %vm3195_vm4, %v3267_v20, 0.0 }
 0x22f   : > { %3163 = vst.msk [vmem:[%s5171_s9] sm:$0xf] %vm3162_vm2, %v3711_v4  ;;  %v2568_v56 = vadd.f32 %v3836_v2, %v3802_v14  ;;  %v2891_v58 = vpop.f32.mrf.mxu0  ;;  %v3714_v61 = vpack.c.bf16 %v3005_v60, %v3005_v60  ;;  %v3003_v41 = vadd.f32 %v2878_v43, %v2547_v8  ;;  %v3297_v51 = vsel %vm3195_vm4, %v3265_v54, 0.0 }
 0x230   : > { %v2559_v3 = vpop.f32.mrf.mxu1  ;;  %v3268_v23 = vmul.f32 %v3005_v60, %v3005_v60  ;;  %v3201_v43 = vsel %vm3195_vm4, %v3005_v60, 0.0 }
 0x231   : > { %v3008_v45 = vadd.f32 %v3870_v25, %v2568_v56  ;;  %v2560_v26 = vadd.f32 %v2559_v3, %v2382_v6  ;;  %v3871_v49 = vpop.f32.mrf.mxu0  ;;  %3166 = vst.msk [vmem:[%s5171_s9 + $0xc] sm:$0xf] %vm3162_vm2, %v3714_v61  ;;  %v3712_v53 = vpack.c.bf16 %v3003_v41, %v3003_v41  ;;  %v3197_v32 = vsel %vm3195_vm4, %v3003_v41, 0.0 }
 0x232   : > { %v3266_v52 = vmul.f32 %v3003_v41, %v3003_v41  ;;  %v3837_v0 = vpop.f32.mrf.mxu1  ;;  %v3198_v14 = vadd.f32 %v3197_v32, %v3196_v29 }
 0x233   : > { %v3717_v31 = vpack.c.bf16 %v3008_v45, %v3008_v45  ;;  %v2894_v48 = vpop.f32.mrf.mxu0  ;;  %3164 = vst.msk [vmem:[%s5171_s9 + $0x4] sm:$0xf] %vm3162_vm2, %v3712_v53  ;;  %v3006_v34 = vadd.f32 %v2891_v58, %v2560_v26  ;;  %v2571_v35 = vadd.f32 %v3837_v0, %v5130_v50  ;;  %v3302_v58 = vsel %vm3195_vm4, %v3268_v23, 0.0 }
 0x234   : > { %v3298_v6 = vsel %vm3195_vm4, %v3266_v52, 0.0  ;;  %v2562_v16 = vpop.f32.mrf.mxu1  ;;  %v3200_v5 = vadd.f32 %v3199_v11, %v3198_v14  ;;  %v3271_v61 = vmul.f32 %v3008_v45, %v3008_v45 }
 0x235   : > { %v3299_v59 = vadd.f32 %v3298_v6, %v3297_v51  ;;  %3169 = vst.msk [vmem:[%s5171_s9 + $0x18] sm:$0xf] %vm3162_vm2, %v3717_v31  ;;  %v2563_v30 = vadd.f32 %v2562_v16, %v5134_v13  ;;  %v3874_v19 = vpop.f32.mrf.mxu0  ;;  %v3715_v39 = vpack.c.bf16 %v3006_v34, %v3006_v34  ;;  %v3269_v46 = vmul.f32 %v3006_v34, %v3006_v34 }
 0x236   : > { %v3009_v4 = vadd.f32 %v3871_v49, %v2571_v35  ;;  %v3840_v25 = vpop.f32.mrf.mxu1  ;;  %v3202_v2 = vadd.f32 %v3201_v43, %v3200_v5  ;;  %v3203_v13 = vsel %vm3195_vm4, %v3006_v34, 0.0 }
 0x237   : > { %v3301_v8 = vadd.f32 %v3300_v1, %v3299_v59  ;;  %v3007_v50 = vadd.f32 %v2894_v48, %v2563_v30  ;;  %v2584_v54 = vadd.f32 %v3840_v25, %v5138_v33  ;;  %v2907_v56 = vpop.f32.mrf.mxu0  ;;  %3167 = vst.msk [vmem:[%s5171_s9 + $0x10] sm:$0xf] %vm3162_vm2, %v3715_v39  ;;  %v3304_v53 = vsel %vm3195_vm4, %v3269_v46, 0.0 }
 0x238   : > { %v3718_v60 = vpack.c.bf16 %v3009_v4, %v3009_v4  ;;  %v2575_v41 = vpop.f32.mrf.mxu1  ;;  %v3204_v3 = vadd.f32 %v3203_v13, %v3202_v2  ;;  %v3207_v48 = vsel %vm3195_vm4, %v3008_v45, 0.0  ;;  %v3272_v23 = vmul.f32 %v3009_v4, %v3009_v4 }
 0x239   : > { %v3303_v20 = vadd.f32 %v3302_v58, %v3301_v8  ;;  %v3716_v26 = vpack.c.bf16 %v3007_v50, %v3007_v50  ;;  %v3205_v49 = vsel %vm3195_vm4, %v3007_v50, 0.0  ;;  %v3875_v29 = vpop.f32.mrf.mxu0  ;;  %v3270_v33 = vmul.f32 %v3007_v50, %v3007_v50 }
 0x23a   : > { %3170 = vst.msk [vmem:[%s5171_s9 + $0x1c] sm:$0xf] %vm3162_vm2, %v3718_v60  ;;  %v3012_v32 = vadd.f32 %v3874_v19, %v2584_v54  ;;  %v2576_v52 = vadd.f32 %v2575_v41, %v5142_v42  ;;  %v3841_v0 = vpop.f32.mrf.mxu1  ;;  %v3206_v51 = vadd.f32 %v3205_v49, %v3204_v3  ;;  %v3308_v30 = vsel %vm3195_vm4, %v3271_v61, 0.0 }
 0x23b   : > { %v3305_v11 = vadd.f32 %v3304_v53, %v3303_v20  ;;  %3168 = vst.msk [vmem:[%s5171_s9 + $0x14] sm:$0xf] %vm3162_vm2, %v3716_v26  ;;  %v2587_v14 = vadd.f32 %v3841_v0, %v5146_v38  ;;  %v2910_v31 = vpop.f32.mrf.mxu0  ;;  %v3306_v6 = vsel %vm3195_vm4, %v3270_v33, 0.0  ;;  %v3209_v19 = vsel %vm3195_vm4, %v3009_v4, 0.0 }
 0x23c   : > { %v3721_v34 = vpack.c.bf16 %v3012_v32, %v3012_v32  ;;  %v2578_v35 = vpop.f32.mrf.mxu1  ;;  %v3208_v16 = vadd.f32 %v3207_v48, %v3206_v51  ;;  %v3010_v5 = vadd.f32 %v2907_v56, %v2576_v52  ;;  %v3310_v8 = vsel %vm3195_vm4, %v3272_v23, 0.0 }
 0x23d   : > { %v3307_v1 = vadd.f32 %v3306_v6, %v3305_v11  ;;  %v3013_v42 = vadd.f32 %v3875_v29, %v2587_v14  ;;  %v3878_v59 = vpop.f32.mrf.mxu0  ;;  %v2579_v38 = vadd.f32 %v2578_v35, %v5150_v27  ;;  %v3275_v60 = vmul.f32 %v3012_v32, %v3012_v32 }
 0x23e   : > { %3173 = vst.msk [vmem:[%s5171_s9 + $0x28] sm:$0xf] %vm3162_vm2, %v3721_v34  ;;  %v3844_v45 = vpop.f32.mrf.mxu1  ;;  %v3719_v39 = vpack.c.bf16 %v3010_v5, %v3010_v5  ;;  %v3210_v46 = vadd.f32 %v3209_v19, %v3208_v16  ;;  %v3211_v2 = vsel %vm3195_vm4, %v3010_v5, 0.0  ;;  %v3273_v50 = vmul.f32 %v3010_v5, %v3010_v5 }
 0x23f   : > { %v3309_v43 = vadd.f32 %v3308_v30, %v3307_v1  ;;  %v2923_v25 = vpop.f32.mrf.mxu0  ;;  %v3722_v54 = vpack.c.bf16 %v3013_v42, %v3013_v42  ;;  %v3011_v61 = vadd.f32 %v2910_v31, %v2579_v38  ;;  %v2600_v27 = vadd.f32 %v3844_v45, %v5154_v9 }
 0x240   : > { %v2591_v56 = vpop.f32.mrf.mxu1  ;;  %3171 = vst.msk [vmem:[%s5171_s9 + $0x20] sm:$0xf] %vm3162_vm2, %v3719_v39  ;;  %v3212_v4 = vadd.f32 %v3211_v2, %v3210_v46  ;;  %v3312_v41 = vsel %vm3195_vm4, %v3273_v50, 0.0  ;;  %v3276_v3 = vmul.f32 %v3013_v42, %v3013_v42  ;;  %v3215_v31 = vsel %vm3195_vm4, %v3012_v32, 0.0 }
 0x241   : > { %v3311_v58 = vadd.f32 %v3310_v8, %v3309_v43  ;;  %v3879_v13 = vpop.f32.mrf.mxu0  ;;  %3174 = vst.msk [vmem:[%s5171_s9 + $0x2c] sm:$0xf] %vm3162_vm2, %v3722_v54  ;;  %v2592_v20 = vadd.f32 %v2591_v56, %v5156_v63  ;;  %v3720_v29 = vpack.c.bf16 %v3011_v61, %v3011_v61  ;;  %v3213_v53 = vsel %vm3195_vm4, %v3011_v61, 0.0 }
 0x242   : > { %v3845_v26 = vpop.f32.mrf.mxu1  ;;  %v3274_v33 = vmul.f32 %v3011_v61, %v3011_v61  ;;  %v3214_v0 = vadd.f32 %v3213_v53, %v3212_v4  ;;  %v3016_v11 = vadd.f32 %v3878_v59, %v2600_v27  ;;  %v3316_v6 = vsel %vm3195_vm4, %v3275_v60, 0.0 }
 0x243   : > { %v3313_v49 = vadd.f32 %v3312_v41, %v3311_v58  ;;  %v2926_v52 = vpop.f32.mrf.mxu0  ;;  %v3014_v9 = vadd.f32 %v2923_v25, %v2592_v20  ;;  %v2603_v51 = vadd.f32 %v3845_v26, %v5160_v22  ;;  %3172 = vst.msk [vmem:[%s5171_s9 + $0x24] sm:$0xf] %vm3162_vm2, %v3720_v29  ;;  %v3217_v22 = vsel %vm3195_vm4, %v3013_v42, 0.0 }
 0x244   : > { %v2594_v14 = vpop.f32.mrf.mxu1  ;;  %v3314_v63 = vsel %vm3195_vm4, %v3274_v33, 0.0  ;;  %v3216_v34 = vadd.f32 %v3215_v31, %v3214_v0  ;;  %v3725_v16 = vpack.c.bf16 %v3016_v11, %v3016_v11  ;;  %v3318_v5 = vsel %vm3195_vm4, %v3276_v3, 0.0 }
 0x245   : > { %v2595_v48 = vadd.f32 %v2594_v14, %v5162_v28  ;;  %v3882_v23 = vpop.f32.mrf.mxu0  ;;  %v3315_v35 = vadd.f32 %v3314_v63, %v3313_v49  ;;  %v3723_v32 = vpack.c.bf16 %v3014_v9, %v3014_v9  ;;  %v3277_v59 = vmul.f32 %v3014_v9, %v3014_v9 }
 0x246   : > { %v3848_v1 = vpop.f32.mrf.mxu1  ;;  %3177 = vst.msk [vmem:[%s5171_s9 + $0x38] sm:$0xf] %vm3162_vm2, %v3725_v16  ;;  %v3218_v38 = vadd.f32 %v3217_v22, %v3216_v34  ;;  %v3017_v28 = vadd.f32 %v3879_v13, %v2603_v51  ;;  %v3279_v39 = vmul.f32 %v3016_v11, %v3016_v11  ;;  %v3219_v46 = vsel %vm3195_vm4, %v3014_v9, 0.0 }
 0x247   : > { %v2939_v30 = vpop.f32.mrf.mxu0  ;;  %v3317_v19 = vadd.f32 %v3316_v6, %v3315_v35  ;;  %v3015_v45 = vadd.f32 %v2926_v52, %v2595_v48  ;;  %3175 = vst.msk [vmem:[%s5171_s9 + $0x30] sm:$0xf] %vm3162_vm2, %v3723_v32  ;;  %v2616_v42 = vadd.f32 %v3848_v1, %v5114_v15  ;;  %v3320_v54 = vsel %vm3195_vm4, %v3277_v59, 0.0 }
 0x248   : > { %v2607_v43 = vpop.f32.mrf.mxu1  ;;  %v3220_v2 = vadd.f32 %v3219_v46, %v3218_v38  ;;  %v3726_v56 = vpack.c.bf16 %v3017_v28, %v3017_v28  ;;  %v3280_v58 = vmul.f32 %v3017_v28, %v3017_v28  ;;  %v3223_v26 = vsel %vm3195_vm4, %v3016_v11, 0.0 }
 0x249   : > { %v2608_v25 = vadd.f32 %v2607_v43, %v5116_v36  ;;  %v3883_v8 = vpop.f32.mrf.mxu0  ;;  %v3319_v50 = vadd.f32 %v3318_v5, %v3317_v19  ;;  %v3724_v61 = vpack.c.bf16 %v3015_v45, %v3015_v45  ;;  %v3221_v27 = vsel %vm3195_vm4, %v3015_v45, 0.0 }
 0x24a   : > { %v3849_v4 = vpop.f32.mrf.mxu1  ;;  %v3278_v13 = vmul.f32 %v3015_v45, %v3015_v45  ;;  %3178 = vst.msk [vmem:[%s5171_s9 + $0x3c] sm:$0xf] %vm3162_vm2, %v3726_v56  ;;  %v3222_v15 = vadd.f32 %v3221_v27, %v3220_v2  ;;  %v3020_v3 = vadd.f32 %v3882_v23, %v2616_v42  ;;  %v3324_v52 = vsel %vm3195_vm4, %v3279_v39, 0.0 }
 0x24b   : > { %v2942_v60 = vpop.f32.mrf.mxu0  ;;  %v3321_v41 = vadd.f32 %v3320_v54, %v3319_v50  ;;  %v3018_v36 = vadd.f32 %v2939_v30, %v2608_v25  ;;  %3176 = vst.msk [vmem:[%s5171_s9 + $0x34] sm:$0xf] %vm3162_vm2, %v3724_v61  ;;  %v2619_v29 = vadd.f32 %v3849_v4, %v5118_v21  ;;  %v3225_v31 = vsel %vm3195_vm4, %v3017_v28, 0.0 }
 0x24c   : > { %v2610_v20 = vpop.f32.mrf.mxu1  ;;  %v3322_v49 = vsel %vm3195_vm4, %v3278_v13, 0.0  ;;  %v3224_v0 = vadd.f32 %v3223_v26, %v3222_v15  ;;  %v3729_v51 = vpack.c.bf16 %v3020_v3, %v3020_v3  ;;  %v3326_v11 = vsel %vm3195_vm4, %v3280_v58, 0.0 }
 0x24d   : > { %v2611_v53 = vadd.f32 %v2610_v20, %v5120_v55  ;;  %v3886_v33 = vpop.f32.mrf.mxu0  ;;  %v3323_v9 = vadd.f32 %v3322_v49, %v3321_v41  ;;  %v3727_v63 = vpack.c.bf16 %v3018_v36, %v3018_v36  ;;  %v3281_v48 = vmul.f32 %v3018_v36, %v3018_v36 }
 0x24e   : > { %v3852_v14 = vpop.f32.mrf.mxu1  ;;  %3181 = vst.msk [vmem:[%s5171_s9 + $0x48] sm:$0xf] %vm3162_vm2, %v3729_v51  ;;  %v3226_v21 = vadd.f32 %v3225_v31, %v3224_v0  ;;  %v3021_v55 = vadd.f32 %v3883_v8, %v2619_v29  ;;  %v3283_v16 = vmul.f32 %v3020_v3, %v3020_v3  ;;  %v3227_v1 = vsel %vm3195_vm4, %v3018_v36, 0.0 }
 0x24f   : > { %v2955_v23 = vpop.f32.mrf.mxu0  ;;  %v3325_v6 = vadd.f32 %v3324_v52, %v3323_v9  ;;  %v3019_v34 = vadd.f32 %v2942_v60, %v2611_v53  ;;  %3179 = vst.msk [vmem:[%s5171_s9 + $0x40] sm:$0xf] %vm3162_vm2, %v3727_v63  ;;  %v2632_v22 = vadd.f32 %v3852_v14, %v5122_v37  ;;  %v3328_v19 = vsel %vm3195_vm4, %v3281_v48, 0.0 }
 0x250   : > { %v2623_v35 = vpop.f32.mrf.mxu1  ;;  %v3228_v59 = vadd.f32 %v3227_v1, %v3226_v21  ;;  %v3730_v38 = vpack.c.bf16 %v3021_v55, %v3021_v55  ;;  %v3284_v45 = vmul.f32 %v3021_v55, %v3021_v55  ;;  %v3231_v50 = vsel %vm3195_vm4, %v3020_v3, 0.0 }
 0x251   : > { %v2624_v5 = vadd.f32 %v2623_v35, %v5124_v10  ;;  %v3887_v32 = vpop.f32.mrf.mxu0  ;;  %v3327_v30 = vadd.f32 %v3326_v11, %v3325_v6  ;;  %v3728_v43 = vpack.c.bf16 %v3019_v34, %v3019_v34  ;;  %v3229_v39 = vsel %vm3195_vm4, %v3019_v34, 0.0 }
 0x252   : > { %v3853_v28 = vpop.f32.mrf.mxu1  ;;  %v3282_v46 = vmul.f32 %v3019_v34, %v3019_v34  ;;  %3182 = vst.msk [vmem:[%s5171_s9 + $0x4c] sm:$0xf] %vm3162_vm2, %v3730_v38  ;;  %v3230_v37 = vadd.f32 %v3229_v39, %v3228_v59  ;;  %v3024_v8 = vadd.f32 %v3886_v33, %v2632_v22  ;;  %v3332_v61 = vsel %vm3195_vm4, %v3283_v16, 0.0 }
 0x253   : > { %v2958_v42 = vpop.f32.mrf.mxu0  ;;  %v3329_v25 = vadd.f32 %v3328_v19, %v3327_v30  ;;  %v3022_v10 = vadd.f32 %v2955_v23, %v2624_v5  ;;  %3180 = vst.msk [vmem:[%s5171_s9 + $0x44] sm:$0xf] %vm3162_vm2, %v3728_v43  ;;  %v2635_v56 = vadd.f32 %v3853_v28, %v5126_v57  ;;  %v3233_v15 = vsel %vm3195_vm4, %v3021_v55, 0.0 }
 0x254   : > { %v2626_v2 = vpop.f32.mrf.mxu1  ;;  %v3330_v54 = vsel %vm3195_vm4, %v3282_v46, 0.0  ;;  %v3232_v27 = vadd.f32 %v3231_v50, %v3230_v37  ;;  %v3733_v60 = vpack.c.bf16 %v3024_v8, %v3024_v8  ;;  %v3334_v3 = vsel %vm3195_vm4, %v3284_v45, 0.0 }
 0x255   : > { %v2627_v4 = vadd.f32 %v2626_v2, %v5128_v7  ;;  %v3890_v58 = vpop.f32.mrf.mxu0  ;;  %v3331_v13 = vadd.f32 %v3330_v54, %v3329_v25  ;;  %v3731_v36 = vpack.c.bf16 %v3022_v10, %v3022_v10  ;;  %v3285_v20 = vmul.f32 %v3022_v10, %v3022_v10 }
 0x256   : > { %v3856_v41 = vpop.f32.mrf.mxu1  ;;  %3185 = vst.msk [vmem:[%s5171_s9 + $0x58] sm:$0xf] %vm3162_vm2, %v3733_v60  ;;  %v3234_v57 = vadd.f32 %v3233_v15, %v3232_v27  ;;  %v3025_v7 = vadd.f32 %v3887_v32, %v2635_v56  ;;  %v3287_v33 = vmul.f32 %v3024_v8, %v3024_v8  ;;  %v3235_v52 = vsel %vm3195_vm4, %v3022_v10, 0.0 }
 0x257   : > { %v2971_v26 = vpop.f32.mrf.mxu0  ;;  %v3333_v49 = vadd.f32 %v3332_v61, %v3331_v13  ;;  %v3023_v29 = vadd.f32 %v2958_v42, %v2627_v4  ;;  %3183 = vst.msk [vmem:[%s5171_s9 + $0x50] sm:$0xf] %vm3162_vm2, %v3731_v36  ;;  %v2648_v0 = vadd.f32 %v3856_v41, %v5132_v44  ;;  %v3336_v11 = vsel %vm3195_vm4, %v3285_v20, 0.0 }
 0x258   : > { %v2639_v53 = vpop.f32.mrf.mxu1  ;;  %v3236_v14 = vadd.f32 %v3235_v52, %v3234_v57  ;;  %v3734_v63 = vpack.c.bf16 %v3025_v7, %v3025_v7  ;;  %v3288_v23 = vmul.f32 %v3025_v7, %v3025_v7  ;;  %v3239_v22 = vsel %vm3195_vm4, %v3024_v8, 0.0 }
 0x259   : > { %v2640_v9 = vadd.f32 %v2639_v53, %v5136_v47  ;;  %v3891_v51 = vpop.f32.mrf.mxu0  ;;  %v3335_v31 = vadd.f32 %v3334_v3, %v3333_v49  ;;  %v3732_v6 = vpack.c.bf16 %v3023_v29, %v3023_v29  ;;  %v3237_v21 = vsel %vm3195_vm4, %v3023_v29, 0.0 }
 0x25a   : > { %v3857_v48 = vpop.f32.mrf.mxu1  ;;  %v3286_v55 = vmul.f32 %v3023_v29, %v3023_v29  ;;  %3186 = vst.msk [vmem:[%s5171_s9 + $0x5c] sm:$0xf] %vm3162_vm2, %v3734_v63  ;;  %v3238_v44 = vadd.f32 %v3237_v21, %v3236_v14  ;;  %v3028_v16 = vadd.f32 %v3890_v58, %v2648_v0  ;;  %v3340_v19 = vsel %vm3195_vm4, %v3287_v33, 0.0 }
 0x25b   : > { %v2974_v34 = vpop.f32.mrf.mxu0  ;;  %v3337_v35 = vadd.f32 %v3336_v11, %v3335_v31  ;;  %v3026_v47 = vadd.f32 %v2971_v26, %v2640_v9  ;;  %3184 = vst.msk [vmem:[%s5171_s9 + $0x54] sm:$0xf] %vm3162_vm2, %v3732_v6  ;;  %v2651_v32 = vadd.f32 %v3857_v48, %v5140_v40  ;;  %v3241_v39 = vsel %vm3195_vm4, %v3025_v7, 0.0 }
 0x25c   : > { %v2642_v1 = vpop.f32.mrf.mxu1  ;;  %v3338_v5 = vsel %vm3195_vm4, %v3286_v55, 0.0  ;;  %v3240_v38 = vadd.f32 %v3239_v22, %v3238_v44  ;;  %v3737_v45 = vpack.c.bf16 %v3028_v16, %v3028_v16  ;;  %v3342_v46 = vsel %vm3195_vm4, %v3288_v23, 0.0 }
 0x25d   : > { %v2643_v59 = vadd.f32 %v2642_v1, %v5144_v24  ;;  %v3894_v30 = vpop.f32.mrf.mxu0  ;;  %v3339_v28 = vadd.f32 %v3338_v5, %v3337_v35  ;;  %v3735_v42 = vpack.c.bf16 %v3026_v47, %v3026_v47  ;;  %v3289_v25 = vmul.f32 %v3026_v47, %v3026_v47 }
 0x25e   : > { %v3860_v43 = vpop.f32.mrf.mxu1  ;;  %3189 = vst.msk [vmem:[%s5171_s9 + $0x68] sm:$0xf] %vm3162_vm2, %v3737_v45  ;;  %v3242_v40 = vadd.f32 %v3241_v39, %v3240_v38  ;;  %v3029_v24 = vadd.f32 %v3891_v51, %v2651_v32  ;;  %v3247_v50 = vsel %vm3195_vm4, %v3028_v16, 0.0  ;;  %v3243_v54 = vsel %vm3195_vm4, %v3026_v47, 0.0 }
 0x25f   : > { %v2987_v37 = vpop.f32.mrf.mxu0  ;;  %v3341_v8 = vadd.f32 %v3340_v19, %v3339_v28  ;;  %v3027_v10 = vadd.f32 %v2974_v34, %v2643_v59  ;;  %3187 = vst.msk [vmem:[%s5171_s9 + $0x60] sm:$0xf] %vm3162_vm2, %v3735_v42  ;;  %v2664_v56 = vadd.f32 %v3860_v43, %v5148_v17  ;;  %v3291_v58 = vmul.f32 %v3028_v16, %v3028_v16 }
 0x260   : > { %v2655_v2 = vpop.f32.mrf.mxu1  ;;  %v3244_v61 = vadd.f32 %v3243_v54, %v3242_v40  ;;  %v3738_v13 = vpack.c.bf16 %v3029_v24, %v3029_v24  ;;  %v3344_v41 = vsel %vm3195_vm4, %v3289_v25, 0.0  ;;  %v3292_v7 = vmul.f32 %v3029_v24, %v3029_v24 }
 0x261   : > { %v2656_v4 = vadd.f32 %v2655_v2, %v5152_v62  ;;  %v3343_v27 = vadd.f32 %v3342_v46, %v3341_v8  ;;  %v3736_v15 = vpack.c.bf16 %v3027_v10, %v3027_v10  ;;  %v3245_v3 = vsel %vm3195_vm4, %v3027_v10, 0.0  ;;  %v3895_v20 = vpop.f32.mrf.mxu0 }
 0x262   : > { %v3861_v60 = vpop.f32.mrf.mxu1  ;;  %v3290_v36 = vmul.f32 %v3027_v10, %v3027_v10  ;;  %3190 = vst.msk [vmem:[%s5171_s9 + $0x6c] sm:$0xf] %vm3162_vm2, %v3738_v13  ;;  %v3246_v49 = vadd.f32 %v3245_v3, %v3244_v61  ;;  %v3032_v17 = vadd.f32 %v3894_v30, %v2664_v56  ;;  %v3348_v51 = vsel %vm3195_vm4, %v3291_v58, 0.0 }
 0x263   : > { %v3345_v26 = vadd.f32 %v3344_v41, %v3343_v27  ;;  %v3030_v57 = vadd.f32 %v2987_v37, %v2656_v4  ;;  %3188 = vst.msk [vmem:[%s5171_s9 + $0x64] sm:$0xf] %vm3162_vm2, %v3736_v15  ;;  %v2667_v53 = vadd.f32 %v3861_v60, %v5158_v18  ;;  %v3249_v14 = vsel %vm3195_vm4, %v3029_v24, 0.0  ;;  %v2990_v63 = vpop.f32.mrf.mxu0 }
 0x264   : > { %v2658_v62 = vpop.f32.mrf.mxu1  ;;  %v3346_v29 = vsel %vm3195_vm4, %v3290_v36, 0.0  ;;  %v3248_v52 = vadd.f32 %v3247_v50, %v3246_v49  ;;  %v3741_v9 = vpack.c.bf16 %v3032_v17, %v3032_v17  ;;  %v3350_v21 = vsel %vm3195_vm4, %v3292_v7, 0.0 }
 0x265   : > { %v2659_v33 = vadd.f32 %v2658_v62, %v5164_v12  ;;  %v3347_v0 = vadd.f32 %v3346_v29, %v3345_v26  ;;  %v3739_v31 = vpack.c.bf16 %v3030_v57, %v3030_v57  ;;  %v3293_v11 = vmul.f32 %v3030_v57, %v3030_v57 }
 0x266   : > { %3193 = vst.msk [vmem:[%s5171_s9 + $0x78] sm:$0xf] %vm3162_vm2, %v3741_v9  ;;  %v3250_v23 = vadd.f32 %v3249_v14, %v3248_v52  ;;  %v3033_v6 = vadd.f32 %v3895_v20, %v2667_v53  ;;  %v3251_v12 = vsel %vm3195_vm4, %v3030_v57, 0.0  ;;  %v3295_v55 = vmul.f32 %v3032_v17, %v3032_v17 }
 0x267   : > { %v3349_v48 = vadd.f32 %v3348_v51, %v3347_v0  ;;  %v3031_v18 = vadd.f32 %v2990_v63, %v2659_v33  ;;  %3191 = vst.msk [vmem:[%s5171_s9 + $0x70] sm:$0xf] %vm3162_vm2, %v3739_v31  ;;  %v3352_v16 = vsel %vm3195_vm4, %v3293_v11, 0.0  ;;  %v3255_v59 = vsel %vm3195_vm4, %v3032_v17, 0.0 }
 0x268   : > { %v3252_v34 = vadd.f32 %v3251_v12, %v3250_v23  ;;  %v3742_v44 = vpack.c.bf16 %v3033_v6, %v3033_v6  ;;  %v3296_v30 = vmul.f32 %v3033_v6, %v3033_v6  ;;  %v3356_v45 = vsel %vm3195_vm4, %v3295_v55, 0.0 }
 0x269   : > { %v3351_v35 = vadd.f32 %v3350_v21, %v3349_v48  ;;  %v3740_v47 = vpack.c.bf16 %v3031_v18, %v3031_v18  ;;  %v3253_v1 = vsel %vm3195_vm4, %v3031_v18, 0.0  ;;  %v3294_v22 = vmul.f32 %v3031_v18, %v3031_v18 }
 0x26a   : > { %3194 = vst.msk [vmem:[%s5171_s9 + $0x7c] sm:$0xf] %vm3162_vm2, %v3742_v44  ;;  %v3254_v32 = vadd.f32 %v3253_v1, %v3252_v34  ;;  %v3257_v43 = vsel %vm3195_vm4, %v3033_v6, 0.0  ;;  %v3358_v42 = vsel %vm3195_vm4, %v3296_v30, 0.0  ;;  %v3366_v24 = vlaneseq }
 0x26b   : > { %v3353_v5 = vadd.f32 %v3352_v16, %v3351_v35  ;;  %3192 = vst.msk [vmem:[%s5171_s9 + $0x74] sm:$0xf] %vm3162_vm2, %v3740_v47  ;;  %v3354_v19 = vsel %vm3195_vm4, %v3294_v22, 0.0 }
 0x26c   : > { %v3256_v38 = vadd.f32 %v3255_v59, %v3254_v32  ;;  %v3367_v56 = vshrl.u32 %v3366_v24, 7 }
 0x26d   : > { %v3355_v28 = vadd.f32 %v3354_v19, %v3353_v5 }
 0x26e   : > { %v3258_v39 = vadd.f32 %v3257_v43, %v3256_v38  ;;  %vm3369_vm5 = vcmp.eq.s32.totalorder %v3367_v56, 1  ;;  %vm3368_vm6 = vcmp.eq.s32.totalorder %v3367_v56, 0 }
 0x26f   : > { %v3357_v46 = vadd.f32 %v3356_v45, %v3355_v28 }
 0x270   : > { %v3259_v25 = vrot.slane %v3258_v39, 4 }
 0x271   : > { %v3359_v37 = vadd.f32 %v3358_v42, %v3357_v46 }
 0x272   : > { %v3260_v8 = vadd.f32 %v3259_v25, %v3258_v39 }
 0x273   : > { %v3360_v40 = vrot.slane %v3359_v37, 4 }
 0x274   : > { %v3261_v10 = vrot.slane %v3260_v8, 2 }
 0x275   : > { %v3361_v2 = vadd.f32 %v3360_v40, %v3359_v37 }
 0x276   : > { %v3262_v50 = vadd.f32 %v3261_v10, %v3260_v8 }
 0x277   : > { %v3362_v54 = vrot.slane %v3361_v2, 2 }
 0x278   : > { %v3263_v58 = vrot.slane %v3262_v50, 1 }
 0x279   : > { %v3363_v4 = vadd.f32 %v3362_v54, %v3361_v2 }
 0x27a   : > { %v3264_v13 = vadd.f32 %v3263_v58, %v3262_v50 }
 0x27b   : > { %v3364_v61 = vrot.slane %v3363_v4, 1 }
 0x27d   : > { %v3365_v27 = vadd.f32 %v3364_v61, %v3363_v4 }
 0x27f   : > { %v3370_v60 = vsel %vm3369_vm5, %v3365_v27, 0.0 }
 0x280   : > { %v3371_v41 = vsel %vm3368_vm6, %v3264_v13, %v3370_v60 }
 0x281   : > { %3372 = vst.msk [vmem:[%s411_s13] sm:$0xff] %vm3195_vm4, %v3371_v41 }
 0x282 PF: > { %s16_s0 = sadd.s32 1, %s3987_s0   ;;  %s5359_s18 = smov %s3983_s19 }
 0x283   : > { %p13_p5 = scmp.ge.s32.totalorder %s16_s0, 4   ;;  %s5360_s19 = smov %s5362_s2 }
 0x285   :  { %15 = sbr.rel (!%p13_p5) target bundleno = 2 (0x2), region = 88 }

// kernel: vgg_block_forward.4
= control target key start
LH: loop header
LB: loop body
LE: loop exit
PB: predicated region body
PF: predicated region fallthrough
CT: control target
= control target key end

     0   :  { %s4537_s24 = smov 0   ;;  %s4539_s25 = smov 0   ;;  %s5889_s0 = inlined_call_operand.vmem [shape: f32[1,8], index: 0, kind: input, shape index: {}]   ;;  %s5890_s1 = inlined_call_operand.vmem [shape: f32[1,8], index: 1, kind: input, shape index: {}]   ;;  %s5891_s2 = inlined_call_operand.vmem [shape: bf16[2,16,16,8], index: 2, kind: input, shape index: {}, may-alias: {2,3,4}]   ;;  %s5892_s3 = inlined_call_operand.vmem [shape: bf16[2,16,16,8], index: 3, kind: input, shape index: {}, may-alias: {2,3,4}]   ;;  %s5893_s4 = inlined_call_operand.vmem [shape: bf16[2,16,16,8], index: 4, kind: input, shape index: {}, may-alias: {2,3,4}]   ;;  %s5894_s5 = inlined_call_operand.vmem [shape: bf16[3,24,4], index: 5, kind: input, shape index: {}]   ;;  %s5895_s6 = inlined_call_operand.vmem [shape: bf16[2,16,16,4], index: 6, kind: output, shape index: {0}]   ;;  %s5896_s7 = inlined_call_operand.vmem [shape: f32[2,1,8,4], index: 7, kind: output, shape index: {1}]  }
   0x1   :  { %s4541_s2 = smov 0  }
   0x2 LB: > { %s30_s4 = sadd.s32 1, %s4488_s25  ;;  %p3891_p0 = scmp.ge.s32.totalorder %s4492_s2, 1  ;;  %s4492_s2 = sphi %s4541_s2, %s18_s2   ;;  %s4488_s25 = sphi %s4539_s25, %s5910_s25   ;;  %s4484_s24 = sphi %s4537_s24, %s5909_s24  }
   0x3   : > { %p32_p1 = scmp.ge.s32.totalorder %s30_s4, 2  ;;  %p328_p2 = scmp.lt.s32.totalorder %s4492_s2, 3 }
   0x5   : > { %s5912_s4 = smov (%p32_p1, %s30_s4), 0  ;;  %p329_p3 = pnand %p3891_p0, %p328_p2 }
   0x6   : > { %p421_p4 = scmp.lt.s32.totalorder (!%p329_p3), %s4484_s24, 1  ;;  %s4494_s11 = smov (!%p329_p3), 16  }
   0x7   : > { %332 = sbr.rel (%p329_p3) target bundleno = 661 (0x295), region = 44  ;;  %s4495_s12 = smov (!%p329_p3), 8  }
   0xc   : > { %vm673_vm0 = vcmask 57344   ;;  %vm674_vm1 = vsmask.f32 256  ;;  %v703_v0 = vld [vmem:[#allocation2 + $0x6c] sm:$0x1]  ;;  %s5914_s24 = smov (!%p421_p4, %s4484_s24), 1 }
   0xd   : > { %vm4559_vm2 = vmand %vm673_vm0, %vm674_vm1  ;;  %vm730_vm3 = vsmask.f32 7938  ;;  %v759_v3 = vld [vmem:[#allocation2 + $0x74] sm:$0x1]  ;;  %v706_v4 = vld [vmem:[#allocation2 + $0x78] sm:$0x1] }
   0xe   : > { %v704_v2 = vsel %vm4559_vm2, 0, %v703_v0  ;;  %s4085_s26 = sshll.u32 %s5914_s24, 7  ;;  %v4569_v5 = vld [vmem:[%s5889_s0] ss:$0 sm:$0xff]  ;;  %v707_v6 = vsel %vm4559_vm2, 0, %v706_v4  ;;  %vm4585_vm4 = vmand %vm673_vm0, %vm730_vm3  ;;  %vm814_vm6 = vcmask 60416  }
   0xf   : > { %705 = vst [vmem:[#allocation2 + $0x6c] sm:$0x1] %v704_v2  ;;  %v762_v7 = vld [vmem:[#allocation2 + $0x80] sm:$0x1]  ;;  %v679_v8 = vld [vmem:[#allocation2 + $0xc] sm:$0x1]  ;;  %s4578_s8 = scalar_lea.vmem %s5892_s3, %s4085_s26  ;;  %vm4634_vm10 = vmand %vm814_vm6, %vm730_vm3 }
  0x10   : > { %708 = vst [vmem:[#allocation2 + $0x78] sm:$0x1] %v707_v6  ;;  %v680_v9 = vsel %vm4559_vm2, 0, %v679_v8  ;;  %v735_v10 = vld [vmem:[#allocation2 + $0x14] sm:$0x1]  ;;  %v4224_v12 = vld [vmem:[%s4578_s8 + $0x40] sm:$0xff]  }
  0x11   : > { %v682_v11 = vld [vmem:[#allocation2 + $0x18] sm:$0x1]  ;;  %v4225_v14 = vld [vmem:[%s4578_s8 + $0x48] sm:$0xff]   ;;  %681 = vst [vmem:[#allocation2 + $0xc] sm:$0x1] %v680_v9  ;;  %v4187_v16 = vunpack.c.l.bf16 %v4224_v12  ;;  %v4188_v17 = vunpack.c.h.bf16 %v4224_v12  ;;  %v760_v18 = vsel %vm4585_vm4, 0, %v759_v3 }
  0x12   : > { %v683_v15 = vsel %vm4559_vm2, 0, %v682_v11  ;;  %v4191_v19 = vunpack.c.l.bf16 %v4225_v14  ;;  %v4154_v20 = vld [vmem:[%s4578_s8] sm:$0xff]   ;;  %v4217_v21 = vld [vmem:[%s4578_s8 + $0x8] sm:$0xff]   ;;  %vm792_vm5 = vsmask.f32 4368  ;;  %v4192_v23 = vunpack.c.h.bf16 %v4225_v14 }
  0x13   : > { %684 = vst [vmem:[#allocation2 + $0x18] sm:$0x1] %v683_v15  ;;  %v4599_v22 = vld [vmem:[%s5890_s1] ss:$0 sm:$0xff]  ;;  %761 = vst [vmem:[#allocation2 + $0x74] sm:$0x1] %v760_v18  ;;  %v4155_v25 = vunpack.c.l.bf16 %v4154_v20  ;;  %v4156_v26 = vunpack.c.h.bf16 %v4154_v20  ;;  %v571_v27 = vmul.f32 %v4187_v16, %v4569_v5  ;;  %v572_v28 = vmul.f32 %v4188_v17, %v4569_v5 }
  0x14   : > { %v763_v24 = vsel %vm4585_vm4, 0, %v762_v7  ;;  %v573_v29 = vmul.f32 %v4191_v19, %v4569_v5  ;;  %v736_v30 = vsel %vm4585_vm4, 0, %v735_v10  ;;  %v574_v31 = vmul.f32 %v4192_v23, %v4569_v5  ;;  %vm4628_vm7 = vmor %vm674_vm1, %vm792_vm5 }
  0x15   : > { %764 = vst [vmem:[#allocation2 + $0x80] sm:$0x1] %v763_v24  ;;  %v555_v32 = vmul.f32 %v4155_v25, %v4569_v5  ;;  %v556_v33 = vmul.f32 %v4156_v26, %v4569_v5  ;;  %737 = vst [vmem:[#allocation2 + $0x14] sm:$0x1] %v736_v30  ;;  %v4159_v34 = vunpack.c.l.bf16 %v4217_v21  ;;  %v603_v35 = vadd.f32 %v4599_v22, %v571_v27  ;;  %v738_v30 = vld [vmem:[#allocation2 + $0x20] sm:$0x1] }
  0x16   : > { %v604_v36 = vadd.f32 %v4599_v22, %v572_v28  ;;  %v605_v37 = vadd.f32 %v4599_v22, %v573_v29  ;;  %v4160_v38 = vunpack.c.h.bf16 %v4217_v21  ;;  %v606_v39 = vadd.f32 %v4599_v22, %v574_v31  ;;  %v1297_v8 = vld [vmem:[#allocation2 + $0x6c] sm:$0xf] }
  0x17   : > { %v587_v40 = vadd.f32 %v4599_v22, %v555_v32  ;;  %v588_v41 = vadd.f32 %v4599_v22, %v556_v33  ;;  %v557_v42 = vmul.f32 %v4159_v34, %v4569_v5  ;;  %v635_v43 = vmax.f32 %v603_v35, 0.0  ;;  %v1304_v23 = vld [vmem:[#allocation2 + $0x78] sm:$0xf] }
  0x18   : > { %v636_v44 = vmax.f32 %v604_v36, 0.0  ;;  %v637_v45 = vmax.f32 %v605_v37, 0.0  ;;  %v558_v46 = vmul.f32 %v4160_v38, %v4569_v5  ;;  %v638_v47 = vmax.f32 %v606_v39, 0.0  ;;  %v1241_v29 = vld [vmem:[#allocation2 + $0xc] sm:$0xf]  ;;  %v4226_v36 = vld [vmem:[%s4578_s8 + $0x50] sm:$0xff]  }
  0x19   : > { %v619_v48 = vmax.f32 %v587_v40, 0.0  ;;  %v620_v49 = vmax.f32 %v588_v41, 0.0  ;;  %v4620_v50 = vadd.f32 %v4599_v22, %v557_v42  ;;  %v4105_v51 = vpack.c.bf16 %v635_v43, %v635_v43  ;;  %v709_v41 = vld [vmem:[#allocation2 + $0x84] sm:$0x1] }
  0x1a   : > { %v4106_v52 = vpack.c.bf16 %v636_v44, %v636_v44  ;;  %v4107_v53 = vpack.c.bf16 %v637_v45, %v637_v45  ;;  %v4623_v54 = vadd.f32 %v4599_v22, %v558_v46  ;;  %v4108_v55 = vpack.c.bf16 %v638_v47, %v638_v47  ;;  %v1301_v12 = vld [vmem:[#allocation2 + $0x74] sm:$0x1] }
  0x1b   : > { %v4089_v56 = vpack.c.bf16 %v619_v48, %v619_v48  ;;  %v4090_v57 = vpack.c.bf16 %v620_v49, %v620_v49  ;;  %v621_v58 = vmax.f32 %v4620_v50, 0.0  ;;  %v1057_v59 = vshrl.u32 %v4105_v51, 16 }
  0x1c   : > { %v1060_v60 = vshll.u32 %v4105_v51, 16  ;;  %v1065_v61 = vshrl.u32 %v4106_v52, 16  ;;  %v1068_v62 = vshll.u32 %v4106_v52, 16  ;;  %v1074_v63 = vshrl.u32 %v4107_v53, 16  ;;  %v1308_v24 = vld [vmem:[#allocation2 + $0x80] sm:$0x1] }
  0x1d   : > { %v1077_v0 = vshll.u32 %v4107_v53, 16  ;;  %v1082_v2 = vshrl.u32 %v4108_v55, 16  ;;  %v1085_v3 = vshll.u32 %v4108_v55, 16  ;;  %v1059_v6 = vrot.slane %v1057_v59, 7  ;;  %v1245_v35 = vld [vmem:[#allocation2 + $0x14] sm:$0x1] }
  0x1e   : > { %v1067_v7 = vrot.slane %v1065_v61, 7  ;;  %vm2201_vm8 = vcmask 1042432   ;;  %vm2202_vm9 = vcmask 1046532   ;;  %v921_v9 = vshrl.u32 %v4089_v56, 16  ;;  %v765_v55 = vld [vmem:[#allocation2 + $0x8c] sm:$0x1] }
  0x1f   : > { %v924_v10 = vshll.u32 %v4089_v56, 16  ;;  %v1076_v14 = vrot.slane %v1074_v63, 7  ;;  %v1084_v15 = vrot.slane %v1082_v2, 7  ;;  %v929_v16 = vshrl.u32 %v4090_v57, 16  ;;  %v4664_v59 = vld [vmem:[%s4578_s8 + $0x58] sm:$0xff]   ;;  %vm4674_vm11 = vmor %vm2201_vm8, %vm2202_vm9 }
  0x20   : > { %v932_v17 = vshll.u32 %v4090_v57, 16  ;;  %v1062_v18 = vor.u32 %v1060_v60, %v1059_v6  ;;  %v1063_v19 = vrot.slane %v1059_v6, 4  ;;  %v1070_v20 = vor.u32 %v1068_v62, %v1067_v7  ;;  %v4667_v60 = vld [vmem:[%s4578_s8 + $0x10] sm:$0xff]  }
  0x21   : > { %v1072_v21 = vrot.slane %v1067_v7, 4  ;;  %v1079_v25 = vor.u32 %v1077_v0, %v1076_v14  ;;  %v1080_v26 = vrot.slane %v1076_v14, 4  ;;  %v1087_v27 = vor.u32 %v1085_v3, %v1084_v15  ;;  %v1248_v3 = vld [vmem:[#allocation2 + $0x18] sm:$0xf] }
  0x22   : > { %v1089_v28 = vrot.slane %v1084_v15, 4  ;;  %v1071_v31 = vsel %vm4628_vm7, %v1063_v19, %v1070_v20  ;;  %v1298_v32 = vsel %vm4634_vm10, %v1062_v18, %v1297_v8  ;;  %v923_v34 = vrot.slane %v921_v9, 7 }
  0x23   : > { %v1302_v33 = vsel %vm4559_vm2, %v1072_v21, %v1301_v12  ;;  %1299 = vst [vmem:[#allocation2 + $0x6c] sm:$0xf] %v1298_v32  ;;  %1300 = vst.msk [vmem:[#allocation2 + $0x70] sm:$0xf] %vm814_vm6, %v1071_v31  ;;  %v1088_v37 = vsel %vm4628_vm7, %v1080_v26, %v1087_v27  ;;  %v1305_v38 = vsel %vm4634_vm10, %v1079_v25, %v1304_v23  ;;  %v931_v40 = vrot.slane %v929_v16, 7 }
  0x24   : > { %1303 = vst [vmem:[#allocation2 + $0x74] sm:$0x1] %v1302_v33  ;;  %v1309_v39 = vsel %vm4559_vm2, %v1089_v28, %v1308_v24  ;;  %1306 = vst [vmem:[#allocation2 + $0x78] sm:$0xf] %v1305_v38  ;;  %v926_v42 = vor.u32 %v924_v10, %v923_v34  ;;  %v927_v43 = vrot.slane %v923_v34, 4  ;;  %v622_v44 = vmax.f32 %v4623_v54, 0.0 }
  0x25   : > { %1307 = vst.msk [vmem:[#allocation2 + $0x7c] sm:$0xf] %vm814_vm6, %v1088_v37  ;;  %1310 = vst [vmem:[#allocation2 + $0x80] sm:$0x1] %v1309_v39  ;;  %v4091_v45 = vpack.c.bf16 %v621_v58, %v621_v58  ;;  %v934_v46 = vor.u32 %v932_v17, %v931_v40  ;;  %v936_v47 = vrot.slane %v931_v40, 4  ;;  %v739_v48 = vsel %vm4585_vm4, 0, %v738_v30 }
  0x26   : > { %v4195_v49 = vunpack.c.l.bf16 %v4226_v36  ;;  %v1242_v50 = vsel %vm4634_vm10, %v926_v42, %v1241_v29  ;;  %v4092_v51 = vpack.c.bf16 %v622_v44, %v622_v44  ;;  %740 = vst [vmem:[#allocation2 + $0x20] sm:$0x1] %v739_v48  ;;  %v4196_v57 = vunpack.c.h.bf16 %v4226_v36 }
  0x27   : > { %v938_v52 = vshrl.u32 %v4091_v45, 16  ;;  %v941_v53 = vshll.u32 %v4091_v45, 16  ;;  %v935_v54 = vsel %vm4628_vm7, %v927_v43, %v934_v46  ;;  %1243 = vst [vmem:[#allocation2 + $0xc] sm:$0xf] %v1242_v50  ;;  %v1246_v56 = vsel %vm4559_vm2, %v936_v47, %v1245_v35 }
  0x28   : > { %v575_v58 = vmul.f32 %v4195_v49, %v4569_v5  ;;  %1244 = vst.msk [vmem:[#allocation2 + $0x10] sm:$0xf] %vm814_vm6, %v935_v54  ;;  %1247 = vst [vmem:[#allocation2 + $0x14] sm:$0x1] %v1246_v56  ;;  %v946_v62 = vshrl.u32 %v4092_v51, 16  ;;  %v710_v63 = vsel %vm4559_vm2, 0, %v709_v41  ;;  %v576_v6 = vmul.f32 %v4196_v57, %v4569_v5 }
  0x29   : > { %v940_v61 = vrot.slane %v938_v52, 7  ;;  %v949_v2 = vshll.u32 %v4092_v51, 16  ;;  %711 = vst [vmem:[#allocation2 + $0x84] sm:$0x1] %v710_v63  ;;  %v766_v8 = vsel %vm4585_vm4, 0, %v765_v55  ;;  %v4199_v15 = vunpack.c.l.bf16 %v4664_v59 }
  0x2a   : > { %v607_v7 = vadd.f32 %v4599_v22, %v575_v58  ;;  %v2120_v9 = vld [vmem:[#allocation2 + $0x6c] sm:$0xe]  ;;  %v2121_v10 = vld [vmem:[#allocation2 + $0x70] sm:$0xf]  ;;  %767 = vst [vmem:[#allocation2 + $0x8c] sm:$0x1] %v766_v8  ;;  %v4200_v16 = vunpack.c.h.bf16 %v4664_v59  ;;  %v4163_v17 = vunpack.c.l.bf16 %v4667_v60  ;;  %v608_v29 = vadd.f32 %v4599_v22, %v576_v6 }
  0x2b   : > { %v2122_v12 = vld [vmem:[#allocation2 + $0x74] sm:$0x1]  ;;  %v943_v14 = vor.u32 %v941_v53, %v940_v61  ;;  %v3948_v18 = vrot.slane %v2120_v9, 9  ;;  %v2269_v19 = vrot.slane %v2121_v10, 5  ;;  %v2123_v21 = vld [vmem:[#allocation2 + $0x78] sm:$0xe] }
  0x2c   : > { %v2272_v20 = vrot.slane %v2122_v12, 5  ;;  %v944_v23 = vrot.slane %v940_v61, 4  ;;  %v2124_v24 = vld [vmem:[#allocation2 + $0x7c] sm:$0xf]  ;;  %v3949_v25 = vrot.slane %v2123_v21, 9  ;;  %v948_v27 = vrot.slane %v946_v62, 7 }
  0x2d   : > { %v2125_v26 = vld [vmem:[#allocation2 + $0x80] sm:$0x1]  ;;  %v1249_v28 = vsel %vm4634_vm10, %v943_v14, %v1248_v3  ;;  %vm1513_vm12 = vsmask.f32 3328  ;;  %vm1514_vm13 = vsmask.f32 7440  ;;  %v2270_v30 = vsel %vm4674_vm11, %v3948_v18, %v2269_v19 }
  0x2e   : > { %v2271_v31 = vrot.slane %v2269_v19, 4  ;;  %v2276_v32 = vrot.slane %v2124_v24, 5  ;;  %v2279_v33 = vrot.slane %v2125_v26, 5  ;;  %1250 = vst [vmem:[#allocation2 + $0x18] sm:$0xf] %v1249_v28  ;;  %2366 = vrot.lane.b32.xlu0 %v2270_v30, %s4494_s11  ;;  %v951_v36 = vor.u32 %v949_v2, %v948_v27  ;;  %vm4714_vm14 = vmor %vm1513_vm12, %vm1514_vm13 }
  0x2f   : > { %v1252_v34 = vld [vmem:[#allocation2 + $0x20] sm:$0x1]  ;;  %v2096_v35 = vld [vmem:[#allocation2 + $0xc] sm:$0xe]  ;;  %v953_v37 = vrot.slane %v948_v27, 4  ;;  %v639_v38 = vmax.f32 %v607_v7, 0.0 }
  0x30   : > { %v640_v39 = vmax.f32 %v608_v29, 0.0  ;;  %v2273_v40 = vsel %vm4674_vm11, %v2271_v31, %v2272_v20  ;;  %v2277_v41 = vsel %vm4674_vm11, %v3949_v25, %v2276_v32  ;;  %v2278_v42 = vrot.slane %v2276_v32, 4  ;;  %v2097_v43 = vld [vmem:[#allocation2 + $0x10] sm:$0xf]  ;;  %v2098_v45 = vld [vmem:[#allocation2 + $0x14] sm:$0x1] }
  0x31   : > { %v3940_v44 = vrot.slane %v2096_v35, 9  ;;  %2368 = vrot.lane.b32.xlu1 %v2273_v40, %s4494_s11  ;;  %v2213_v46 = vrot.slane %v2097_v43, 5  ;;  %v2216_v47 = vrot.slane %v2098_v45, 5  ;;  %v952_v48 = vsel %vm4628_vm7, %v944_v23, %v951_v36  ;;  %v1486_v50 = vld [vmem:[#allocation2 + $0x6c] sm:$0xf] }
  0x32   : > { %v1253_v49 = vsel %vm4559_vm2, %v953_v37, %v1252_v34  ;;  %v2280_v51 = vsel %vm4674_vm11, %v2278_v42, %v2279_v33  ;;  %1251 = vst.msk [vmem:[#allocation2 + $0x1c] sm:$0xf] %vm814_vm6, %v952_v48  ;;  %v4109_v52 = vpack.c.bf16 %v639_v38, %v639_v38  ;;  %v4110_v53 = vpack.c.bf16 %v640_v39, %v640_v39  ;;  %v1487_v55 = vld [vmem:[#allocation2 + $0x70] sm:$0xf]  ;;  %v1489_v62 = vld [vmem:[#allocation2 + $0x78] sm:$0xf] }
  0x33   : > { %1254 = vst [vmem:[#allocation2 + $0x20] sm:$0x1] %v1253_v49  ;;  %v1733_v54 = vshrl.u32 %v1486_v50, 16  ;;  %2370 = vrot.lane.b32.xlu0 %v2277_v41, %s4494_s11  ;;  %v2214_v56 = vsel %vm4674_vm11, %v3940_v44, %v2213_v46  ;;  %v2215_v57 = vrot.slane %v2213_v46, 4  ;;  %v1736_v58 = vshll.u32 %v1486_v50, 16 }
  0x34   : > { %v1742_v61 = vshll.u32 %v1487_v55, 16  ;;  %v1091_v63 = vshrl.u32 %v4109_v52, 16  ;;  %v1094_v2 = vshll.u32 %v4109_v52, 16  ;;  %v1099_v3 = vshrl.u32 %v4110_v53, 16  ;;  %v1490_v7 = vld [vmem:[#allocation2 + $0x7c] sm:$0xf] }
  0x35   : > { %v1102_v6 = vshll.u32 %v4110_v53, 16  ;;  %2372 = vrot.lane.b32.xlu1 %v2280_v51, %s4494_s11  ;;  %v2217_v8 = vsel %vm4674_vm11, %v2215_v57, %v2216_v47  ;;  %v2099_v9 = vld [vmem:[#allocation2 + $0x18] sm:$0xe]  ;;  %v1735_v10 = vrot.slane %v1733_v54, 4  ;;  %v1738_v12 = vrot.slane %v1736_v58, 5 }
  0x36   : > { %v4709_v14 = vrot.slane %v1742_v61, 5  ;;  %v3941_v18 = vrot.slane %v2099_v9, 9  ;;  %v1093_v19 = vrot.slane %v1091_v63, 7  ;;  %v1101_v20 = vrot.slane %v1099_v3, 7  ;;  %v1311_v23 = vld [vmem:[#allocation2 + $0x84] sm:$0xf] }
  0x37   : > { %v1746_v21 = vshrl.u32 %v1487_v55, 16  ;;  %2334 = vrot.lane.b32.xlu0 %v2214_v56, %s4494_s11  ;;  %v1739_v24 = vor.u32 %v1738_v12, %v1735_v10  ;;  %v1757_v25 = vshrl.u32 %v1489_v62, 16  ;;  %v1760_v26 = vshll.u32 %v1489_v62, 16  ;;  %v1315_v32 = vld [vmem:[#allocation2 + $0x8c] sm:$0x1] }
  0x38   : > { %v1766_v27 = vshll.u32 %v1490_v7, 16  ;;  %v1096_v28 = vor.u32 %v1094_v2, %v1093_v19  ;;  %v1097_v29 = vrot.slane %v1093_v19, 4  ;;  %v1104_v30 = vor.u32 %v1102_v6, %v1101_v20  ;;  %v1488_v34 = vld [vmem:[#allocation2 + $0x74] sm:$0x1]  ;;  %v1491_v45 = vld [vmem:[#allocation2 + $0x80] sm:$0x1] }
  0x39   : > { %v1106_v31 = vrot.slane %v1101_v20, 4  ;;  %2336 = vrot.lane.b32.xlu1 %v2217_v8, %s4494_s11  ;;  %v2100_v35 = vld [vmem:[#allocation2 + $0x1c] sm:$0xf]  ;;  %v4719_v37 = vrot.slane %v1739_v24, 4  ;;  %v1759_v38 = vrot.slane %v1757_v25, 4  ;;  %v4724_v39 = vmul.f32 %v4199_v15, %v4569_v5 }
  0x3a   : > { %v2101_v36 = vld [vmem:[#allocation2 + $0x20] sm:$0x1]  ;;  %v4729_v40 = vmul.f32 %v4200_v16, %v4569_v5  ;;  %v2220_v41 = vrot.slane %v2100_v35, 5  ;;  %v1105_v43 = vsel %vm4628_vm7, %v1097_v29, %v1104_v30  ;;  %v1312_v44 = vsel %vm4634_vm10, %v1096_v28, %v1311_v23  ;;  %v1462_v46 = vld [vmem:[#allocation2 + $0xc] sm:$0xf] }
  0x3b   : > { %v2223_v42 = vrot.slane %v2101_v36, 5  ;;  %1313 = vst [vmem:[#allocation2 + $0x84] sm:$0xf] %v1312_v44  ;;  %1314 = vst.msk [vmem:[#allocation2 + $0x88] sm:$0xf] %vm814_vm6, %v1105_v43  ;;  %v1316_v15 = vsel %vm4559_vm2, %v1106_v31, %v1315_v32  ;;  %v1745_v59 = vsel %vm4714_vm14, %v4719_v37, %v4709_v14  ;;  %v1762_v16 = vrot.slane %v1760_v26, 5 }
  0x3c   : > { %v4742_v47 = vrot.slane %v1766_v27, 5  ;;  %v2221_v48 = vsel %vm4674_vm11, %v3941_v18, %v2220_v41  ;;  %v2222_v49 = vrot.slane %v2220_v41, 4  ;;  %1317 = vst [vmem:[#allocation2 + $0x8c] sm:$0x1] %v1316_v15  ;;  %v1770_v50 = vshrl.u32 %v1490_v7, 16 }
  0x3d   : > { %v1748_v51 = vrot.slane %v1746_v21, 4  ;;  %2338 = vrot.lane.b32.xlu0 %v2221_v48, %s4494_s11  ;;  %v1763_v52 = vor.u32 %v1762_v16, %v1759_v38  ;;  %v1752_v53 = vshll.u32 %v1488_v34, 16  ;;  %v1776_v55 = vshll.u32 %v1491_v45, 16  ;;  %v1463_v54 = vld [vmem:[#allocation2 + $0x10] sm:$0xf] }
  0x3e   : > { %v1541_v56 = vshrl.u32 %v1462_v46, 16  ;;  %v2224_v57 = vsel %vm4674_vm11, %v2222_v49, %v2223_v42  ;;  %v1772_v61 = vrot.slane %v1770_v50, 4  ;;  %v1544_v62 = vshll.u32 %v1462_v46, 16  ;;  %v1464_v63 = vld [vmem:[#allocation2 + $0x14] sm:$0x1] }
  0x3f   : > { %v1749_v58 = vor.u32 %v1748_v51, %v4709_v14  ;;  %v1465_v2 = vld [vmem:[#allocation2 + $0x18] sm:$0xf]  ;;  %2340 = vrot.lane.b32.xlu1 %v2224_v57, %s4494_s11  ;;  %v4751_v3 = vrot.slane %v1763_v52, 4  ;;  %v4753_v6 = vrot.slane %v1752_v53, 5  ;;  %v4755_v7 = vrot.slane %v1776_v55, 5 }
  0x40   : > { %v1543_v8 = vrot.slane %v1541_v56, 4  ;;  %v1773_v10 = vor.u32 %v1772_v61, %v4742_v47  ;;  %v1546_v12 = vrot.slane %v1544_v62, 5  ;;  %v1550_v18 = vshll.u32 %v1463_v54, 16  ;;  %v1466_v23 = vld [vmem:[#allocation2 + $0x1c] sm:$0xf] }
  0x41   : > { %v4757_v9 = vrot.slane %v1749_v58, 4  ;;  %v1769_v19 = vsel %vm4714_vm14, %v4751_v3, %v4742_v47  ;;  %v1554_v20 = vshrl.u32 %v1463_v54, 16  ;;  %v1560_v21 = vshll.u32 %v1464_v63, 16  ;;  %v1467_v25 = vld [vmem:[#allocation2 + $0x20] sm:$0x1] }
  0x42   : > { %v1565_v24 = vshrl.u32 %v1465_v2, 16  ;;  %v2126_v26 = vld [vmem:[#allocation2 + $0x84] sm:$0xe]  ;;  %v2127_v27 = vld [vmem:[#allocation2 + $0x88] sm:$0xf]  ;;  %v4768_v29 = vrot.slane %v1773_v10, 4  ;;  %v1547_v30 = vor.u32 %v1546_v12, %v1543_v8 }
  0x43   : > { %v1755_v28 = vsel %vm4714_vm14, %v4757_v9, %v4753_v6  ;;  %v4770_v31 = vrot.slane %v1550_v18, 5  ;;  %v3950_v32 = vrot.slane %v2126_v26, 9  ;;  %v2283_v34 = vrot.slane %v2127_v27, 5  ;;  %v2128_v35 = vld [vmem:[#allocation2 + $0x8c] sm:$0x1] }
  0x44   : > { %v1556_v36 = vrot.slane %v1554_v20, 4  ;;  %v4772_v38 = vrot.slane %v1560_v21, 5  ;;  %v2286_v41 = vrot.slane %v2128_v35, 5  ;;  %v1779_v42 = vsel %vm4714_vm14, %v4768_v29, %v4755_v7  ;;  %v1492_v45 = vld [vmem:[#allocation2 + $0x84] sm:$0xf] }
  0x45   : > { %v4778_v43 = vrot.slane %v1547_v30, 4  ;;  %v1567_v44 = vrot.slane %v1565_v24, 4  ;;  %v2284_v46 = vsel %vm4674_vm11, %v3950_v32, %v2283_v34  ;;  %v2285_v15 = vrot.slane %v2283_v34, 4  ;;  %v1493_v52 = vld [vmem:[#allocation2 + $0x88] sm:$0xf] }
  0x46   : > { %v1557_v16 = vor.u32 %v1556_v36, %v4770_v31  ;;  %v1568_v47 = vshll.u32 %v1465_v2, 16  ;;  %2374 = vrot.lane.b32.xlu0 %v2284_v46, %s4494_s11  ;;  %v1574_v49 = vshll.u32 %v1466_v23, 16  ;;  %v1578_v50 = vshrl.u32 %v1466_v23, 16  ;;  %v1494_v57 = vld [vmem:[#allocation2 + $0x8c] sm:$0x1] }
  0x47   : > { %v1553_v48 = vsel %vm4714_vm14, %v4778_v43, %v4770_v31  ;;  %v1584_v51 = vshll.u32 %v1467_v25, 16  ;;  %v2287_v53 = vsel %vm4674_vm11, %v2285_v15, %v2286_v41  ;;  %v1781_v56 = vshrl.u32 %v1492_v45, 16  ;;  %v768_v18 = vld [vmem:[#allocation2 + $0x98] sm:$0x1]  ;;  %v712_v25 = vld [vmem:[#allocation2 + $0x90] sm:$0x1] }
  0x48   : > { %v4790_v55 = vrot.slane %v1557_v16, 4  ;;  %v1570_v54 = vrot.slane %v1568_v47, 5  ;;  %2376 = vrot.lane.b32.xlu1 %v2287_v53, %s4494_s11  ;;  %v4793_v58 = vrot.slane %v1574_v49, 5  ;;  %v1580_v61 = vrot.slane %v1578_v50, 4  ;;  %v741_v27 = vld [vmem:[#allocation2 + $0x2c] sm:$0x1] }
  0x49   : > { %v4795_v62 = vrot.slane %v1584_v51, 5  ;;  %v1784_v63 = vshll.u32 %v1492_v45, 16  ;;  %v1783_v6 = vrot.slane %v1781_v56, 4  ;;  %v1790_v7 = vshll.u32 %v1493_v52, 16  ;;  %v685_v32 = vld [vmem:[#allocation2 + $0x24] sm:$0x1] }
  0x4a   : > { %v1563_v2 = vsel %vm4714_vm14, %v4790_v55, %v4772_v38  ;;  %v1571_v3 = vor.u32 %v1570_v54, %v1567_v44  ;;  %1984 = vrot.lane.b32.xlu0 %v1745_v59, %s4495_s12  ;;  %v1581_v8 = vor.u32 %v1580_v61, %v4793_v58  ;;  %v1794_v10 = vshrl.u32 %v1493_v52, 16  ;;  %v4219_v45 = vld [vmem:[%s4578_s8 + $0x18] sm:$0xff]  }
  0x4b   : > { %v1786_v9 = vrot.slane %v1784_v63, 5  ;;  %v1800_v12 = vshll.u32 %v1494_v57, 16  ;;  %v4810_v21 = vrot.slane %v1790_v7, 5  ;;  %v609_v23 = vadd.f32 %v4599_v22, %v4724_v39  ;;  %v744_v49 = vld [vmem:[#allocation2 + $0x38] sm:$0x1]  ;;  %v4228_v63 = vld [vmem:[%s4578_s8 + $0x60] sm:$0xff]  }
  0x4c   : > { %v4808_v20 = vrot.slane %v1571_v3, 4  ;;  %v610_v24 = vadd.f32 %v4599_v22, %v4729_v40  ;;  %1988 = vrot.lane.b32.xlu1 %v1769_v19, %s4495_s12  ;;  %v4817_v14 = vrot.slane %v1581_v8, 4  ;;  %v1796_v59 = vrot.slane %v1794_v10, 4 }
  0x4d   : > { %v1787_v37 = vor.u32 %v1786_v9, %v1783_v6  ;;  %v4819_v26 = vrot.slane %v1800_v12, 5  ;;  %v641_v39 = vmax.f32 %v609_v23, 0.0  ;;  %v769_v40 = vsel %vm4585_vm4, 0, %v768_v18 }
  0x4e   : > { %v1577_v29 = vsel %vm4714_vm14, %v4808_v20, %v4793_v58  ;;  %v642_v30 = vmax.f32 %v610_v24, 0.0  ;;  %1986 = vrot.lane.b32.xlu0 %v1755_v28, %s4495_s12  ;;  %v1587_v19 = vsel %vm4714_vm14, %v4817_v14, %v4795_v62  ;;  %v1797_v35 = vor.u32 %v1796_v59, %v4810_v21  ;;  %770 = vst [vmem:[#allocation2 + $0x98] sm:$0x1] %v769_v40 }
  0x4f   : > { %v4832_v34 = vrot.slane %v1787_v37, 4  ;;  %v713_v36 = vsel %vm4559_vm2, 0, %v712_v25  ;;  %v4111_v38 = vpack.c.bf16 %v641_v39, %v641_v39  ;;  %v4164_v44 = vunpack.c.h.bf16 %v4667_v60 }
  0x50   : > { %v4112_v41 = vpack.c.bf16 %v642_v30, %v642_v30  ;;  %714 = vst [vmem:[#allocation2 + $0x90] sm:$0x1] %v713_v36  ;;  %v559_v28 = vmul.f32 %v4163_v17, %v4569_v5  ;;  %1990 = vrot.lane.b32.xlu1 %v1779_v42, %s4495_s12  ;;  %v4847_v15 = vrot.slane %v1797_v35, 4  ;;  %v742_v16 = vsel %vm4585_vm4, 0, %v741_v27  ;;  %v688_v42 = vld [vmem:[#allocation2 + $0x30] sm:$0x1] }
  0x51   : > { %v1793_v46 = vsel %vm4714_vm14, %v4832_v34, %v4810_v21  ;;  %v686_v47 = vsel %vm4559_vm2, 0, %v685_v32  ;;  %v1108_v50 = vshrl.u32 %v4111_v38, 16  ;;  %v1111_v51 = vshll.u32 %v4111_v38, 16  ;;  %743 = vst [vmem:[#allocation2 + $0x2c] sm:$0x1] %v742_v16 }
  0x52   : > { %v1116_v60 = vshrl.u32 %v4112_v41, 16  ;;  %v1119_v17 = vshll.u32 %v4112_v41, 16  ;;  %687 = vst [vmem:[#allocation2 + $0x24] sm:$0x1] %v686_v47  ;;  %1952 = vrot.lane.b32.xlu0 %v1553_v48, %s4495_s12  ;;  %v1803_v52 = vsel %vm4714_vm14, %v4847_v15, %v4819_v26  ;;  %v560_v53 = vmul.f32 %v4164_v44, %v4569_v5  ;;  %v771_v21 = vld [vmem:[#allocation2 + $0xa4] sm:$0x1] }
  0x53   : > { %v591_v55 = vadd.f32 %v4599_v22, %v559_v28  ;;  %v4167_v54 = vunpack.c.l.bf16 %v4219_v45  ;;  %v1110_v56 = vrot.slane %v1108_v50, 7  ;;  %v4168_v58 = vunpack.c.h.bf16 %v4219_v45  ;;  %v4897_v47 = vld [vmem:[%s4578_s8 + $0x68] sm:$0xff]  }
  0x54   : > { %v1118_v57 = vrot.slane %v1116_v60, 7  ;;  %v745_v61 = vsel %vm4585_vm4, 0, %v744_v49  ;;  %1954 = vrot.lane.b32.xlu1 %v1563_v2, %s4495_s12  ;;  %v592_v31 = vadd.f32 %v4599_v22, %v560_v53  ;;  %v689_v62 = vsel %vm4559_vm2, 0, %v688_v42 }
  0x55   : > { %v623_v43 = vmax.f32 %v591_v55, 0.0  ;;  %v561_v48 = vmul.f32 %v4167_v54, %v4569_v5  ;;  %746 = vst [vmem:[#allocation2 + $0x38] sm:$0x1] %v745_v61  ;;  %v1114_v3 = vrot.slane %v1110_v56, 4  ;;  %v1322_v8 = vld [vmem:[#allocation2 + $0x98] sm:$0x1]  ;;  %v1113_v9 = vor.u32 %v1111_v51, %v1110_v56 }
  0x56   : > { %v1121_v6 = vor.u32 %v1119_v17, %v1118_v57  ;;  %v1123_v7 = vrot.slane %v1118_v57, 4  ;;  %690 = vst [vmem:[#allocation2 + $0x30] sm:$0x1] %v689_v62  ;;  %1956 = vrot.lane.b32.xlu0 %v1577_v29, %s4495_s12  ;;  %v624_v2 = vmax.f32 %v592_v31, 0.0  ;;  %v562_v18 = vmul.f32 %v4168_v58, %v4569_v5  ;;  %v715_v29 = vld [vmem:[#allocation2 + $0x9c] sm:$0x1] }
  0x57   : > { %v1318_v10 = vld [vmem:[#allocation2 + $0x90] sm:$0xf]  ;;  %v4093_v12 = vpack.c.bf16 %v623_v43, %v623_v43  ;;  %v593_v20 = vadd.f32 %v4599_v22, %v561_v48  ;;  %v4203_v14 = vunpack.c.l.bf16 %v4228_v63  ;;  %v4204_v30 = vunpack.c.h.bf16 %v4228_v63 }
  0x58   : > { %v1122_v23 = vsel %vm4628_vm7, %v1114_v3, %v1121_v6  ;;  %v1323_v24 = vsel %vm4559_vm2, %v1123_v7, %v1322_v8  ;;  %v1319_v25 = vsel %vm4634_vm10, %v1113_v9, %v1318_v10  ;;  %1958 = vrot.lane.b32.xlu1 %v1587_v19, %s4495_s12  ;;  %v4094_v37 = vpack.c.bf16 %v624_v2, %v624_v2  ;;  %v1259_v42 = vld [vmem:[#allocation2 + $0x2c] sm:$0x1] }
  0x59   : > { %1321 = vst.msk [vmem:[#allocation2 + $0x94] sm:$0xf] %vm814_vm6, %v1122_v23  ;;  %1324 = vst [vmem:[#allocation2 + $0x98] sm:$0x1] %v1323_v24  ;;  %v955_v59 = vshrl.u32 %v4093_v12, 16  ;;  %v958_v26 = vshll.u32 %v4093_v12, 16  ;;  %v594_v27 = vadd.f32 %v4599_v22, %v562_v18  ;;  %v579_v40 = vmul.f32 %v4203_v14, %v4569_v5 }
  0x5a   : > { %1320 = vst [vmem:[#allocation2 + $0x90] sm:$0xf] %v1319_v25  ;;  %v625_v39 = vmax.f32 %v593_v20, 0.0  ;;  %v772_v32 = vsel %vm4585_vm4, 0, %v771_v21  ;;  %1992 = vrot.lane.b32.xlu0 %v1793_v46, %s4495_s12  ;;  %v963_v34 = vshrl.u32 %v4094_v37, 16  ;;  %v966_v35 = vshll.u32 %v4094_v37, 16 }
  0x5b   : > { %v957_v19 = vrot.slane %v955_v59, 7  ;;  %v626_v36 = vmax.f32 %v594_v27, 0.0  ;;  %773 = vst [vmem:[#allocation2 + $0xa4] sm:$0x1] %v772_v32  ;;  %v1255_v38 = vld [vmem:[#allocation2 + $0x24] sm:$0xf]  ;;  %v580_v44 = vmul.f32 %v4204_v30, %v4569_v5  ;;  %v611_v28 = vadd.f32 %v4599_v22, %v579_v40 }
  0x5c   : > { %v4889_v41 = vpack.c.bf16 %v625_v39, %v625_v39  ;;  %v716_v45 = vsel %vm4559_vm2, 0, %v715_v29  ;;  %1994 = vrot.lane.b32.xlu1 %v1803_v52, %s4495_s12  ;;  %v965_v15 = vrot.slane %v963_v34, 7  ;;  %v4207_v61 = vunpack.c.l.bf16 %v4897_v47  ;;  %v4919_v20 = vld [vmem:[%s4578_s8 + $0x20] sm:$0xff]   ;;  %v1266_v39 = vld [vmem:[#allocation2 + $0x38] sm:$0x1] }
  0x5d   : > { %v960_v46 = vor.u32 %v958_v26, %v957_v19  ;;  %v4096_v16 = vpack.c.bf16 %v626_v36, %v626_v36  ;;  %717 = vst [vmem:[#allocation2 + $0x9c] sm:$0x1] %v716_v45  ;;  %v961_v49 = vrot.slane %v957_v19, 4  ;;  %v643_v17 = vmax.f32 %v611_v28, 0.0  ;;  %v1262_v30 = vld [vmem:[#allocation2 + $0x30] sm:$0xf] }
  0x5e   : > { %v972_v50 = vshrl.u32 %v4889_v41, 16  ;;  %v975_v60 = vshll.u32 %v4889_v41, 16  ;;  %v968_v5 = vor.u32 %v966_v35, %v965_v15  ;;  %v970_v51 = vrot.slane %v965_v15, 4 }
  0x5f   : > { %v1256_v53 = vsel %vm4634_vm10, %v960_v46, %v1255_v38  ;;  %v980_v55 = vshrl.u32 %v4096_v16, 16  ;;  %v4904_v57 = vadd.f32 %v4599_v22, %v580_v44  ;;  %v4906_v58 = vpack.c.bf16 %v643_v17, %v643_v17 }
  0x60   : > { %v1496_v52 = vld [vmem:[#allocation2 + $0x94] sm:$0xf]  ;;  %v1497_v54 = vld [vmem:[#allocation2 + $0x98] sm:$0x1]  ;;  %1257 = vst [vmem:[#allocation2 + $0x24] sm:$0xf] %v1256_v53  ;;  %v969_v6 = vsel %vm4628_vm7, %v961_v49, %v968_v5  ;;  %v1260_v7 = vsel %vm4559_vm2, %v970_v51, %v1259_v42  ;;  %v4208_v18 = vunpack.c.h.bf16 %v4897_v47  ;;  %v4171_v32 = vunpack.c.l.bf16 %v4919_v20 }
  0x61   : > { %v1495_v56 = vld [vmem:[#allocation2 + $0x90] sm:$0xf]  ;;  %v1814_v31 = vshll.u32 %v1496_v52, 16  ;;  %v1818_v43 = vshrl.u32 %v1496_v52, 16  ;;  %v1824_v48 = vshll.u32 %v1497_v54, 16  ;;  %v974_v37 = vrot.slane %v972_v50, 7 }
  0x62   : > { %v1805_v62 = vshrl.u32 %v1495_v56, 16  ;;  %v4909_v63 = vld [vmem:[#allocation2 + $0x94] sm:$0xf]  ;;  %v1808_v3 = vshll.u32 %v1495_v56, 16  ;;  %v2131_v22 = vld [vmem:[#allocation2 + $0x98] sm:$0x1] }
  0x63   : > { %v2290_v8 = vrot.slane %v4909_v63, 5  ;;  %v1816_v9 = vrot.slane %v1814_v31, 5  ;;  %v1820_v10 = vrot.slane %v1818_v43, 4  ;;  %1258 = vst.msk [vmem:[#allocation2 + $0x28] sm:$0xf] %vm814_vm6, %v969_v6  ;;  %v1826_v21 = vrot.slane %v1824_v48, 5 }
  0x64   : > { %v1807_v2 = vrot.slane %v1805_v62, 4  ;;  %1261 = vst [vmem:[#allocation2 + $0x2c] sm:$0x1] %v1260_v7  ;;  %v2129_v12 = vld [vmem:[#allocation2 + $0x90] sm:$0xe]  ;;  %v1810_v23 = vrot.slane %v1808_v3, 5  ;;  %v977_v45 = vor.u32 %v975_v60, %v974_v37 }
  0x65   : > { %v2292_v24 = vrot.slane %v2290_v8, 4  ;;  %v2293_v25 = vrot.slane %v2131_v22, 5  ;;  %v1821_v14 = vor.u32 %v1820_v10, %v1816_v9  ;;  %v982_v59 = vrot.slane %v980_v55, 7  ;;  %v1405_v10 = vld [vmem:[#allocation2 + $0x6c] sm:$0xf] }
  0x66   : > { %v983_v26 = vshll.u32 %v4096_v16, 16  ;;  %v1811_v27 = vor.u32 %v1810_v23, %v1807_v2  ;;  %v3951_v29 = vrot.slane %v2129_v12, 9  ;;  %v644_v40 = vmax.f32 %v4904_v57, 0.0  ;;  %1441 = vst.msk [vmem:[#allocation3 + $0x48] sm:$0xf] %vm814_vm6, %v1405_v10 }
  0x67   : > { %v1822_v19 = vrot.slane %v1821_v14, 4  ;;  %v1468_v34 = vld [vmem:[#allocation2 + $0x24] sm:$0xf]  ;;  %v978_v35 = vrot.slane %v974_v37, 4  ;;  %v987_v38 = vrot.slane %v982_v59, 4  ;;  %v4927_v46 = vsel %vm4674_vm11, %v2292_v24, %v2293_v25 }
  0x68   : > { %v985_v36 = vor.u32 %v983_v26, %v982_v59  ;;  %v1812_v41 = vrot.slane %v1811_v27, 4  ;;  %v1589_v44 = vshrl.u32 %v1468_v34, 16  ;;  %v1592_v28 = vshll.u32 %v1468_v34, 16  ;;  %v4933_v50 = vld [vmem:[#allocation2 + $0x24] sm:$0xe] }
  0x69   : > { %v1827_v15 = vsel %vm4714_vm14, %v1822_v19, %v1826_v21  ;;  %v1267_v49 = vsel %vm4559_vm2, %v987_v38, %v1266_v39  ;;  %v1263_v53 = vsel %vm4634_vm10, %v977_v45, %v1262_v30  ;;  %v4114_v57 = vpack.c.bf16 %v644_v40, %v644_v40  ;;  %v1407_v24 = vld [vmem:[#allocation2 + $0x78] sm:$0xf]  ;;  %v4954_v37 = vld [vmem:[%s5889_s0] ss:$0 sm:$0xff]  ;;  %v1406_v59 = vld [vmem:[#allocation2 + $0x70] sm:$0xf] }
  0x6a   : > { %v986_v16 = vsel %vm4628_vm7, %v978_v35, %v985_v36  ;;  %1998 = vrot.lane.b32.xlu1 %v1827_v15, %s4495_s12  ;;  %v1817_v60 = vsel %vm4714_vm14, %v1812_v41, %v1816_v9  ;;  %v1469_v17 = vld [vmem:[#allocation2 + $0x28] sm:$0xf]  ;;  %v1591_v51 = vrot.slane %v1589_v44, 4  ;;  %v1594_v42 = vrot.slane %v1592_v28, 5  ;;  %1268 = vst [vmem:[#allocation2 + $0x38] sm:$0x1] %v1267_v49 }
  0x6b   : > { %v1470_v5 = vld [vmem:[#allocation2 + $0x2c] sm:$0x1]  ;;  %1265 = vst.msk [vmem:[#allocation2 + $0x34] sm:$0xf] %vm814_vm6, %v986_v16  ;;  %1996 = vrot.lane.b32.xlu0 %v1817_v60, %s4495_s12  ;;  %v1598_v55 = vshll.u32 %v1469_v17, 16  ;;  %v1602_v52 = vshrl.u32 %v1469_v17, 16  ;;  %v2291_v7 = vsel %vm4674_vm11, %v3951_v29, %v2290_v8  ;;  %v581_v8 = vmul.f32 %v4954_v37, %v4207_v61 }
  0x6c   : > { %v1608_v54 = vshll.u32 %v1470_v5, 16  ;;  %1264 = vst [vmem:[#allocation2 + $0x30] sm:$0xf] %v1263_v53  ;;  %v2103_v56 = vld [vmem:[#allocation2 + $0x28] sm:$0xf]  ;;  %v1595_v31 = vor.u32 %v1594_v42, %v1591_v51  ;;  %v1125_v62 = vshrl.u32 %v4906_v58, 16  ;;  %v582_v36 = vmul.f32 %v4954_v37, %v4208_v18 }
  0x6d   : > { %v4942_v43 = vld [vmem:[#allocation2 + $0x2c] sm:$0x1]  ;;  %v2227_v48 = vrot.slane %v2103_v56, 5  ;;  %v1128_v63 = vshll.u32 %v4906_v58, 16  ;;  %v1600_v3 = vrot.slane %v1598_v55, 5  ;;  %v1604_v6 = vrot.slane %v1602_v52, 4 }
  0x6e   : > { %v3942_v22 = vrot.slane %v4933_v50, 9  ;;  %v1325_v9 = vld [vmem:[#allocation2 + $0x9c] sm:$0xf]  ;;  %v1610_v2 = vrot.slane %v1608_v54, 5  ;;  %v1596_v12 = vrot.slane %v1595_v31, 4  ;;  %v2230_v21 = vrot.slane %v4942_v43, 5 }
  0x6f   : > { %v1127_v23 = vrot.slane %v1125_v62, 7  ;;  %v1605_v25 = vor.u32 %v1604_v6, %v1600_v3  ;;  %v1133_v14 = vshrl.u32 %v4114_v57, 16  ;;  %v1136_v58 = vshll.u32 %v4114_v57, 16  ;;  %1443 = vst.msk [vmem:[#allocation3 + $0x50] sm:$0xf] %vm814_vm6, %v1407_v24 }
  0x70   : > { %v1408_v26 = vld [vmem:[#allocation2 + $0x7c] sm:$0xf]  ;;  %v1601_v27 = vsel %vm4714_vm14, %v1596_v12, %v1600_v3  ;;  %v2229_v29 = vrot.slane %v2227_v48, 4  ;;  %1442 = vst.msk [vmem:[#allocation3 + $0x4c] sm:$0xf] %vm814_vm6, %v1406_v59  ;;  %v4988_v55 = vsel %vm4674_vm11, %v3942_v22, %v2227_v48  ;;  %vm2056_vm15 = vcmask 126016  }
  0x71   : > { %v1131_v39 = vrot.slane %v1127_v23, 4  ;;  %v1130_v30 = vor.u32 %v1128_v63, %v1127_v23  ;;  %1444 = vst.msk [vmem:[#allocation3 + $0x54] sm:$0xf] %vm814_vm6, %v1408_v26  ;;  %v1389_v40 = vld [vmem:[#allocation2 + $0xc] sm:$0xf]  ;;  %v1606_v19 = vrot.slane %v1605_v25, 4  ;;  %1960 = vrot.lane.b32.xlu0 %v1601_v27, %s4495_s12 }
  0x72   : > { %v1472_v34 = vld [vmem:[#allocation2 + $0x34] sm:$0xf]  ;;  %v1473_v61 = vld [vmem:[#allocation2 + $0x38] sm:$0x1]  ;;  %v1135_v35 = vrot.slane %v1133_v14, 7  ;;  %v2231_v59 = vsel %vm4674_vm11, %v2229_v29, %v2230_v21  ;;  %vm2438_vm0 = vcmask 191616  }
  0x73   : > { %v4971_v38 = vld [vmem:[%s5890_s1] ss:$0 sm:$0xff]  ;;  %1425 = vst.msk [vmem:[#allocation3 + $0x8] sm:$0xf] %vm814_vm6, %v1389_v40  ;;  %v1622_v44 = vshll.u32 %v1472_v34, 16  ;;  %v1626_v28 = vshrl.u32 %v1472_v34, 16  ;;  %v1326_v16 = vsel %vm4634_vm10, %v1130_v30, %v1325_v9  ;;  %v1611_v47 = vsel %vm4714_vm14, %v1606_v19, %v1610_v2 }
  0x74   : > { %v613_v41 = vadd.f32 %v4971_v38, %v581_v8  ;;  %v1632_v45 = vshll.u32 %v1473_v61, 16  ;;  %v1471_v15 = vld [vmem:[#allocation2 + $0x30] sm:$0xf]  ;;  %v4979_v50 = vld [vmem:[#allocation2 + $0x34] sm:$0xf]  ;;  %v1138_v17 = vor.u32 %v1136_v58, %v1135_v35  ;;  %1962 = vrot.lane.b32.xlu1 %v1611_v47, %s4495_s12  ;;  %v1140_v22 = vrot.slane %v1135_v35, 4 }
  0x75   : > { %v1613_v18 = vshrl.u32 %v1471_v15, 16  ;;  %v1616_v49 = vshll.u32 %v1471_v15, 16  ;;  %v4981_v60 = vld [vmem:[#allocation2 + $0x38] sm:$0x1]  ;;  %v1329_v5 = vld [vmem:[#allocation2 + $0xa4] sm:$0x1]  ;;  %2378 = vrot.lane.b32.xlu0 %v2291_v7, %s4494_s11  ;;  %v614_v24 = vadd.f32 %v4971_v38, %v582_v36  ;;  %v4172_v61 = vunpack.c.h.bf16 %v4919_v20 }
  0x76   : > { %1327 = vst [vmem:[#allocation2 + $0x9c] sm:$0xf] %v1326_v16  ;;  %v774_v51 = vld [vmem:[#allocation2 + $0xb0] sm:$0x1]  ;;  %v4984_v42 = vrot.slane %v1622_v44, 5  ;;  %v1628_v53 = vrot.slane %v1626_v28, 4  ;;  %v1139_v48 = vsel %vm4628_vm7, %v1131_v39, %v1138_v17  ;;  %v1330_v26 = vsel %vm4559_vm2, %v1140_v22, %v1329_v5 }
  0x77   : > { %v2234_v52 = vrot.slane %v4979_v50, 5  ;;  %v2105_v54 = vld [vmem:[#allocation2 + $0x30] sm:$0xe]  ;;  %v718_v56 = vld [vmem:[#allocation2 + $0xa8] sm:$0x1]  ;;  %v1634_v57 = vrot.slane %v1632_v45, 5  ;;  %v563_v35 = vmul.f32 %v4954_v37, %v4171_v32 }
  0x78   : > { %v1615_v31 = vrot.slane %v1613_v18, 4  ;;  %v1618_v62 = vrot.slane %v1616_v49, 5  ;;  %v2237_v63 = vrot.slane %v4981_v60, 5  ;;  %v747_v3 = vld [vmem:[#allocation2 + $0x44] sm:$0x1]  ;;  %v1629_v9 = vor.u32 %v1628_v53, %v4984_v42  ;;  %2380 = vrot.lane.b32.xlu1 %v4927_v46, %s4494_s11 }
  0x79   : > { %v1390_v6 = vld [vmem:[#allocation2 + $0x10] sm:$0xf]  ;;  %v3943_v10 = vrot.slane %v2105_v54, 9  ;;  %v1391_v2 = vld [vmem:[#allocation2 + $0x18] sm:$0xf]  ;;  %v2236_v7 = vrot.slane %v2234_v52, 4  ;;  %v564_v49 = vmul.f32 %v4954_v37, %v4172_v61 }
  0x7a   : > { %1426 = vst.msk [vmem:[#allocation3 + $0xc] sm:$0xf] %vm814_vm6, %v1390_v6  ;;  %v1392_v12 = vld [vmem:[#allocation2 + $0x1c] sm:$0xf]  ;;  %v1619_v23 = vor.u32 %v1618_v62, %v1615_v31  ;;  %1328 = vst.msk [vmem:[#allocation2 + $0xa0] sm:$0xf] %vm814_vm6, %v1139_v48  ;;  %v595_v62 = vadd.f32 %v4971_v38, %v563_v35 }
  0x7b   : > { %v645_v25 = vmax.f32 %v613_v41, 0.0  ;;  %1427 = vst.msk [vmem:[#allocation3 + $0x10] sm:$0xf] %vm814_vm6, %v1391_v2  ;;  %1428 = vst.msk [vmem:[#allocation3 + $0x14] sm:$0xf] %vm814_vm6, %v1392_v12  ;;  %v1630_v8 = vrot.slane %v1629_v9, 4  ;;  %v2235_v20 = vsel %vm4674_vm11, %v3943_v10, %v2234_v52  ;;  %v2238_v52 = vsel %vm4674_vm11, %v2236_v7, %v2237_v63 }
  0x7c   : > { %v1409_v14 = vld [vmem:[#allocation2 + $0x84] sm:$0xf]  ;;  %v1410_v58 = vld [vmem:[#allocation2 + $0x88] sm:$0xf]  ;;  %v775_v27 = vsel %vm4585_vm4, 0, %v774_v51  ;;  %v1620_v40 = vrot.slane %v1619_v23, 4 }
  0x7d   : > { %1445 = vst.msk [vmem:[#allocation3 + $0x58] sm:$0xf] %vm814_vm6, %v1409_v14  ;;  %1446 = vst.msk [vmem:[#allocation3 + $0x5c] sm:$0xf] %vm814_vm6, %v1410_v58  ;;  %v1412_v39 = vld [vmem:[#allocation2 + $0x94] sm:$0xf]  ;;  %v4115_v43 = vpack.c.bf16 %v645_v25, %v645_v25  ;;  %v1635_v19 = vsel %vm4714_vm14, %v1630_v8, %v1634_v57 }
  0x7e   : > { %v1411_v30 = vld [vmem:[#allocation2 + $0x90] sm:$0xf]  ;;  %1331 = vst [vmem:[#allocation2 + $0xa4] sm:$0x1] %v1330_v26  ;;  %v646_v46 = vmax.f32 %v614_v24, 0.0  ;;  %v719_v21 = vsel %vm4559_vm2, 0, %v718_v56  ;;  %v1625_v44 = vsel %vm4714_vm14, %v1620_v40, %v4984_v42  ;;  %1966 = vrot.lane.b32.xlu1 %v1635_v19, %s4495_s12  ;;  %v596_v24 = vadd.f32 %v4971_v38, %v564_v49 }
  0x7f   : > { %776 = vst [vmem:[#allocation2 + $0xb0] sm:$0x1] %v775_v27  ;;  %1448 = vst.msk [vmem:[#allocation3 + $0x64] sm:$0xf] %vm814_vm6, %v1412_v39  ;;  %v1394_v29 = vld [vmem:[#allocation2 + $0x28] sm:$0xf]  ;;  %1964 = vrot.lane.b32.xlu0 %v1625_v44, %s4495_s12 }
  0x80   : > { %1447 = vst.msk [vmem:[#allocation3 + $0x60] sm:$0xf] %vm814_vm6, %v1411_v30  ;;  %v1498_v34 = vld [vmem:[#allocation2 + $0x9c] sm:$0xf]  ;;  %720 = vst [vmem:[#allocation2 + $0xa8] sm:$0x1] %v719_v21  ;;  %v4116_v15 = vpack.c.bf16 %v646_v46, %v646_v46 }
  0x81   : > { %v748_v36 = vsel %vm4585_vm4, 0, %v747_v3  ;;  %v691_v41 = vld [vmem:[#allocation2 + $0x3c] sm:$0x1]  ;;  %1430 = vst.msk [vmem:[#allocation3 + $0x1c] sm:$0xf] %vm814_vm6, %v1394_v29  ;;  %v1829_v28 = vshrl.u32 %v1498_v34, 16 }
  0x82   : > { %v1832_v45 = vshll.u32 %v1498_v34, 16  ;;  %749 = vst [vmem:[#allocation2 + $0x44] sm:$0x1] %v748_v36  ;;  %v1393_v16 = vld [vmem:[#allocation2 + $0x24] sm:$0xf]  ;;  %v1142_v32 = vshrl.u32 %v4115_v43, 16  ;;  %2344 = vrot.lane.b32.xlu1 %v2231_v59, %s4494_s11 }
  0x83   : > { %v1396_v47 = vld [vmem:[#allocation2 + $0x34] sm:$0xf]  ;;  %v1145_v18 = vshll.u32 %v4115_v43, 16  ;;  %1429 = vst.msk [vmem:[#allocation3 + $0x18] sm:$0xf] %vm814_vm6, %v1393_v16  ;;  %v1831_v17 = vrot.slane %v1829_v28, 4  ;;  %2342 = vrot.lane.b32.xlu0 %v4988_v55, %s4494_s11 }
  0x84   : > { %1432 = vst.msk [vmem:[#allocation3 + $0x24] sm:$0xf] %vm814_vm6, %v1396_v47  ;;  %v1395_v50 = vld [vmem:[#allocation2 + $0x30] sm:$0xf]  ;;  %v1834_v5 = vrot.slane %v1832_v45, 5  ;;  %v1150_v51 = vshrl.u32 %v4116_v15, 16 }
  0x85   : > { %v1153_v42 = vshll.u32 %v4116_v15, 16  ;;  %1431 = vst.msk [vmem:[#allocation3 + $0x20] sm:$0xf] %vm814_vm6, %v1395_v50  ;;  %v1413_v53 = vld [vmem:[#allocation2 + $0x9c] sm:$0xf]  ;;  %v1144_v56 = vrot.slane %v1142_v32, 7 }
  0x86   : > { %v1499_v54 = vld [vmem:[#allocation2 + $0xa0] sm:$0xf]  ;;  %v5043_v31 = vld [vmem:[#allocation2 + $0x9c] sm:$0xe]  ;;  %v692_v3 = vsel %vm4559_vm2, 0, %v691_v41  ;;  %v1835_v10 = vor.u32 %v1834_v5, %v1831_v17  ;;  %v1152_v60 = vrot.slane %v1150_v51, 7  ;;  %2348 = vrot.lane.b32.xlu1 %v2238_v52, %s4494_s11 }
  0x87   : > { %v5041_v57 = vld [vmem:[#allocation2 + $0xa0] sm:$0xf]  ;;  %1449 = vst.msk [vmem:[#allocation3 + $0x68] sm:$0xf] %vm814_vm6, %v1413_v53  ;;  %v1838_v6 = vshll.u32 %v1499_v54, 16  ;;  %v1842_v9 = vshrl.u32 %v1499_v54, 16  ;;  %v1147_v23 = vor.u32 %v1145_v18, %v1144_v56  ;;  %2346 = vrot.lane.b32.xlu0 %v2235_v20, %s4494_s11 }
  0x88   : > { %693 = vst [vmem:[#allocation2 + $0x3c] sm:$0x1] %v692_v3  ;;  %v4221_v48 = vld [vmem:[%s4578_s8 + $0x28] sm:$0xff]   ;;  %v1414_v63 = vld [vmem:[#allocation2 + $0xa0] sm:$0xf]  ;;  %v1148_v2 = vrot.slane %v1144_v56, 4  ;;  %v1155_v27 = vor.u32 %v1153_v42, %v1152_v60 }
  0x89   : > { %v1500_v22 = vld [vmem:[#allocation2 + $0xa4] sm:$0x1]  ;;  %v1336_v12 = vld [vmem:[#allocation2 + $0xb0] sm:$0x1]  ;;  %v2297_v7 = vrot.slane %v5041_v57, 5  ;;  %v1840_v25 = vrot.slane %v1838_v6, 5  ;;  %v4175_v30 = vunpack.c.l.bf16 %v4221_v48  ;;  %v4176_v15 = vunpack.c.h.bf16 %v4221_v48 }
  0x8a   : > { %1450 = vst.msk [vmem:[#allocation3 + $0x6c] sm:$0xf] %vm814_vm6, %v1414_v63  ;;  %v1844_v14 = vrot.slane %v1842_v9, 4  ;;  %v1848_v58 = vshll.u32 %v1500_v22, 16  ;;  %v1836_v8 = vrot.slane %v1835_v10, 4  ;;  %v1157_v59 = vrot.slane %v1152_v60, 4 }
  0x8b   : > { %v1332_v26 = vld [vmem:[#allocation2 + $0xa8] sm:$0xf]  ;;  %v2134_v39 = vld [vmem:[#allocation2 + $0xa4] sm:$0x1]  ;;  %v750_v40 = vld [vmem:[#allocation2 + $0x50] sm:$0x1]  ;;  %v1156_v61 = vsel %vm4628_vm7, %v1148_v2, %v1155_v27  ;;  %v565_v47 = vmul.f32 %v4954_v37, %v4175_v30  ;;  %v566_v50 = vmul.f32 %v4954_v37, %v4176_v15 }
  0x8c   : > { %v1333_v55 = vsel %vm4634_vm10, %v1147_v23, %v1332_v26  ;;  %v1845_v46 = vor.u32 %v1844_v14, %v1840_v25  ;;  %v1850_v43 = vrot.slane %v1848_v58, 5  ;;  %v2299_v21 = vrot.slane %v2297_v7, 4  ;;  %v694_v19 = vld [vmem:[#allocation2 + $0x48] sm:$0x1]  ;;  %v4230_v41 = vld [vmem:[%s4578_s8 + $0x70] sm:$0xff]   ;;  %v5091_v2 = vld [vmem:[%s4578_s8 + $0x78] sm:$0xff]  }
  0x8d   : > { %1334 = vst [vmem:[#allocation2 + $0xa8] sm:$0xf] %v1333_v55  ;;  %v3952_v29 = vrot.slane %v5043_v31, 9  ;;  %v1841_v34 = vsel %vm4714_vm14, %v1836_v8, %v1840_v25  ;;  %v1337_v35 = vsel %vm4559_vm2, %v1157_v59, %v1336_v12  ;;  %v627_v36 = vmax.f32 %v595_v62, 0.0  ;;  %1335 = vst.msk [vmem:[#allocation2 + $0xac] sm:$0xf] %vm814_vm6, %v1156_v61 }
  0x8e   : > { %v1846_v44 = vrot.slane %v1845_v46, 4  ;;  %1338 = vst [vmem:[#allocation2 + $0xb0] sm:$0x1] %v1337_v35  ;;  %v2300_v28 = vrot.slane %v2134_v39, 5  ;;  %v628_v45 = vmax.f32 %v596_v24, 0.0  ;;  %v751_v20 = vsel %vm4585_vm4, 0, %v750_v40  ;;  %2000 = vrot.lane.b32.xlu0 %v1841_v34, %s4495_s12 }
  0x8f   : > { %v4097_v16 = vpack.c.bf16 %v627_v36, %v627_v36  ;;  %v695_v32 = vsel %vm4559_vm2, 0, %v694_v19  ;;  %752 = vst [vmem:[#allocation2 + $0x50] sm:$0x1] %v751_v20  ;;  %v4211_v17 = vunpack.c.l.bf16 %v4230_v41  ;;  %v597_v42 = vadd.f32 %v4971_v38, %v565_v47  ;;  %v1269_v56 = vld [vmem:[#allocation2 + $0x3c] sm:$0xf] }
  0x90   : > { %v1851_v18 = vsel %vm4714_vm14, %v1846_v44, %v1850_v43  ;;  %v4098_v49 = vpack.c.bf16 %v628_v45, %v628_v45  ;;  %696 = vst [vmem:[#allocation2 + $0x48] sm:$0x1] %v695_v32  ;;  %v5082_v53 = vsel %vm4674_vm11, %v2299_v21, %v2300_v28  ;;  %v5086_v52 = vsel %vm4674_vm11, %v3952_v29, %v2297_v7  ;;  %v1273_v63 = vld [vmem:[#allocation2 + $0x44] sm:$0x1]  ;;  %v777_v20 = vld [vmem:[#allocation2 + $0xbc] sm:$0x1] }
  0x91   : > { %2002 = vrot.lane.b32.xlu1 %v1851_v18, %s4495_s12  ;;  %v989_v5 = vshrl.u32 %v4097_v16, 16  ;;  %v992_v51 = vshll.u32 %v4097_v16, 16  ;;  %v598_v57 = vadd.f32 %v4971_v38, %v566_v50  ;;  %v629_v6 = vmax.f32 %v597_v42, 0.0 }
  0x92   : > { %v997_v54 = vshrl.u32 %v4098_v49, 16  ;;  %v1000_v3 = vshll.u32 %v4098_v49, 16  ;;  %v4212_v9 = vunpack.c.h.bf16 %v4230_v41  ;;  %v583_v22 = vmul.f32 %v4954_v37, %v4211_v17  ;;  %v721_v17 = vld [vmem:[#allocation2 + $0xb4] sm:$0x1] }
  0x93   : > { %v991_v62 = vrot.slane %v989_v5, 7  ;;  %v630_v14 = vmax.f32 %v598_v57, 0.0  ;;  %v4099_v58 = vpack.c.bf16 %v629_v6, %v629_v6  ;;  %v4215_v34 = vunpack.c.l.bf16 %v5091_v2 }
  0x94   : > { %v1501_v31 = vld [vmem:[#allocation2 + $0xa8] sm:$0xf]  ;;  %v999_v48 = vrot.slane %v997_v54, 7  ;;  %v1502_v23 = vld [vmem:[#allocation2 + $0xac] sm:$0xf]  ;;  %v584_v19 = vmul.f32 %v4954_v37, %v4212_v9  ;;  %v615_v50 = vadd.f32 %v4971_v38, %v583_v22  ;;  %vm2654_vm1 = vcmask 1043456  }
  0x95   : > { %v1853_v10 = vshrl.u32 %v1501_v31, 16  ;;  %v1856_v60 = vshll.u32 %v1501_v31, 16  ;;  %v1415_v12 = vld [vmem:[#allocation2 + $0xa8] sm:$0xf]  ;;  %v1503_v7 = vld [vmem:[#allocation2 + $0xb0] sm:$0x1]  ;;  %v994_v25 = vor.u32 %v992_v51, %v991_v62  ;;  %v4100_v47 = vpack.c.bf16 %v630_v14, %v630_v14 }
  0x96   : > { %v995_v24 = vrot.slane %v991_v62, 4  ;;  %1451 = vst.msk [vmem:[#allocation3 + $0x70] sm:$0xf] %vm814_vm6, %v1415_v12  ;;  %v1862_v8 = vshll.u32 %v1502_v23, 16  ;;  %v1866_v26 = vshrl.u32 %v1502_v23, 16  ;;  %v1872_v27 = vshll.u32 %v1503_v7, 16 }
  0x97   : > { %v1855_v59 = vrot.slane %v1853_v10, 4  ;;  %v2135_v55 = vld [vmem:[#allocation2 + $0xa8] sm:$0xe]  ;;  %v1858_v39 = vrot.slane %v1856_v60, 5  ;;  %v1002_v30 = vor.u32 %v1000_v3, %v999_v48  ;;  %v1004_v40 = vrot.slane %v999_v48, 4 }
  0x98   : > { %v1270_v46 = vsel %vm4634_vm10, %v994_v25, %v1269_v56  ;;  %v2136_v43 = vld [vmem:[#allocation2 + $0xac] sm:$0xf]  ;;  %v1864_v21 = vrot.slane %v1862_v8, 5  ;;  %v1868_v29 = vrot.slane %v1866_v26, 4  ;;  %v5102_v41 = vld [vmem:[#allocation2 + $0xb0] sm:$0x1]  ;;  %v616_v31 = vadd.f32 %v4971_v38, %v584_v19 }
  0x99   : > { %1271 = vst [vmem:[#allocation2 + $0x3c] sm:$0xf] %v1270_v46  ;;  %v1859_v61 = vor.u32 %v1858_v39, %v1855_v59  ;;  %v1003_v35 = vsel %vm4628_vm7, %v995_v24, %v1002_v30  ;;  %v1274_v36 = vsel %vm4559_vm2, %v1004_v40, %v1273_v63  ;;  %v3953_v44 = vrot.slane %v2135_v55, 9  ;;  %v1416_v28 = vld [vmem:[#allocation2 + $0xac] sm:$0xf] }
  0x9a   : > { %v1869_v45 = vor.u32 %v1868_v29, %v1864_v21  ;;  %v1874_v15 = vrot.slane %v1872_v27, 5  ;;  %1272 = vst.msk [vmem:[#allocation2 + $0x40] sm:$0xf] %vm814_vm6, %v1003_v35  ;;  %1275 = vst [vmem:[#allocation2 + $0x44] sm:$0x1] %v1274_v36  ;;  %v2304_v16 = vrot.slane %v2136_v43, 5 }
  0x9b   : > { %1452 = vst.msk [vmem:[#allocation3 + $0x74] sm:$0xf] %vm814_vm6, %v1416_v28  ;;  %v1860_v32 = vrot.slane %v1859_v61, 4  ;;  %v1006_v18 = vshrl.u32 %v4099_v58, 16  ;;  %v1009_v49 = vshll.u32 %v4099_v58, 16  ;;  %v2307_v51 = vrot.slane %v5102_v41, 5 }
  0x9c   : > { %v1870_v5 = vrot.slane %v1869_v45, 4  ;;  %v1014_v42 = vshrl.u32 %v4100_v47, 16  ;;  %v1017_v54 = vshll.u32 %v4100_v47, 16  ;;  %v647_v62 = vmax.f32 %v615_v50, 0.0  ;;  %v1280_v9 = vld [vmem:[#allocation2 + $0x50] sm:$0x1] }
  0x9d   : > { %v1865_v56 = vsel %vm4714_vm14, %v1860_v32, %v1864_v21  ;;  %v1008_v57 = vrot.slane %v1006_v18, 7  ;;  %v1276_v10 = vld [vmem:[#allocation2 + $0x48] sm:$0xf]  ;;  %v778_v60 = vsel %vm4585_vm4, 0, %v777_v20  ;;  %v722_v48 = vsel %vm4559_vm2, 0, %v721_v17 }
  0x9e   : > { %v1875_v3 = vsel %vm4714_vm14, %v1870_v5, %v1874_v15  ;;  %2004 = vrot.lane.b32.xlu0 %v1865_v56, %s4495_s12  ;;  %v1016_v6 = vrot.slane %v1014_v42, 7  ;;  %v2306_v22 = vrot.slane %v2304_v16, 4  ;;  %v648_v7 = vmax.f32 %v616_v31, 0.0  ;;  %779 = vst [vmem:[#allocation2 + $0xbc] sm:$0x1] %v778_v60 }
  0x9f   : > { %2006 = vrot.lane.b32.xlu1 %v1875_v3, %s4495_s12  ;;  %v1012_v12 = vrot.slane %v1008_v57, 4  ;;  %v1011_v23 = vor.u32 %v1009_v49, %v1008_v57  ;;  %723 = vst [vmem:[#allocation2 + $0xb4] sm:$0x1] %v722_v48  ;;  %v5121_v59 = vsel %vm4674_vm11, %v3953_v44, %v2304_v16  ;;  %v4117_v30 = vpack.c.bf16 %v647_v62, %v647_v62  ;;  %v780_v5 = vld [vmem:[#allocation2 + $0xc8] sm:$0x1] }
  0xa0   : > { %v1474_v63 = vld [vmem:[#allocation2 + $0x3c] sm:$0xf]  ;;  %v1019_v14 = vor.u32 %v1017_v54, %v1016_v6  ;;  %v1021_v58 = vrot.slane %v1016_v6, 4  ;;  %v4118_v40 = vpack.c.bf16 %v648_v7, %v648_v7  ;;  %v5139_v45 = vsel %vm4674_vm11, %v2306_v22, %v2307_v51 }
  0xa1   : > { %v1637_v24 = vshrl.u32 %v1474_v63, 16  ;;  %v1640_v25 = vshll.u32 %v1474_v63, 16  ;;  %v1397_v8 = vld [vmem:[#allocation2 + $0x3c] sm:$0xf]  ;;  %v1475_v26 = vld [vmem:[#allocation2 + $0x40] sm:$0xf]  ;;  %v1277_v55 = vsel %vm4634_vm10, %v1011_v23, %v1276_v10  ;;  %v585_v56 = vmul.f32 %v4954_v37, %v4215_v34 }
  0xa2   : > { %v1476_v27 = vld [vmem:[#allocation2 + $0x44] sm:$0x1]  ;;  %v5125_v39 = vld [vmem:[#allocation2 + $0x40] sm:$0xf]  ;;  %1433 = vst.msk [vmem:[#allocation3 + $0x28] sm:$0xf] %vm814_vm6, %v1397_v8  ;;  %2382 = vrot.lane.b32.xlu0 %v5086_v52, %s4494_s11  ;;  %v1020_v35 = vsel %vm4628_vm7, %v1012_v12, %v1019_v14  ;;  %v1281_v36 = vsel %vm4559_vm2, %v1021_v58, %v1280_v9 }
  0xa3   : > { %v1646_v46 = vshll.u32 %v1475_v26, 16  ;;  %v1650_v43 = vshrl.u32 %v1475_v26, 16  ;;  %v1656_v21 = vshll.u32 %v1476_v27, 16  ;;  %v1639_v29 = vrot.slane %v1637_v24, 4  ;;  %1278 = vst [vmem:[#allocation2 + $0x48] sm:$0xf] %v1277_v55  ;;  %2384 = vrot.lane.b32.xlu1 %v5082_v53, %s4494_s11 }
  0xa4   : > { %v2110_v19 = vld [vmem:[#allocation2 + $0x44] sm:$0x1]  ;;  %v1642_v61 = vrot.slane %v1640_v25, 5  ;;  %v2241_v41 = vrot.slane %v5125_v39, 5  ;;  %v1398_v44 = vld [vmem:[#allocation2 + $0x40] sm:$0xf]  ;;  %v4216_v53 = vunpack.c.h.bf16 %v5091_v2  ;;  %v617_v8 = vadd.f32 %v4971_v38, %v585_v56  ;;  %v5167_v39 = vpop.permute.xlu0 %2366 }
  0xa5   : > { %v1648_v52 = vrot.slane %v1646_v46, 5  ;;  %v1652_v28 = vrot.slane %v1650_v43, 4  ;;  %1279 = vst.msk [vmem:[#allocation2 + $0x4c] sm:$0xf] %vm814_vm6, %v1020_v35  ;;  %1282 = vst [vmem:[#allocation2 + $0x50] sm:$0x1] %v1281_v36 }
  0xa6   : > { %1434 = vst.msk [vmem:[#allocation3 + $0x2c] sm:$0xf] %vm814_vm6, %v1398_v44  ;;  %v1658_v15 = vrot.slane %v1656_v21, 5  ;;  %v1643_v16 = vor.u32 %v1642_v61, %v1639_v29  ;;  %v2244_v47 = vrot.slane %v2110_v19, 5  ;;  %v2108_v20 = vld [vmem:[#allocation2 + $0x3c] sm:$0xe]  ;;  %v586_v6 = vmul.f32 %v4954_v37, %v4216_v53  ;;  %v5177_v44 = vpop.permute.xlu1 %2368 }
  0xa7   : > { %v1159_v32 = vshrl.u32 %v4117_v30, 16  ;;  %v1653_v18 = vor.u32 %v1652_v28, %v1648_v52  ;;  %v2243_v49 = vrot.slane %v2241_v41, 4  ;;  %v1167_v50 = vshrl.u32 %v4118_v40, 16  ;;  %v1339_v3 = vld [vmem:[#allocation2 + $0xb4] sm:$0xf] }
  0xa8   : > { %v1162_v17 = vshll.u32 %v4117_v30, 16  ;;  %v1644_v42 = vrot.slane %v1643_v16, 4  ;;  %v1170_v54 = vshll.u32 %v4118_v40, 16  ;;  %v3944_v31 = vrot.slane %v2108_v20, 9  ;;  %v724_v27 = vld [vmem:[#allocation2 + $0xc0] sm:$0x1] }
  0xa9   : > { %v1161_v51 = vrot.slane %v1159_v32, 7  ;;  %v1654_v57 = vrot.slane %v1653_v18, 4  ;;  %v1169_v62 = vrot.slane %v1167_v50, 7  ;;  %v781_v63 = vsel %vm4585_vm4, 0, %v780_v5  ;;  %v4222_v55 = vld [vmem:[%s4578_s8 + $0x30] sm:$0xff]  }
  0xaa   : > { %v1649_v9 = vsel %vm4714_vm14, %v1644_v42, %v1648_v52  ;;  %v1477_v10 = vld [vmem:[#allocation2 + $0x48] sm:$0xf]  ;;  %v5157_v12 = vsel %vm4674_vm11, %v2243_v49, %v2244_v47  ;;  %782 = vst [vmem:[#allocation2 + $0xc8] sm:$0x1] %v781_v63  ;;  %v618_v26 = vadd.f32 %v4971_v38, %v586_v6  ;;  %v5172_v19 = vsel %vm4674_vm11, %v3944_v31, %v2241_v41  ;;  %v1343_v36 = vld [vmem:[#allocation2 + $0xbc] sm:$0x1]  ;;  %v5191_v42 = vpop.permute.xlu0 %2370  ;;  %v5197_v6 = vpop.permute.xlu1 %2372 }
  0xab   : > { %v1165_v60 = vrot.slane %v1161_v51, 4  ;;  %v1164_v48 = vor.u32 %v1162_v17, %v1161_v51  ;;  %v1659_v2 = vsel %vm4714_vm14, %v1654_v57, %v1658_v15  ;;  %1968 = vrot.lane.b32.xlu0 %v1649_v9, %s4495_s12  ;;  %v1661_v34 = vshrl.u32 %v1477_v10, 16  ;;  %v5159_v23 = vld [vmem:[#allocation2 + $0x48] sm:$0xe]  ;;  %v753_v49 = vld [vmem:[#allocation2 + $0x5c] sm:$0x1] }
  0xac   : > { %v1664_v22 = vshll.u32 %v1477_v10, 16  ;;  %v1399_v7 = vld [vmem:[#allocation2 + $0x48] sm:$0xf]  ;;  %1970 = vrot.lane.b32.xlu1 %v1659_v2, %s4495_s12  ;;  %v1478_v24 = vld [vmem:[#allocation2 + $0x4c] sm:$0xf]  ;;  %v1172_v14 = vor.u32 %v1170_v54, %v1169_v62  ;;  %v3945_v61 = vrot.slane %v5159_v23, 9  ;;  %v4179_v41 = vunpack.c.l.bf16 %v4222_v55 }
  0xad   : > { %v1479_v25 = vld [vmem:[#allocation2 + $0x50] sm:$0x1]  ;;  %v1340_v58 = vsel %vm4634_vm10, %v1164_v48, %v1339_v3  ;;  %1435 = vst.msk [vmem:[#allocation3 + $0x30] sm:$0xf] %vm814_vm6, %v1399_v7  ;;  %v1670_v30 = vshll.u32 %v1478_v24, 16  ;;  %v1674_v40 = vshrl.u32 %v1478_v24, 16  ;;  %v4180_v56 = vunpack.c.h.bf16 %v4222_v55 }
  0xae   : > { %v1680_v46 = vshll.u32 %v1479_v25, 16  ;;  %v1663_v43 = vrot.slane %v1661_v34, 4  ;;  %v2112_v21 = vld [vmem:[#allocation2 + $0x4c] sm:$0xf]  ;;  %1341 = vst [vmem:[#allocation2 + $0xb4] sm:$0xf] %v1340_v58  ;;  %v1173_v35 = vsel %vm4628_vm7, %v1165_v60, %v1172_v14 }
  0xaf   : > { %v1666_v29 = vrot.slane %v1664_v22, 5  ;;  %v1400_v52 = vld [vmem:[#allocation2 + $0x4c] sm:$0xf]  ;;  %2386 = vrot.lane.b32.xlu0 %v5121_v59, %s4494_s11  ;;  %v1672_v28 = vrot.slane %v1670_v30, 5  ;;  %v1676_v53 = vrot.slane %v1674_v40, 4  ;;  %v1174_v16 = vrot.slane %v1169_v62, 4  ;;  %v5209_v40 = vpop.permute.xlu0 %2334 }
  0xb0   : > { %v5181_v15 = vld [vmem:[#allocation2 + $0x50] sm:$0x1]  ;;  %1342 = vst.msk [vmem:[#allocation2 + $0xb8] sm:$0xf] %vm814_vm6, %v1173_v35  ;;  %1436 = vst.msk [vmem:[#allocation3 + $0x34] sm:$0xf] %vm814_vm6, %v1400_v52  ;;  %2388 = vrot.lane.b32.xlu1 %v5139_v45, %s4494_s11  ;;  %v567_v62 = vmul.f32 %v4954_v37, %v4179_v41  ;;  %v568_v63 = vmul.f32 %v4954_v37, %v4180_v56 }
  0xb1   : > { %v1682_v47 = vrot.slane %v1680_v46, 5  ;;  %v1667_v20 = vor.u32 %v1666_v29, %v1663_v43  ;;  %v2248_v32 = vrot.slane %v2112_v21, 5  ;;  %v649_v18 = vmax.f32 %v617_v8, 0.0  ;;  %v1350_v29 = vld [vmem:[#allocation2 + $0xc8] sm:$0x1] }
  0xb2   : > { %v1677_v50 = vor.u32 %v1676_v53, %v1672_v28  ;;  %v1344_v59 = vsel %vm4559_vm2, %v1174_v16, %v1343_v36  ;;  %v650_v17 = vmax.f32 %v618_v26, 0.0  ;;  %v725_v5 = vsel %vm4559_vm2, 0, %v724_v27 }
  0xb3   : > { %v1668_v51 = vrot.slane %v1667_v20, 4  ;;  %v2251_v54 = vrot.slane %v5181_v15, 5  ;;  %1345 = vst [vmem:[#allocation2 + $0xbc] sm:$0x1] %v1344_v59  ;;  %v4119_v45 = vpack.c.bf16 %v649_v18, %v649_v18  ;;  %726 = vst [vmem:[#allocation2 + $0xc0] sm:$0x1] %v725_v5  ;;  %v2249_v25 = vsel %vm4674_vm11, %v3945_v61, %v2248_v32 }
  0xb4   : > { %v1678_v57 = vrot.slane %v1677_v50, 4  ;;  %v4120_v31 = vpack.c.bf16 %v650_v17, %v650_v17  ;;  %v754_v3 = vsel %vm4585_vm4, 0, %v753_v49  ;;  %v2250_v24 = vrot.slane %v2248_v32, 4  ;;  %v4223_v61 = vld [vmem:[%s4578_s8 + $0x38] sm:$0xff]   ;;  %v697_v5 = vld [vmem:[#allocation2 + $0x54] sm:$0x1] }
  0xb5   : > { %v1673_v9 = vsel %vm4714_vm14, %v1668_v51, %v1672_v28  ;;  %v1504_v10 = vld [vmem:[#allocation2 + $0xb4] sm:$0xf]  ;;  %v1176_v60 = vshrl.u32 %v4119_v45, 16  ;;  %v1179_v48 = vshll.u32 %v4119_v45, 16  ;;  %755 = vst [vmem:[#allocation2 + $0x5c] sm:$0x1] %v754_v3  ;;  %v599_v36 = vadd.f32 %v4971_v38, %v567_v62 }
  0xb6   : > { %v1683_v2 = vsel %vm4714_vm14, %v1678_v57, %v1682_v47  ;;  %1972 = vrot.lane.b32.xlu0 %v1673_v9, %s4495_s12  ;;  %v1877_v34 = vshrl.u32 %v1504_v10, 16  ;;  %v1880_v22 = vshll.u32 %v1504_v10, 16  ;;  %v1184_v23 = vshrl.u32 %v4120_v31, 16  ;;  %v1417_v7 = vld [vmem:[#allocation2 + $0xb4] sm:$0xf]  ;;  %v5217_v47 = vpop.permute.xlu1 %2336  ;;  %v5234_v9 = vpop.permute.xlu0 %2338 }
  0xb7   : > { %1974 = vrot.lane.b32.xlu1 %v1683_v2, %s4495_s12  ;;  %v1505_v14 = vld [vmem:[#allocation2 + $0xb8] sm:$0xf]  ;;  %v1178_v58 = vrot.slane %v1176_v60, 7  ;;  %v1187_v8 = vshll.u32 %v4120_v31, 16  ;;  %1453 = vst.msk [vmem:[#allocation3 + $0x78] sm:$0xf] %vm814_vm6, %v1417_v7  ;;  %v600_v41 = vadd.f32 %v4971_v38, %v568_v63  ;;  %v4183_v51 = vunpack.c.l.bf16 %v4223_v61 }
  0xb8   : > { %v1886_v26 = vshll.u32 %v1505_v14, 16  ;;  %v1890_v27 = vshrl.u32 %v1505_v14, 16  ;;  %v1879_v55 = vrot.slane %v1877_v34, 4  ;;  %v1882_v30 = vrot.slane %v1880_v22, 5  ;;  %v1418_v46 = vld [vmem:[#allocation2 + $0xb8] sm:$0xf] }
  0xb9   : > { %v1182_v43 = vrot.slane %v1178_v58, 4  ;;  %v1186_v21 = vrot.slane %v1184_v23, 7  ;;  %v1181_v35 = vor.u32 %v1179_v48, %v1178_v58  ;;  %1454 = vst.msk [vmem:[#allocation3 + $0x7c] sm:$0xf] %vm814_vm6, %v1418_v46  ;;  %v5223_v50 = vld [vmem:[#allocation2 + $0xb8] sm:$0xf]  ;;  %v4184_v2 = vunpack.c.h.bf16 %v4223_v61 }
  0xba   : > { %2350 = vrot.lane.b32.xlu0 %v5172_v19, %s4494_s11  ;;  %v1506_v52 = vld [vmem:[#allocation2 + $0xbc] sm:$0x1]  ;;  %v1888_v28 = vrot.slane %v1886_v26, 5  ;;  %v1892_v53 = vrot.slane %v1890_v27, 4  ;;  %v1883_v15 = vor.u32 %v1882_v30, %v1879_v55  ;;  %v1346_v16 = vld [vmem:[#allocation2 + $0xc0] sm:$0xf]  ;;  %v2252_v19 = vsel %vm4674_vm11, %v2250_v24, %v2251_v54  ;;  %v5250_v14 = vpop.permute.xlu1 %2340 }
  0xbb   : > { %2352 = vrot.lane.b32.xlu1 %v5157_v12, %s4494_s11  ;;  %v1896_v20 = vshll.u32 %v1506_v52, 16  ;;  %v1189_v32 = vor.u32 %v1187_v8, %v1186_v21  ;;  %v1191_v18 = vrot.slane %v1186_v21, 4  ;;  %v1347_v49 = vsel %vm4634_vm10, %v1181_v35, %v1346_v16  ;;  %v756_v57 = vld [vmem:[#allocation2 + $0x68] sm:$0x1]  ;;  %v700_v31 = vld [vmem:[#allocation2 + $0x60] sm:$0x1] }
  0xbc   : > { %v1893_v59 = vor.u32 %v1892_v53, %v1888_v28  ;;  %v1884_v17 = vrot.slane %v1883_v15, 4  ;;  %1348 = vst [vmem:[#allocation2 + $0xc0] sm:$0xf] %v1347_v49  ;;  %v2311_v54 = vrot.slane %v5223_v50, 5  ;;  %v631_v3 = vmax.f32 %v599_v36, 0.0  ;;  %v5264_v53 = vpop.permute.xlu0 %2374 }
  0xbd   : > { %v1898_v45 = vrot.slane %v1896_v20, 5  ;;  %v1190_v12 = vsel %vm4628_vm7, %v1182_v43, %v1189_v32  ;;  %v1351_v56 = vsel %vm4559_vm2, %v1191_v18, %v1350_v29  ;;  %v732_v10 = vld [vmem:[#allocation2 + $0x8] sm:$0x1]  ;;  %v632_v48 = vmax.f32 %v600_v41, 0.0  ;;  %v5243_v22 = vld [vmem:[#allocation2 + $0xbc] sm:$0x1] }
  0xbe   : > { %2354 = vrot.lane.b32.xlu0 %v2249_v25, %s4494_s11  ;;  %v1894_v62 = vrot.slane %v1893_v59, 4  ;;  %1349 = vst.msk [vmem:[#allocation2 + $0xc4] sm:$0xf] %vm814_vm6, %v1190_v12  ;;  %1352 = vst [vmem:[#allocation2 + $0xc8] sm:$0x1] %v1351_v56  ;;  %v1889_v60 = vsel %vm4714_vm14, %v1884_v17, %v1888_v28  ;;  %v698_v63 = vsel %vm4559_vm2, 0, %v697_v5  ;;  %v4101_v7 = vpack.c.bf16 %v631_v3, %v631_v3  ;;  %v5270_v12 = vpop.permute.xlu1 %2376 }
  0xbf   : > { %2356 = vrot.lane.b32.xlu1 %v2252_v19, %s4494_s11  ;;  %v5245_v23 = vld [vmem:[#allocation2 + $0xb4] sm:$0xe]  ;;  %699 = vst [vmem:[#allocation2 + $0x54] sm:$0x1] %v698_v63  ;;  %v569_v24 = vmul.f32 %v4954_v37, %v4183_v51  ;;  %v757_v25 = vsel %vm4585_vm4, 0, %v756_v57  ;;  %v4102_v58 = vpack.c.bf16 %v632_v48, %v632_v48  ;;  %v570_v8 = vmul.f32 %v4954_v37, %v4184_v2 }
  0xc0   : > { %v1899_v34 = vsel %vm4714_vm14, %v1894_v62, %v1898_v45  ;;  %758 = vst [vmem:[#allocation2 + $0x68] sm:$0x1] %v757_v25  ;;  %v701_v26 = vsel %vm4559_vm2, 0, %v700_v31  ;;  %v733_v27 = vsel %vm4585_vm4, 0, %v732_v10  ;;  %v2313_v55 = vrot.slane %v2311_v54, 4  ;;  %v1985_v63 = vpop.permute.xlu0 %1984 }
  0xc1   : > { %v1023_v30 = vshrl.u32 %v4101_v7, 16  ;;  %v601_v46 = vadd.f32 %v4971_v38, %v569_v24  ;;  %702 = vst [vmem:[#allocation2 + $0x60] sm:$0x1] %v701_v26  ;;  %734 = vst [vmem:[#allocation2 + $0x8] sm:$0x1] %v733_v27  ;;  %v2314_v43 = vrot.slane %v5243_v22, 5  ;;  %v602_v32 = vadd.f32 %v4971_v38, %v570_v8 }
  0xc2   : > { %2008 = vrot.lane.b32.xlu0 %v1889_v60, %s4495_s12  ;;  %v3954_v21 = vrot.slane %v5245_v23, 9  ;;  %v1031_v29 = vshrl.u32 %v4102_v58, 16  ;;  %v1034_v35 = vshll.u32 %v4102_v58, 16  ;;  %v1026_v28 = vshll.u32 %v4101_v7, 16  ;;  %v1287_v45 = vld [vmem:[#allocation2 + $0x5c] sm:$0x1]  ;;  %v1989_v8 = vpop.permute.xlu1 %1988 }
  0xc3   : > { %2010 = vrot.lane.b32.xlu1 %v1899_v34, %s4495_s12  ;;  %v1507_v37 = vld [vmem:[#allocation2 + $0xc0] sm:$0xf]  ;;  %v1025_v52 = vrot.slane %v1023_v30, 7  ;;  %v633_v18 = vmax.f32 %v601_v46, 0.0  ;;  %v4496_v49 = vmov 0.0|0.0   ;;  %v634_v58 = vmax.f32 %v602_v32, 0.0 }
  0xc4   : > { %v1901_v36 = vshrl.u32 %v1507_v37, 16  ;;  %v1904_v61 = vshll.u32 %v1507_v37, 16  ;;  %v1419_v15 = vld [vmem:[#allocation2 + $0xc0] sm:$0xf]  ;;  %v1033_v20 = vrot.slane %v1031_v29, 7  ;;  %v5267_v19 = vcombine.low %v4496_v49, %v4496_v49 }
  0xc5   : > { %v1508_v16 = vld [vmem:[#allocation2 + $0xc4] sm:$0xf]  ;;  %v1509_v41 = vld [vmem:[#allocation2 + $0xc8] sm:$0x1]  ;;  %1455 = vst.msk [vmem:[#allocation3 + $0x80] sm:$0xf] %vm814_vm6, %v1419_v15  ;;  %v1028_v60 = vor.u32 %v1026_v28, %v1025_v52  ;;  %v3904_v48 = vcombine.high %v4496_v49, %v4496_v49  ;;  %v2315_v30 = vsel %vm4674_vm11, %v2313_v55, %v2314_v43  ;;  %v2312_v46 = vsel %vm4674_vm11, %v3954_v21, %v2311_v54  ;;  %v1987_v28 = vpop.permute.xlu0 %1986 }
  0xc6   : > { %v1910_v59 = vshll.u32 %v1508_v16, 16  ;;  %v1914_v17 = vshrl.u32 %v1508_v16, 16  ;;  %v1920_v5 = vshll.u32 %v1509_v41, 16  ;;  %v1903_v51 = vrot.slane %v1901_v36, 4  ;;  %v1283_v3 = vld [vmem:[#allocation2 + $0x54] sm:$0xf] }
  0xc7   : > { %v1906_v56 = vrot.slane %v1904_v61, 5  ;;  %v1029_v57 = vrot.slane %v1025_v52, 4  ;;  %v1036_v31 = vor.u32 %v1034_v35, %v1033_v20  ;;  %v1038_v62 = vrot.slane %v1033_v20, 4  ;;  %v5279_v25 = vld [vmem:[#allocation2 + $0xc4] sm:$0xf]  ;;  %v1991_v20 = vpop.permute.xlu1 %1990 }
  0xc8   : > { %v1912_v10 = vrot.slane %v1910_v59, 5  ;;  %v1916_v38 = vrot.slane %v1914_v17, 4  ;;  %v1922_v7 = vrot.slane %v1920_v5, 5  ;;  %v1284_v24 = vsel %vm4634_vm10, %v1028_v60, %v1283_v3  ;;  %v1420_v26 = vld [vmem:[#allocation2 + $0xc4] sm:$0xf] }
  0xc9   : > { %v1907_v2 = vor.u32 %v1906_v56, %v1903_v51  ;;  %v1037_v34 = vsel %vm4628_vm7, %v1029_v57, %v1036_v31  ;;  %v1288_v22 = vsel %vm4559_vm2, %v1038_v62, %v1287_v45  ;;  %1285 = vst [vmem:[#allocation2 + $0x54] sm:$0xf] %v1284_v24  ;;  %v4103_v37 = vpack.c.bf16 %v633_v18, %v633_v18  ;;  %v676_v52 = vld [vmem:[#allocation2] sm:$0x1]  ;;  %v1294_v5 = vld [vmem:[#allocation2 + $0x68] sm:$0x1]  ;;  %v1953_v57 = vpop.permute.xlu0 %1952 }
  0xca   : > { %v1917_v23 = vor.u32 %v1916_v38, %v1912_v10  ;;  %1286 = vst.msk [vmem:[#allocation2 + $0x58] sm:$0xf] %vm814_vm6, %v1037_v34  ;;  %1289 = vst [vmem:[#allocation2 + $0x5c] sm:$0x1] %v1288_v22  ;;  %v4104_v35 = vpack.c.bf16 %v634_v58, %v634_v58  ;;  %v795_v36 = vshrl.u32 %v5267_v19, 16  ;;  %v803_v61 = vshrl.u32 %v3904_v48, 16 }
  0xcb   : > { %v1908_v27 = vrot.slane %v1907_v2, 4  ;;  %1456 = vst.msk [vmem:[#allocation3 + $0x84] sm:$0xf] %vm814_vm6, %v1420_v26  ;;  %v2318_v55 = vrot.slane %v5279_v25, 5  ;;  %v1040_v50 = vshrl.u32 %v4103_v37, 16  ;;  %v1043_v43 = vshll.u32 %v4103_v37, 16 }
  0xcc   : > { %v1918_v29 = vrot.slane %v1917_v23, 4  ;;  %v1048_v21 = vshrl.u32 %v4104_v35, 16  ;;  %v1051_v16 = vshll.u32 %v4104_v35, 16  ;;  %v5295_v41 = vrot.slane %v795_v36, 7  ;;  %v1290_v51 = vld [vmem:[#allocation2 + $0x60] sm:$0xf]  ;;  %v1955_v23 = vpop.permute.xlu1 %1954 }
  0xcd   : > { %v1913_v15 = vsel %vm4714_vm14, %v1908_v27, %v1912_v10  ;;  %v1042_v32 = vrot.slane %v1040_v50, 7  ;;  %v5298_v18 = vrot.slane %v803_v61, 7  ;;  %v806_v49 = vshll.u32 %v3904_v48, 16  ;;  %2075 = vst.msk [vmem:[#allocation3 + $0x48] sm:$0xf] %vm2056_vm15, %v1985_v63  ;;  %v1957_v35 = vpop.permute.xlu0 %1956 }
  0xce   : > { %v1923_v54 = vsel %vm4714_vm14, %v1918_v29, %v1922_v7  ;;  %2012 = vrot.lane.b32.xlu0 %v1913_v15, %s4495_s12  ;;  %v677_v59 = vsel %vm4559_vm2, 0, %v676_v52  ;;  %v1050_v17 = vrot.slane %v1048_v21, 7  ;;  %v801_v45 = vrot.slane %v5295_v41, 4  ;;  %2077 = vst.msk [vmem:[#allocation3 + $0x50] sm:$0xf] %vm2056_vm15, %v1989_v8 }
  0xcf   : > { %2014 = vrot.lane.b32.xlu1 %v1923_v54, %s4495_s12  ;;  %678 = vst [vmem:[#allocation2] sm:$0x1] %v677_v59  ;;  %v798_v56 = vshll.u32 %v5267_v19, 16  ;;  %v1046_v3 = vrot.slane %v1042_v32, 4  ;;  %v1045_v10 = vor.u32 %v1043_v43, %v1042_v32  ;;  %v808_v38 = vor.u32 %v806_v49, %v5298_v18  ;;  %2076 = vst.msk [vmem:[#allocation3 + $0x4c] sm:$0xf] %vm2056_vm15, %v1987_v28 }
  0xd0   : > { %v810_v60 = vrot.slane %v5298_v18, 4  ;;  %2078 = vst.msk [vmem:[#allocation3 + $0x54] sm:$0xf] %vm2056_vm15, %v1991_v20  ;;  %2059 = vst.msk [vmem:[#allocation3 + $0x8] sm:$0xf] %vm2056_vm15, %v1953_v57  ;;  %v1053_v22 = vor.u32 %v1051_v16, %v1050_v17  ;;  %v1055_v58 = vrot.slane %v1050_v17, 4  ;;  %v1959_v20 = vpop.permute.xlu1 %1958 }
  0xd1   : > { %v1481_v31 = vld [vmem:[#allocation2 + $0x58] sm:$0xf]  ;;  %v1482_v62 = vld [vmem:[#allocation2 + $0x5c] sm:$0x1]  ;;  %v1480_v34 = vld [vmem:[#allocation2 + $0x54] sm:$0xf]  ;;  %v1291_v8 = vsel %vm4634_vm10, %v1045_v10, %v1290_v51  ;;  %v809_v16 = vsel %vm4628_vm7, %v801_v45, %v808_v38  ;;  %v5347_v4 = vor.u32 %v798_v56, %v5295_v41  ;;  %v1993_v41 = vpop.permute.xlu0 %1992 }
  0xd2   : > { %2390 = vrot.lane.b32.xlu0 %v2312_v46, %s4494_s11  ;;  %v1694_v19 = vshll.u32 %v1481_v31, 16  ;;  %v1698_v48 = vshrl.u32 %v1481_v31, 16  ;;  %v1704_v2 = vshll.u32 %v1482_v62, 16  ;;  %v1685_v7 = vshrl.u32 %v1480_v34, 16  ;;  %v5313_v24 = vld [vmem:[#allocation2 + $0xc8] sm:$0x1] }
  0xd3   : > { %2392 = vrot.lane.b32.xlu1 %v2315_v30, %s4494_s11  ;;  %v1688_v63 = vshll.u32 %v1480_v34, 16  ;;  %v4429_v26 = vld [vmem:[%s5894_s5 + $0x14] ss:$0 sps:$4 sm:$0xff]   ;;  %2060 = vst.msk [vmem:[#allocation3 + $0xc] sm:$0xf] %vm2056_vm15, %v1955_v23  ;;  %v1054_v30 = vsel %vm4628_vm7, %v1046_v3, %v1053_v22  ;;  %v1295_v28 = vsel %vm4559_vm2, %v1055_v58, %v1294_v5  ;;  %v2321_v21 = vrot.slane %v5313_v24, 5 }
  0xd4   : > { %v5321_v27 = vrot.slane %v1694_v19, 5  ;;  %v1700_v46 = vrot.slane %v1698_v48, 4  ;;  %1292 = vst [vmem:[#allocation2 + $0x60] sm:$0xf] %v1291_v8  ;;  %v5325_v37 = vld [vmem:[#allocation2 + $0x58] sm:$0xf]  ;;  %4399 = vmatprep.subr.msk.bf16.mxu1 %vm2654_vm1, %v4429_v26  ;;  %4398 = vmatprep.subr.msk.bf16.mxu0 %vm2654_vm1, %v4429_v26 }
  0xd5   : > { %v821_v29 = vld [vmem:[#allocation2 + $0x8] sm:$0x1]  ;;  %v1687_v36 = vrot.slane %v1685_v7, 4  ;;  %v1690_v61 = vrot.slane %v1688_v63, 5  ;;  %v5327_v52 = vld [vmem:[#allocation2 + $0xc0] sm:$0xe] }
  0xd6   : > { %1293 = vst.msk [vmem:[#allocation2 + $0x64] sm:$0xf] %vm814_vm6, %v1054_v30  ;;  %v783_v15 = vld [vmem:[#allocation2 + $0xd4] sm:$0x1]  ;;  %v727_v50 = vld [vmem:[#allocation2 + $0xcc] sm:$0x1]  ;;  %v1701_v43 = vor.u32 %v1700_v46, %v5321_v27  ;;  %v822_v51 = vsel %vm4559_vm2, %v810_v60, %v821_v29 }
  0xd7   : > { %2061 = vst.msk [vmem:[#allocation3 + $0x10] sm:$0xf] %vm2056_vm15, %v1957_v35  ;;  %v1706_v54 = vrot.slane %v1704_v2, 5  ;;  %1296 = vst [vmem:[#allocation2 + $0x68] sm:$0x1] %v1295_v28  ;;  %v1691_v59 = vor.u32 %v1690_v61, %v1687_v36  ;;  %v2255_v5 = vrot.slane %v5325_v37, 5 }
  0xd8   : > { %v1402_v32 = vld [vmem:[#allocation2 + $0x58] sm:$0xf]  ;;  %v1401_v49 = vld [vmem:[#allocation2 + $0x54] sm:$0xf]  ;;  %v5337_v17 = vld [vmem:[#allocation2 + $0x5c] sm:$0x1] }
  0xd9   : > { %820 = vst.msk [vmem:[#allocation2 + $0x4] sm:$0xf] %vm814_vm6, %v809_v16  ;;  %1383 = vst.msk [vmem:[#allocation2 + $0xd0] sm:$0xf] %vm814_vm6, %v809_v16  ;;  %v816_v45 = vld [vmem:[#allocation2] sm:$0xf] }
  0xda   : > { %v5352_v57 = vld [vmem:[%s5894_s5 + $0xc] sm:$0xff]   ;;  %2062 = vst.msk [vmem:[#allocation3 + $0x14] sm:$0xf] %vm2056_vm15, %v1959_v20  ;;  %v1702_v31 = vrot.slane %v1701_v43, 4  ;;  %v2320_v62 = vrot.slane %v2318_v55, 4  ;;  %v1692_v56 = vrot.slane %v1691_v59, 4  ;;  %v817_v38 = vsel %vm4634_vm10, %v5347_v4, %v816_v45 }
  0xdb   : > { %1438 = vst.msk [vmem:[#allocation3 + $0x3c] sm:$0xf] %vm814_vm6, %v1402_v32  ;;  %1437 = vst.msk [vmem:[#allocation3 + $0x38] sm:$0xf] %vm814_vm6, %v1401_v49  ;;  %v5359_v3 = vld [vmem:[#allocation2 + $0x54] sm:$0xe] }
  0xdc   : > { %823 = vst [vmem:[#allocation2 + $0x8] sm:$0x1] %v822_v51  ;;  %v3955_v10 = vrot.slane %v5327_v52, 9  ;;  %2457 = vst.msk [vmem:[#allocation3 + $0x48] sm:$0xf] %vm2438_vm0, %v5167_v39  ;;  %v2656_v19 = vsel %vm2654_vm1, %v4429_v26, 0  ;;  %v1707_v39 = vsel %vm4714_vm14, %v1702_v31, %v1706_v54  ;;  %v2322_v48 = vsel %vm4674_vm11, %v2320_v62, %v2321_v21 }
  0xdd   : > { %2459 = vst.msk [vmem:[#allocation3 + $0x50] sm:$0xf] %vm2438_vm0, %v5191_v42  ;;  %2458 = vst.msk [vmem:[#allocation3 + $0x4c] sm:$0xf] %vm2438_vm0, %v5177_v44  ;;  %4396 = vmatpush3.bf16.msra.mxu1 %v2656_v19  ;;  %v1995_v44 = vpop.permute.xlu1 %1994  ;;  %4287 = vmatpush3.bf16.msra.mxu0 %v2656_v19  ;;  %v784_v42 = vsel %vm4585_vm4, 0, %v783_v15  ;;  %v2258_v13 = vrot.slane %v5337_v17, 5 }
  0xde   : > { %2460 = vst.msk [vmem:[#allocation3 + $0x54] sm:$0xf] %vm2438_vm0, %v5197_v6  ;;  %2441 = vst.msk [vmem:[#allocation3 + $0x8] sm:$0xf] %vm2438_vm0, %v5209_v40  ;;  %v728_v6 = vsel %vm4559_vm2, 0, %v727_v50  ;;  %1978 = vrot.lane.b32.xlu1 %v1707_v39, %s4495_s12  ;;  %4395 = vmatprep.subr.bf16.mxu1 %v5352_v57  ;;  %v2319_v7 = vsel %vm4674_vm11, %v3955_v10, %v2318_v55  ;;  %vm2605_vm3 = vcmask 195584  }
  0xdf   : > { %2442 = vst.msk [vmem:[#allocation3 + $0xc] sm:$0xf] %vm2438_vm0, %v5217_v47  ;;  %2443 = vst.msk [vmem:[#allocation3 + $0x10] sm:$0xf] %vm2438_vm0, %v5234_v9  ;;  %v4443_v40 = vld [vmem:[%s5894_s5 + $0x8] ss:$0 sps:$4 sm:$0xff]   ;;  %v1697_v47 = vsel %vm4714_vm14, %v1692_v56, %v5321_v27  ;;  %4288 = vmatprep.subr.bf16.mxu0 %v5352_v57 }
  0xe0   : > { %2444 = vst.msk [vmem:[#allocation3 + $0x14] sm:$0xf] %vm2438_vm0, %v5250_v14  ;;  %818 = vst [vmem:[#allocation2] sm:$0xf] %v817_v38  ;;  %v1483_v9 = vld [vmem:[#allocation2 + $0x60] sm:$0xf]  ;;  %1976 = vrot.lane.b32.xlu0 %v1697_v47, %s4495_s12 }
  0xe1   : > { %2079 = vst.msk [vmem:[#allocation3 + $0x58] sm:$0xf] %vm2056_vm15, %v1993_v41  ;;  %v5402_v14 = vrot.slane %v2255_v5, 4  ;;  %2080 = vst.msk [vmem:[#allocation3 + $0x5c] sm:$0xf] %vm2056_vm15, %v1995_v44  ;;  %v1709_v34 = vshrl.u32 %v1483_v9, 16  ;;  %4397 = vmatpush3.bf16.msra.mxu1 %v5352_v57  ;;  %4289 = vmatpush3.bf16.msra.mxu0 %v5352_v57 }
  0xe2   : > { %2461 = vst.msk [vmem:[#allocation3 + $0x58] sm:$0xf] %vm2438_vm0, %v5264_v53  ;;  %v3946_v53 = vrot.slane %v5359_v3, 9  ;;  %785 = vst [vmem:[#allocation2 + $0xd4] sm:$0x1] %v784_v42  ;;  %v1712_v22 = vshll.u32 %v1483_v9, 16  ;;  %2396 = vrot.lane.b32.xlu1 %v2322_v48, %s4494_s11  ;;  %4400 = vmatprep.subr.msk.bf16.mxu1 %vm2654_vm1, %v4443_v40  ;;  %v1999_v3 = vpop.permute.xlu1 %1998 }
  0xe3   : > { %729 = vst [vmem:[#allocation2 + $0xcc] sm:$0x1] %v728_v6  ;;  %v1484_v2 = vld [vmem:[#allocation2 + $0x64] sm:$0xf]  ;;  %2462 = vst.msk [vmem:[#allocation3 + $0x5c] sm:$0xf] %vm2438_vm0, %v5270_v12  ;;  %v2259_v47 = vsel %vm4674_vm11, %v5402_v14, %v2258_v13 }
  0xe4   : > { %v4444_v23 = vld [vmem:[%s5894_s5 + $0x20] ss:$0 sps:$4 sm:$0xff]   ;;  %v1485_v63 = vld [vmem:[#allocation2 + $0x68] sm:$0x1]  ;;  %v1718_v24 = vshll.u32 %v1484_v2, 16  ;;  %v1722_v58 = vshrl.u32 %v1484_v2, 16  ;;  %2394 = vrot.lane.b32.xlu0 %v2319_v7, %s4494_s11  ;;  %v2256_v42 = vsel %vm4674_vm11, %v3946_v53, %v2255_v5  ;;  %v1997_v53 = vpop.permute.xlu0 %1996 }
  0xe5   : > { %v5421_v8 = vld [vmem:[#allocation2 + $0x64] sm:$0xf]  ;;  %v1728_v26 = vshll.u32 %v1485_v63, 16  ;;  %v1711_v27 = vrot.slane %v1709_v34, 4  ;;  %v1714_v46 = vrot.slane %v1712_v22, 5  ;;  %v2837_v28 = vsel %vm2654_vm1, %v4443_v40, 0  ;;  %4401 = vmatprep.subr.msk.bf16.mxu0 %vm2654_vm1, %v4444_v23 }
  0xe6   : > { %v1460_v12 = vld [vmem:[#allocation2 + $0x4] sm:$0xf]  ;;  %v1720_v25 = vrot.slane %v1718_v24, 5  ;;  %v1724_v30 = vrot.slane %v1722_v58, 4  ;;  %v5426_v29 = vld [vmem:[#allocation2 + $0x68] sm:$0x1] }
  0xe7   : > { %v1461_v55 = vld [vmem:[#allocation2 + $0x8] sm:$0x1]  ;;  %v1715_v35 = vor.u32 %v1714_v46, %v1711_v27  ;;  %v2117_v36 = vld [vmem:[#allocation2 + $0x60] sm:$0xe]  ;;  %v1526_v61 = vshll.u32 %v1460_v12, 16  ;;  %v3174_v15 = vsel %vm2654_vm1, %v4444_v23, 0 }
  0xe8   : > { %v5430_v52 = vld [vmem:[#allocation3 + $0x48] sm:$0xff]   ;;  %v1725_v50 = vor.u32 %v1724_v30, %v1720_v25  ;;  %v1730_v43 = vrot.slane %v1728_v26, 5  ;;  %v2262_v54 = vrot.slane %v5421_v8, 5  ;;  %v1530_v21 = vshrl.u32 %v1460_v12, 16  ;;  %v5439_v51 = vld [vmem:[#allocation3 + $0x50] sm:$0xff]   ;;  %v4448_v12 = vld [vmem:[%s5894_s5 + $0x18] sm:$0xff]  }
  0xe9   : > { %v1459_v16 = vld [vmem:[#allocation2] sm:$0xf]  ;;  %v1716_v20 = vrot.slane %v1715_v35, 4  ;;  %v2265_v32 = vrot.slane %v5426_v29, 5  ;;  %v1536_v49 = vshll.u32 %v1461_v55, 16  ;;  %4306 = vmatprep.mubr.msk.bf16.mxu1 %vm2605_vm3, %v5430_v52  ;;  %v5441_v57 = vrot.slane %v1526_v61, 5 }
  0xea   : > { %v1517_v59 = vshrl.u32 %v1459_v16, 16  ;;  %v1726_v45 = vrot.slane %v1725_v50, 4  ;;  %v1532_v31 = vrot.slane %v1530_v21, 4  ;;  %v1520_v62 = vshll.u32 %v1459_v16, 16  ;;  %v5445_v10 = vld [vmem:[#allocation2 + $0x4] sm:$0xf]  ;;  %4307 = vmatmul.mubr.msk.bf16.vlgmr.msra.gmra.mxu1 %vm2605_vm3, %v5439_v51  ;;  %v1963_v50 = vpop.permute.xlu1 %1962 }
  0xeb   : > { %v1721_v41 = vsel %vm4714_vm14, %v1716_v20, %v1720_v25  ;;  %v5449_v38 = vld [vmem:[#allocation3 + $0x8] sm:$0xff]   ;;  %v3947_v39 = vrot.slane %v2117_v36, 9  ;;  %4323 = vmatpush3.bf16.msra.mxu1 %v2837_v28  ;;  %v2264_v6 = vrot.slane %v2262_v54, 4  ;;  %v5463_v40 = vld [vmem:[#allocation3 + $0x10] sm:$0xff]   ;;  %v1538_v37 = vrot.slane %v1536_v49, 5  ;;  %v5471_v2 = vld [vmem:[#allocation3 + $0x58] sm:$0xff]   ;;  %v1961_v36 = vpop.permute.xlu0 %1960 }
  0xec   : > { %v1519_v56 = vrot.slane %v1517_v59, 4  ;;  %v1731_v19 = vsel %vm4714_vm14, %v1726_v45, %v1730_v43  ;;  %1980 = vrot.lane.b32.xlu0 %v1721_v41, %s4495_s12  ;;  %v1522_v44 = vrot.slane %v1520_v62, 5  ;;  %4290 = vmatprep.mubr.msk.bf16.mxu0 %vm2605_vm3, %v5449_v38  ;;  %v1533_v9 = vor.u32 %v1532_v31, %v5441_v57  ;;  %v2095_v5 = vld [vmem:[#allocation2 + $0x8] sm:$0x1]  ;;  %2082 = vst.msk [vmem:[#allocation3 + $0x64] sm:$0xf] %vm2056_vm15, %v1999_v3 }
  0xed   : > { %1982 = vrot.lane.b32.xlu1 %v1731_v19, %s4495_s12  ;;  %4291 = vmatmul.mubr.msk.bf16.vlgmr.msra.gmra.mxu0 %vm2605_vm3, %v5463_v40  ;;  %v1384_v34 = vld [vmem:[#allocation2 + $0xd4] sm:$0x1]  ;;  %v2263_v17 = vsel %vm4674_vm11, %v3947_v39, %v2262_v54  ;;  %v2206_v14 = vrot.slane %v5445_v10, 5  ;;  %v2093_v13 = vld [vmem:[#allocation2] sm:$0xe]  ;;  %v2266_v1 = vsel %vm4674_vm11, %v2264_v6, %v2265_v32  ;;  %vm3530_vm4 = vcmask 31744  }
  0xee   : > { %v1523_v48 = vor.u32 %v1522_v44, %v1519_v56  ;;  %2081 = vst.msk [vmem:[#allocation3 + $0x60] sm:$0xf] %vm2056_vm15, %v1997_v53  ;;  %4310 = vmatprep.mubr.msk.bf16.mxu1 %vm2605_vm3, %v5471_v2  ;;  %v1385_v22 = vsel %vm4559_vm2, %v810_v60, %v1384_v34  ;;  %v1511_v23 = vld [vmem:[#allocation2 + $0xd0] sm:$0xf]  ;;  %v1380_v7 = vld [vmem:[#allocation2 + $0xcc] sm:$0xf]  ;;  %4359 = vmatpush3.bf16.msra.mxu0 %v3174_v15  ;;  %v2381_v41 = vpop.permute.xlu1 %2380 }
  0xef   : > { %v4447_v63 = vld [vmem:[%s5894_s5] sm:$0xff]   ;;  %1386 = vst [vmem:[#allocation2 + $0xd4] sm:$0x1] %v1385_v22  ;;  %v1934_v58 = vshll.u32 %v1511_v23, 16  ;;  %v1938_v8 = vshrl.u32 %v1511_v23, 16  ;;  %v1381_v26 = vsel %vm4634_vm10, %v5347_v4, %v1380_v7  ;;  %v1534_v60 = vrot.slane %v1533_v9, 4  ;;  %4360 = vmatprep.subr.bf16.mxu0 %v4448_v12  ;;  %v2379_v16 = vpop.permute.xlu0 %2378 }
  0xf0   : > { %2358 = vrot.lane.b32.xlu0 %v2256_v42, %s4494_s11  ;;  %v1524_v24 = vrot.slane %v1523_v48, 4  ;;  %v1404_v18 = vld [vmem:[#allocation2 + $0x64] sm:$0xf]  ;;  %1382 = vst [vmem:[#allocation2 + $0xcc] sm:$0xf] %v1381_v26  ;;  %4324 = vmatprep.subr.bf16.mxu1 %v4447_v63  ;;  %v2209_v4 = vrot.slane %v2095_v5, 5 }
  0xf1   : > { %2360 = vrot.lane.b32.xlu1 %v2259_v47, %s4494_s11  ;;  %1440 = vst.msk [vmem:[#allocation3 + $0x44] sm:$0xf] %vm814_vm6, %v1404_v18  ;;  %v1403_v27 = vld [vmem:[#allocation2 + $0x60] sm:$0xf]  ;;  %v1388_v46 = vld [vmem:[#allocation2 + $0x4] sm:$0xf]  ;;  %4325 = vmatpush3.bf16.msra.mxu1 %v4447_v63  ;;  %v1539_v61 = vsel %vm4714_vm14, %v1534_v60, %v1538_v37 }
  0xf2   : > { %v1936_v25 = vrot.slane %v1934_v58, 5  ;;  %v1940_v30 = vrot.slane %v1938_v8, 4  ;;  %1439 = vst.msk [vmem:[#allocation3 + $0x40] sm:$0xf] %vm814_vm6, %v1403_v27  ;;  %1424 = vst.msk [vmem:[#allocation3 + $0x4] sm:$0xf] %vm814_vm6, %v1388_v46  ;;  %v1529_v29 = vsel %vm4714_vm14, %v1524_v24, %v5441_v57  ;;  %4361 = vmatpush3.bf16.msra.mxu0 %v4448_v12  ;;  %v1967_v47 = vpop.permute.xlu1 %1966 }
  0xf3   : > { %v1387_v11 = vld [vmem:[#allocation2] sm:$0xf]  ;;  %v2208_v55 = vrot.slane %v2206_v14, 4  ;;  %v3939_v35 = vrot.slane %v2093_v13, 9  ;;  %2063 = vst.msk [vmem:[#allocation3 + $0x18] sm:$0xf] %vm2056_vm15, %v1961_v36  ;;  %v1965_v9 = vpop.permute.xlu0 %1964 }
  0xf4   : > { %2362 = vrot.lane.b32.xlu0 %v2263_v17, %s4494_s11  ;;  %1423 = vst.msk [vmem:[#allocation3] sm:$0xf] %vm814_vm6, %v1387_v11  ;;  %v1941_v28 = vor.u32 %v1940_v30, %v1936_v25  ;;  %v2145_v15 = vld [vmem:[#allocation2 + $0xd0] sm:$0xf]  ;;  %vm3497_vm2 = vcmask 27648  }
  0xf5   : > { %2364 = vrot.lane.b32.xlu1 %v2266_v1, %s4494_s11  ;;  %v2210_v54 = vsel %vm4674_vm11, %v2208_v55, %v2209_v4  ;;  %v2207_v21 = vsel %vm4674_vm11, %v3939_v35, %v2206_v14  ;;  %2064 = vst.msk [vmem:[#allocation3 + $0x1c] sm:$0xf] %vm2056_vm15, %v1963_v50  ;;  %v2325_v57 = vrot.slane %v2145_v15, 5  ;;  %2066 = vst.msk [vmem:[#allocation3 + $0x24] sm:$0xf] %vm2056_vm15, %v1967_v47 }
  0xf6   : > { %v1512_v43 = vld [vmem:[#allocation2 + $0xd4] sm:$0x1]  ;;  %2463 = vst.msk [vmem:[#allocation3 + $0x60] sm:$0xf] %vm2438_vm0, %v2379_v16  ;;  %v1942_v49 = vrot.slane %v1941_v28, 4  ;;  %v2345_v53 = vpop.permute.xlu1 %2344 }
  0xf7   : > { %v1944_v20 = vshll.u32 %v1512_v43, 16  ;;  %v1510_v32 = vld [vmem:[#allocation2 + $0xcc] sm:$0xf]  ;;  %v2146_v62 = vld [vmem:[#allocation2 + $0xd4] sm:$0x1]  ;;  %v2327_v42 = vrot.slane %v2325_v57, 4  ;;  %v2343_v34 = vpop.permute.xlu0 %2342 }
  0xf8   : > { %1948 = vrot.lane.b32.xlu0 %v1529_v29, %s4495_s12  ;;  %v1925_v59 = vshrl.u32 %v1510_v32, 16  ;;  %v1928_v45 = vshll.u32 %v1510_v32, 16  ;;  %2464 = vst.msk [vmem:[#allocation3 + $0x64] sm:$0xf] %vm2438_vm0, %v2381_v41  ;;  %v2144_v19 = vld [vmem:[#allocation2 + $0xcc] sm:$0xe] }
  0xf9   : > { %1950 = vrot.lane.b32.xlu1 %v1539_v61, %s4495_s12  ;;  %v1946_v31 = vrot.slane %v1944_v20, 5  ;;  %v2328_v6 = vrot.slane %v2146_v62, 5  ;;  %v3956_v48 = vrot.slane %v2144_v19, 9  ;;  %2065 = vst.msk [vmem:[#allocation3 + $0x20] sm:$0xf] %vm2056_vm15, %v1965_v9  ;;  %v4451_v9 = vld [vmem:[#allocation3 + $0x10] sm:$0xff]  }
  0xfa   : > { %v1927_v56 = vrot.slane %v1925_v59, 4  ;;  %v1930_v10 = vrot.slane %v1928_v45, 5  ;;  %2446 = vst.msk [vmem:[#allocation3 + $0x1c] sm:$0xf] %vm2438_vm0, %v2345_v53  ;;  %2445 = vst.msk [vmem:[#allocation3 + $0x18] sm:$0xf] %vm2438_vm0, %v2343_v34  ;;  %v2349_v33 = vpop.permute.xlu1 %2348 }
  0xfb   : > { %v1947_v39 = vsel %vm4714_vm14, %v1942_v49, %v1946_v31  ;;  %v2329_v5 = vsel %vm4674_vm11, %v2327_v42, %v2328_v6  ;;  %v2326_v14 = vsel %vm4674_vm11, %v3956_v48, %v2325_v57  ;;  %v2347_v13 = vpop.permute.xlu0 %2346  ;;  %2448 = vst.msk [vmem:[#allocation3 + $0x24] sm:$0xf] %vm2438_vm0, %v2349_v33  ;;  %v1422_v26 = vld [vmem:[#allocation2 + $0xd0] sm:$0xf]  ;;  %v1421_v18 = vld [vmem:[#allocation2 + $0xcc] sm:$0xf] }
  0xfc   : > { %2330 = vrot.lane.b32.xlu0 %v2207_v21, %s4494_s11  ;;  %v1931_v44 = vor.u32 %v1930_v10, %v1927_v56  ;;  %2447 = vst.msk [vmem:[#allocation3 + $0x20] sm:$0xf] %vm2438_vm0, %v2347_v13 }
  0xfd   : > { %2332 = vrot.lane.b32.xlu1 %v2210_v54, %s4494_s11  ;;  %1458 = vst.msk [vmem:[#allocation3 + $0x8c] sm:$0xf] %vm814_vm6, %v1422_v26  ;;  %1457 = vst.msk [vmem:[#allocation3 + $0x88] sm:$0xf] %vm814_vm6, %v1421_v18 }
  0xfe   : > { %v1932_v37 = vrot.slane %v1931_v44, 4 }
  0xff   : > { %v5532_v17 = vld [vmem:[#allocation3 + $0x60] sm:$0xff]  }
 0x100   : > { %v1937_v3 = vsel %vm4714_vm14, %v1932_v37, %v1936_v25  ;;  %4311 = vmatmul.mubr.msk.bf16.gmra.mxu1 %vm2605_vm3, %v5532_v17  ;;  %v2001_v0 = vpop.permute.xlu0 %2000 }
 0x101   : > { %2018 = vrot.lane.b32.xlu1 %v1947_v39, %s4495_s12  ;;  %2016 = vrot.lane.b32.xlu0 %v1937_v3, %s4495_s12  ;;  %v5544_v23 = vld [vmem:[#allocation3 + $0x18] sm:$0xff]   ;;  %2083 = vst.msk [vmem:[#allocation3 + $0x68] sm:$0xf] %vm2056_vm15, %v2001_v0  ;;  %v4460_v0 = vld [vmem:[#allocation3 + $0x50] sm:$0xff]  }
 0x102   : > { %4294 = vmatprep.mubr.msk.bf16.mxu0 %vm2605_vm3, %v5544_v23 }
 0x103   : > { %v2003_v22 = vpop.permute.xlu1 %2002  ;;  %v5550_v7 = vld [vmem:[#allocation3 + $0x20] sm:$0xff]  }
 0x104   : > { %2084 = vst.msk [vmem:[#allocation3 + $0x6c] sm:$0xf] %vm2056_vm15, %v2003_v22  ;;  %4295 = vmatmul.mubr.msk.bf16.gmra.mxu0 %vm2605_vm3, %v5550_v7  ;;  %v4454_v34 = vld [vmem:[#allocation3 + $0x20] sm:$0xff]  }
 0x105   : > { %2400 = vrot.lane.b32.xlu1 %v2329_v5, %s4494_s11  ;;  %2398 = vrot.lane.b32.xlu0 %v2326_v14, %s4494_s11  ;;  %v4453_v5 = vld [vmem:[#allocation3 + $0x18] sm:$0xff]   ;;  %s5719_s11 = scalar_lea.vmem %s5895_s6, %s4085_s26  ;;  %s3900_s26 = sshll.u32 %s5914_s24, 3 }
 0x106   : > { %s465_s14 = scalar_lea.vmem %s5896_s7, %s3900_s26 }
 0x110   : > { %v2005_v63 = vpop.permute.xlu0 %2004 }
 0x111   : > { %v2007_v24 = vpop.permute.xlu1 %2006  ;;  %2085 = vst.msk [vmem:[#allocation3 + $0x70] sm:$0xf] %vm2056_vm15, %v2005_v63 }
 0x112   : > { %2086 = vst.msk [vmem:[#allocation3 + $0x74] sm:$0xf] %vm2056_vm15, %v2007_v24 }
 0x114   : > { %v2383_v58 = vpop.permute.xlu0 %2382 }
 0x115   : > { %v2385_v8 = vpop.permute.xlu1 %2384  ;;  %2465 = vst.msk [vmem:[#allocation3 + $0x68] sm:$0xf] %vm2438_vm0, %v2383_v58 }
 0x116   : > { %2466 = vst.msk [vmem:[#allocation3 + $0x6c] sm:$0xf] %vm2438_vm0, %v2385_v8 }
 0x11d   : > { %v1969_v1 = vpop.permute.xlu0 %1968  ;;  %v5561_v27 = vld [vmem:[#allocation3 + $0x68] sm:$0xff]  }
 0x11e   : > { %v1971_v60 = vpop.permute.xlu1 %1970  ;;  %2067 = vst.msk [vmem:[#allocation3 + $0x28] sm:$0xf] %vm2056_vm15, %v1969_v1  ;;  %4314 = vmatprep.mubr.msk.bf16.mxu1 %vm2605_vm3, %v5561_v27  ;;  %v4463_v63 = vld [vmem:[#allocation3 + $0x68] sm:$0xff]  }
 0x11f   : > { %2068 = vst.msk [vmem:[#allocation3 + $0x2c] sm:$0xf] %vm2056_vm15, %v1971_v60 }
 0x121   : > { %v2387_v46 = vpop.permute.xlu0 %2386 }
 0x122   : > { %v2389_v12 = vpop.permute.xlu1 %2388  ;;  %2467 = vst.msk [vmem:[#allocation3 + $0x70] sm:$0xf] %vm2438_vm0, %v2387_v46 }
 0x123   : > { %2468 = vst.msk [vmem:[#allocation3 + $0x74] sm:$0xf] %vm2438_vm0, %v2389_v12 }
 0x128   : > { %v1973_v25 = vpop.permute.xlu0 %1972 }
 0x129   : > { %v1975_v30 = vpop.permute.xlu1 %1974  ;;  %2069 = vst.msk [vmem:[#allocation3 + $0x30] sm:$0xf] %vm2056_vm15, %v1973_v25 }
 0x12a   : > { %2070 = vst.msk [vmem:[#allocation3 + $0x34] sm:$0xf] %vm2056_vm15, %v1975_v30  ;;  %v5570_v11 = vld [vmem:[#allocation3 + $0x70] sm:$0xff]  }
 0x12b   : > { %4315 = vmatmul.mubr.msk.bf16.gmra.mxu1 %vm2605_vm3, %v5570_v11  ;;  %v4464_v24 = vld [vmem:[#allocation3 + $0x70] sm:$0xff]  }
 0x12c   : > { %v2351_v4 = vpop.permute.xlu0 %2350 }
 0x12d   : > { %v2353_v29 = vpop.permute.xlu1 %2352  ;;  %2449 = vst.msk [vmem:[#allocation3 + $0x28] sm:$0xf] %vm2438_vm0, %v2351_v4 }
 0x12e   : > { %2450 = vst.msk [vmem:[#allocation3 + $0x2c] sm:$0xf] %vm2438_vm0, %v2353_v29 }
 0x130   : > { %v2355_v55 = vpop.permute.xlu0 %2354 }
 0x131   : > { %v2357_v35 = vpop.permute.xlu1 %2356  ;;  %2451 = vst.msk [vmem:[#allocation3 + $0x30] sm:$0xf] %vm2438_vm0, %v2355_v55 }
 0x132   : > { %2452 = vst.msk [vmem:[#allocation3 + $0x34] sm:$0xf] %vm2438_vm0, %v2357_v35 }
 0x134   : > { %v2009_v36 = vpop.permute.xlu0 %2008 }
 0x135   : > { %v2011_v61 = vpop.permute.xlu1 %2010  ;;  %2087 = vst.msk [vmem:[#allocation3 + $0x78] sm:$0xf] %vm2056_vm15, %v2009_v36  ;;  %v5579_v28 = vld [vmem:[#allocation3 + $0x28] sm:$0xff]  }
 0x136   : > { %2088 = vst.msk [vmem:[#allocation3 + $0x7c] sm:$0xf] %vm2056_vm15, %v2011_v61  ;;  %4298 = vmatprep.mubr.msk.bf16.mxu0 %vm2605_vm3, %v5579_v28  ;;  %v4455_v33 = vld [vmem:[#allocation3 + $0x28] sm:$0xff]  }
 0x139   : > { %v5584_v15 = vld [vmem:[#allocation3 + $0x30] sm:$0xff]  }
 0x13a   : > { %4299 = vmatmul.mubr.msk.bf16.gmra.mxu0 %vm2605_vm3, %v5584_v15  ;;  %v4456_v13 = vld [vmem:[#allocation3 + $0x30] sm:$0xff]  }
 0x140   : > { %v2013_v50 = vpop.permute.xlu0 %2012 }
 0x141   : > { %v2015_v43 = vpop.permute.xlu1 %2014  ;;  %2089 = vst.msk [vmem:[#allocation3 + $0x80] sm:$0xf] %vm2056_vm15, %v2013_v50 }
 0x142   : > { %2090 = vst.msk [vmem:[#allocation3 + $0x84] sm:$0xf] %vm2056_vm15, %v2015_v43 }
 0x144   : > { %v2391_v54 = vpop.permute.xlu0 %2390 }
 0x145   : > { %v2393_v21 = vpop.permute.xlu1 %2392  ;;  %2469 = vst.msk [vmem:[#allocation3 + $0x78] sm:$0xf] %vm2438_vm0, %v2391_v54 }
 0x146   : > { %2470 = vst.msk [vmem:[#allocation3 + $0x7c] sm:$0xf] %vm2438_vm0, %v2393_v21 }
 0x14d   : > { %v5592_v20 = vld [vmem:[#allocation3 + $0x78] sm:$0xff]  }
 0x14e   : > { %4318 = vmatprep.mubr.msk.bf16.mxu1 %vm2605_vm3, %v5592_v20  ;;  %v4465_v58 = vld [vmem:[#allocation3 + $0x78] sm:$0xff]  }
 0x150   : > { %v1979_v16 = vpop.permute.xlu1 %1978 }
 0x151   : > { %2072 = vst.msk [vmem:[#allocation3 + $0x3c] sm:$0xf] %vm2056_vm15, %v1979_v16 }
 0x152   : > { %v1977_v32 = vpop.permute.xlu0 %1976 }
 0x153   : > { %2071 = vst.msk [vmem:[#allocation3 + $0x38] sm:$0xf] %vm2056_vm15, %v1977_v32 }
 0x154   : > { %v2397_v49 = vpop.permute.xlu1 %2396 }
 0x155   : > { %2472 = vst.msk [vmem:[#allocation3 + $0x84] sm:$0xf] %vm2438_vm0, %v2397_v49 }
 0x156   : > { %v2395_v59 = vpop.permute.xlu0 %2394 }
 0x157   : > { %2471 = vst.msk [vmem:[#allocation3 + $0x80] sm:$0xf] %vm2438_vm0, %v2395_v59 }
 0x15e   : > { %v1981_v45 = vpop.permute.xlu0 %1980  ;;  %v4446_v31 = vld [vmem:[#allocation3 + $0x80] sm:$0xff]  }
 0x15f   : > { %v1983_v57 = vpop.permute.xlu1 %1982  ;;  %2073 = vst.msk [vmem:[#allocation3 + $0x40] sm:$0xf] %vm2056_vm15, %v1981_v45  ;;  %4319 = vmatmul.mubr.msk.bf16.gmra.mxu1 %vm2605_vm3, %v4446_v31  ;;  %v4466_v8 = vld [vmem:[#allocation3 + $0x80] sm:$0xff]  }
 0x160   : > { %2074 = vst.msk [vmem:[#allocation3 + $0x44] sm:$0xf] %vm2056_vm15, %v1983_v57 }
 0x162   : > { %v2359_v62 = vpop.permute.xlu0 %2358 }
 0x163   : > { %v2361_v41 = vpop.permute.xlu1 %2360  ;;  %2453 = vst.msk [vmem:[#allocation3 + $0x38] sm:$0xf] %vm2438_vm0, %v2359_v62 }
 0x164   : > { %2454 = vst.msk [vmem:[#allocation3 + $0x3c] sm:$0xf] %vm2438_vm0, %v2361_v41 }
 0x166   : > { %v2363_v56 = vpop.permute.xlu0 %2362 }
 0x167   : > { %v2365_v10 = vpop.permute.xlu1 %2364  ;;  %2455 = vst.msk [vmem:[#allocation3 + $0x40] sm:$0xf] %vm2438_vm0, %v2363_v56 }
 0x168   : > { %2456 = vst.msk [vmem:[#allocation3 + $0x44] sm:$0xf] %vm2438_vm0, %v2365_v10 }
 0x16a   : > { %v1949_v19 = vpop.permute.xlu0 %1948 }
 0x16b   : > { %v1951_v39 = vpop.permute.xlu1 %1950  ;;  %2057 = vst.msk [vmem:[#allocation3] sm:$0xf] %vm2056_vm15, %v1949_v19  ;;  %v4449_v44 = vld [vmem:[#allocation3 + $0x38] sm:$0xff]  }
 0x16c   : > { %2058 = vst.msk [vmem:[#allocation3 + $0x4] sm:$0xf] %vm2056_vm15, %v1951_v39  ;;  %4302 = vmatprep.mubr.msk.bf16.mxu0 %vm2605_vm3, %v4449_v44 }
 0x16e   : > { %v2331_v42 = vpop.permute.xlu0 %2330 }
 0x16f   : > { %v2333_v6 = vpop.permute.xlu1 %2332  ;;  %2439 = vst.msk [vmem:[#allocation3] sm:$0xf] %vm2438_vm0, %v2331_v42  ;;  %v4450_v47 = vld [vmem:[#allocation3 + $0x40] sm:$0xff]  }
 0x170   : > { %2440 = vst.msk [vmem:[#allocation3 + $0x4] sm:$0xf] %vm2438_vm0, %v2333_v6  ;;  %4303 = vmatmul.mubr.msk.bf16.gmra.mxu0 %vm2605_vm3, %v4450_v47  ;;  %v4458_v22 = vld [vmem:[#allocation3 + $0x40] sm:$0xff]  }
 0x171   : > { %4362 = vmatprep.mubr.msk.bf16.mxu0 %vm2605_vm3, %v4451_v9 }
 0x173   : > { %v2019_v37 = vpop.permute.xlu1 %2018  ;;  %v2017_v48 = vpop.permute.xlu0 %2016 }
 0x174   : > { %2092 = vst.msk [vmem:[#allocation3 + $0x8c] sm:$0xf] %vm2056_vm15, %v2019_v37  ;;  %2091 = vst.msk [vmem:[#allocation3 + $0x88] sm:$0xf] %vm2056_vm15, %v2017_v48 }
 0x177   : > { %v4452_v3 = vld [vmem:[#allocation3] sm:$0xff]   ;;  %v2401_v53 = vpop.permute.xlu1 %2400  ;;  %v2399_v14 = vpop.permute.xlu0 %2398 }
 0x178   : > { %2474 = vst.msk [vmem:[#allocation3 + $0x8c] sm:$0xf] %vm2438_vm0, %v2401_v53  ;;  %4326 = vmatprep.mubr.msk.bf16.mxu1 %vm2605_vm3, %v4452_v3  ;;  %4363 = vmatmul.mubr.msk.bf16.vlgmr.msra.gmra.mxu0 %vm2605_vm3, %v4453_v5  ;;  %2473 = vst.msk [vmem:[#allocation3 + $0x88] sm:$0xf] %vm2438_vm0, %v2399_v14 }
 0x179   : > { %4327 = vmatmul.mubr.msk.bf16.vlgmr.msra.gmra.mxu1 %vm2605_vm3, %v5449_v38  ;;  %4366 = vmatprep.mubr.msk.bf16.mxu0 %vm2605_vm3, %v4454_v34  ;;  %v4457_v38 = vld [vmem:[#allocation3 + $0x38] sm:$0xff]  }
 0x17a   : > { %4330 = vmatprep.mubr.msk.bf16.mxu1 %vm2605_vm3, %v5463_v40  ;;  %v4459_v40 = vld [vmem:[#allocation3 + $0x48] sm:$0xff]  }
 0x180   : > { %4367 = vmatmul.mubr.msk.bf16.gmra.mxu0 %vm2605_vm3, %v4455_v33 }
 0x181   : > { %4331 = vmatmul.mubr.msk.bf16.gmra.mxu1 %vm2605_vm3, %v5544_v23  ;;  %4370 = vmatprep.mubr.msk.bf16.mxu0 %vm2605_vm3, %v4456_v13  ;;  %v4461_v23 = vld [vmem:[#allocation3 + $0x58] sm:$0xff]  }
 0x182   : > { %4334 = vmatprep.mubr.msk.bf16.mxu1 %vm2605_vm3, %v5550_v7  ;;  %v4462_v7 = vld [vmem:[#allocation3 + $0x60] sm:$0xff]  }
 0x188   : > { %4371 = vmatmul.mubr.msk.bf16.gmra.mxu0 %vm2605_vm3, %v4457_v38 }
 0x189   : > { %4335 = vmatmul.mubr.msk.bf16.gmra.mxu1 %vm2605_vm3, %v5579_v28  ;;  %4374 = vmatprep.mubr.msk.bf16.mxu0 %vm2605_vm3, %v4458_v22 }
 0x18a   : > { %4338 = vmatprep.mubr.msk.bf16.mxu1 %vm2605_vm3, %v5584_v15 }
 0x190   : > { %4375 = vmatmul.mubr.msk.bf16.gmra.mxu0 %vm2605_vm3, %v4459_v40 }
 0x191   : > { %4339 = vmatmul.mubr.msk.bf16.gmra.mxu1 %vm2605_vm3, %v4449_v44  ;;  %4378 = vmatprep.mubr.msk.bf16.mxu0 %vm2605_vm3, %v4460_v0 }
 0x192   : > { %4342 = vmatprep.mubr.msk.bf16.mxu1 %vm2605_vm3, %v4450_v47 }
 0x198   : > { %4379 = vmatmul.mubr.msk.bf16.gmra.mxu0 %vm2605_vm3, %v4461_v23 }
 0x199   : > { %4343 = vmatmul.mubr.msk.bf16.gmra.mxu1 %vm2605_vm3, %v5430_v52  ;;  %4382 = vmatprep.mubr.msk.bf16.mxu0 %vm2605_vm3, %v4462_v7  ;;  %v4467_v52 = vld [vmem:[#allocation3 + $0x88] sm:$0xff]  }
 0x19a   : > { %4346 = vmatprep.mubr.msk.bf16.mxu1 %vm2605_vm3, %v5439_v51 }
 0x1a0   : > { %4383 = vmatmul.mubr.msk.bf16.gmra.mxu0 %vm2605_vm3, %v4463_v63 }
 0x1a1   : > { %4347 = vmatmul.mubr.msk.bf16.gmra.mxu1 %vm2605_vm3, %v5471_v2  ;;  %4386 = vmatprep.mubr.msk.bf16.mxu0 %vm2605_vm3, %v4464_v24 }
 0x1a2   : > { %4350 = vmatprep.mubr.msk.bf16.mxu1 %vm2605_vm3, %v5532_v17 }
 0x1a8   : > { %4387 = vmatmul.mubr.msk.bf16.gmra.mxu0 %vm2605_vm3, %v4465_v58 }
 0x1a9   : > { %4351 = vmatmul.mubr.msk.bf16.gmra.mxu1 %vm2605_vm3, %v5561_v27  ;;  %4390 = vmatprep.mubr.msk.bf16.mxu0 %vm2605_vm3, %v4466_v8 }
 0x1aa   : > { %4354 = vmatprep.mubr.msk.bf16.mxu1 %vm2605_vm3, %v5570_v11  ;;  %v5662_v51 = vpop.f32.mrf.mxu1 }
 0x1ac   : > { %v5664_v2 = vpop.f32.mrf.mxu1 }
 0x1ad   : > { %v4292_v17 = vpop.f32.mrf.mxu0 }
 0x1ae   : > { %v5666_v26 = vpop.f32.mrf.mxu1 }
 0x1af   : > { %v2692_v18 = vpop.f32.mrf.mxu0 }
 0x1b0   : > { %4391 = vmatmul.mubr.msk.bf16.gmra.mxu0 %vm2605_vm3, %v4467_v52  ;;  %v5668_v1 = vpop.f32.mrf.mxu1 }
 0x1b1   : > { %4355 = vmatmul.mubr.msk.bf16.gmra.mxu1 %vm2605_vm3, %v5592_v20  ;;  %v4293_v60 = vpop.f32.mrf.mxu0 }
 0x1b3   : > { %v2695_v46 = vpop.f32.mrf.mxu0 }
 0x1c0   : > { %v5670_v27 = vpop.f32.mrf.mxu1 }
 0x1c2   : > { %v5672_v12 = vpop.f32.mrf.mxu1 }
 0x1c4   : > { %v4296_v25 = vpop.f32.mrf.mxu0  ;;  %v5674_v30 = vpop.f32.mrf.mxu1 }
 0x1c6   : > { %v2708_v11 = vpop.f32.mrf.mxu0  ;;  %v5676_v4 = vpop.f32.mrf.mxu1 }
 0x1c8   : > { %v5678_v29 = vpop.f32.mrf.mxu0 }
 0x1ca   : > { %v5682_v35 = vpop.f32.mrf.mxu0 }
 0x1eb   : > { %v5680_v55 = vpop.f32.mrf.mxu1 }
 0x1ed   : > { %v5684_v36 = vpop.f32.mrf.mxu1 }
 0x1ef   : > { %v5688_v28 = vpop.f32.mrf.mxu1 }
 0x1f1   : > { %v5692_v50 = vpop.f32.mrf.mxu1 }
 0x1fa   : > { %v5686_v61 = vpop.f32.mrf.mxu0 }
 0x1fc   : > { %v5690_v15 = vpop.f32.mrf.mxu0 }
 0x1fe   : > { %v5694_v43 = vpop.f32.mrf.mxu0 }
 0x200   : > { %v5698_v21 = vpop.f32.mrf.mxu0 }
 0x21f   : > { %v5696_v54 = vpop.f32.mrf.mxu1 }
 0x221   : > { %v5700_v16 = vpop.f32.mrf.mxu1 }
 0x223   : > { %v5706_v49 = vpop.f32.mrf.mxu1 }
 0x225   : > { %v5712_v57 = vpop.f32.mrf.mxu1 }
 0x230   : > { %v5702_v20 = vpop.f32.mrf.mxu0 }
 0x232   : > { %v5704_v32 = vpop.f32.mrf.mxu0 }
 0x234   : > { %v5708_v59 = vpop.f32.mrf.mxu0 }
 0x236   : > { %v5710_v45 = vpop.f32.mrf.mxu0 }
 0x238   : > { %v4364_v31 = vpop.f32.mrf.mxu0 }
 0x239   : > { %v4328_v62 = vpop.f32.mrf.mxu1 }
 0x23a   : > { %v2882_v41 = vadd.f32 %v4328_v62, %v4292_v17  ;;  %v3210_v56 = vpop.f32.mrf.mxu0 }
 0x23b   : > { %v2873_v10 = vpop.f32.mrf.mxu1 }
 0x23c   : > { %v3339_v19 = vadd.f32 %v4364_v31, %v2882_v41  ;;  %v2874_v39 = vadd.f32 %v2873_v10, %v2692_v18  ;;  %v4365_v44 = vpop.f32.mrf.mxu0 }
 0x23d   : > { %v4329_v42 = vpop.f32.mrf.mxu1 }
 0x23e   : > { %v4123_v6 = vpack.c.bf16 %v3339_v19, %v3339_v19  ;;  %v3337_v47 = vadd.f32 %v3210_v56, %v2874_v39  ;;  %v3213_v9 = vpop.f32.mrf.mxu0  ;;  %v2885_v37 = vadd.f32 %v4329_v42, %v4293_v60  ;;  %v3602_v23 = vmul.f32 %v3339_v19, %v3339_v19 }
 0x23f   : > { %v2876_v48 = vpop.f32.mrf.mxu1  ;;  %v3534_v60 = vsel %vm3530_vm4, %v3339_v19, 0.0 }
 0x240   : > { %3500 = vst.msk [vmem:[%s5719_s11 + $0x8] sm:$0xf] %vm3497_vm2, %v4123_v6  ;;  %v4121_v3 = vpack.c.bf16 %v3337_v47, %v3337_v47  ;;  %v4368_v5 = vpop.f32.mrf.mxu0  ;;  %v3340_v53 = vadd.f32 %v4365_v44, %v2885_v37  ;;  %v2877_v34 = vadd.f32 %v2876_v48, %v2695_v46  ;;  %v3600_v33 = vmul.f32 %v3337_v47, %v3337_v47 }
 0x241   : > { %v4332_v14 = vpop.f32.mrf.mxu1  ;;  %v3531_v58 = vsel %vm3530_vm4, %v3337_v47, 0.0  ;;  %v3635_v44 = vsel %vm3530_vm4, %v3602_v23, 0.0 }
 0x242   : > { %3498 = vst.msk [vmem:[%s5719_s11] sm:$0xf] %vm3497_vm2, %v4121_v3  ;;  %v2898_v13 = vadd.f32 %v4332_v14, %v4296_v25  ;;  %v3226_v38 = vpop.f32.mrf.mxu0  ;;  %v4124_v22 = vpack.c.bf16 %v3340_v53, %v3340_v53  ;;  %v3338_v40 = vadd.f32 %v3213_v9, %v2877_v34  ;;  %v3632_v46 = vsel %vm3530_vm4, %v3600_v33, 0.0 }
 0x243   : > { %v2889_v0 = vpop.f32.mrf.mxu1  ;;  %v3603_v41 = vmul.f32 %v3340_v53, %v3340_v53  ;;  %v3536_v9 = vsel %vm3530_vm4, %v3340_v53, 0.0 }
 0x244   : > { %v3343_v7 = vadd.f32 %v4368_v5, %v2898_v13  ;;  %v2890_v63 = vadd.f32 %v2889_v0, %v2708_v11  ;;  %v4369_v24 = vpop.f32.mrf.mxu0  ;;  %3501 = vst.msk [vmem:[%s5719_s11 + $0xc] sm:$0xf] %vm3497_vm2, %v4124_v22  ;;  %v4122_v8 = vpack.c.bf16 %v3338_v40, %v3338_v40  ;;  %v3532_v52 = vsel %vm3530_vm4, %v3338_v40, 0.0 }
 0x245   : > { %v3601_v17 = vmul.f32 %v3338_v40, %v3338_v40  ;;  %v4333_v18 = vpop.f32.mrf.mxu1  ;;  %v3533_v25 = vadd.f32 %v3532_v52, %v3531_v58 }
 0x246   : > { %v4127_v31 = vpack.c.bf16 %v3343_v7, %v3343_v7  ;;  %v3229_v62 = vpop.f32.mrf.mxu0  ;;  %3499 = vst.msk [vmem:[%s5719_s11 + $0x4] sm:$0xf] %vm3497_vm2, %v4122_v8  ;;  %v3341_v56 = vadd.f32 %v3226_v38, %v2890_v63  ;;  %v2901_v10 = vadd.f32 %v4333_v18, %v5678_v29  ;;  %v3637_v38 = vsel %vm3530_vm4, %v3603_v41, 0.0 }
 0x247   : > { %v3633_v11 = vsel %vm3530_vm4, %v3601_v17, 0.0  ;;  %v2892_v39 = vpop.f32.mrf.mxu1  ;;  %v3535_v42 = vadd.f32 %v3534_v60, %v3533_v25  ;;  %v3606_v22 = vmul.f32 %v3343_v7, %v3343_v7 }
 0x248   : > { %v3634_v6 = vadd.f32 %v3633_v11, %v3632_v46  ;;  %3504 = vst.msk [vmem:[%s5719_s11 + $0x18] sm:$0xf] %vm3497_vm2, %v4127_v31  ;;  %v2893_v19 = vadd.f32 %v2892_v39, %v5682_v35  ;;  %v4372_v47 = vpop.f32.mrf.mxu0  ;;  %v4125_v37 = vpack.c.bf16 %v3341_v56, %v3341_v56  ;;  %v3604_v48 = vmul.f32 %v3341_v56, %v3341_v56 }
 0x249   : > { %v3344_v3 = vadd.f32 %v4369_v24, %v2901_v10  ;;  %v4336_v5 = vpop.f32.mrf.mxu1  ;;  %v3537_v14 = vadd.f32 %v3536_v9, %v3535_v42  ;;  %v3538_v35 = vsel %vm3530_vm4, %v3341_v56, 0.0 }
 0x24a   : > { %v3636_v34 = vadd.f32 %v3635_v44, %v3634_v6  ;;  %v3342_v29 = vadd.f32 %v3229_v62, %v2893_v19  ;;  %v2914_v33 = vadd.f32 %v4336_v5, %v5686_v61  ;;  %v3242_v13 = vpop.f32.mrf.mxu0  ;;  %3502 = vst.msk [vmem:[%s5719_s11 + $0x10] sm:$0xf] %vm3497_vm2, %v4125_v37  ;;  %v3639_v8 = vsel %vm3530_vm4, %v3604_v48, 0.0 }
 0x24b   : > { %v4128_v53 = vpack.c.bf16 %v3344_v3, %v3344_v3  ;;  %v2905_v40 = vpop.f32.mrf.mxu1  ;;  %v3539_v0 = vadd.f32 %v3538_v35, %v3537_v14  ;;  %v3542_v62 = vsel %vm3530_vm4, %v3343_v7, 0.0  ;;  %v3607_v41 = vmul.f32 %v3344_v3, %v3344_v3 }
 0x24c   : > { %v3638_v23 = vadd.f32 %v3637_v38, %v3636_v34  ;;  %v4126_v63 = vpack.c.bf16 %v3342_v29, %v3342_v29  ;;  %v3540_v24 = vsel %vm3530_vm4, %v3342_v29, 0.0  ;;  %v4373_v58 = vpop.f32.mrf.mxu0  ;;  %v3605_v61 = vmul.f32 %v3342_v29, %v3342_v29 }
 0x24d   : > { %3505 = vst.msk [vmem:[%s5719_s11 + $0x1c] sm:$0xf] %vm3497_vm2, %v4128_v53  ;;  %v3347_v52 = vadd.f32 %v4372_v47, %v2914_v33  ;;  %v2906_v17 = vadd.f32 %v2905_v40, %v5690_v15  ;;  %v4337_v18 = vpop.f32.mrf.mxu1  ;;  %v3541_v46 = vadd.f32 %v3540_v24, %v3539_v0  ;;  %v3643_v19 = vsel %vm3530_vm4, %v3606_v22, 0.0 }
 0x24e   : > { %v3640_v60 = vadd.f32 %v3639_v8, %v3638_v23  ;;  %3503 = vst.msk [vmem:[%s5719_s11 + $0x14] sm:$0xf] %vm3497_vm2, %v4126_v63  ;;  %v2917_v25 = vadd.f32 %v4337_v18, %v5694_v43  ;;  %v3245_v31 = vpop.f32.mrf.mxu0  ;;  %v3641_v11 = vsel %vm3530_vm4, %v3605_v61, 0.0  ;;  %v3544_v47 = vsel %vm3530_vm4, %v3344_v3, 0.0 }
 0x24f   : > { %v4131_v56 = vpack.c.bf16 %v3347_v52, %v3347_v52  ;;  %v2908_v10 = vpop.f32.mrf.mxu1  ;;  %v3543_v39 = vadd.f32 %v3542_v62, %v3541_v46  ;;  %v3345_v42 = vadd.f32 %v3242_v13, %v2906_v17  ;;  %v3645_v34 = vsel %vm3530_vm4, %v3607_v41, 0.0 }
 0x250   : > { %v3642_v44 = vadd.f32 %v3641_v11, %v3640_v60  ;;  %v3348_v15 = vadd.f32 %v4373_v58, %v2917_v25  ;;  %v4376_v6 = vpop.f32.mrf.mxu0  ;;  %v2909_v43 = vadd.f32 %v2908_v10, %v5698_v21  ;;  %v3610_v53 = vmul.f32 %v3347_v52, %v3347_v52 }
 0x251   : > { %3508 = vst.msk [vmem:[%s5719_s11 + $0x28] sm:$0xf] %vm3497_vm2, %v4131_v56  ;;  %v4340_v7 = vpop.f32.mrf.mxu1  ;;  %v4129_v37 = vpack.c.bf16 %v3345_v42, %v3345_v42  ;;  %v3545_v48 = vadd.f32 %v3544_v47, %v3543_v39  ;;  %v3546_v14 = vsel %vm3530_vm4, %v3345_v42, 0.0  ;;  %v3608_v29 = vmul.f32 %v3345_v42, %v3345_v42 }
 0x252   : > { %v3644_v9 = vadd.f32 %v3643_v19, %v3642_v44  ;;  %v3258_v5 = vpop.f32.mrf.mxu0  ;;  %v4132_v33 = vpack.c.bf16 %v3348_v15, %v3348_v15  ;;  %v3346_v22 = vadd.f32 %v3245_v31, %v2909_v43  ;;  %v2930_v21 = vadd.f32 %v4340_v7, %v5702_v20 }
 0x253   : > { %v2921_v13 = vpop.f32.mrf.mxu1  ;;  %3506 = vst.msk [vmem:[%s5719_s11 + $0x20] sm:$0xf] %vm3497_vm2, %v4129_v37  ;;  %v3547_v3 = vadd.f32 %v3546_v14, %v3545_v48  ;;  %v3647_v40 = vsel %vm3530_vm4, %v3608_v29, 0.0  ;;  %v3611_v0 = vmul.f32 %v3348_v15, %v3348_v15  ;;  %v3550_v31 = vsel %vm3530_vm4, %v3347_v52, 0.0 }
 0x254   : > { %v3646_v38 = vadd.f32 %v3645_v34, %v3644_v9  ;;  %v4377_v35 = vpop.f32.mrf.mxu0  ;;  %3509 = vst.msk [vmem:[%s5719_s11 + $0x2c] sm:$0xf] %vm3497_vm2, %v4132_v33  ;;  %v2922_v23 = vadd.f32 %v2921_v13, %v5704_v32  ;;  %v4130_v58 = vpack.c.bf16 %v3346_v22, %v3346_v22  ;;  %v3548_v8 = vsel %vm3530_vm4, %v3346_v22, 0.0 }
 0x255   : > { %v4341_v63 = vpop.f32.mrf.mxu1  ;;  %v3609_v61 = vmul.f32 %v3346_v22, %v3346_v22  ;;  %v3549_v18 = vadd.f32 %v3548_v8, %v3547_v3  ;;  %v3351_v60 = vadd.f32 %v4376_v6, %v2930_v21  ;;  %v3651_v11 = vsel %vm3530_vm4, %v3610_v53, 0.0 }
 0x256   : > { %v3648_v24 = vadd.f32 %v3647_v40, %v3646_v38  ;;  %v3261_v17 = vpop.f32.mrf.mxu0  ;;  %v3349_v20 = vadd.f32 %v3258_v5, %v2922_v23  ;;  %v2933_v46 = vadd.f32 %v4341_v63, %v5708_v59  ;;  %3507 = vst.msk [vmem:[%s5719_s11 + $0x24] sm:$0xf] %vm3497_vm2, %v4130_v58  ;;  %v3552_v59 = vsel %vm3530_vm4, %v3348_v15, 0.0 }
 0x257   : > { %v2924_v25 = vpop.f32.mrf.mxu1  ;;  %v3649_v32 = vsel %vm3530_vm4, %v3609_v61, 0.0  ;;  %v3551_v56 = vadd.f32 %v3550_v31, %v3549_v18  ;;  %v4135_v39 = vpack.c.bf16 %v3351_v60, %v3351_v60  ;;  %v3653_v42 = vsel %vm3530_vm4, %v3611_v0, 0.0 }
 0x258   : > { %v2925_v62 = vadd.f32 %v2924_v25, %v5710_v45  ;;  %v4380_v41 = vpop.f32.mrf.mxu0  ;;  %v3650_v10 = vadd.f32 %v3649_v32, %v3648_v24  ;;  %v4133_v52 = vpack.c.bf16 %v3349_v20, %v3349_v20  ;;  %v3612_v6 = vmul.f32 %v3349_v20, %v3349_v20 }
 0x259   : > { %v4344_v44 = vpop.f32.mrf.mxu1  ;;  %3512 = vst.msk [vmem:[%s5719_s11 + $0x38] sm:$0xf] %vm3497_vm2, %v4135_v39  ;;  %v3553_v43 = vadd.f32 %v3552_v59, %v3551_v56  ;;  %v3352_v45 = vadd.f32 %v4377_v35, %v2933_v46  ;;  %v3614_v37 = vmul.f32 %v3351_v60, %v3351_v60  ;;  %v3554_v48 = vsel %vm3530_vm4, %v3349_v20, 0.0 }
 0x25a   : > { %v3274_v19 = vpop.f32.mrf.mxu0  ;;  %v3652_v47 = vadd.f32 %v3651_v11, %v3650_v10  ;;  %v3350_v7 = vadd.f32 %v3261_v17, %v2925_v62  ;;  %3510 = vst.msk [vmem:[%s5719_s11 + $0x30] sm:$0xf] %vm3497_vm2, %v4133_v52  ;;  %v2946_v15 = vadd.f32 %v4344_v44, %v5662_v51  ;;  %v3655_v33 = vsel %vm3530_vm4, %v3612_v6, 0.0 }
 0x25b   : > { %v2937_v9 = vpop.f32.mrf.mxu1  ;;  %v3555_v14 = vadd.f32 %v3554_v48, %v3553_v43  ;;  %v4136_v13 = vpack.c.bf16 %v3352_v45, %v3352_v45  ;;  %v3615_v38 = vmul.f32 %v3352_v45, %v3352_v45  ;;  %v3558_v63 = vsel %vm3530_vm4, %v3351_v60, 0.0 }
 0x25c   : > { %v2938_v5 = vadd.f32 %v2937_v9, %v5664_v2  ;;  %v4381_v34 = vpop.f32.mrf.mxu0  ;;  %v3654_v29 = vadd.f32 %v3653_v42, %v3652_v47  ;;  %v4134_v22 = vpack.c.bf16 %v3350_v7, %v3350_v7  ;;  %v3556_v21 = vsel %vm3530_vm4, %v3350_v7, 0.0 }
 0x25d   : > { %v4345_v3 = vpop.f32.mrf.mxu1  ;;  %v3613_v35 = vmul.f32 %v3350_v7, %v3350_v7  ;;  %3513 = vst.msk [vmem:[%s5719_s11 + $0x3c] sm:$0xf] %vm3497_vm2, %v4136_v13  ;;  %v3557_v51 = vadd.f32 %v3556_v21, %v3555_v14  ;;  %v3355_v0 = vadd.f32 %v4380_v41, %v2946_v15  ;;  %v3659_v17 = vsel %vm3530_vm4, %v3614_v37, 0.0 }
 0x25e   : > { %v3277_v53 = vpop.f32.mrf.mxu0  ;;  %v3656_v40 = vadd.f32 %v3655_v33, %v3654_v29  ;;  %v3353_v2 = vadd.f32 %v3274_v19, %v2938_v5  ;;  %3511 = vst.msk [vmem:[%s5719_s11 + $0x34] sm:$0xf] %vm3497_vm2, %v4134_v22  ;;  %v2949_v58 = vadd.f32 %v4345_v3, %v5666_v26  ;;  %v3560_v31 = vsel %vm3530_vm4, %v3352_v45, 0.0 }
 0x25f   : > { %v2940_v23 = vpop.f32.mrf.mxu1  ;;  %v3657_v24 = vsel %vm3530_vm4, %v3613_v35, 0.0  ;;  %v3559_v18 = vadd.f32 %v3558_v63, %v3557_v51  ;;  %v4139_v46 = vpack.c.bf16 %v3355_v0, %v3355_v0  ;;  %v3661_v60 = vsel %vm3530_vm4, %v3615_v38, 0.0 }
 0x260   : > { %v2941_v8 = vadd.f32 %v2940_v23, %v5668_v1  ;;  %v4384_v61 = vpop.f32.mrf.mxu0  ;;  %v3658_v20 = vadd.f32 %v3657_v24, %v3656_v40  ;;  %v4137_v32 = vpack.c.bf16 %v3353_v2, %v3353_v2  ;;  %v3616_v62 = vmul.f32 %v3353_v2, %v3353_v2 }
 0x261   : > { %v4348_v25 = vpop.f32.mrf.mxu1  ;;  %3516 = vst.msk [vmem:[%s5719_s11 + $0x48] sm:$0xf] %vm3497_vm2, %v4139_v46  ;;  %v3561_v26 = vadd.f32 %v3560_v31, %v3559_v18  ;;  %v3356_v1 = vadd.f32 %v4381_v34, %v2949_v58  ;;  %v3618_v39 = vmul.f32 %v3355_v0, %v3355_v0  ;;  %v3562_v44 = vsel %vm3530_vm4, %v3353_v2, 0.0 }
 0x262   : > { %v3290_v41 = vpop.f32.mrf.mxu0  ;;  %v3660_v11 = vadd.f32 %v3659_v17, %v3658_v20  ;;  %v3354_v56 = vadd.f32 %v3277_v53, %v2941_v8  ;;  %3514 = vst.msk [vmem:[%s5719_s11 + $0x40] sm:$0xf] %vm3497_vm2, %v4137_v32  ;;  %v2962_v59 = vadd.f32 %v4348_v25, %v5670_v27  ;;  %v3663_v47 = vsel %vm3530_vm4, %v3616_v62, 0.0 }
 0x263   : > { %v2953_v10 = vpop.f32.mrf.mxu1  ;;  %v3563_v6 = vadd.f32 %v3562_v44, %v3561_v26  ;;  %v4140_v43 = vpack.c.bf16 %v3356_v1, %v3356_v1  ;;  %v3619_v7 = vmul.f32 %v3356_v1, %v3356_v1  ;;  %v3566_v29 = vsel %vm3530_vm4, %v3355_v0, 0.0 }
 0x264   : > { %v2954_v42 = vadd.f32 %v2953_v10, %v5672_v12  ;;  %v4385_v52 = vpop.f32.mrf.mxu0  ;;  %v3662_v19 = vadd.f32 %v3661_v60, %v3660_v11  ;;  %v4138_v9 = vpack.c.bf16 %v3354_v56, %v3354_v56  ;;  %v3564_v37 = vsel %vm3530_vm4, %v3354_v56, 0.0 }
 0x265   : > { %v4349_v45 = vpop.f32.mrf.mxu1  ;;  %v3617_v48 = vmul.f32 %v3354_v56, %v3354_v56  ;;  %3517 = vst.msk [vmem:[%s5719_s11 + $0x4c] sm:$0xf] %vm3497_vm2, %v4140_v43  ;;  %v3565_v27 = vadd.f32 %v3564_v37, %v3563_v6  ;;  %v3359_v34 = vadd.f32 %v4384_v61, %v2962_v59  ;;  %v3667_v22 = vsel %vm3530_vm4, %v3618_v39, 0.0 }
 0x266   : > { %v3293_v15 = vpop.f32.mrf.mxu0  ;;  %v3664_v5 = vadd.f32 %v3663_v47, %v3662_v19  ;;  %v3357_v12 = vadd.f32 %v3290_v41, %v2954_v42  ;;  %3515 = vst.msk [vmem:[%s5719_s11 + $0x44] sm:$0xf] %vm3497_vm2, %v4138_v9  ;;  %v2965_v13 = vadd.f32 %v4349_v45, %v5674_v30  ;;  %v3568_v51 = vsel %vm3530_vm4, %v3356_v1, 0.0 }
 0x267   : > { %v2956_v14 = vpop.f32.mrf.mxu1  ;;  %v3665_v33 = vsel %vm3530_vm4, %v3617_v48, 0.0  ;;  %v3567_v21 = vadd.f32 %v3566_v29, %v3565_v27  ;;  %v4143_v53 = vpack.c.bf16 %v3359_v34, %v3359_v34  ;;  %v3669_v0 = vsel %vm3530_vm4, %v3619_v7, 0.0 }
 0x268   : > { %v2957_v3 = vadd.f32 %v2956_v14, %v5676_v4  ;;  %v4388_v38 = vpop.f32.mrf.mxu0  ;;  %v3666_v35 = vadd.f32 %v3665_v33, %v3664_v5  ;;  %v4141_v2 = vpack.c.bf16 %v3357_v12, %v3357_v12  ;;  %v3620_v23 = vmul.f32 %v3357_v12, %v3357_v12 }
 0x269   : > { %v4352_v40 = vpop.f32.mrf.mxu1  ;;  %3520 = vst.msk [vmem:[%s5719_s11 + $0x58] sm:$0xf] %vm3497_vm2, %v4143_v53  ;;  %v3569_v30 = vadd.f32 %v3568_v51, %v3567_v21  ;;  %v3360_v4 = vadd.f32 %v4385_v52, %v2965_v13  ;;  %v3622_v61 = vmul.f32 %v3359_v34, %v3359_v34  ;;  %v3570_v17 = vsel %vm3530_vm4, %v3357_v12, 0.0 }
 0x26a   : > { %v3306_v63 = vpop.f32.mrf.mxu0  ;;  %v3668_v24 = vadd.f32 %v3667_v22, %v3666_v35  ;;  %v3358_v58 = vadd.f32 %v3293_v15, %v2957_v3  ;;  %3518 = vst.msk [vmem:[%s5719_s11 + $0x50] sm:$0xf] %vm3497_vm2, %v4141_v2  ;;  %v2978_v18 = vadd.f32 %v4352_v40, %v5680_v55  ;;  %v3671_v60 = vsel %vm3530_vm4, %v3620_v23, 0.0 }
 0x26b   : > { %v2969_v8 = vpop.f32.mrf.mxu1  ;;  %v3571_v25 = vadd.f32 %v3570_v17, %v3569_v30  ;;  %v4144_v32 = vpack.c.bf16 %v3360_v4, %v3360_v4  ;;  %v3623_v41 = vmul.f32 %v3360_v4, %v3360_v4  ;;  %v3574_v59 = vsel %vm3530_vm4, %v3359_v34, 0.0 }
 0x26c   : > { %v2970_v20 = vadd.f32 %v2969_v8, %v5684_v36  ;;  %v4389_v46 = vpop.f32.mrf.mxu0  ;;  %v3670_v31 = vadd.f32 %v3669_v0, %v3668_v24  ;;  %v4142_v11 = vpack.c.bf16 %v3358_v58, %v3358_v58  ;;  %v3572_v26 = vsel %vm3530_vm4, %v3358_v58, 0.0 }
 0x26d   : > { %v4353_v62 = vpop.f32.mrf.mxu1  ;;  %v3621_v1 = vmul.f32 %v3358_v58, %v3358_v58  ;;  %3521 = vst.msk [vmem:[%s5719_s11 + $0x5c] sm:$0xf] %vm3497_vm2, %v4144_v32  ;;  %v3573_v55 = vadd.f32 %v3572_v26, %v3571_v25  ;;  %v3363_v39 = vadd.f32 %v4388_v38, %v2978_v18  ;;  %v3675_v47 = vsel %vm3530_vm4, %v3622_v61, 0.0 }
 0x26e   : > { %v3309_v56 = vpop.f32.mrf.mxu0  ;;  %v3672_v10 = vadd.f32 %v3671_v60, %v3670_v31  ;;  %v3361_v36 = vadd.f32 %v3306_v63, %v2970_v20  ;;  %3519 = vst.msk [vmem:[%s5719_s11 + $0x54] sm:$0xf] %vm3497_vm2, %v4142_v11  ;;  %v2981_v52 = vadd.f32 %v4353_v62, %v5688_v28  ;;  %v3576_v37 = vsel %vm3530_vm4, %v3360_v4, 0.0 }
 0x26f   : > { %v2972_v44 = vpop.f32.mrf.mxu1  ;;  %v3673_v42 = vsel %vm3530_vm4, %v3621_v1, 0.0  ;;  %v3575_v43 = vadd.f32 %v3574_v59, %v3573_v55  ;;  %v4147_v7 = vpack.c.bf16 %v3363_v39, %v3363_v39  ;;  %v3677_v48 = vsel %vm3530_vm4, %v3623_v41, 0.0 }
 0x270   : > { %v2973_v6 = vadd.f32 %v2972_v44, %v5692_v50  ;;  %v4392_v19 = vpop.f32.mrf.mxu0  ;;  %v3674_v45 = vadd.f32 %v3673_v42, %v3672_v10  ;;  %v4145_v15 = vpack.c.bf16 %v3361_v36, %v3361_v36  ;;  %v3624_v5 = vmul.f32 %v3361_v36, %v3361_v36 }
 0x271   : > { %v4356_v9 = vpop.f32.mrf.mxu1  ;;  %3524 = vst.msk [vmem:[%s5719_s11 + $0x68] sm:$0xf] %vm3497_vm2, %v4147_v7  ;;  %v3577_v28 = vadd.f32 %v3576_v37, %v3575_v43  ;;  %v3364_v50 = vadd.f32 %v4389_v46, %v2981_v52  ;;  %v3582_v29 = vsel %vm3530_vm4, %v3363_v39, 0.0  ;;  %v3578_v33 = vsel %vm3530_vm4, %v3361_v36, 0.0 }
 0x272   : > { %v3322_v27 = vpop.f32.mrf.mxu0  ;;  %v3676_v34 = vadd.f32 %v3675_v47, %v3674_v45  ;;  %v3362_v12 = vadd.f32 %v3309_v56, %v2973_v6  ;;  %3522 = vst.msk [vmem:[%s5719_s11 + $0x60] sm:$0xf] %vm3497_vm2, %v4145_v15  ;;  %v2994_v13 = vadd.f32 %v4356_v9, %v5696_v54  ;;  %v3626_v38 = vmul.f32 %v3363_v39, %v3363_v39 }
 0x273   : > { %v2985_v14 = vpop.f32.mrf.mxu1  ;;  %v3579_v22 = vadd.f32 %v3578_v33, %v3577_v28  ;;  %v4148_v35 = vpack.c.bf16 %v3364_v50, %v3364_v50  ;;  %v3679_v40 = vsel %vm3530_vm4, %v3624_v5, 0.0  ;;  %v3627_v4 = vmul.f32 %v3364_v50, %v3364_v50 }
 0x274   : > { %v2986_v3 = vadd.f32 %v2985_v14, %v5700_v16  ;;  %v3678_v21 = vadd.f32 %v3677_v48, %v3676_v34  ;;  %v4146_v51 = vpack.c.bf16 %v3362_v12, %v3362_v12  ;;  %v3580_v0 = vsel %vm3530_vm4, %v3362_v12, 0.0  ;;  %v4393_v23 = vpop.f32.mrf.mxu0 }
 0x275   : > { %v4357_v53 = vpop.f32.mrf.mxu1  ;;  %v3625_v2 = vmul.f32 %v3362_v12, %v3362_v12  ;;  %3525 = vst.msk [vmem:[%s5719_s11 + $0x6c] sm:$0xf] %vm3497_vm2, %v4148_v35  ;;  %v3581_v24 = vadd.f32 %v3580_v0, %v3579_v22  ;;  %v3367_v54 = vadd.f32 %v4392_v19, %v2994_v13  ;;  %v3683_v46 = vsel %vm3530_vm4, %v3626_v38, 0.0 }
 0x276   : > { %v3680_v63 = vadd.f32 %v3679_v40, %v3678_v21  ;;  %v3365_v30 = vadd.f32 %v3322_v27, %v2986_v3  ;;  %3523 = vst.msk [vmem:[%s5719_s11 + $0x64] sm:$0xf] %vm3497_vm2, %v4146_v51  ;;  %v2997_v8 = vadd.f32 %v4357_v53, %v5706_v49  ;;  %v3584_v25 = vsel %vm3530_vm4, %v3364_v50, 0.0  ;;  %v3325_v32 = vpop.f32.mrf.mxu0 }
 0x277   : > { %v2988_v16 = vpop.f32.mrf.mxu1  ;;  %v3681_v58 = vsel %vm3530_vm4, %v3625_v2, 0.0  ;;  %v3583_v17 = vadd.f32 %v3582_v29, %v3581_v24  ;;  %v4151_v20 = vpack.c.bf16 %v3367_v54, %v3367_v54  ;;  %v3685_v26 = vsel %vm3530_vm4, %v3627_v4, 0.0 }
 0x278   : > { %v2989_v61 = vadd.f32 %v2988_v16, %v5712_v57  ;;  %v3682_v18 = vadd.f32 %v3681_v58, %v3680_v63  ;;  %v4149_v31 = vpack.c.bf16 %v3365_v30, %v3365_v30  ;;  %v3628_v60 = vmul.f32 %v3365_v30, %v3365_v30 }
 0x279   : > { %3528 = vst.msk [vmem:[%s5719_s11 + $0x78] sm:$0xf] %vm3497_vm2, %v4151_v20  ;;  %v3585_v41 = vadd.f32 %v3584_v25, %v3583_v17  ;;  %v3368_v11 = vadd.f32 %v4393_v23, %v2997_v8  ;;  %v3586_v57 = vsel %vm3530_vm4, %v3365_v30, 0.0  ;;  %v3630_v1 = vmul.f32 %v3367_v54, %v3367_v54 }
 0x27a   : > { %v3684_v62 = vadd.f32 %v3683_v46, %v3682_v18  ;;  %v3366_v49 = vadd.f32 %v3325_v32, %v2989_v61  ;;  %3526 = vst.msk [vmem:[%s5719_s11 + $0x70] sm:$0xf] %vm3497_vm2, %v4149_v31  ;;  %v3687_v39 = vsel %vm3530_vm4, %v3628_v60, 0.0  ;;  %v3590_v6 = vsel %vm3530_vm4, %v3367_v54, 0.0 }
 0x27b   : > { %v3587_v56 = vadd.f32 %v3586_v57, %v3585_v41  ;;  %v4152_v55 = vpack.c.bf16 %v3368_v11, %v3368_v11  ;;  %v3631_v19 = vmul.f32 %v3368_v11, %v3368_v11  ;;  %v3691_v7 = vsel %vm3530_vm4, %v3630_v1, 0.0 }
 0x27c   : > { %v3686_v10 = vadd.f32 %v3685_v26, %v3684_v62  ;;  %v4150_v36 = vpack.c.bf16 %v3366_v49, %v3366_v49  ;;  %v3588_v44 = vsel %vm3530_vm4, %v3366_v49, 0.0  ;;  %v3629_v59 = vmul.f32 %v3366_v49, %v3366_v49 }
 0x27d   : > { %3529 = vst.msk [vmem:[%s5719_s11 + $0x7c] sm:$0xf] %vm3497_vm2, %v4152_v55  ;;  %v3589_v52 = vadd.f32 %v3588_v44, %v3587_v56  ;;  %v3592_v9 = vsel %vm3530_vm4, %v3368_v11, 0.0  ;;  %v3693_v15 = vsel %vm3530_vm4, %v3631_v19, 0.0  ;;  %v3701_v50 = vlaneseq }
 0x27e   : > { %v3688_v42 = vadd.f32 %v3687_v39, %v3686_v10  ;;  %3527 = vst.msk [vmem:[%s5719_s11 + $0x74] sm:$0xf] %vm3497_vm2, %v4150_v36  ;;  %v3689_v47 = vsel %vm3530_vm4, %v3629_v59, 0.0 }
 0x27f   : > { %v3591_v43 = vadd.f32 %v3590_v6, %v3589_v52  ;;  %v3702_v13 = vshrl.u32 %v3701_v50, 7 }
 0x280   : > { %v3690_v45 = vadd.f32 %v3689_v47, %v3688_v42 }
 0x281   : > { %v3593_v37 = vadd.f32 %v3592_v9, %v3591_v43  ;;  %vm3704_vm5 = vcmp.eq.s32.totalorder %v3702_v13, 1  ;;  %vm3703_vm6 = vcmp.eq.s32.totalorder %v3702_v13, 0 }
 0x282   : > { %v3692_v48 = vadd.f32 %v3691_v7, %v3690_v45 }
 0x283   : > { %v3594_v5 = vrot.slane %v3593_v37, 4 }
 0x284   : > { %v3694_v27 = vadd.f32 %v3693_v15, %v3692_v48 }
 0x285   : > { %v3595_v34 = vadd.f32 %v3594_v5, %v3593_v37 }
 0x286   : > { %v3695_v28 = vrot.slane %v3694_v27, 4 }
 0x287   : > { %v3596_v12 = vrot.slane %v3595_v34, 2 }
 0x288   : > { %v3696_v14 = vadd.f32 %v3695_v28, %v3694_v27 }
 0x289   : > { %v3597_v29 = vadd.f32 %v3596_v12, %v3595_v34 }
 0x28a   : > { %v3697_v33 = vrot.slane %v3696_v14, 2 }
 0x28b   : > { %v3598_v38 = vrot.slane %v3597_v29, 1 }
 0x28c   : > { %v3698_v3 = vadd.f32 %v3697_v33, %v3696_v14 }
 0x28d   : > { %v3599_v35 = vadd.f32 %v3598_v38, %v3597_v29 }
 0x28e   : > { %v3699_v22 = vrot.slane %v3698_v3, 1 }
 0x290   : > { %v3700_v21 = vadd.f32 %v3699_v22, %v3698_v3 }
 0x292   : > { %v3705_v53 = vsel %vm3704_vm5, %v3700_v21, 0.0 }
 0x293   : > { %v3706_v40 = vsel %vm3703_vm6, %v3599_v35, %v3705_v53 }
 0x294   : > { %3707 = vst.msk [vmem:[%s465_s14] sm:$0xff] %vm3530_vm4, %v3706_v40 }
 0x295 PF: > { %s18_s2 = sadd.s32 1, %s4492_s2   ;;  %s5909_s24 = smov %s4488_s25 }
 0x296   : > { %p15_p5 = scmp.ge.s32.totalorder %s18_s2, 4   ;;  %s5910_s25 = smov %s5912_s4 }
 0x298   :  { %17 = sbr.rel (!%p15_p5) target bundleno = 2 (0x2), region = 96 }

</bundles_post_ra>
